<compile_context>
chip_gen: v6e
topology: v6e:2x2x1
jax: 0.10.0
libtpu: 0.0.40
codegen_flags: <defaults>
</compile_context>

<pallas_src>
import math
import functools

import jax
import jax.numpy as jnp
from jax.experimental import pallas as pl
from jax.experimental.pallas import tpu as pltpu


def _round_up(x, m):
    return (x + m - 1) // m * m


def _is_v7x():
    try:
        kind = jax.devices()[0].device_kind.lower()
    except Exception:
        return False
    return ("v7" in kind) or ("7x" in kind)


# ----------------------------------------------------------------------------
# Fused window multi-head self-attention kernel
# ----------------------------------------------------------------------------

def _window_mha_kernel(x_ref, wqkv_ref, bqkv_ref, wo_ref, bo_ref, o_ref, o_scr, *,
                       num_heads, head_dim):
    """Fused per-window MHA for one tile of windows.

    x_ref:    (WB, L, Cp)    bf16  window tokens, channels-last (lane-dense)
    wqkv_ref: (Cp, 3*Cp)     bf16  packed [Wq^T*scale | Wk^T | Wv^T] (zero-padded)
    bqkv_ref: (1, 3*Cp)      f32   packed in_proj bias (q part pre-scaled)
    wo_ref:   (Cp, Cp)       bf16  out_proj weight^T (zero-padded)
    bo_ref:   (1, Cp)        f32   out_proj bias
    o_ref:    (WB, L, Cp)    bf16  output window tokens
    o_scr:    (WB*L, Cp)     bf16  VMEM scratch holding all heads' attention outputs
    """
    WB, L, Cp = x_ref.shape
    C = num_heads * head_dim
    xm = x_ref[...].reshape(WB * L, Cp)                                  # bf16

    # Fused QKV projection (bf16 MXU, f32 accumulate), bias epilogue, ONE bf16 cast.
    qkv = jnp.dot(xm, wqkv_ref[...], preferred_element_type=jnp.float32)
    qkv = (qkv + bqkv_ref[...]).astype(jnp.bfloat16)                     # (WB*L, 3*Cp)

    if Cp > C:   # keep padded lanes of the scratch clean (scratch is uninitialized)
        o_scr[:, C:] = jnp.zeros((WB * L, Cp - C), jnp.bfloat16)

    for h in range(num_heads):                                           # static unroll
        lo = h * head_dim
        hi = lo + head_dim
        q = qkv[:, lo:hi].reshape(WB, L, head_dim)
        k = qkv[:, Cp + lo:Cp + hi].reshape(WB, L, head_dim)
        v = qkv[:, 2 * Cp + lo:2 * Cp + hi].reshape(WB, L, head_dim)

        # scores over key positions within each window (scale pre-folded into Q).
        s = jnp.einsum("wld,wmd->wlm", q, k,
                       preferred_element_type=jnp.float32)               # (WB, L, L)
        m = jnp.max(s, axis=-1, keepdims=True)
        e = jnp.exp(s - m)
        denom = jnp.sum(e, axis=-1, keepdims=True)
        p = (e * pl.reciprocal(denom)).astype(jnp.bfloat16)              # exact recip

        o_h = jnp.einsum("wlm,wmd->wld", p, v,
                         preferred_element_type=jnp.float32)             # (WB, L, hd)
        o_scr[:, lo:hi] = o_h.reshape(WB * L, head_dim).astype(jnp.bfloat16)

    # Single full-K output projection (K = Cp) on the MXU, f32 accumulate + bias.
    out = jnp.dot(o_scr[...], wo_ref[...],
                  preferred_element_type=jnp.float32) + bo_ref[...]
    o_ref[...] = out.reshape(WB, L, Cp).astype(o_ref.dtype)


# ----------------------------------------------------------------------------
# Parameter packing (nn.MultiheadAttention layout -> padded, transposed, bf16)
# ----------------------------------------------------------------------------

def _pack_padded_weights(params, C, Cp, scale):
    wq, wk, wv = jnp.split(params["in_proj_weight"].astype(jnp.float32), 3, axis=0)
    bq, bk, bv = jnp.split(params["in_proj_bias"].astype(jnp.float32), 3)
    wq = wq * scale                     # fold 1/sqrt(head_dim) into the Q projection
    bq = bq * scale

    wqkv = jnp.zeros((Cp, 3 * Cp), jnp.float32)
    bqkv = jnp.zeros((1, 3 * Cp), jnp.float32)
    for idx, (wpart, bpart) in enumerate(((wq, bq), (wk, bk), (wv, bv))):
        wqkv = wqkv.at[:C, idx * Cp:idx * Cp + C].set(wpart.T)
        bqkv = bqkv.at[0, idx * Cp:idx * Cp + C].set(bpart)

    wo = jnp.zeros((Cp, Cp), jnp.float32).at[:C, :C].set(
        params["out_proj_weight"].astype(jnp.float32).T)
    bo = jnp.zeros((1, Cp), jnp.float32).at[0, :C].set(
        params["out_proj_bias"].astype(jnp.float32))

    return (wqkv.astype(jnp.bfloat16), bqkv, wo.astype(jnp.bfloat16), bo)


# ----------------------------------------------------------------------------
# Forward wrapper (window partition -> fused kernel -> window merge)
# ----------------------------------------------------------------------------

def window_attention_forward(params, x, *, window_size, num_heads,
                             windows_per_tile=None):
    N, C, H, W = x.shape
    ws = window_size
    assert H % ws == 0 and W % ws == 0, "H, W must be divisible by window_size"
    assert C % num_heads == 0, "dim must be divisible by num_heads"
    Hn, Wn = H // ws, W // ws
    L = ws * ws
    NW = N * Hn * Wn
    head_dim = C // num_heads
    scale = 1.0 / math.sqrt(head_dim)

    # --- window partition in bf16 (same layout as the module's view/permute) ---
    xw = x.astype(jnp.bfloat16).reshape(N, C, Hn, ws, Wn, ws)
    xw = xw.transpose(0, 2, 4, 3, 5, 1).reshape(NW, L, C)                # (NW, L, C)

    # --- pad channels to a lane-dense multiple of 128 ---
    Cp = max(128, _round_up(C, 128))
    wqkv, bqkv, wo, bo = _pack_padded_weights(params, C, Cp, scale)
    if Cp != C:
        xw = jnp.pad(xw, ((0, 0), (0, 0), (0, Cp - C)))

    # --- tile windows: ~2048 token rows per step (v5e/v6e) / ~1024 (v7x),
    #     keeping at least 2 grid steps so megacore sharding has work to split ---
    v7 = _is_v7x()
    if windows_per_tile is None:
        target_rows = 1024 if v7 else 2048
        windows_per_tile = max(1, min(target_rows // L, pl.cdiv(NW, 2)))
    WB = max(1, min(windows_per_tile, NW))
    NWp = _round_up(NW, WB)
    if NWp != NW:
        xw = jnp.pad(xw, ((0, NWp - NW), (0, 0), (0, 0)))

    kernel = functools.partial(_window_mha_kernel, num_heads=num_heads,
                               head_dim=head_dim)
    out = pl.pallas_call(
        kernel,
        grid=(NWp // WB,),
        in_specs=[
            pl.BlockSpec((WB, L, Cp), lambda i: (i, 0, 0)),
            pl.BlockSpec((Cp, 3 * Cp), lambda i: (0, 0)),
            pl.BlockSpec((1, 3 * Cp), lambda i: (0, 0)),
            pl.BlockSpec((Cp, Cp), lambda i: (0, 0)),
            pl.BlockSpec((1, Cp), lambda i: (0, 0)),
        ],
        out_specs=pl.BlockSpec((WB, L, Cp), lambda i: (i, 0, 0)),
        out_shape=jax.ShapeDtypeStruct((NWp, L, Cp), jnp.bfloat16),
        scratch_shapes=[pltpu.VMEM((WB * L, Cp), jnp.bfloat16)],
        compiler_params=pltpu.CompilerParams(
            dimension_semantics=("parallel",),
            vmem_limit_bytes=(40 if v7 else 64) * 1024 * 1024,
        ),
    )(xw, wqkv, bqkv, wo, bo)

    out = out[:NW, :, :C]
    # --- window merge in bf16 (reverse of the module's view/permute) ---
    out = out.reshape(N, Hn, Wn, ws, ws, C)
    out = out.transpose(0, 5, 1, 3, 2, 4).reshape(N, C, H, W)
    return out.astype(x.dtype)   # final cast fuses with the merge copy


# ----------------------------------------------------------------------------
# Pure-JAX f32 reference (sanity check against the kernel)
# ----------------------------------------------------------------------------

def window_attention_reference(params, x, *, window_size, num_heads):
    N, C, H, W = x.shape
    ws = window_size
    Hn, Wn = H // ws, W // ws
    L = ws * ws
    hd = C // num_heads
    hp = jax.lax.Precision.HIGHEST

    xw = x.astype(jnp.float32).reshape(N, C, Hn, ws, Wn, ws)
    xw = xw.transpose(0, 2, 4, 3, 5, 1).reshape(-1, L, C)

    wq, wk, wv = jnp.split(params["in_proj_weight"], 3, axis=0)
    bq, bk, bv = jnp.split(params["in_proj_bias"], 3)
    q = jnp.einsum("blc,dc->bld", xw, wq, precision=hp) + bq
    k = jnp.einsum("blc,dc->bld", xw, wk, precision=hp) + bk
    v = jnp.einsum("blc,dc->bld", xw, wv, precision=hp) + bv

    def split_heads(t):
        return t.reshape(-1, L, num_heads, hd).transpose(0, 2, 1, 3)

    q, k, v = split_heads(q), split_heads(k), split_heads(v)
    s = jnp.einsum("bhld,bhmd->bhlm", q, k, precision=hp) / math.sqrt(hd)
    p = jax.nn.softmax(s, axis=-1)
    o = jnp.einsum("bhlm,bhmd->bhld", p, v, precision=hp)
    o = o.transpose(0, 2, 1, 3).reshape(-1, L, C)
    o = jnp.einsum("blc,dc->bld", o, params["out_proj_weight"], precision=hp)
    o = o + params["out_proj_bias"]
    o = o.reshape(N, Hn, Wn, ws, ws, C).transpose(0, 5, 1, 3, 2, 4).reshape(N, C, H, W)
    return o


def init_params(key, dim):
    """nn.MultiheadAttention-style init: xavier-uniform in_proj, zero biases."""
    k1, k2 = jax.random.split(key)
    bound_in = math.sqrt(6.0 / (dim + dim))
    bound_out = 1.0 / math.sqrt(dim)
    return {
        "in_proj_weight": jax.random.uniform(k1, (3 * dim, dim), jnp.float32,
                                             -bound_in, bound_in),
        "in_proj_bias": jnp.zeros((3 * dim,), jnp.float32),
        "out_proj_weight": jax.random.uniform(k2, (dim, dim), jnp.float32,
                                              -bound_out, bound_out),
        "out_proj_bias": jnp.zeros((dim,), jnp.float32),
    }


# ----------------------------------------------------------------------------
# Demo
# ----------------------------------------------------------------------------

if __name__ == "__main__":
    key = jax.random.PRNGKey(0)
    k_x, k_w = jax.random.split(key)

    N, C, H, W = 2, 128, 16, 16
    window_size = 8
    num_heads = 4

    x = jax.random.normal(k_x, (N, C, H, W), jnp.float32)
    params = init_params(k_w, C)

    fwd = jax.jit(functools.partial(window_attention_forward,
                                    window_size=window_size, num_heads=num_heads))
    out = jax.block_until_ready(fwd(params, x))

    assert out.shape == (N, C, H, W), out.shape
    assert bool(jnp.all(jnp.isfinite(out)))

    # sanity check against an f32 reference (kernel runs bf16 on the MXU, bf16 I/O)
    ref = window_attention_reference(params, x, window_size=window_size,
                                     num_heads=num_heads)
    max_err = float(jnp.max(jnp.abs(out.astype(jnp.float32) - ref)))
    assert max_err < 0.25, f"max abs error vs reference: {max_err}"

    print("KERNEL_OK")
</pallas_src>

<mosaic_0001>
module attributes {stable_mosaic.version = 11 : i64} {
  func.func @_window_mha_kernel(%arg0: i32, %arg1: memref<4x64x128xbf16, #tpu.memory_space<vmem>>, %arg2: memref<128x384xbf16, #tpu.memory_space<vmem>>, %arg3: memref<1x384xf32, #tpu.memory_space<vmem>>, %arg4: memref<128x128xbf16, #tpu.memory_space<vmem>>, %arg5: memref<1x128xf32, #tpu.memory_space<vmem>>, %arg6: memref<4x64x128xbf16, #tpu.memory_space<vmem>>, %arg7: memref<256x128xbf16, #tpu.memory_space<vmem>>) attributes {dimension_semantics = [#tpu.dimension_semantics<parallel>], iteration_bounds = array<i64: 2>, scalar_prefetch = 0 : i64, scratch_operands = 1 : i64, tpu.core_type = #tpu.core_type<tc>, window_params = [{transform_indices = @transform_0, window_bounds = array<i64: 4, 64, 128>}, {pipeline_mode = #tpu.pipeline_mode<synchronous>, transform_indices = @transform_1, window_bounds = array<i64: 128, 384>}, {pipeline_mode = #tpu.pipeline_mode<synchronous>, transform_indices = @transform_2, window_bounds = array<i64: 1, 384>}, {pipeline_mode = #tpu.pipeline_mode<synchronous>, transform_indices = @transform_3, window_bounds = array<i64: 128, 128>}, {pipeline_mode = #tpu.pipeline_mode<synchronous>, transform_indices = @transform_4, window_bounds = array<i64: 1, 128>}, {transform_indices = @transform_5, window_bounds = array<i64: 4, 64, 128>}]} {
    %c0 = arith.constant 0 : index
    %c0_0 = arith.constant 0 : index
    %c0_1 = arith.constant 0 : index
    %0 = vector.load %arg1[%c0, %c0_0, %c0_1] : memref<4x64x128xbf16, #tpu.memory_space<vmem>>, vector<4x64x128xbf16>
    %1 = vector.shape_cast %0 : vector<4x64x128xbf16> to vector<256x128xbf16>
    %c0_2 = arith.constant 0 : index
    %c0_3 = arith.constant 0 : index
    %2 = vector.load %arg2[%c0_2, %c0_3] : memref<128x384xbf16, #tpu.memory_space<vmem>>, vector<128x384xbf16>
    %cst = arith.constant dense<0.000000e+00> : vector<256x384xf32>
    %3 = tpu.matmul %1, %2, %cst {dimension_numbers = #tpu.dot_dimension_numbers<[1], [0], [0], [1], [0, 0, 1, 1], [], []>} : vector<256x128xbf16>, vector<128x384xbf16>, vector<256x384xf32> -> vector<256x384xf32>
    %c0_4 = arith.constant 0 : index
    %c0_5 = arith.constant 0 : index
    %4 = vector.load %arg3[%c0_4, %c0_5] : memref<1x384xf32, #tpu.memory_space<vmem>>, vector<1x384xf32>
    %5 = vector.broadcast %4 : vector<1x384xf32> to vector<256x384xf32>
    %6 = arith.addf %3, %5 : vector<256x384xf32>
    %7 = arith.truncf %6 : vector<256x384xf32> to vector<256x384xbf16>
    %8 = vector.extract_strided_slice %7 {offsets = [0, 0], sizes = [256, 32], strides = [1, 1]} : vector<256x384xbf16> to vector<256x32xbf16>
    %9 = vector.shape_cast %8 : vector<256x32xbf16> to vector<4x64x32xbf16>
    %10 = vector.extract_strided_slice %7 {offsets = [0, 128], sizes = [256, 32], strides = [1, 1]} : vector<256x384xbf16> to vector<256x32xbf16>
    %11 = vector.shape_cast %10 : vector<256x32xbf16> to vector<4x64x32xbf16>
    %12 = vector.extract_strided_slice %7 {offsets = [0, 256], sizes = [256, 32], strides = [1, 1]} : vector<256x384xbf16> to vector<256x32xbf16>
    %13 = vector.shape_cast %12 : vector<256x32xbf16> to vector<4x64x32xbf16>
    "tpu.trace_start"() <{level = 10 : i32, message = "wld,wmd->wlm"}> : () -> ()
    %cst_6 = arith.constant dense<0.000000e+00> : vector<4x64x64xf32>
    %14 = tpu.matmul %9, %11, %cst_6 {dimension_numbers = #tpu.dot_dimension_numbers<[2], [2], [1], [1], [0, 0, 0, 1, 1, 1], [0], [0]>} : vector<4x64x32xbf16>, vector<4x64x32xbf16>, vector<4x64x64xf32> -> vector<4x64x64xf32>
    "tpu.trace_stop"() : () -> ()
    %cst_7 = arith.constant dense<0xFF800000> : vector<4x64xf32>
    %15 = vector.multi_reduction <maximumf>, %14, %cst_7 [2] : vector<4x64x64xf32> to vector<4x64xf32>
    %16 = vector.shape_cast %15 : vector<4x64xf32> to vector<4x64x1xf32>
    %17 = vector.broadcast %16 : vector<4x64x1xf32> to vector<4x64x64xf32>
    %18 = arith.subf %14, %17 : vector<4x64x64xf32>
    %19 = math.exp %18 : vector<4x64x64xf32>
    %cst_8 = arith.constant dense<0.000000e+00> : vector<4x64xf32>
    %20 = vector.multi_reduction <add>, %19, %cst_8 [2] : vector<4x64x64xf32> to vector<4x64xf32>
    %21 = vector.shape_cast %20 : vector<4x64xf32> to vector<4x64x1xf32>
    %22 = tpu.reciprocal %21 : vector<4x64x1xf32> -> vector<4x64x1xf32>
    %23 = vector.broadcast %22 : vector<4x64x1xf32> to vector<4x64x64xf32>
    %24 = arith.mulf %19, %23 : vector<4x64x64xf32>
    %25 = arith.truncf %24 : vector<4x64x64xf32> to vector<4x64x64xbf16>
    "tpu.trace_start"() <{level = 10 : i32, message = "wlm,wmd->wld"}> : () -> ()
    %cst_9 = arith.constant dense<0.000000e+00> : vector<4x64x32xf32>
    %26 = tpu.matmul %25, %13, %cst_9 {dimension_numbers = #tpu.dot_dimension_numbers<[2], [1], [1], [2], [0, 0, 0, 1, 1, 2], [0], [0]>} : vector<4x64x64xbf16>, vector<4x64x32xbf16>, vector<4x64x32xf32> -> vector<4x64x32xf32>
    "tpu.trace_stop"() : () -> ()
    %27 = vector.shape_cast %26 : vector<4x64x32xf32> to vector<256x32xf32>
    %28 = arith.truncf %27 : vector<256x32xf32> to vector<256x32xbf16>
    %c0_10 = arith.constant 0 : index
    %c0_11 = arith.constant 0 : index
    %29 = vector.load %arg7[%c0_10, %c0_11] : memref<256x128xbf16, #tpu.memory_space<vmem>>, vector<256x32xbf16>
    tpu.vector_store %arg7[%c0_10, %c0_11], %28 {strides = array<i32>} : memref<256x128xbf16, #tpu.memory_space<vmem>>, vector<256x32xbf16>,
    %30 = vector.extract_strided_slice %7 {offsets = [0, 32], sizes = [256, 32], strides = [1, 1]} : vector<256x384xbf16> to vector<256x32xbf16>
    %31 = vector.shape_cast %30 : vector<256x32xbf16> to vector<4x64x32xbf16>
    %32 = vector.extract_strided_slice %7 {offsets = [0, 160], sizes = [256, 32], strides = [1, 1]} : vector<256x384xbf16> to vector<256x32xbf16>
    %33 = vector.shape_cast %32 : vector<256x32xbf16> to vector<4x64x32xbf16>
    %34 = vector.extract_strided_slice %7 {offsets = [0, 288], sizes = [256, 32], strides = [1, 1]} : vector<256x384xbf16> to vector<256x32xbf16>
    %35 = vector.shape_cast %34 : vector<256x32xbf16> to vector<4x64x32xbf16>
    "tpu.trace_start"() <{level = 10 : i32, message = "wld,wmd->wlm"}> : () -> ()
    %cst_12 = arith.constant dense<0.000000e+00> : vector<4x64x64xf32>
    %36 = tpu.matmul %31, %33, %cst_12 {dimension_numbers = #tpu.dot_dimension_numbers<[2], [2], [1], [1], [0, 0, 0, 1, 1, 1], [0], [0]>} : vector<4x64x32xbf16>, vector<4x64x32xbf16>, vector<4x64x64xf32> -> vector<4x64x64xf32>
    "tpu.trace_stop"() : () -> ()
    %cst_13 = arith.constant dense<0xFF800000> : vector<4x64xf32>
    %37 = vector.multi_reduction <maximumf>, %36, %cst_13 [2] : vector<4x64x64xf32> to vector<4x64xf32>
    %38 = vector.shape_cast %37 : vector<4x64xf32> to vector<4x64x1xf32>
    %39 = vector.broadcast %38 : vector<4x64x1xf32> to vector<4x64x64xf32>
    %40 = arith.subf %36, %39 : vector<4x64x64xf32>
    %41 = math.exp %40 : vector<4x64x64xf32>
    %cst_14 = arith.constant dense<0.000000e+00> : vector<4x64xf32>
    %42 = vector.multi_reduction <add>, %41, %cst_14 [2] : vector<4x64x64xf32> to vector<4x64xf32>
    %43 = vector.shape_cast %42 : vector<4x64xf32> to vector<4x64x1xf32>
    %44 = tpu.reciprocal %43 : vector<4x64x1xf32> -> vector<4x64x1xf32>
    %45 = vector.broadcast %44 : vector<4x64x1xf32> to vector<4x64x64xf32>
    %46 = arith.mulf %41, %45 : vector<4x64x64xf32>
    %47 = arith.truncf %46 : vector<4x64x64xf32> to vector<4x64x64xbf16>
    "tpu.trace_start"() <{level = 10 : i32, message = "wlm,wmd->wld"}> : () -> ()
    %cst_15 = arith.constant dense<0.000000e+00> : vector<4x64x32xf32>
    %48 = tpu.matmul %47, %35, %cst_15 {dimension_numbers = #tpu.dot_dimension_numbers<[2], [1], [1], [2], [0, 0, 0, 1, 1, 2], [0], [0]>} : vector<4x64x64xbf16>, vector<4x64x32xbf16>, vector<4x64x32xf32> -> vector<4x64x32xf32>
    "tpu.trace_stop"() : () -> ()
    %49 = vector.shape_cast %48 : vector<4x64x32xf32> to vector<256x32xf32>
    %50 = arith.truncf %49 : vector<256x32xf32> to vector<256x32xbf16>
    %c0_16 = arith.constant 0 : index
    %c32 = arith.constant 32 : index
    %51 = vector.load %arg7[%c0_16, %c32] : memref<256x128xbf16, #tpu.memory_space<vmem>>, vector<256x32xbf16>
    tpu.vector_store %arg7[%c0_16, %c32], %50 {strides = array<i32>} : memref<256x128xbf16, #tpu.memory_space<vmem>>, vector<256x32xbf16>,
    %52 = vector.extract_strided_slice %7 {offsets = [0, 64], sizes = [256, 32], strides = [1, 1]} : vector<256x384xbf16> to vector<256x32xbf16>
    %53 = vector.shape_cast %52 : vector<256x32xbf16> to vector<4x64x32xbf16>
    %54 = vector.extract_strided_slice %7 {offsets = [0, 192], sizes = [256, 32], strides = [1, 1]} : vector<256x384xbf16> to vector<256x32xbf16>
    %55 = vector.shape_cast %54 : vector<256x32xbf16> to vector<4x64x32xbf16>
    %56 = vector.extract_strided_slice %7 {offsets = [0, 320], sizes = [256, 32], strides = [1, 1]} : vector<256x384xbf16> to vector<256x32xbf16>
    %57 = vector.shape_cast %56 : vector<256x32xbf16> to vector<4x64x32xbf16>
    "tpu.trace_start"() <{level = 10 : i32, message = "wld,wmd->wlm"}> : () -> ()
    %cst_17 = arith.constant dense<0.000000e+00> : vector<4x64x64xf32>
    %58 = tpu.matmul %53, %55, %cst_17 {dimension_numbers = #tpu.dot_dimension_numbers<[2], [2], [1], [1], [0, 0, 0, 1, 1, 1], [0], [0]>} : vector<4x64x32xbf16>, vector<4x64x32xbf16>, vector<4x64x64xf32> -> vector<4x64x64xf32>
    "tpu.trace_stop"() : () -> ()
    %cst_18 = arith.constant dense<0xFF800000> : vector<4x64xf32>
    %59 = vector.multi_reduction <maximumf>, %58, %cst_18 [2] : vector<4x64x64xf32> to vector<4x64xf32>
    %60 = vector.shape_cast %59 : vector<4x64xf32> to vector<4x64x1xf32>
    %61 = vector.broadcast %60 : vector<4x64x1xf32> to vector<4x64x64xf32>
    %62 = arith.subf %58, %61 : vector<4x64x64xf32>
    %63 = math.exp %62 : vector<4x64x64xf32>
    %cst_19 = arith.constant dense<0.000000e+00> : vector<4x64xf32>
    %64 = vector.multi_reduction <add>, %63, %cst_19 [2] : vector<4x64x64xf32> to vector<4x64xf32>
    %65 = vector.shape_cast %64 : vector<4x64xf32> to vector<4x64x1xf32>
    %66 = tpu.reciprocal %65 : vector<4x64x1xf32> -> vector<4x64x1xf32>
    %67 = vector.broadcast %66 : vector<4x64x1xf32> to vector<4x64x64xf32>
    %68 = arith.mulf %63, %67 : vector<4x64x64xf32>
    %69 = arith.truncf %68 : vector<4x64x64xf32> to vector<4x64x64xbf16>
    "tpu.trace_start"() <{level = 10 : i32, message = "wlm,wmd->wld"}> : () -> ()
    %cst_20 = arith.constant dense<0.000000e+00> : vector<4x64x32xf32>
    %70 = tpu.matmul %69, %57, %cst_20 {dimension_numbers = #tpu.dot_dimension_numbers<[2], [1], [1], [2], [0, 0, 0, 1, 1, 2], [0], [0]>} : vector<4x64x64xbf16>, vector<4x64x32xbf16>, vector<4x64x32xf32> -> vector<4x64x32xf32>
    "tpu.trace_stop"() : () -> ()
    %71 = vector.shape_cast %70 : vector<4x64x32xf32> to vector<256x32xf32>
    %72 = arith.truncf %71 : vector<256x32xf32> to vector<256x32xbf16>
    %c0_21 = arith.constant 0 : index
    %c64 = arith.constant 64 : index
    %73 = vector.load %arg7[%c0_21, %c64] : memref<256x128xbf16, #tpu.memory_space<vmem>>, vector<256x32xbf16>
    tpu.vector_store %arg7[%c0_21, %c64], %72 {strides = array<i32>} : memref<256x128xbf16, #tpu.memory_space<vmem>>, vector<256x32xbf16>,
    %74 = vector.extract_strided_slice %7 {offsets = [0, 96], sizes = [256, 32], strides = [1, 1]} : vector<256x384xbf16> to vector<256x32xbf16>
    %75 = vector.shape_cast %74 : vector<256x32xbf16> to vector<4x64x32xbf16>
    %76 = vector.extract_strided_slice %7 {offsets = [0, 224], sizes = [256, 32], strides = [1, 1]} : vector<256x384xbf16> to vector<256x32xbf16>
    %77 = vector.shape_cast %76 : vector<256x32xbf16> to vector<4x64x32xbf16>
    %78 = vector.extract_strided_slice %7 {offsets = [0, 352], sizes = [256, 32], strides = [1, 1]} : vector<256x384xbf16> to vector<256x32xbf16>
    %79 = vector.shape_cast %78 : vector<256x32xbf16> to vector<4x64x32xbf16>
    "tpu.trace_start"() <{level = 10 : i32, message = "wld,wmd->wlm"}> : () -> ()
    %cst_22 = arith.constant dense<0.000000e+00> : vector<4x64x64xf32>
    %80 = tpu.matmul %75, %77, %cst_22 {dimension_numbers = #tpu.dot_dimension_numbers<[2], [2], [1], [1], [0, 0, 0, 1, 1, 1], [0], [0]>} : vector<4x64x32xbf16>, vector<4x64x32xbf16>, vector<4x64x64xf32> -> vector<4x64x64xf32>
    "tpu.trace_stop"() : () -> ()
    %cst_23 = arith.constant dense<0xFF800000> : vector<4x64xf32>
    %81 = vector.multi_reduction <maximumf>, %80, %cst_23 [2] : vector<4x64x64xf32> to vector<4x64xf32>
    %82 = vector.shape_cast %81 : vector<4x64xf32> to vector<4x64x1xf32>
    %83 = vector.broadcast %82 : vector<4x64x1xf32> to vector<4x64x64xf32>
    %84 = arith.subf %80, %83 : vector<4x64x64xf32>
    %85 = math.exp %84 : vector<4x64x64xf32>
    %cst_24 = arith.constant dense<0.000000e+00> : vector<4x64xf32>
    %86 = vector.multi_reduction <add>, %85, %cst_24 [2] : vector<4x64x64xf32> to vector<4x64xf32>
    %87 = vector.shape_cast %86 : vector<4x64xf32> to vector<4x64x1xf32>
    %88 = tpu.reciprocal %87 : vector<4x64x1xf32> -> vector<4x64x1xf32>
    %89 = vector.broadcast %88 : vector<4x64x1xf32> to vector<4x64x64xf32>
    %90 = arith.mulf %85, %89 : vector<4x64x64xf32>
    %91 = arith.truncf %90 : vector<4x64x64xf32> to vector<4x64x64xbf16>
    "tpu.trace_start"() <{level = 10 : i32, message = "wlm,wmd->wld"}> : () -> ()
    %cst_25 = arith.constant dense<0.000000e+00> : vector<4x64x32xf32>
    %92 = tpu.matmul %91, %79, %cst_25 {dimension_numbers = #tpu.dot_dimension_numbers<[2], [1], [1], [2], [0, 0, 0, 1, 1, 2], [0], [0]>} : vector<4x64x64xbf16>, vector<4x64x32xbf16>, vector<4x64x32xf32> -> vector<4x64x32xf32>
    "tpu.trace_stop"() : () -> ()
    %93 = vector.shape_cast %92 : vector<4x64x32xf32> to vector<256x32xf32>
    %94 = arith.truncf %93 : vector<256x32xf32> to vector<256x32xbf16>
    %c0_26 = arith.constant 0 : index
    %c96 = arith.constant 96 : index
    %95 = vector.load %arg7[%c0_26, %c96] : memref<256x128xbf16, #tpu.memory_space<vmem>>, vector<256x32xbf16>
    tpu.vector_store %arg7[%c0_26, %c96], %94 {strides = array<i32>} : memref<256x128xbf16, #tpu.memory_space<vmem>>, vector<256x32xbf16>,
    %c0_27 = arith.constant 0 : index
    %c0_28 = arith.constant 0 : index
    %96 = vector.load %arg7[%c0_27, %c0_28] : memref<256x128xbf16, #tpu.memory_space<vmem>>, vector<256x128xbf16>
    %c0_29 = arith.constant 0 : index
    %c0_30 = arith.constant 0 : index
    %97 = vector.load %arg4[%c0_29, %c0_30] : memref<128x128xbf16, #tpu.memory_space<vmem>>, vector<128x128xbf16>
    %cst_31 = arith.constant dense<0.000000e+00> : vector<256x128xf32>
    %98 = tpu.matmul %96, %97, %cst_31 {dimension_numbers = #tpu.dot_dimension_numbers<[1], [0], [0], [1], [0, 0, 1, 1], [], []>} : vector<256x128xbf16>, vector<128x128xbf16>, vector<256x128xf32> -> vector<256x128xf32>
    %c0_32 = arith.constant 0 : index
    %c0_33 = arith.constant 0 : index
    %99 = vector.load %arg5[%c0_32, %c0_33] : memref<1x128xf32, #tpu.memory_space<vmem>>, vector<1x128xf32>
    %100 = vector.broadcast %99 : vector<1x128xf32> to vector<256x128xf32>
    %101 = arith.addf %98, %100 : vector<256x128xf32>
    %102 = vector.shape_cast %101 : vector<256x128xf32> to vector<4x64x128xf32>
    %103 = arith.truncf %102 : vector<4x64x128xf32> to vector<4x64x128xbf16>
    %c0_34 = arith.constant 0 : index
    %c0_35 = arith.constant 0 : index
    %c0_36 = arith.constant 0 : index
    %104 = vector.load %arg6[%c0_34, %c0_35, %c0_36] : memref<4x64x128xbf16, #tpu.memory_space<vmem>>, vector<4x64x128xbf16>
    tpu.vector_store %arg6[%c0_34, %c0_35, %c0_36], %103 {strides = array<i32>} : memref<4x64x128xbf16, #tpu.memory_space<vmem>>, vector<4x64x128xbf16>,
    return
  }
  func.func @transform_0(%arg0: i32) -> (i32, i32, i32) {
    %c0_i32 = arith.constant 0 : i32
    %c0_i32_0 = arith.constant 0 : i32
    %c0_i32_1 = arith.constant 0 : i32
    return %arg0, %c0_i32, %c0_i32_0 : i32, i32, i32
  }
  func.func @transform_1(%arg0: i32) -> (i32, i32) {
    %c0_i32 = arith.constant 0 : i32
    %c0_i32_0 = arith.constant 0 : i32
    %c0_i32_1 = arith.constant 0 : i32
    return %c0_i32, %c0_i32_0 : i32, i32
  }
  func.func @transform_2(%arg0: i32) -> (i32, i32) {
    %c0_i32 = arith.constant 0 : i32
    %c0_i32_0 = arith.constant 0 : i32
    %c0_i32_1 = arith.constant 0 : i32
    return %c0_i32, %c0_i32_0 : i32, i32
  }
  func.func @transform_3(%arg0: i32) -> (i32, i32) {
    %c0_i32 = arith.constant 0 : i32
    %c0_i32_0 = arith.constant 0 : i32
    %c0_i32_1 = arith.constant 0 : i32
    return %c0_i32, %c0_i32_0 : i32, i32
  }
  func.func @transform_4(%arg0: i32) -> (i32, i32) {
    %c0_i32 = arith.constant 0 : i32
    %c0_i32_0 = arith.constant 0 : i32
    %c0_i32_1 = arith.constant 0 : i32
    return %c0_i32, %c0_i32_0 : i32, i32
  }
  func.func @transform_5(%arg0: i32) -> (i32, i32, i32) {
    %c0_i32 = arith.constant 0 : i32
    %c0_i32_0 = arith.constant 0 : i32
    %c0_i32_1 = arith.constant 0 : i32
    return %arg0, %c0_i32, %c0_i32_0 : i32, i32, i32
  }
}

</mosaic_0001>

<bundles_post_ra>
// kernel: window_attention_forward.1
= control target key start
LH: loop header
LB: loop body
LE: loop exit
PB: predicated region body
PF: predicated region fallthrough
CT: control target
= control target key end

     0   :  { %s9122_s18 = smov 0   ;;  %s12306_s0 = inlined_call_operand.vmem [shape: bf16[8,64,128], index: 0, kind: input, shape index: {}]   ;;  %s12307_s1 = inlined_call_operand.vmem [shape: bf16[128,384], index: 1, kind: input, shape index: {}]   ;;  %s12308_s2 = inlined_call_operand.vmem [shape: f32[1,384], index: 2, kind: input, shape index: {}]   ;;  %s12309_s3 = inlined_call_operand.vmem [shape: bf16[128,128], index: 3, kind: input, shape index: {}]   ;;  %s12310_s4 = inlined_call_operand.vmem [shape: f32[1,128], index: 4, kind: input, shape index: {}]   ;;  %s12311_s5 = inlined_call_operand.vmem [shape: bf16[8,64,128], index: 5, kind: output, shape index: {}]  }
   0x1 LB: > { %s6869_s19 = sadd.s32 4294967295, %s9086_s18   ;;  %p6873_p0 = scmp.ge.s32.totalorder %s9086_s18, 1  ;;  %s9086_s18 = sphi %s9122_s18, %s15_s18  }
   0x2   : > { %p189_p1 = scmp.lt.s32.totalorder %s9086_s18, 3 }
   0x4   : > { %p190_p2 = pnand %p6873_p0, %p189_p1 }
   0x6   : > { %193 = sbr.rel (%p190_p2) target bundleno = 3341 (0xd0d), region = 40 }
   0xb   : > { %v8496_v0 = vld [vmem:[%s12307_s1 + $0xac] ss:$12 sps:$4 sm:$0xff]   ;;  %s6874_s22 = sshll.u32 %s6869_s19, 2  ;;  %v8498_v1 = vld [vmem:[%s12307_s1 + $0xa8] ss:$12 sps:$4 sm:$0xff]   ;;  %v9088_v2 = vmov 0   ;;  %v300_v41 = vlaneseq }
   0xc   : > { %571 = vmatprep.mubr.bf16.mxu0 %v9088_v2  ;;  %p220_p3 = scmp.lt.s32.totalorder %s6874_s22, 7  ;;  %681 = vmatprep.mubr.bf16.mxu1 %v9088_v2  ;;  %v8499_v3 = vld [vmem:[%s12307_s1 + $0x94] ss:$12 sps:$4 sm:$0xff]   ;;  %v8501_v4 = vld [vmem:[%s12307_s1 + $0x90] ss:$12 sps:$4 sm:$0xff]   ;;  %vm941_vm0 = vcmask 261120  }
   0xd   : > { %539 = vmatprep.subr.bf16.mxu0 %v8496_v0  ;;  %8404 = vmatprep.subr.bf16.mxu1 %v8496_v0  ;;  %v8502_v5 = vld [vmem:[%s12307_s1 + $0x7c] ss:$12 sps:$4 sm:$0xff]   ;;  %v8504_v6 = vld [vmem:[%s12307_s1 + $0x78] ss:$12 sps:$4 sm:$0xff]   ;;  %v8507_v8 = vld [vmem:[%s12307_s1 + $0x60] ss:$12 sps:$4 sm:$0xff]  }
   0xe   : > { %540 = vmatpush1.bf16.msra.mxu0 %v8498_v1  ;;  %s12712_s22 = smov (!%p220_p3, %s6874_s22), 7  ;;  %8412 = vmatpush1.bf16.msra.mxu1 %v8498_v1  ;;  %v8505_v7 = vld [vmem:[%s12307_s1 + $0x64] ss:$12 sps:$4 sm:$0xff]   ;;  %v8508_v9 = vld [vmem:[%s12307_s1 + $0x4c] ss:$12 sps:$4 sm:$0xff]   ;;  %v9252_v42 = vshrl.u32 %v300_v41, 7 }
   0xf   : > { %541 = vmatprep.subr.bf16.mxu0 %v8499_v3  ;;  %8405 = vmatprep.subr.bf16.mxu1 %v8499_v3  ;;  %s7235_s6 = sshll.u32 %s12712_s22, 5  ;;  %v8510_v10 = vld [vmem:[%s12307_s1 + $0x48] ss:$12 sps:$4 sm:$0xff]   ;;  %v8513_v12 = vld [vmem:[%s12307_s1 + $0x30] ss:$12 sps:$4 sm:$0xff]   ;;  %s9089_s30 = smov 96  }
  0x10   : > { %s9161_s13 = scalar_lea.vmem %s12306_s0, %s7235_s6  ;;  %v8511_v11 = vld [vmem:[%s12307_s1 + $0x34] ss:$12 sps:$4 sm:$0xff]   ;;  %v8514_v13 = vld [vmem:[%s12307_s1 + $0x1c] ss:$12 sps:$4 sm:$0xff]   ;;  %v8516_v14 = vld [vmem:[%s12307_s1 + $0x18] ss:$12 sps:$4 sm:$0xff]  }
  0x11   : > { %v8517_v15 = vld [vmem:[%s12307_s1 + $0x4] ss:$12 sps:$4 sm:$0xff]   ;;  %v8519_v16 = vld [vmem:[%s12307_s1] ss:$12 sps:$4 sm:$0xff]   ;;  %v9195_v19 = vld [vmem:[%s9161_s13 + $0x58] sm:$0xff]   ;;  %v302_v43 = vsub.s32 0, %v9252_v42 }
  0x12   : > { %542 = vmatpush1.bf16.msra.mxu0 %v8501_v4  ;;  %8413 = vmatpush1.bf16.msra.mxu1 %v8501_v4  ;;  %v8536_v17 = vld [vmem:[%s12307_s1 + $0xb0] ss:$12 sps:$4 sm:$0xff]   ;;  %v8520_v18 = vld [vmem:[%s9161_s13] sm:$0xff]   ;;  %v8521_v22 = vld [vmem:[%s9161_s13 + $0x8] sm:$0xff]   ;;  %v306_v45 = vsub.s32 1, %v9252_v42  ;;  %vm1298_vm1 = vcmask 523264  }
  0x13   : > { %543 = vmatprep.subr.bf16.mxu0 %v8502_v5  ;;  %8406 = vmatprep.subr.bf16.mxu1 %v8502_v5  ;;  %v8537_v20 = vld [vmem:[%s12307_s1 + $0x98] ss:$12 sps:$4 sm:$0xff]   ;;  %v8538_v21 = vld [vmem:[%s12307_s1 + $0x80] ss:$12 sps:$4 sm:$0xff]   ;;  %v8539_v24 = vld [vmem:[%s12307_s1 + $0x68] ss:$12 sps:$4 sm:$0xff]  }
  0x14   : > { %v9208_v23 = vld [vmem:[%s9161_s13 + $0x60] sm:$0xff]   ;;  %v8540_v25 = vld [vmem:[%s12307_s1 + $0x50] ss:$12 sps:$4 sm:$0xff]   ;;  %v8532_v27 = vld [vmem:[%s9161_s13 + $0x68] sm:$0xff]   ;;  %s9090_s7 = smov 64   ;;  %vm2103_vm2 = vcmask 257024  }
  0x15   : > { %v8522_v26 = vld [vmem:[%s9161_s13 + $0x10] sm:$0xff]   ;;  %v8541_v28 = vld [vmem:[%s12307_s1 + $0x38] ss:$12 sps:$4 sm:$0xff]   ;;  %v8542_v29 = vld [vmem:[%s12307_s1 + $0x20] ss:$12 sps:$4 sm:$0xff]   ;;  %s9091_s8 = smov 32  }
  0x16   : > { %544 = vmatpush1.bf16.msra.mxu0 %v8504_v6  ;;  %8414 = vmatpush1.bf16.msra.mxu1 %v8504_v6  ;;  %v8523_v30 = vld [vmem:[%s9161_s13 + $0x18] sm:$0xff]   ;;  %v8534_v31 = vld [vmem:[%s9161_s13 + $0x70] sm:$0xff]   ;;  %v8524_v33 = vld [vmem:[%s9161_s13 + $0x20] sm:$0xff]   ;;  %vm3520_vm3 = vcmask 519424   ;;  %vm4889_vm4 = vcmask 781824   ;;  %vm6258_vm5 = vcmask 1044224  }
  0x17   : > { %545 = vmatprep.subr.bf16.mxu0 %v8505_v7  ;;  %8407 = vmatprep.subr.bf16.mxu1 %v8505_v7  ;;  %v8543_v32 = vld [vmem:[%s12307_s1 + $0x8] ss:$12 sps:$4 sm:$0xff]   ;;  %v8535_v34 = vld [vmem:[%s9161_s13 + $0x78] sm:$0xff]   ;;  %v8529_v38 = vld [vmem:[%s9161_s13 + $0x40] sm:$0xff]  }
  0x18   : > { %v8525_v35 = vld [vmem:[%s9161_s13 + $0x28] sm:$0xff]   ;;  %v8526_v36 = vld [vmem:[%s9161_s13 + $0x30] sm:$0xff]   ;;  %v8528_v37 = vld [vmem:[%s9161_s13 + $0x38] sm:$0xff]  }
  0x19   : > { %v8531_v39 = vld [vmem:[%s9161_s13 + $0x48] sm:$0xff]   ;;  %v8533_v40 = vld [vmem:[%s9161_s13 + $0x50] sm:$0xff]   ;;  %v9258_v44 = vld [vmem:[%s12308_s2] sm:$0x7] }
  0x1a   : > { %546 = vmatpush1.bf16.msra.mxu0 %v8507_v8  ;;  %8415 = vmatpush1.bf16.msra.mxu1 %v8507_v8  ;;  %v9262_v48 = vrot.slane %v9258_v44, %v302_v43  ;;  %v9265_v49 = vrot.slane %v9258_v44, %v306_v45 }
  0x1b   : > { %547 = vmatprep.subr.bf16.mxu0 %v8508_v9  ;;  %8408 = vmatprep.subr.bf16.mxu1 %v8508_v9 }
  0x1e   : > { %548 = vmatpush1.bf16.msra.mxu0 %v8510_v10  ;;  %8416 = vmatpush1.bf16.msra.mxu1 %v8510_v10 }
  0x1f   : > { %549 = vmatprep.subr.bf16.mxu0 %v8511_v11  ;;  %8409 = vmatprep.subr.bf16.mxu1 %v8511_v11 }
  0x22   : > { %550 = vmatpush1.bf16.msra.mxu0 %v8513_v12  ;;  %8417 = vmatpush1.bf16.msra.mxu1 %v8513_v12 }
  0x23   : > { %551 = vmatprep.subr.bf16.mxu0 %v8514_v13  ;;  %8410 = vmatprep.subr.bf16.mxu1 %v8514_v13 }
  0x26   : > { %552 = vmatpush1.bf16.msra.mxu0 %v8516_v14  ;;  %8418 = vmatpush1.bf16.msra.mxu1 %v8516_v14 }
  0x27   : > { %553 = vmatprep.subr.bf16.mxu0 %v8517_v15  ;;  %8411 = vmatprep.subr.bf16.mxu1 %v8517_v15 }
  0x2a   : > { %554 = vmatpush1.bf16.msra.mxu0 %v8519_v16  ;;  %8419 = vmatpush1.bf16.msra.mxu1 %v8519_v16 }
  0x2b   : > { %7796 = vmatprep.subr.bf16.mxu1 %v8536_v17 }
  0x2d   : > { %572 = vmatmul.mubr.bf16.vlgmr.msra.gmra.mxu0 %v8520_v18  ;;  %682 = vmatmul.mubr.bf16.vlgmr.msra.gmra.mxu1 %v9195_v19 }
  0x2e   : > { %581 = vmatprep.mubr.bf16.mxu0 %v9088_v2  ;;  %691 = vmatprep.mubr.bf16.mxu1 %v9088_v2 }
  0x2f   : > { %7797 = vmatpush3.bf16.msra.mxu1 %v8536_v17 }
  0x30   : > { %7798 = vmatprep.subr.bf16.mxu1 %v8537_v20 }
  0x33   : > { %7799 = vmatpush3.bf16.msra.mxu1 %v8537_v20 }
  0x34   : > { %7800 = vmatprep.subr.bf16.mxu1 %v8538_v21 }
  0x35   : > { %582 = vmatmul.mubr.bf16.gmra.mxu0 %v8521_v22  ;;  %692 = vmatmul.mubr.bf16.gmra.mxu1 %v9208_v23 }
  0x36   : > { %591 = vmatprep.mubr.bf16.mxu0 %v9088_v2  ;;  %701 = vmatprep.mubr.bf16.mxu1 %v9088_v2 }
  0x37   : > { %7801 = vmatpush3.bf16.msra.mxu1 %v8538_v21 }
  0x38   : > { %7802 = vmatprep.subr.bf16.mxu1 %v8539_v24 }
  0x3b   : > { %7803 = vmatpush3.bf16.msra.mxu1 %v8539_v24 }
  0x3c   : > { %7804 = vmatprep.subr.bf16.mxu1 %v8540_v25 }
  0x3d   : > { %592 = vmatmul.mubr.bf16.gmra.mxu0 %v8522_v26  ;;  %702 = vmatmul.mubr.bf16.gmra.mxu1 %v8532_v27 }
  0x3e   : > { %601 = vmatprep.mubr.bf16.mxu0 %v9088_v2  ;;  %711 = vmatprep.mubr.bf16.mxu1 %v9088_v2 }
  0x3f   : > { %7805 = vmatpush3.bf16.msra.mxu1 %v8540_v25 }
  0x40   : > { %7806 = vmatprep.subr.bf16.mxu1 %v8541_v28 }
  0x43   : > { %7807 = vmatpush3.bf16.msra.mxu1 %v8541_v28 }
  0x44   : > { %7808 = vmatprep.subr.bf16.mxu1 %v8542_v29 }
  0x45   : > { %602 = vmatmul.mubr.bf16.gmra.mxu0 %v8523_v30  ;;  %712 = vmatmul.mubr.bf16.gmra.mxu1 %v8534_v31 }
  0x46   : > { %611 = vmatprep.mubr.bf16.mxu0 %v9088_v2  ;;  %721 = vmatprep.mubr.bf16.mxu1 %v9088_v2 }
  0x47   : > { %7809 = vmatpush3.bf16.msra.mxu1 %v8542_v29 }
  0x48   : > { %7810 = vmatprep.subr.bf16.mxu1 %v8543_v32 }
  0x4b   : > { %7811 = vmatpush3.bf16.msra.mxu1 %v8543_v32 }
  0x4d   : > { %612 = vmatmul.mubr.bf16.gmra.mxu0 %v8524_v33  ;;  %722 = vmatmul.mubr.bf16.gmra.mxu1 %v8535_v34 }
  0x4e   : > { %621 = vmatprep.mubr.bf16.mxu0 %v9088_v2  ;;  %7812 = vmatprep.mubr.bf16.mxu1 %v8520_v18 }
  0x55   : > { %622 = vmatmul.mubr.bf16.gmra.mxu0 %v8525_v35  ;;  %7813 = vmatmul.mubr.bf16.vlgmr.msra.gmra.mxu1 %v8521_v22 }
  0x56   : > { %631 = vmatprep.mubr.bf16.mxu0 %v9088_v2  ;;  %7816 = vmatprep.mubr.bf16.mxu1 %v8522_v26 }
  0x5d   : > { %632 = vmatmul.mubr.bf16.gmra.mxu0 %v8526_v36  ;;  %7817 = vmatmul.mubr.bf16.gmra.mxu1 %v8523_v30 }
  0x5e   : > { %641 = vmatprep.mubr.bf16.mxu0 %v9088_v2  ;;  %7820 = vmatprep.mubr.bf16.mxu1 %v8524_v33 }
  0x65   : > { %642 = vmatmul.mubr.bf16.gmra.mxu0 %v8528_v37  ;;  %7821 = vmatmul.mubr.bf16.gmra.mxu1 %v8525_v35 }
  0x66   : > { %651 = vmatprep.mubr.bf16.mxu0 %v9088_v2  ;;  %7824 = vmatprep.mubr.bf16.mxu1 %v8526_v36 }
  0x6d   : > { %652 = vmatmul.mubr.bf16.gmra.mxu0 %v8529_v38  ;;  %7825 = vmatmul.mubr.bf16.gmra.mxu1 %v8528_v37 }
  0x6e   : > { %661 = vmatprep.mubr.bf16.mxu0 %v9088_v2  ;;  %7828 = vmatprep.mubr.bf16.mxu1 %v8529_v38 }
  0x75   : > { %662 = vmatmul.mubr.bf16.gmra.mxu0 %v8531_v39  ;;  %7829 = vmatmul.mubr.bf16.gmra.mxu1 %v8531_v39 }
  0x76   : > { %671 = vmatprep.mubr.bf16.mxu0 %v9088_v2  ;;  %7832 = vmatprep.mubr.bf16.mxu1 %v8533_v40 }
  0x7d   : > { %672 = vmatmul.mubr.bf16.gmra.mxu0 %v8533_v40  ;;  %7833 = vmatmul.mubr.bf16.gmra.mxu1 %v9195_v19 }
  0x7e   : > { %7836 = vmatprep.mubr.bf16.mxu1 %v9208_v23 }
  0x85   : > { %7837 = vmatmul.mubr.bf16.gmra.mxu1 %v8532_v27 }
  0x86   : > { %7840 = vmatprep.mubr.bf16.mxu1 %v8534_v31 }
  0x8d   : > { %7841 = vmatmul.mubr.bf16.gmra.mxu1 %v8535_v34 }
  0xed   : > { %v573_v46 = vpop.f32.mrf.mxu0  ;;  %v683_v47 = vpop.f32.mrf.mxu1 }
  0xee   : > { %v684_v52 = vadd.f32 %v683_v47, %v9262_v48  ;;  %v574_v55 = vadd.f32 %v573_v46, %v9262_v48 }
  0xef   : > { %v575_v50 = vpop.f32.mrf.mxu0  ;;  %v685_v51 = vpop.f32.mrf.mxu1 }
  0xf0   : > { %v686_v57 = vadd.f32 %v685_v51, %v9265_v49  ;;  %v576_v59 = vadd.f32 %v575_v50, %v9265_v49 }
  0xf1   : > { %v577_v53 = vpop.f32.mrf.mxu0  ;;  %v687_v54 = vpop.f32.mrf.mxu1 }
  0xf2   : > { %v578_v56 = vadd.f32 %v577_v53, %v9262_v48  ;;  %v688_v58 = vadd.f32 %v687_v54, %v9262_v48 }
  0xf3   : > { %v579_v60 = vpop.f32.mrf.mxu0  ;;  %v689_v61 = vpop.f32.mrf.mxu1 }
  0xf4   : > { %v9273_v62 = vpack.c.bf16 %v578_v56, %v574_v55  ;;  %v580_v63 = vadd.f32 %v579_v60, %v9265_v49  ;;  %v9276_v0 = vpack.c.bf16 %v688_v58, %v684_v52  ;;  %v690_v1 = vadd.f32 %v689_v61, %v9265_v49 }
  0xf5   : > { %v9279_v2 = vpop.f32.mrf.mxu0  ;;  %v9281_v3 = vpop.f32.mrf.mxu1 }
  0xf6   : > { %12418 = vst [vmem:[#allocation3_spill] sm:$0xff] %v9273_v62  ;;  %12419 = vst [vmem:[#allocation4_spill] sm:$0xff] %v9276_v0  ;;  %v9283_v4 = vpack.c.bf16 %v580_v63, %v576_v59  ;;  %2140 = vrot.lane.b32.xlu0 %v9273_v62, %s9089_s30  ;;  %7852 = vmatprep.mubr.msk.bf16.mxu1 %vm941_vm0, %v9273_v62  ;;  %v9289_v5 = vpack.c.bf16 %v690_v1, %v686_v57 }
  0xf7   : > { %v585_v6 = vpop.f32.mrf.mxu0  ;;  %v9291_v7 = vpop.f32.mrf.mxu1 }
  0xf8   : > { %12420 = vst [vmem:[#allocation5_spill] sm:$0xff] %v9283_v4  ;;  %12421 = vst [vmem:[#allocation6_spill] sm:$0xff] %v9289_v5  ;;  %2152 = vrot.lane.b32.xlu1 %v9283_v4, %s9089_s30  ;;  %8428 = vmatprep.subr.msk.bf16.mxu0 %vm941_vm0, %v9289_v5  ;;  %v1142_v8 = vsel %vm941_vm0, %v9289_v5, 0  ;;  %v586_v13 = vadd.f32 %v585_v6, %v9265_v49 }
  0xf9   : > { %v9299_v9 = vpop.f32.mrf.mxu0  ;;  %7877 = vmatpush3.bf16.xpose.msra.mxu0 %v1142_v8  ;;  %v9301_v10 = vpop.f32.mrf.mxu1 }
  0xfb   : > { %v589_v11 = vpop.f32.mrf.mxu0  ;;  %v9303_v12 = vpop.f32.mrf.mxu1 }
  0xfc   : > { %v590_v14 = vadd.f32 %v589_v11, %v9265_v49 }
  0xfd   : > { %v9307_v15 = vpop.f32.mrf.mxu0  ;;  %v703_v16 = vpop.f32.mrf.mxu1 }
  0xfe   : > { %v9309_v17 = vpack.c.bf16 %v590_v14, %v586_v13  ;;  %v704_v20 = vadd.f32 %v703_v16, %v9262_v48 }
  0xff   : > { %v595_v18 = vpop.f32.mrf.mxu0  ;;  %v9311_v19 = vpop.f32.mrf.mxu1 }
 0x100   : > { %12422 = vst [vmem:[#allocation7_spill] sm:$0xff] %v9309_v17  ;;  %2154 = vrot.lane.b32.xlu0 %v9309_v17, %s9089_s30  ;;  %v596_v26 = vadd.f32 %v595_v18, %v9265_v49  ;;  %v958_v14 = vsel %vm941_vm0, %v9309_v17, 0 }
 0x101   : > { %v9316_v21 = vpop.f32.mrf.mxu0  ;;  %v707_v22 = vpop.f32.mrf.mxu1 }
 0x102   : > { %v708_v23 = vadd.f32 %v707_v22, %v9262_v48 }
 0x103   : > { %v599_v24 = vpop.f32.mrf.mxu0  ;;  %v9319_v25 = vpop.f32.mrf.mxu1 }
 0x104   : > { %v600_v27 = vadd.f32 %v599_v24, %v9265_v49  ;;  %v9323_v28 = vpack.c.bf16 %v708_v23, %v704_v20 }
 0x105   : > { %v9325_v29 = vpop.f32.mrf.mxu0  ;;  %v9327_v30 = vpop.f32.mrf.mxu1 }
 0x106   : > { %12423 = vst [vmem:[#allocation8_spill] sm:$0xff] %v9323_v28  ;;  %v9329_v31 = vpack.c.bf16 %v600_v27, %v596_v26 }
 0x107   : > { %v605_v32 = vpop.f32.mrf.mxu0  ;;  %v9331_v33 = vpop.f32.mrf.mxu1 }
 0x108   : > { %12424 = vst [vmem:[#allocation9_spill] sm:$0xff] %v9329_v31  ;;  %2156 = vrot.lane.b32.xlu1 %v9329_v31, %s9089_s30  ;;  %v606_v38 = vadd.f32 %v605_v32, %v9265_v49  ;;  %v961_v56 = vsel %vm941_vm0, %v9329_v31, 0 }
 0x109   : > { %v9335_v34 = vpop.f32.mrf.mxu0  ;;  %v9337_v35 = vpop.f32.mrf.mxu1 }
 0x10b   : > { %v609_v36 = vpop.f32.mrf.mxu0  ;;  %v9339_v37 = vpop.f32.mrf.mxu1 }
 0x10c   : > { %v610_v39 = vadd.f32 %v609_v36, %v9265_v49 }
 0x10d   : > { %v9343_v40 = vpop.f32.mrf.mxu0  ;;  %v9345_v41 = vpop.f32.mrf.mxu1 }
 0x10e   : > { %v9347_v43 = vpack.c.bf16 %v610_v39, %v606_v38  ;;  %v955_v39 = vsel %vm941_vm0, %v9283_v4, 0 }
 0x10f   : > { %v9349_v45 = vpop.f32.mrf.mxu0  ;;  %v9351_v46 = vpop.f32.mrf.mxu1 }
 0x110   : > { %12425 = vst [vmem:[#allocation10_spill] sm:$0xff] %v9347_v43  ;;  %8420 = vmatprep.subr.msk.bf16.mxu1 %vm941_vm0, %v9347_v43  ;;  %2158 = vrot.lane.b32.xlu0 %v9347_v43, %s9089_s30  ;;  %v964_v47 = vsel %vm941_vm0, %v9347_v43, 0 }
 0x111   : > { %v9359_v50 = vpop.f32.mrf.mxu0  ;;  %7845 = vmatpush3.bf16.xpose.msra.mxu1 %v964_v47  ;;  %v9365_v52 = vpop.f32.mrf.mxu1 }
 0x112   : > { %8421 = vmatprep.subr.msk.bf16.mxu1 %vm941_vm0, %v9329_v31 }
 0x113   : > { %v9363_v51 = vpop.f32.mrf.mxu0  ;;  %v9369_v55 = vpop.f32.mrf.mxu1 }
 0x115   : > { %v9367_v53 = vpop.f32.mrf.mxu0  ;;  %v9375_v58 = vpop.f32.mrf.mxu1 }
 0x117   : > { %v625_v54 = vpop.f32.mrf.mxu0  ;;  %v9379_v60 = vpop.f32.mrf.mxu1 }
 0x118   : > { %v626_v61 = vadd.f32 %v625_v54, %v9265_v49 }
 0x119   : > { %v9373_v57 = vpop.f32.mrf.mxu0  ;;  %7847 = vmatpush3.bf16.xpose.msra.mxu1 %v961_v56  ;;  %v9385_v6 = vpop.f32.mrf.mxu1  ;;  %v588_v56 = vadd.f32 %v9299_v9, %v9262_v48 }
 0x11a   : > { %8422 = vmatprep.subr.msk.bf16.mxu1 %vm941_vm0, %v9309_v17 }
 0x11b   : > { %v629_v59 = vpop.f32.mrf.mxu0  ;;  %v9389_v13 = vpop.f32.mrf.mxu1 }
 0x11c   : > { %v630_v63 = vadd.f32 %v629_v59, %v9265_v49  ;;  %v598_v59 = vadd.f32 %v9316_v21, %v9262_v48 }
 0x11d   : > { %v9383_v1 = vpop.f32.mrf.mxu0  ;;  %v9397_v18 = vpop.f32.mrf.mxu1 }
 0x11e   : > { %v9387_v8 = vpack.c.bf16 %v630_v63, %v626_v61 }
 0x11f   : > { %v635_v11 = vpop.f32.mrf.mxu0  ;;  %v9401_v22 = vpop.f32.mrf.mxu1 }
 0x120   : > { %12426 = vst [vmem:[#allocation11_spill] sm:$0xff] %v9387_v8  ;;  %2267 = vrot.lane.b32.xlu1 %v9387_v8, %s9089_s30  ;;  %v636_v23 = vadd.f32 %v635_v11, %v9265_v49  ;;  %v584_v11 = vadd.f32 %v9279_v2, %v9262_v48 }
 0x121   : > { %v9395_v16 = vpop.f32.mrf.mxu0  ;;  %7849 = vmatpush3.bf16.xpose.msra.mxu1 %v958_v14  ;;  %v9407_v27 = vpop.f32.mrf.mxu1 }
 0x122   : > { %8423 = vmatprep.subr.msk.bf16.mxu1 %vm941_vm0, %v9283_v4  ;;  %v9435_v9 = vpack.c.bf16 %v588_v56, %v584_v11  ;;  %v608_v56 = vadd.f32 %v9335_v34, %v9262_v48  ;;  %v618_v11 = vadd.f32 %v9359_v50, %v9262_v48  ;;  %v310_v34 = vsub.s32 2, %v9252_v42 }
 0x123   : > { %v639_v20 = vpop.f32.mrf.mxu0  ;;  %v9411_v38 = vpop.f32.mrf.mxu1 }
 0x124   : > { %v640_v24 = vadd.f32 %v639_v20, %v9265_v49  ;;  %12428 = vst [vmem:[#allocation13_spill] sm:$0xff] %v9435_v9  ;;  %v9491_v42 = vrot.slane %v9258_v44, %v310_v34  ;;  %v620_v34 = vadd.f32 %v9363_v51, %v9265_v49  ;;  %v1047_v51 = vsel %vm941_vm0, %v9387_v8, 0 }
 0x125   : > { %v9405_v26 = vpop.f32.mrf.mxu0  ;;  %v9419_v54 = vpop.f32.mrf.mxu1 }
 0x126   : > { %v9409_v32 = vpack.c.bf16 %v640_v24, %v636_v23  ;;  %v594_v23 = vadd.f32 %v9307_v15, %v9262_v48 }
 0x127   : > { %v645_v36 = vpop.f32.mrf.mxu0  ;;  %v9425_v63 = vpop.f32.mrf.mxu1 }
 0x128   : > { %12427 = vst [vmem:[#allocation12_spill] sm:$0xff] %v9409_v32  ;;  %2269 = vrot.lane.b32.xlu1 %v9409_v32, %s9089_s30  ;;  %v646_v14 = vadd.f32 %v645_v36, %v9265_v49  ;;  %v9439_v21 = vpack.c.bf16 %v598_v59, %v594_v23  ;;  %v604_v23 = vadd.f32 %v9325_v29, %v9262_v48 }
 0x129   : > { %v9417_v47 = vpop.f32.mrf.mxu0  ;;  %7851 = vmatpush3.bf16.xpose.msra.mxu1 %v955_v39  ;;  %v9433_v39 = vpop.f32.mrf.mxu1 }
 0x12a   : > { %12430 = vst [vmem:[#allocation15_spill] sm:$0xff] %v9439_v21 }
 0x12b   : > { %v649_v61 = vpop.f32.mrf.mxu0  ;;  %v9443_v17 = vpop.f32.mrf.mxu1 }
 0x12c   : > { %v650_v20 = vadd.f32 %v649_v61, %v9265_v49  ;;  %12431 = vst [vmem:[#allocation16_spill] sm:$0xff] %v9443_v17 }
 0x12d   : > { %v653_v24 = vpop.f32.mrf.mxu0  ;;  %v9455_v36 = vpop.f32.mrf.mxu1 }
 0x12e   : > { %v9437_v4 = vpack.c.bf16 %v650_v20, %v646_v14  ;;  %v654_v59 = vadd.f32 %v653_v24, %v9262_v48  ;;  %v614_v24 = vadd.f32 %v9343_v40, %v9262_v48 }
 0x12f   : > { %v9441_v62 = vpop.f32.mrf.mxu0  ;;  %v9467_v20 = vpop.f32.mrf.mxu1 }
 0x130   : > { %12429 = vst [vmem:[#allocation14_spill] sm:$0xff] %v9437_v4  ;;  %2271 = vrot.lane.b32.xlu1 %v9437_v4, %s9089_s30  ;;  %7853 = vmatmul.mubr.msk.bf16.vlgmr.msra.gmra.mxu1 %vm941_vm0, %v9435_v9  ;;  %v1053_v2 = vsel %vm941_vm0, %v9437_v4, 0  ;;  %v9484_v31 = vpack.c.bf16 %v618_v11, %v614_v24 }
 0x131   : > { %8424 = vmatprep.subr.msk.bf16.mxu1 %vm941_vm0, %v9437_v4  ;;  %v657_v15 = vpop.f32.mrf.mxu0  ;;  %7856 = vmatprep.mubr.msk.bf16.mxu1 %vm941_vm0, %v9439_v21  ;;  %v9478_v50 = vpop.f32.mrf.mxu1 }
 0x132   : > { %v658_v61 = vadd.f32 %v657_v15, %v9262_v48  ;;  %7861 = vmatpush3.bf16.xpose.msra.mxu1 %v1053_v2  ;;  %v9480_v15 = vpack.c.bf16 %v608_v56, %v604_v23  ;;  %12434 = vst [vmem:[#allocation19_spill] sm:$0xff] %v9484_v31  ;;  %v1050_v56 = vsel %vm941_vm0, %v9409_v32, 0 }
 0x133   : > { %8425 = vmatprep.subr.msk.bf16.mxu1 %vm941_vm0, %v9409_v32  ;;  %v9465_v14 = vpop.f32.mrf.mxu0  ;;  %v9486_v29 = vpop.f32.mrf.mxu1 }
 0x134   : > { %v9471_v4 = vpack.c.bf16 %v658_v61, %v654_v59  ;;  %12433 = vst [vmem:[#allocation18_spill] sm:$0xff] %v9480_v15 }
 0x135   : > { %v9476_v2 = vpop.f32.mrf.mxu0  ;;  %v7830_v59 = vpop.f32.mrf.mxu1 }
 0x136   : > { %12432 = vst [vmem:[#allocation17_spill] sm:$0xff] %v9471_v4  ;;  %7884 = vmatprep.mubr.msk.bf16.mxu0 %vm941_vm0, %v9471_v4  ;;  %v839_v61 = vadd.f32 %v7830_v59, %v9491_v42 }
 0x137   : > { %v665_v43 = vpop.f32.mrf.mxu0  ;;  %v830_v23 = vpop.f32.mrf.mxu1 }
 0x138   : > { %7857 = vmatmul.mubr.msk.bf16.gmra.mxu1 %vm941_vm0, %v9480_v15  ;;  %v831_v44 = vadd.f32 %v830_v23, %v9491_v42 }
 0x139   : > { %v9493_v40 = vpop.f32.mrf.mxu0  ;;  %7868 = vmatprep.mubr.msk.bf16.mxu1 %vm941_vm0, %v9484_v31  ;;  %v7831_v32 = vpop.f32.mrf.mxu1 }
 0x13a   : > { %7863 = vmatpush3.bf16.xpose.msra.mxu1 %v1050_v56  ;;  %v842_v4 = vadd.f32 %v7831_v32, %v9491_v42  ;;  %v616_v56 = vadd.f32 %v9349_v45, %v9265_v49 }
 0x13b   : > { %8426 = vmatprep.subr.msk.bf16.mxu1 %vm941_vm0, %v9387_v8  ;;  %v669_v11 = vpop.f32.mrf.mxu0  ;;  %v833_v59 = vpop.f32.mrf.mxu1 }
 0x13c   : > { %v9510_v15 = vpack.c.bf16 %v842_v4, %v839_v61  ;;  %v834_v31 = vadd.f32 %v833_v59, %v9491_v42  ;;  %v9513_v5 = vpack.c.bf16 %v620_v34, %v616_v56  ;;  %v726_v4 = vadd.f32 %v9351_v46, %v9265_v49 }
 0x13d   : > { %v9505_v24 = vpop.f32.mrf.mxu0  ;;  %v9519_v9 = vpop.f32.mrf.mxu1  ;;  %v730_v61 = vadd.f32 %v9369_v55, %v9265_v49  ;;  %v670_v56 = vadd.f32 %v669_v11, %v9265_v49 }
 0x13e   : > { %12435 = vst [vmem:[#allocation20_spill] sm:$0xff] %v9510_v15  ;;  %v9521_v32 = vpack.c.bf16 %v834_v31, %v831_v44  ;;  %v1044_v11 = vsel %vm941_vm0, %v9513_v5, 0 }
 0x13f   : > { %v675_v21 = vpop.f32.mrf.mxu0  ;;  %v846_v34 = vpop.f32.mrf.mxu1  ;;  %v9538_v15 = vpack.c.bf16 %v730_v61, %v726_v4  ;;  %v628_v4 = vadd.f32 %v9373_v57, %v9262_v48  ;;  %v720_v57 = vadd.f32 %v9339_v37, %v9265_v49 }
 0x140   : > { %12436 = vst [vmem:[#allocation21_spill] sm:$0xff] %v9521_v32  ;;  %v676_v59 = vadd.f32 %v675_v21, %v9265_v49  ;;  %v847_v31 = vadd.f32 %v846_v34, %v9491_v42  ;;  %v638_v34 = vadd.f32 %v9395_v16, %v9262_v48 }
 0x141   : > { %v9515_v23 = vpop.f32.mrf.mxu0  ;;  %v9533_v44 = vpop.f32.mrf.mxu1 }
 0x142   : > { %7865 = vmatpush3.bf16.xpose.msra.mxu1 %v1047_v51  ;;  %v666_v51 = vadd.f32 %v665_v43, %v9265_v49 }
 0x143   : > { %8427 = vmatprep.subr.msk.bf16.mxu1 %vm941_vm0, %v9513_v5  ;;  %v679_v45 = vpop.f32.mrf.mxu0  ;;  %v849_v46 = vpop.f32.mrf.mxu1 }
 0x144   : > { %v680_v8 = vadd.f32 %v679_v45, %v9265_v49  ;;  %v9540_v17 = vpack.c.bf16 %v670_v56, %v666_v51  ;;  %v850_v21 = vadd.f32 %v849_v46, %v9491_v42  ;;  %v716_v51 = vadd.f32 %v9331_v33, %v9265_v49 }
 0x145   : > { %v7838_v43 = vpop.f32.mrf.mxu1 }
 0x146   : > { %v9536_v32 = vpack.c.bf16 %v680_v8, %v676_v59  ;;  %v9551_v8 = vpack.c.bf16 %v850_v21, %v847_v31  ;;  %v871_v45 = vadd.f32 %v7838_v43, %v9491_v42  ;;  %v624_v59 = vadd.f32 %v9367_v53, %v9262_v48 }
 0x147   : > { %v862_v61 = vpop.f32.mrf.mxu1  ;;  %v660_v31 = vadd.f32 %v9465_v14, %v9265_v49  ;;  %v656_v53 = vadd.f32 %v9441_v62, %v9265_v49  ;;  %v1136_v33 = vsel %vm941_vm0, %v9540_v17, 0  ;;  %v1231_v62 = vsel %vm941_vm0, %v9538_v15, 0 }
 0x148   : > { %8429 = vmatprep.subr.msk.bf16.mxu0 %vm941_vm0, %v9536_v32  ;;  %v1139_v55 = vsel %vm941_vm0, %v9536_v32, 0  ;;  %12437 = vst [vmem:[#allocation22_spill] sm:$0xff] %v9551_v8  ;;  %v863_v56 = vadd.f32 %v862_v61, %v9491_v42  ;;  %v9572_v21 = vpack.c.bf16 %v628_v4, %v624_v59  ;;  %v791_v59 = vadd.f32 %v9397_v18, %v9491_v42 }
 0x149   : > { %7879 = vmatpush3.bf16.xpose.msra.mxu0 %v1139_v55  ;;  %v7839_v46 = vpop.f32.mrf.mxu1  ;;  %v634_v55 = vadd.f32 %v9383_v1, %v9262_v48  ;;  %v9583_v61 = vpack.c.bf16 %v660_v31, %v656_v53  ;;  %v9585_v1 = vpack.c.bf16 %v720_v57, %v716_v51  ;;  %v794_v31 = vadd.f32 %v9407_v27, %v9491_v42 }
 0x14a   : > { %7867 = vmatpush3.bf16.xpose.msra.mxu1 %v1044_v11  ;;  %8430 = vmatprep.subr.msk.bf16.mxu0 %vm941_vm0, %v9540_v17  ;;  %v874_v16 = vadd.f32 %v7839_v46, %v9491_v42  ;;  %v698_v57 = vadd.f32 %v9301_v10, %v9262_v48  ;;  %v644_v46 = vadd.f32 %v9405_v26, %v9262_v48 }
 0x14b   : > { %8432 = vmatprep.subr.msk.bf16.mxu1 %vm941_vm0, %v9538_v15  ;;  %v865_v11 = vpop.f32.mrf.mxu1  ;;  %v9576_v43 = vpack.c.bf16 %v638_v34, %v634_v55  ;;  %12440 = vst [vmem:[#allocation25_spill] sm:$0xff] %v9583_v61  ;;  %v648_v34 = vadd.f32 %v9417_v47, %v9262_v48  ;;  %v706_v55 = vadd.f32 %v9311_v19, %v9265_v49  ;;  %v1133_v10 = vsel %vm941_vm0, %v9583_v61, 0 }
 0x14c   : > { %v9580_v14 = vpack.c.bf16 %v874_v16, %v871_v45  ;;  %v866_v37 = vadd.f32 %v865_v11, %v9491_v42  ;;  %v710_v18 = vadd.f32 %v9319_v25, %v9265_v49  ;;  %v9622_v53 = vpack.c.bf16 %v794_v31, %v791_v59 }
 0x14d   : > { %12438 = vst [vmem:[#allocation23_spill] sm:$0xff] %v9576_v43  ;;  %v9591_v4 = vpop.f32.mrf.mxu1  ;;  %v9620_v27 = vpack.c.bf16 %v648_v34, %v644_v46  ;;  %v1228_v19 = vsel %vm941_vm0, %v9585_v1, 0  ;;  %v783_v25 = vadd.f32 %v9401_v22, %v9491_v42  ;;  %v678_v59 = vadd.f32 %v9515_v23, %v9262_v48 }
 0x14e   : > { %12439 = vst [vmem:[#allocation24_spill] sm:$0xff] %v9580_v14  ;;  %v9595_v45 = vpack.c.bf16 %v866_v37, %v863_v56  ;;  %v694_v56 = vadd.f32 %v9281_v3, %v9262_v48  ;;  %12443 = vst [vmem:[#allocation28_spill] sm:$0xff] %v9622_v53  ;;  %v668_v37 = vadd.f32 %v9493_v40, %v9262_v48 }
 0x14f   : > { %v878_v51 = vpop.f32.mrf.mxu1  ;;  %12442 = vst [vmem:[#allocation27_spill] sm:$0xff] %v9620_v27  ;;  %v664_v22 = vadd.f32 %v9476_v2, %v9262_v48  ;;  %v696_v40 = vadd.f32 %v9291_v7, %v9265_v49  ;;  %v700_v31 = vadd.f32 %v9303_v12, %v9265_v49  ;;  %v775_v23 = vadd.f32 %v9375_v58, %v9491_v42 }
 0x150   : > { %12441 = vst [vmem:[#allocation26_spill] sm:$0xff] %v9595_v45  ;;  %v879_v47 = vadd.f32 %v878_v51, %v9491_v42  ;;  %v9624_v11 = vpack.c.bf16 %v698_v57, %v694_v56  ;;  %v778_v56 = vadd.f32 %v9385_v6, %v9491_v42  ;;  %v767_v12 = vadd.f32 %v9379_v60, %v9491_v42 }
 0x151   : > { %7869 = vmatmul.mubr.msk.bf16.vlgmr.msra.gmra.mxu1 %vm941_vm0, %v9572_v21  ;;  %7881 = vmatpush3.bf16.xpose.msra.mxu0 %v1136_v33  ;;  %v9618_v16 = vpop.f32.mrf.mxu1  ;;  %v9629_v33 = vpack.c.bf16 %v710_v18, %v706_v55  ;;  %v9658_v51 = vpack.c.bf16 %v668_v37, %v664_v22  ;;  %v9670_v7 = vpack.c.bf16 %v700_v31, %v696_v40 }
 0x152   : > { %7872 = vmatprep.mubr.msk.bf16.mxu1 %vm941_vm0, %v9576_v43  ;;  %7893 = vmatpush3.bf16.xpose.msra.mxu1 %v1231_v62  ;;  %12444 = vst [vmem:[#allocation29_spill] sm:$0xff] %v9624_v11  ;;  %v786_v62 = vadd.f32 %v9411_v38, %v9491_v42  ;;  %v674_v38 = vadd.f32 %v9505_v24, %v9262_v48 }
 0x153   : > { %8431 = vmatprep.subr.msk.bf16.mxu0 %vm941_vm0, %v9583_v61  ;;  %8433 = vmatprep.subr.msk.bf16.mxu1 %vm941_vm0, %v9585_v1  ;;  %v881_v3 = vpop.f32.mrf.mxu1  ;;  %12445 = vst [vmem:[#allocation30_spill] sm:$0xff] %v9629_v33  ;;  %v1225_v49 = vsel %vm941_vm0, %v9629_v33, 0  ;;  %v9679_v58 = vpack.c.bf16 %v778_v56, %v775_v23  ;;  %v770_v6 = vadd.f32 %v9389_v13, %v9491_v42 }
 0x154   : > { %v882_v26 = vadd.f32 %v881_v3, %v9491_v42  ;;  %v9664_v57 = vpack.c.bf16 %v786_v62, %v783_v25  ;;  %v9666_v2 = vpack.c.bf16 %v678_v59, %v674_v38  ;;  %v823_v24 = vadd.f32 %v9455_v36, %v9491_v42 }
 0x155   : > { %12449 = vst [vmem:[#allocation34_spill] sm:$0xff] %v9679_v58  ;;  %v9691_v46 = vpack.c.bf16 %v770_v6, %v767_v12  ;;  %v855_v60 = vadd.f32 %v9519_v9, %v9491_v42  ;;  %v858_v13 = vadd.f32 %v9533_v44, %v9491_v42  ;;  %v1222_v36 = vsel %vm941_vm0, %v9670_v7, 0 }
 0x156   : > { %v9643_v34 = vpack.c.bf16 %v882_v26, %v879_v47  ;;  %12447 = vst [vmem:[#allocation32_spill] sm:$0xff] %v9664_v57  ;;  %12448 = vst [vmem:[#allocation33_spill] sm:$0xff] %v9666_v2  ;;  %v826_v47 = vadd.f32 %v9478_v50, %v9491_v42  ;;  %v815_v9 = vadd.f32 %v9467_v20, %v9491_v42 }
 0x157   : > { %12450 = vst [vmem:[#allocation35_spill] sm:$0xff] %v9691_v46  ;;  %v9705_v50 = vpack.c.bf16 %v858_v13, %v855_v60  ;;  %v818_v44 = vadd.f32 %v9486_v29, %v9491_v42  ;;  %v714_v18 = vadd.f32 %v9327_v30, %v9262_v48  ;;  %v718_v3 = vadd.f32 %v9337_v35, %v9262_v48 }
 0x158   : > { %12446 = vst [vmem:[#allocation31_spill] sm:$0xff] %v9643_v34  ;;  %v9698_v55 = vpack.c.bf16 %v826_v47, %v823_v24  ;;  %v810_v20 = vadd.f32 %v9433_v39, %v9491_v42  ;;  %v724_v30 = vadd.f32 %v9345_v41, %v9262_v48  ;;  %v728_v35 = vadd.f32 %v9365_v52, %v9262_v48 }
 0x159   : > { %7873 = vmatmul.mubr.msk.bf16.gmra.mxu1 %vm941_vm0, %v9620_v27  ;;  %7883 = vmatpush3.bf16.xpose.msra.mxu0 %v1133_v10  ;;  %12452 = vst [vmem:[#allocation37_spill] sm:$0xff] %v9705_v50  ;;  %v807_v10 = vadd.f32 %v9419_v54, %v9491_v42  ;;  %v9723_v26 = vpack.c.bf16 %v818_v44, %v815_v9 }
 0x15a   : > { %7895 = vmatpush3.bf16.xpose.msra.mxu1 %v1228_v19  ;;  %7900 = vmatprep.mubr.msk.bf16.mxu1 %vm941_vm0, %v9624_v11  ;;  %12451 = vst [vmem:[#allocation36_spill] sm:$0xff] %v9698_v55  ;;  %v9725_v29 = vpack.c.bf16 %v718_v3, %v714_v18  ;;  %v799_v54 = vadd.f32 %v9425_v63, %v9491_v42  ;;  %v12456_v19 = vld [vmem:[#allocation16_spill] sm:$0xff] }
 0x15b   : > { %8434 = vmatprep.subr.msk.bf16.mxu1 %vm941_vm0, %v9629_v33  ;;  %7908 = vmatprep.subr.bf16.mxu0 %v9622_v53  ;;  %12453 = vst [vmem:[#allocation38_spill] sm:$0xff] %v9723_v26  ;;  %v9738_v39 = vpack.c.bf16 %v810_v20, %v807_v10  ;;  %v802_v25 = vadd.f32 %v12456_v19, %v9491_v42 }
 0x15c   : > { %12454 = vst [vmem:[#allocation39_spill] sm:$0xff] %v9725_v29  ;;  %v9744_v41 = vpack.c.bf16 %v728_v35, %v724_v30  ;;  %v887_v62 = vadd.f32 %v9591_v4, %v9491_v42  ;;  %v890_v48 = vadd.f32 %v9618_v16, %v9491_v42 }
 0x15d   : > { %12455 = vst [vmem:[#allocation40_spill] sm:$0xff] %v9738_v39  ;;  %v9746_v37 = vpack.c.bf16 %v802_v25, %v799_v54 }
 0x15e   : > { %12457 = vst [vmem:[#allocation16_spill] sm:$0xff] %v9744_v41  ;;  %v9756_v52 = vpack.c.bf16 %v890_v48, %v887_v62 }
 0x15f   : > { %12458 = vst [vmem:[#allocation41_spill] sm:$0xff] %v9746_v37 }
 0x160   : > { %7885 = vmatmul.mubr.msk.bf16.vlgmr.msra.gmra.mxu0 %vm941_vm0, %v9658_v51  ;;  %12459 = vst [vmem:[#allocation42_spill] sm:$0xff] %v9756_v52 }
 0x161   : > { %7888 = vmatprep.mubr.msk.bf16.mxu0 %vm941_vm0, %v9666_v2  ;;  %7909 = vmatpush3.bf16.msra.mxu0 %v9622_v53 }
 0x162   : > { %7897 = vmatpush3.bf16.xpose.msra.mxu1 %v1225_v49  ;;  %7910 = vmatprep.subr.bf16.mxu0 %v9664_v57 }
 0x163   : > { %8435 = vmatprep.subr.msk.bf16.mxu1 %vm941_vm0, %v9670_v7 }
 0x165   : > { %7911 = vmatpush3.bf16.msra.mxu0 %v9664_v57 }
 0x166   : > { %7912 = vmatprep.subr.bf16.mxu0 %v9679_v58 }
 0x168   : > { %7889 = vmatmul.mubr.msk.bf16.gmra.mxu0 %vm941_vm0, %v9276_v0 }
 0x169   : > { %7913 = vmatpush3.bf16.msra.mxu0 %v9679_v58 }
 0x16a   : > { %7899 = vmatpush3.bf16.xpose.msra.mxu1 %v1222_v36  ;;  %7914 = vmatprep.subr.bf16.mxu0 %v9691_v46 }
 0x16b   : > { %7924 = vmatprep.subr.bf16.mxu1 %v9698_v55 }
 0x16d   : > { %7915 = vmatpush3.bf16.msra.mxu0 %v9691_v46 }
 0x16e   : > { %7940 = vmatprep.subr.bf16.mxu0 %v9705_v50 }
 0x171   : > { %7901 = vmatmul.mubr.msk.bf16.vlgmr.msra.gmra.mxu1 %vm941_vm0, %v9323_v28 }
 0x172   : > { %7904 = vmatprep.mubr.msk.bf16.mxu1 %vm941_vm0, %v9725_v29  ;;  %7925 = vmatpush3.bf16.msra.mxu1 %v9698_v55 }
 0x173   : > { %7926 = vmatprep.subr.bf16.mxu1 %v9723_v26 }
 0x176   : > { %7927 = vmatpush3.bf16.msra.mxu1 %v9723_v26 }
 0x177   : > { %7928 = vmatprep.subr.bf16.mxu1 %v9738_v39 }
 0x179   : > { %7905 = vmatmul.mubr.msk.bf16.gmra.mxu1 %vm941_vm0, %v9744_v41 }
 0x17a   : > { %7929 = vmatpush3.bf16.msra.mxu1 %v9738_v39 }
 0x17b   : > { %7930 = vmatprep.subr.bf16.mxu1 %v9746_v37 }
 0x17e   : > { %7931 = vmatpush3.bf16.msra.mxu1 %v9746_v37 }
 0x17f   : > { %7956 = vmatprep.subr.bf16.mxu1 %v9756_v52  ;;  %v9895_v52 = vpop.permute.xlu0 %2140 }
 0x180   : > { %12463 = vst [vmem:[#allocation46_spill] sm:$0xff] %v9895_v52 }
 0x183   : > { %v9899_v46 = vpop.permute.xlu0 %2154 }
 0x184   : > { %12465 = vst [vmem:[#allocation48_spill] sm:$0xff] %v9899_v46 }
 0x1f0   : > { %v9761_v63 = vpop.f32.mrf.mxu1 }
 0x1f1   : > { %v1305_v4 = vsel %vm1298_vm1, %v9761_v63, -inf }
 0x1f2   : > { %1306 = vmax.xlane.f32.xlu1 %v1305_v4  ;;  %v9765_v42 = vpop.f32.mrf.mxu1 }
 0x1f3   : > { %v1299_v16 = vsel %vm1298_vm1, %v9765_v42, -inf }
 0x1f4   : > { %1300 = vmax.xlane.f32.xlu0 %v1299_v16  ;;  %v9769_v59 = vpop.f32.mrf.mxu1 }
 0x1f5   : > { %v1308_v22 = vsel %vm1298_vm1, %v9769_v59, -inf }
 0x1f6   : > { %1309 = vmax.xlane.f32.xlu1 %v1308_v22  ;;  %v9773_v40 = vpop.f32.mrf.mxu1 }
 0x1f7   : > { %v1302_v31 = vsel %vm1298_vm1, %v9773_v40, -inf }
 0x1f8   : > { %1303 = vmax.xlane.f32.xlu0 %v1302_v31  ;;  %v9777_v38 = vpop.f32.mrf.mxu1 }
 0x1f9   : > { %v1317_v56 = vsel %vm1298_vm1, %v9777_v38, -inf }
 0x1fa   : > { %v9779_v23 = vpop.f32.mrf.mxu1 }
 0x1fb   : > { %v1311_v24 = vsel %vm1298_vm1, %v9779_v23, -inf }
 0x1fc   : > { %1318 = vmax.xlane.f32.xlu0 %v1317_v56  ;;  %v9783_v49 = vpop.f32.mrf.mxu1 }
 0x1fd   : > { %v1320_v12 = vsel %vm1298_vm1, %v9783_v49, -inf }
 0x1fe   : > { %1321 = vmax.xlane.f32.xlu1 %v1320_v12  ;;  %v9787_v6 = vpop.f32.mrf.mxu1 }
 0x1ff   : > { %v1314_v47 = vsel %vm1298_vm1, %v9787_v6, -inf }
 0x200   : > { %1312 = vmax.xlane.f32.xlu0 %v1311_v24 }
 0x202   : > { %1315 = vmax.xlane.f32.xlu1 %v1314_v47 }
 0x211   : > { %v9793_v60 = vpop.f32.mrf.mxu1 }
 0x212   : > { %v1329_v13 = vsel %vm1298_vm1, %v9793_v60, -inf }
 0x213   : > { %1330 = vmax.xlane.f32.xlu0 %v1329_v13  ;;  %v9797_v36 = vpop.f32.mrf.mxu1 }
 0x214   : > { %v1323_v44 = vsel %vm1298_vm1, %v9797_v36, -inf }
 0x215   : > { %v9799_v9 = vpop.f32.mrf.mxu1 }
 0x216   : > { %v1332_v18 = vsel %vm1298_vm1, %v9799_v9, -inf }
 0x217   : > { %1324 = vmax.xlane.f32.xlu0 %v1323_v44  ;;  %1333 = vmax.xlane.f32.xlu1 %v1332_v18  ;;  %v9805_v3 = vpop.f32.mrf.mxu1 }
 0x218   : > { %v1326_v20 = vsel %vm1298_vm1, %v9805_v3, -inf }
 0x219   : > { %v9807_v10 = vpop.f32.mrf.mxu1 }
 0x21a   : > { %v1341_v30 = vsel %vm1298_vm1, %v9807_v10, -inf }
 0x21b   : > { %1327 = vmax.xlane.f32.xlu1 %v1326_v20  ;;  %1342 = vmax.xlane.f32.xlu0 %v1341_v30  ;;  %v9813_v35 = vpop.f32.mrf.mxu1 }
 0x21c   : > { %v1335_v19 = vsel %vm1298_vm1, %v9813_v35, -inf }
 0x21d   : > { %v9815_v54 = vpop.f32.mrf.mxu1 }
 0x21e   : > { %v1344_v25 = vsel %vm1298_vm1, %v9815_v54, -inf }
 0x21f   : > { %1336 = vmax.xlane.f32.xlu0 %v1335_v19  ;;  %1345 = vmax.xlane.f32.xlu1 %v1344_v25  ;;  %v9821_v62 = vpop.f32.mrf.mxu1 }
 0x220   : > { %v9823_v48 = vpop.f32.mrf.mxu0  ;;  %v1338_v22 = vsel %vm1298_vm1, %v9821_v62, -inf }
 0x221   : > { %v1353_v4 = vsel %vm1298_vm1, %v9823_v48, -inf }
 0x222   : > { %v9827_v16 = vpop.f32.mrf.mxu0 }
 0x223   : > { %1354 = vmax.xlane.f32.xlu0 %v1353_v4  ;;  %1339 = vmax.xlane.f32.xlu1 %v1338_v22  ;;  %v1347_v24 = vsel %vm1298_vm1, %v9827_v16, -inf }
 0x224   : > { %v9831_v31 = vpop.f32.mrf.mxu0 }
 0x225   : > { %v1356_v56 = vsel %vm1298_vm1, %v9831_v31, -inf }
 0x226   : > { %v9835_v12 = vpop.f32.mrf.mxu0 }
 0x227   : > { %1348 = vmax.xlane.f32.xlu0 %v1347_v24  ;;  %1357 = vmax.xlane.f32.xlu1 %v1356_v56  ;;  %v1350_v18 = vsel %vm1298_vm1, %v9835_v12, -inf }
 0x228   : > { %v9839_v47 = vpop.f32.mrf.mxu0 }
 0x229   : > { %v1365_v13 = vsel %vm1298_vm1, %v9839_v47, -inf }
 0x22a   : > { %v9843_v44 = vpop.f32.mrf.mxu0 }
 0x22b   : > { %1366 = vmax.xlane.f32.xlu0 %v1365_v13  ;;  %1351 = vmax.xlane.f32.xlu1 %v1350_v18  ;;  %v1359_v19 = vsel %vm1298_vm1, %v9843_v44, -inf }
 0x22c   : > { %v9847_v20 = vpop.f32.mrf.mxu0 }
 0x22d   : > { %v1368_v30 = vsel %vm1298_vm1, %v9847_v20, -inf }
 0x22e   : > { %v9853_v25 = vpop.f32.mrf.mxu0 }
 0x22f   : > { %1360 = vmax.xlane.f32.xlu0 %v1359_v19  ;;  %1369 = vmax.xlane.f32.xlu1 %v1368_v30  ;;  %v1362_v22 = vsel %vm1298_vm1, %v9853_v25, -inf }
 0x231   : > { %v9855_v4 = vpop.f32.mrf.mxu1 }
 0x232   : > { %v1377_v56 = vsel %vm1298_vm1, %v9855_v4, -inf }
 0x233   : > { %1363 = vmax.xlane.f32.xlu1 %v1362_v22  ;;  %1378 = vmax.xlane.f32.xlu0 %v1377_v56  ;;  %v9861_v24 = vpop.f32.mrf.mxu1 }
 0x234   : > { %v1371_v18 = vsel %vm1298_vm1, %v9861_v24, -inf }
 0x235   : > { %v9863_v13 = vpop.f32.mrf.mxu1 }
 0x236   : > { %v1380_v30 = vsel %vm1298_vm1, %v9863_v13, -inf }
 0x237   : > { %1372 = vmax.xlane.f32.xlu0 %v1371_v18  ;;  %1381 = vmax.xlane.f32.xlu1 %v1380_v30  ;;  %v9869_v19 = vpop.f32.mrf.mxu1 }
 0x238   : > { %v1374_v22 = vsel %vm1298_vm1, %v9869_v19, -inf }
 0x239   : > { %v9871_v37 = vpop.f32.mrf.mxu1 }
 0x23a   : > { %v1389_v56 = vsel %vm1298_vm1, %v9871_v37, -inf }
 0x23b   : > { %1375 = vmax.xlane.f32.xlu1 %v1374_v22  ;;  %1390 = vmax.xlane.f32.xlu0 %v1389_v56  ;;  %v9877_v45 = vpop.f32.mrf.mxu1  ;;  %v9889_v22 = vpop.permute.xlu1 %2152 }
 0x23c   : > { %v1383_v18 = vsel %vm1298_vm1, %v9877_v45, -inf  ;;  %12460 = vst [vmem:[#allocation43_spill] sm:$0xff] %v9889_v22 }
 0x23d   : > { %v9879_v39 = vpop.f32.mrf.mxu1 }
 0x23e   : > { %v1392_v30 = vsel %vm1298_vm1, %v9879_v39, -inf }
 0x23f   : > { %1384 = vmax.xlane.f32.xlu0 %v1383_v18  ;;  %1393 = vmax.xlane.f32.xlu1 %v1392_v30  ;;  %v9885_v14 = vpop.f32.mrf.mxu1  ;;  %v9891_v56 = vpop.permute.xlu1 %2156 }
 0x240   : > { %v1386_v26 = vsel %vm1298_vm1, %v9885_v14, -inf  ;;  %12461 = vst [vmem:[#allocation44_spill] sm:$0xff] %v9891_v56  ;;  %v9903_v30 = vpop.permute.xlu0 %2158 }
 0x243   : > { %1387 = vmax.xlane.f32.xlu1 %v1386_v26  ;;  %v9893_v34 = vpop.permute.xlu1 %2267 }
 0x244   : > { %12462 = vst [vmem:[#allocation45_spill] sm:$0xff] %v9893_v34 }
 0x247   : > { %v9897_v55 = vpop.permute.xlu1 %2269 }
 0x248   : > { %12464 = vst [vmem:[#allocation47_spill] sm:$0xff] %v9897_v55 }
 0x24b   : > { %v9901_v18 = vpop.permute.xlu1 %2271 }
 0x24c   : > { %12466 = vst [vmem:[#allocation49_spill] sm:$0xff] %v9901_v18 }
 0x27b   : > { %v1307_v58 = vpop.xlane.xlu1 %1306 }
 0x27c   : > { %v1397_v53 = vsub.f32 %v9761_v63, %v1307_v58 }
 0x27d   : > { %v1301_v26 = vpop.xlane.xlu0 %1300 }
 0x27e   : > { %v1431_v57 = vmul.f32 1.442695, %v1397_v53  ;;  %v1395_v22 = vsub.f32 %v9765_v42, %v1301_v26 }
 0x27f   : > { %v1310_v56 = vpop.xlane.xlu1 %1309 }
 0x280   : > { %8568 = vpow2.f32 %v1431_v57  ;;  %v1427_v34 = vmul.f32 1.442695, %v1395_v22  ;;  %v1398_v52 = vsub.f32 %v9769_v59, %v1310_v56 }
 0x281   : > { %v1304_v29 = vpop.xlane.xlu0 %1303 }
 0x282   : > { %8570 = vpow2.f32 %v1427_v34  ;;  %v1433_v55 = vmul.f32 1.442695, %v1398_v52  ;;  %v1396_v46 = vsub.f32 %v9773_v40, %v1304_v29 }
 0x284   : > { %8572 = vpow2.f32 %v1433_v55  ;;  %v1429_v18 = vmul.f32 1.442695, %v1396_v46 }
 0x285   : > { %v1319_v41 = vpop.xlane.xlu0 %1318 }
 0x286   : > { %8574 = vpow2.f32 %v1429_v18  ;;  %v1401_v58 = vsub.f32 %v9777_v38, %v1319_v41 }
 0x287   : > { %v1322_v63 = vpop.xlane.xlu1 %1321 }
 0x288   : > { %v1439_v53 = vmul.f32 1.442695, %v1401_v58  ;;  %v1402_v42 = vsub.f32 %v9783_v49, %v1322_v63 }
 0x289   : > { %v1313_v26 = vpop.xlane.xlu0 %1312 }
 0x28a   : > { %8576 = vpow2.f32 %v1439_v53  ;;  %v1441_v57 = vmul.f32 1.442695, %v1402_v42  ;;  %v1399_v59 = vsub.f32 %v9779_v23, %v1313_v26 }
 0x28b   : > { %v1316_v22 = vpop.xlane.xlu1 %1315 }
 0x28c   : > { %8578 = vpow2.f32 %v1441_v57  ;;  %v1435_v34 = vmul.f32 1.442695, %v1399_v59  ;;  %v1400_v29 = vsub.f32 %v9787_v6, %v1316_v22 }
 0x28d   : > { %v9913_v55 = vpop.eup %8568 }
 0x28e   : > { %8580 = vpow2.f32 %v1435_v34  ;;  %v1437_v46 = vmul.f32 1.442695, %v1400_v29  ;;  %v1497_v41 = vsel %vm1298_vm1, %v9913_v55, 0.0 }
 0x28f   : > { %v9917_v52 = vpop.eup %8570  ;;  %1498 = vadd.xlane.f32.xlu0 %v1497_v41 }
 0x290   : > { %8582 = vpow2.f32 %v1437_v46  ;;  %v1491_v38 = vsel %vm1298_vm1, %v9917_v52, 0.0 }
 0x291   : > { %v9919_v40 = vpop.eup %8572 }
 0x292   : > { %v1500_v23 = vsel %vm1298_vm1, %v9919_v40, 0.0 }
 0x293   : > { %v9925_v49 = vpop.eup %8574  ;;  %1492 = vadd.xlane.f32.xlu0 %v1491_v38  ;;  %1501 = vadd.xlane.f32.xlu1 %v1500_v23 }
 0x294   : > { %v1494_v6 = vsel %vm1298_vm1, %v9925_v49, 0.0 }
 0x297   : > { %v9929_v56 = vpop.eup %8576  ;;  %1495 = vadd.xlane.f32.xlu1 %v1494_v6 }
 0x298   : > { %v1509_v18 = vsel %vm1298_vm1, %v9929_v56, 0.0 }
 0x299   : > { %v9933_v58 = vpop.eup %8578  ;;  %1510 = vadd.xlane.f32.xlu0 %v1509_v18 }
 0x29a   : > { %v1512_v63 = vsel %vm1298_vm1, %v9933_v58, 0.0 }
 0x29b   : > { %v9937_v53 = vpop.eup %8580  ;;  %1513 = vadd.xlane.f32.xlu1 %v1512_v63 }
 0x29c   : > { %v1331_v42 = vpop.xlane.xlu0 %1330  ;;  %v1503_v26 = vsel %vm1298_vm1, %v9937_v53, 0.0 }
 0x29d   : > { %v9941_v57 = vpop.eup %8582  ;;  %v1405_v59 = vsub.f32 %v9793_v60, %v1331_v42  ;;  %1504 = vadd.xlane.f32.xlu0 %v1503_v26 }
 0x29e   : > { %v1506_v22 = vsel %vm1298_vm1, %v9941_v57, 0.0 }
 0x29f   : > { %v1447_v34 = vmul.f32 1.442695, %v1405_v59  ;;  %1507 = vadd.xlane.f32.xlu1 %v1506_v22 }
 0x2a0   : > { %v1325_v29 = vpop.xlane.xlu0 %1324  ;;  %v1334_v46 = vpop.xlane.xlu1 %1333 }
 0x2a1   : > { %8584 = vpow2.f32 %v1447_v34  ;;  %v1403_v41 = vsub.f32 %v9797_v36, %v1325_v29  ;;  %v1406_v38 = vsub.f32 %v9799_v9, %v1334_v46 }
 0x2a3   : > { %v1443_v23 = vmul.f32 1.442695, %v1403_v41  ;;  %v1449_v6 = vmul.f32 1.442695, %v1406_v38 }
 0x2a4   : > { %v1328_v18 = vpop.xlane.xlu1 %1327  ;;  %v1343_v63 = vpop.xlane.xlu0 %1342 }
 0x2a5   : > { %8586 = vpow2.f32 %v1443_v23  ;;  %v1404_v60 = vsub.f32 %v9805_v3, %v1328_v18  ;;  %v1409_v42 = vsub.f32 %v9807_v10, %v1343_v63 }
 0x2a6   : > { %8588 = vpow2.f32 %v1449_v6 }
 0x2a7   : > { %v1445_v26 = vmul.f32 1.442695, %v1404_v60  ;;  %v1455_v59 = vmul.f32 1.442695, %v1409_v42 }
 0x2a8   : > { %v1337_v22 = vpop.xlane.xlu0 %1336  ;;  %v1346_v2 = vpop.xlane.xlu1 %1345 }
 0x2a9   : > { %8590 = vpow2.f32 %v1445_v26  ;;  %v1407_v34 = vsub.f32 %v9813_v35, %v1337_v22  ;;  %v1410_v36 = vsub.f32 %v9815_v54, %v1346_v2 }
 0x2aa   : > { %8592 = vpow2.f32 %v1455_v59 }
 0x2ab   : > { %v1451_v9 = vmul.f32 1.442695, %v1407_v34  ;;  %v1457_v29 = vmul.f32 1.442695, %v1410_v36 }
 0x2ac   : > { %v1355_v46 = vpop.xlane.xlu0 %1354  ;;  %v1340_v41 = vpop.xlane.xlu1 %1339 }
 0x2ad   : > { %8594 = vpow2.f32 %v1451_v9  ;;  %v1413_v3 = vsub.f32 %v9823_v48, %v1355_v46  ;;  %v1408_v10 = vsub.f32 %v9821_v62, %v1340_v41 }
 0x2ae   : > { %v9954_v38 = vpop.eup %8584  ;;  %8596 = vpow2.f32 %v1457_v29 }
 0x2af   : > { %v1463_v23 = vmul.f32 1.442695, %v1413_v3  ;;  %v1453_v6 = vmul.f32 1.442695, %v1408_v10  ;;  %v1521_v35 = vsel %vm1298_vm1, %v9954_v38, 0.0 }
 0x2b0   : > { %v1349_v18 = vpop.xlane.xlu0 %1348  ;;  %v1358_v2 = vpop.xlane.xlu1 %1357  ;;  %1522 = vadd.xlane.f32.xlu0 %v1521_v35 }
 0x2b1   : > { %8598 = vpow2.f32 %v1463_v23  ;;  %v1411_v54 = vsub.f32 %v9827_v16, %v1349_v18  ;;  %v1414_v63 = vsub.f32 %v9831_v31, %v1358_v2 }
 0x2b2   : > { %v9960_v60 = vpop.eup %8586  ;;  %8600 = vpow2.f32 %v1453_v6 }
 0x2b3   : > { %v9962_v62 = vpop.eup %8588  ;;  %v1459_v48 = vmul.f32 1.442695, %v1411_v54  ;;  %v1465_v42 = vmul.f32 1.442695, %v1414_v63  ;;  %v1515_v26 = vsel %vm1298_vm1, %v9960_v60, 0.0 }
 0x2b4   : > { %v1367_v59 = vpop.xlane.xlu0 %1366  ;;  %v1352_v22 = vpop.xlane.xlu1 %1351  ;;  %1516 = vadd.xlane.f32.xlu0 %v1515_v26  ;;  %v1524_v34 = vsel %vm1298_vm1, %v9962_v62, 0.0 }
 0x2b5   : > { %8602 = vpow2.f32 %v1459_v48  ;;  %v1417_v16 = vsub.f32 %v9839_v47, %v1367_v59  ;;  %v1412_v31 = vsub.f32 %v9835_v12, %v1352_v22  ;;  %1525 = vadd.xlane.f32.xlu1 %v1524_v34 }
 0x2b6   : > { %v9970_v36 = vpop.eup %8590  ;;  %8604 = vpow2.f32 %v1465_v42 }
 0x2b7   : > { %v9972_v9 = vpop.eup %8592  ;;  %v1471_v29 = vmul.f32 1.442695, %v1417_v16  ;;  %v1461_v46 = vmul.f32 1.442695, %v1412_v31  ;;  %v1518_v41 = vsel %vm1298_vm1, %v9970_v36, 0.0 }
 0x2b8   : > { %v1361_v3 = vpop.xlane.xlu0 %1360  ;;  %v1370_v10 = vpop.xlane.xlu1 %1369  ;;  %v1533_v23 = vsel %vm1298_vm1, %v9972_v9, 0.0 }
 0x2b9   : > { %8606 = vpow2.f32 %v1471_v29  ;;  %v1415_v47 = vsub.f32 %v9843_v44, %v1361_v3  ;;  %v1418_v12 = vsub.f32 %v9847_v20, %v1370_v10  ;;  %1534 = vadd.xlane.f32.xlu0 %v1533_v23  ;;  %1519 = vadd.xlane.f32.xlu1 %v1518_v41 }
 0x2ba   : > { %v9980_v6 = vpop.eup %8594  ;;  %8608 = vpow2.f32 %v1461_v46 }
 0x2bb   : > { %v9982_v35 = vpop.eup %8596  ;;  %v1467_v18 = vmul.f32 1.442695, %v1415_v47  ;;  %v1473_v2 = vmul.f32 1.442695, %v1418_v12  ;;  %v1527_v54 = vsel %vm1298_vm1, %v9980_v6, 0.0 }
 0x2bc   : > { %v1364_v63 = vpop.xlane.xlu1 %1363  ;;  %v1379_v48 = vpop.xlane.xlu0 %1378  ;;  %v1536_v42 = vsel %vm1298_vm1, %v9982_v35, 0.0 }
 0x2bd   : > { %8610 = vpow2.f32 %v1467_v18  ;;  %v1416_v44 = vsub.f32 %v9853_v25, %v1364_v63  ;;  %v1421_v20 = vsub.f32 %v9855_v4, %v1379_v48  ;;  %1528 = vadd.xlane.f32.xlu0 %v1527_v54  ;;  %1537 = vadd.xlane.f32.xlu1 %v1536_v42 }
 0x2be   : > { %v9990_v26 = vpop.eup %8598  ;;  %8612 = vpow2.f32 %v1473_v2 }
 0x2bf   : > { %v9992_v59 = vpop.eup %8600  ;;  %v1469_v22 = vmul.f32 1.442695, %v1416_v44  ;;  %v1479_v34 = vmul.f32 1.442695, %v1421_v20  ;;  %v1545_v16 = vsel %vm1298_vm1, %v9990_v26, 0.0 }
 0x2c0   : > { %v1373_v31 = vpop.xlane.xlu0 %1372  ;;  %v1382_v29 = vpop.xlane.xlu1 %1381  ;;  %v1530_v46 = vsel %vm1298_vm1, %v9992_v59, 0.0 }
 0x2c1   : > { %8614 = vpow2.f32 %v1469_v22  ;;  %v1419_v25 = vsub.f32 %v9861_v24, %v1373_v31  ;;  %v1422_v4 = vsub.f32 %v9863_v13, %v1382_v29  ;;  %1546 = vadd.xlane.f32.xlu0 %v1545_v16  ;;  %1531 = vadd.xlane.f32.xlu1 %v1530_v46 }
 0x2c2   : > { %v10000_v41 = vpop.eup %8602  ;;  %8616 = vpow2.f32 %v1479_v34 }
 0x2c3   : > { %v10002_v3 = vpop.eup %8604  ;;  %v1475_v10 = vmul.f32 1.442695, %v1419_v25  ;;  %v1481_v23 = vmul.f32 1.442695, %v1422_v4  ;;  %v1539_v47 = vsel %vm1298_vm1, %v10000_v41, 0.0 }
 0x2c4   : > { %v1376_v12 = vpop.xlane.xlu1 %1375  ;;  %v1548_v18 = vsel %vm1298_vm1, %v10002_v3, 0.0 }
 0x2c5   : > { %8618 = vpow2.f32 %v1475_v10  ;;  %v1420_v24 = vsub.f32 %v9869_v19, %v1376_v12  ;;  %1540 = vadd.xlane.f32.xlu0 %v1539_v47  ;;  %1549 = vadd.xlane.f32.xlu1 %v1548_v18  ;;  %v12467_v47 = vld [vmem:[#allocation13_spill] sm:$0xff]  ;;  %v1391_v12 = vpop.xlane.xlu0 %1390  ;;  %v12468_v18 = vld [vmem:[#allocation6_spill] sm:$0xff] }
 0x2c6   : > { %v10009_v13 = vpop.eup %8606  ;;  %8620 = vpow2.f32 %v1481_v23 }
 0x2c7   : > { %v10011_v2 = vpop.eup %8608  ;;  %v1477_v54 = vmul.f32 1.442695, %v1420_v24  ;;  %v1557_v63 = vsel %vm1298_vm1, %v10009_v13, 0.0 }
 0x2c8   : > { %v1542_v48 = vsel %vm1298_vm1, %v10011_v2, 0.0  ;;  %v1394_v24 = vpop.xlane.xlu1 %1393 }
 0x2c9   : > { %8622 = vpow2.f32 %v1477_v54  ;;  %1558 = vadd.xlane.f32.xlu0 %v1557_v63  ;;  %1543 = vadd.xlane.f32.xlu1 %v1542_v48  ;;  %v1425_v54 = vsub.f32 %v9871_v37, %v1391_v12  ;;  %v1385_v63 = vpop.xlane.xlu0 %1384 }
 0x2ca   : > { %v10017_v42 = vpop.eup %8610 }
 0x2cb   : > { %v10019_v19 = vpop.eup %8612  ;;  %v1551_v44 = vsel %vm1298_vm1, %v10017_v42, 0.0 }
 0x2cc   : > { %v1560_v20 = vsel %vm1298_vm1, %v10019_v19, 0.0  ;;  %v1388_v48 = vpop.xlane.xlu1 %1387 }
 0x2cd   : > { %1552 = vadd.xlane.f32.xlu0 %v1551_v44  ;;  %1561 = vadd.xlane.f32.xlu1 %v1560_v20  ;;  %v1423_v44 = vsub.f32 %v9877_v45, %v1385_v63  ;;  %v1487_v20 = vmul.f32 1.442695, %v1425_v54 }
 0x2ce   : > { %v10025_v22 = vpop.eup %8614 }
 0x2cf   : > { %v10027_v34 = vpop.eup %8616  ;;  %v1554_v16 = vsel %vm1298_vm1, %v10025_v22, 0.0  ;;  %8624 = vpow2.f32 %v1487_v20 }
 0x2d0   : > { %v1569_v31 = vsel %vm1298_vm1, %v10027_v34, 0.0 }
 0x2d1   : > { %1570 = vadd.xlane.f32.xlu0 %v1569_v31  ;;  %1555 = vadd.xlane.f32.xlu1 %v1554_v16  ;;  %v1424_v16 = vsub.f32 %v9885_v14, %v1388_v48  ;;  %v1483_v31 = vmul.f32 1.442695, %v1423_v44 }
 0x2d2   : > { %v10033_v29 = vpop.eup %8618 }
 0x2d3   : > { %v10035_v46 = vpop.eup %8620  ;;  %v1563_v25 = vsel %vm1298_vm1, %v10033_v29, 0.0  ;;  %8626 = vpow2.f32 %v1483_v31 }
 0x2d4   : > { %v1572_v4 = vsel %vm1298_vm1, %v10035_v46, 0.0 }
 0x2d5   : > { %1564 = vadd.xlane.f32.xlu0 %v1563_v25  ;;  %1573 = vadd.xlane.f32.xlu1 %v1572_v4  ;;  %v1426_v25 = vsub.f32 %v9879_v39, %v1394_v24  ;;  %v1485_v4 = vmul.f32 1.442695, %v1424_v16 }
 0x2d6   : > { %v10041_v10 = vpop.eup %8622 }
 0x2d7   : > { %v1566_v23 = vsel %vm1298_vm1, %v10041_v10, 0.0  ;;  %8628 = vpow2.f32 %v1485_v4 }
 0x2d9   : > { %1567 = vadd.xlane.f32.xlu1 %v1566_v23  ;;  %v1489_v23 = vmul.f32 1.442695, %v1426_v25  ;;  %v12469_v25 = vld [vmem:[#allocation19_spill] sm:$0xff] }
 0x2db   : > { %8630 = vpow2.f32 %v1489_v23 }
 0x2ea   : > { %2142 = vrot.lane.b32.xlu1 %v12467_v47, %s9089_s30 }
 0x2eb   : > { %2384 = vrot.lane.b32.xlu0 %v12468_v18, %s9089_s30  ;;  %v10053_v18 = vpop.eup %8624 }
 0x2ec   : > { %v10055_v47 = vpop.eup %8626  ;;  %v1581_v37 = vsel %vm1298_vm1, %v10053_v18, 0.0 }
 0x2ed   : > { %v10059_v45 = vpop.eup %8628  ;;  %v1575_v14 = vsel %vm1298_vm1, %v10055_v47, 0.0 }
 0x2ee   : > { %v1578_v39 = vsel %vm1298_vm1, %v10059_v45, 0.0  ;;  %v10065_v12 = vpop.eup %8630 }
 0x2ef   : > { %v1584_v24 = vsel %vm1298_vm1, %v10065_v12, 0.0 }
 0x30a   : > { %1582 = vadd.xlane.f32.xlu0 %v1581_v37 }
 0x30e   : > { %1576 = vadd.xlane.f32.xlu1 %v1575_v14  ;;  %1579 = vadd.xlane.f32.xlu0 %v1578_v39 }
 0x312   : > { %1585 = vadd.xlane.f32.xlu1 %v1584_v24 }
 0x318   : > { %v1499_v54 = vpop.xlane.xlu0 %1498 }
 0x31c   : > { %v1493_v63 = vpop.xlane.xlu0 %1492  ;;  %v1502_v48 = vpop.xlane.xlu1 %1501 }
 0x31d   : > { %8632 = vrcp.f32 %v1502_v48 }
 0x31e   : > { %8634 = vrcp.f32 %v1493_v63 }
 0x31f   : > { %8636 = vrcp.f32 %v1499_v54  ;;  %v12470_v54 = vld [vmem:[#allocation18_spill] sm:$0xff] }
 0x320   : > { %v1496_v44 = vpop.xlane.xlu1 %1495 }
 0x321   : > { %8638 = vrcp.f32 %v1496_v44 }
 0x322   : > { %v1511_v20 = vpop.xlane.xlu0 %1510 }
 0x323   : > { %2382 = vrot.lane.b32.xlu1 %v9536_v32, %s9089_s30 }
 0x324   : > { %2265 = vrot.lane.b32.xlu0 %v9513_v5, %s9089_s30  ;;  %v1514_v16 = vpop.xlane.xlu1 %1513 }
 0x325   : > { %8640 = vrcp.f32 %v1514_v16 }
 0x326   : > { %v1505_v31 = vpop.xlane.xlu0 %1504 }
 0x327   : > { %2380 = vrot.lane.b32.xlu1 %v9540_v17, %s9089_s30  ;;  %8642 = vrcp.f32 %v1505_v31 }
 0x328   : > { %8644 = vrcp.f32 %v1511_v20  ;;  %2253 = vrot.lane.b32.xlu0 %v12469_v25, %s9089_s30  ;;  %v1508_v4 = vpop.xlane.xlu1 %1507  ;;  %v12471_v20 = vld [vmem:[#allocation15_spill] sm:$0xff] }
 0x329   : > { %8646 = vrcp.f32 %v1508_v4 }
 0x32a   : > { %v8633_v23 = vpop.eup %8632 }
 0x32b   : > { %2255 = vrot.lane.b32.xlu1 %v9572_v21, %s9089_s30  ;;  %v8635_v37 = vpop.eup %8634  ;;  %v1622_v24 = vmul.f32 %v8633_v23, %v9919_v40 }
 0x32c   : > { %2497 = vrot.lane.b32.xlu0 %v9538_v15, %s9089_s30  ;;  %v8637_v14 = vpop.eup %8636  ;;  %v1619_v63 = vmul.f32 %v8635_v37, %v9917_v52 }
 0x32d   : > { %v1621_v44 = vmul.f32 %v8637_v14, %v9913_v55  ;;  %v12472_v14 = vld [vmem:[#allocation17_spill] sm:$0xff] }
 0x32e   : > { %v8639_v39 = vpop.eup %8638 }
 0x32f   : > { %2146 = vrot.lane.b32.xlu1 %v12470_v54, %s9089_s30  ;;  %v1620_v48 = vmul.f32 %v8639_v39, %v9925_v49  ;;  %v1652_v31 = vpack.c.bf16 %v1622_v24, %v1621_v44 }
 0x330   : > { %2144 = vrot.lane.b32.xlu0 %v12471_v20, %s9089_s30 }
 0x331   : > { %v1651_v16 = vpack.c.bf16 %v1620_v48, %v1619_v63  ;;  %v12473_v48 = vld [vmem:[#allocation20_spill] sm:$0xff] }
 0x332   : > { %v8641_v4 = vpop.eup %8640 }
 0x333   : > { %2495 = vrot.lane.b32.xlu1 %v9585_v1, %s9089_s30  ;;  %7916 = vmatprep.mubr.msk.bf16.mxu0 %vm1298_vm1, %v1651_v16  ;;  %v1626_v49 = vmul.f32 %v8641_v4, %v9933_v58 }
 0x334   : > { %v8643_v40 = vpop.eup %8642  ;;  %2378 = vrot.lane.b32.xlu0 %v9583_v61, %s9089_s30  ;;  %7917 = vmatmul.mubr.msk.bf16.vlgmr.msra.gmra.mxu0 %vm1298_vm1, %v1652_v31 }
 0x335   : > { %v8645_v52 = vpop.eup %8644  ;;  %7941 = vmatpush3.bf16.msra.mxu0 %v9705_v50  ;;  %v1623_v23 = vmul.f32 %v8643_v40, %v9937_v53  ;;  %v12474_v53 = vld [vmem:[#allocation21_spill] sm:$0xff] }
 0x336   : > { %v8647_v55 = vpop.eup %8646  ;;  %7942 = vmatprep.subr.bf16.mxu0 %v9551_v8  ;;  %v1625_v39 = vmul.f32 %v8645_v52, %v9929_v56  ;;  %v12475_v40 = vld [vmem:[#allocation33_spill] sm:$0xff] }
 0x337   : > { %2368 = vrot.lane.b32.xlu1 %v9658_v51, %s9089_s30  ;;  %v1624_v37 = vmul.f32 %v8647_v55, %v9941_v57 }
 0x338   : > { %2366 = vrot.lane.b32.xlu0 %v12472_v14, %s9089_s30  ;;  %v1654_v44 = vpack.c.bf16 %v1626_v49, %v1625_v39  ;;  %v12476_v49 = vld [vmem:[#allocation16_spill] sm:$0xff] }
 0x339   : > { %v1523_v24 = vpop.xlane.xlu0 %1522  ;;  %7943 = vmatpush3.bf16.msra.mxu0 %v9551_v8  ;;  %v1653_v63 = vpack.c.bf16 %v1624_v37, %v1623_v23  ;;  %v12477_v23 = vld [vmem:[#allocation39_spill] sm:$0xff] }
 0x33a   : > { %7944 = vmatprep.subr.bf16.mxu0 %v12473_v48 }
 0x33b   : > { %2257 = vrot.lane.b32.xlu1 %v9576_v43, %s9089_s30  ;;  %7920 = vmatprep.mubr.msk.bf16.mxu0 %vm1298_vm1, %v1653_v63 }
 0x33c   : > { %2493 = vrot.lane.b32.xlu0 %v9629_v33, %s9089_s30  ;;  %7921 = vmatmul.mubr.msk.bf16.gmra.mxu0 %vm1298_vm1, %v1654_v44  ;;  %v12478_v44 = vld [vmem:[#allocation32_spill] sm:$0xff] }
 0x33d   : > { %v1517_v58 = vpop.xlane.xlu0 %1516  ;;  %7945 = vmatpush3.bf16.msra.mxu0 %v12473_v48 }
 0x33e   : > { %v1526_v56 = vpop.xlane.xlu1 %1525  ;;  %7946 = vmatprep.subr.bf16.mxu0 %v12474_v53 }
 0x33f   : > { %2491 = vrot.lane.b32.xlu1 %v9670_v7, %s9089_s30  ;;  %8648 = vrcp.f32 %v1526_v56  ;;  %v12479_v56 = vld [vmem:[#allocation28_spill] sm:$0xff] }
 0x340   : > { %2259 = vrot.lane.b32.xlu0 %v9620_v27, %s9089_s30  ;;  %8650 = vrcp.f32 %v1517_v58 }
 0x341   : > { %7947 = vmatpush3.bf16.msra.mxu0 %v12474_v53  ;;  %8652 = vrcp.f32 %v1523_v24 }
 0x342   : > { %v1535_v57 = vpop.xlane.xlu0 %1534  ;;  %v1520_v16 = vpop.xlane.xlu1 %1519  ;;  %8436 = vmatprep.subr.msk.bf16.mxu0 %vm941_vm0, %v9903_v30 }
 0x343   : > { %2481 = vrot.lane.b32.xlu1 %v9323_v28, %s9089_s30  ;;  %8654 = vrcp.f32 %v1520_v16 }
 0x344   : > { %2479 = vrot.lane.b32.xlu0 %v9624_v11, %s9089_s30  ;;  %v12480_v11 = vld [vmem:[#allocation34_spill] sm:$0xff] }
 0x346   : > { %v1529_v31 = vpop.xlane.xlu0 %1528  ;;  %v1538_v4 = vpop.xlane.xlu1 %1537 }
 0x347   : > { %2372 = vrot.lane.b32.xlu1 %v9276_v0, %s9089_s30  ;;  %8656 = vrcp.f32 %v1538_v4 }
 0x348   : > { %2370 = vrot.lane.b32.xlu0 %v12475_v40, %s9089_s30  ;;  %8658 = vrcp.f32 %v1529_v31 }
 0x349   : > { %8660 = vrcp.f32 %v1535_v57 }
 0x34a   : > { %v1547_v52 = vpop.xlane.xlu0 %1546  ;;  %v1532_v55 = vpop.xlane.xlu1 %1531 }
 0x34b   : > { %2485 = vrot.lane.b32.xlu1 %v12476_v49, %s9089_s30  ;;  %8662 = vrcp.f32 %v1532_v55 }
 0x34c   : > { %2483 = vrot.lane.b32.xlu0 %v12477_v23, %s9089_s30  ;;  %v8649_v37 = vpop.eup %8648 }
 0x34d   : > { %v8651_v63 = vpop.eup %8650  ;;  %v1630_v57 = vmul.f32 %v8649_v37, %v9962_v62 }
 0x34e   : > { %v1541_v39 = vpop.xlane.xlu0 %1540  ;;  %v1550_v24 = vpop.xlane.xlu1 %1549  ;;  %v1627_v55 = vmul.f32 %v8651_v63, %v9960_v60 }
 0x34f   : > { %2964 = vrot.lane.b32.xlu1 %v12478_v44, %s9089_s30  ;;  %v8653_v58 = vpop.eup %8652  ;;  %8664 = vrcp.f32 %v1550_v24 }
 0x350   : > { %2966 = vrot.lane.b32.xlu0 %v12479_v56, %s9089_s30  ;;  %v8655_v16 = vpop.eup %8654  ;;  %8666 = vrcp.f32 %v1541_v39  ;;  %v1629_v40 = vmul.f32 %v8653_v58, %v9954_v38  ;;  %v12481_v56 = vld [vmem:[#allocation35_spill] sm:$0xff]  ;;  %v12482_v38 = vld [vmem:[#allocation36_spill] sm:$0xff] }
 0x351   : > { %v1628_v23 = vmul.f32 %v8655_v16, %v9970_v36  ;;  %8668 = vrcp.f32 %v1547_v52  ;;  %v12483_v52 = vld [vmem:[#allocation42_spill] sm:$0xff] }
 0x352   : > { %v1559_v31 = vpop.xlane.xlu0 %1558  ;;  %v1544_v4 = vpop.xlane.xlu1 %1543  ;;  %v1656_v62 = vpack.c.bf16 %v1630_v57, %v1629_v40  ;;  %v12484_v40 = vld [vmem:[#allocation31_spill] sm:$0xff] }
 0x353   : > { %2962 = vrot.lane.b32.xlu1 %v12480_v11, %s9089_s30  ;;  %8670 = vrcp.f32 %v1544_v4  ;;  %v1655_v27 = vpack.c.bf16 %v1628_v23, %v1627_v55  ;;  %v12485_v55 = vld [vmem:[#allocation38_spill] sm:$0xff] }
 0x354   : > { %2960 = vrot.lane.b32.xlu0 %v12481_v56, %s9089_s30  ;;  %v8657_v37 = vpop.eup %8656 }
 0x355   : > { %7932 = vmatprep.mubr.msk.bf16.mxu1 %vm1298_vm1, %v1655_v27  ;;  %v8659_v60 = vpop.eup %8658  ;;  %v1634_v27 = vmul.f32 %v8657_v37, %v9982_v35 }
 0x356   : > { %v1553_v39 = vpop.xlane.xlu0 %1552  ;;  %v1562_v24 = vpop.xlane.xlu1 %1561  ;;  %7933 = vmatmul.mubr.msk.bf16.vlgmr.msra.gmra.mxu1 %vm1298_vm1, %v1656_v62  ;;  %v1631_v16 = vmul.f32 %v8659_v60, %v9980_v6  ;;  %v12486_v62 = vld [vmem:[#allocation24_spill] sm:$0xff] }
 0x357   : > { %3059 = vrot.lane.b32.xlu1 %v12482_v38, %s9089_s30  ;;  %v8661_v36 = vpop.eup %8660  ;;  %7957 = vmatpush3.bf16.msra.mxu1 %v12483_v52  ;;  %8672 = vrcp.f32 %v1562_v24  ;;  %v12487_v24 = vld [vmem:[#allocation40_spill] sm:$0xff] }
 0x358   : > { %3152 = vrot.lane.b32.xlu0 %v9705_v50, %s9089_s30  ;;  %v8663_v63 = vpop.eup %8662  ;;  %7958 = vmatprep.subr.bf16.mxu1 %v12484_v40  ;;  %8674 = vrcp.f32 %v1553_v39  ;;  %v1633_v4 = vmul.f32 %v8661_v36, %v9972_v9 }
 0x359   : > { %v1632_v57 = vmul.f32 %v8663_v63, %v9992_v59  ;;  %8676 = vrcp.f32 %v1559_v31  ;;  %v12488_v63 = vld [vmem:[#allocation26_spill] sm:$0xff] }
 0x35a   : > { %v1571_v23 = vpop.xlane.xlu0 %1570  ;;  %v1556_v58 = vpop.xlane.xlu1 %1555  ;;  %v1658_v37 = vpack.c.bf16 %v1634_v27, %v1633_v4  ;;  %v12489_v4 = vld [vmem:[#allocation41_spill] sm:$0xff] }
 0x35b   : > { %3150 = vrot.lane.b32.xlu1 %v9551_v8, %s9089_s30  ;;  %7959 = vmatpush3.bf16.msra.mxu1 %v12484_v40  ;;  %8678 = vrcp.f32 %v1556_v58  ;;  %v1657_v35 = vpack.c.bf16 %v1632_v57, %v1631_v16 }
 0x35c   : > { %3057 = vrot.lane.b32.xlu0 %v12485_v55, %s9089_s30  ;;  %7960 = vmatprep.subr.bf16.mxu1 %v12486_v62  ;;  %v8665_v39 = vpop.eup %8664 }
 0x35d   : > { %7936 = vmatprep.mubr.msk.bf16.mxu1 %vm1298_vm1, %v1657_v35  ;;  %v8667_v31 = vpop.eup %8666  ;;  %v1638_v36 = vmul.f32 %v8665_v39, %v10002_v3  ;;  %v12490_v35 = vld [vmem:[#allocation49_spill] sm:$0xff] }
 0x35e   : > { %v1565_v6 = vpop.xlane.xlu0 %1564  ;;  %v1574_v59 = vpop.xlane.xlu1 %1573  ;;  %7937 = vmatmul.mubr.msk.bf16.gmra.mxu1 %vm1298_vm1, %v1658_v37  ;;  %v1635_v58 = vmul.f32 %v8667_v31, %v10000_v41 }
 0x35f   : > { %3148 = vrot.lane.b32.xlu1 %v12473_v48, %s9089_s30  ;;  %v8669_v9 = vpop.eup %8668  ;;  %7961 = vmatpush3.bf16.msra.mxu1 %v12486_v62  ;;  %8680 = vrcp.f32 %v1574_v59 }
 0x360   : > { %3055 = vrot.lane.b32.xlu0 %v12487_v24, %s9089_s30  ;;  %v8671_v60 = vpop.eup %8670  ;;  %8682 = vrcp.f32 %v1565_v6  ;;  %7962 = vmatprep.subr.bf16.mxu1 %v12488_v63  ;;  %v1637_v57 = vmul.f32 %v8669_v9, %v9990_v26  ;;  %v2182_v26 = vsel %vm941_vm0, %v9903_v30, 0  ;;  %v12491_v6 = vld [vmem:[#allocation44_spill] sm:$0xff]  ;;  %v12492_v30 = vld [vmem:[#allocation10_spill] sm:$0xff] }
 0x361   : > { %8684 = vrcp.f32 %v1571_v23  ;;  %v1636_v16 = vmul.f32 %v8671_v60, %v10011_v2 }
 0x362   : > { %v1568_v27 = vpop.xlane.xlu1 %1567  ;;  %v1660_v23 = vpack.c.bf16 %v1638_v36, %v1637_v57  ;;  %v12493_v36 = vld [vmem:[#allocation9_spill] sm:$0xff] }
 0x363   : > { %8686 = vrcp.f32 %v1568_v27  ;;  %3146 = vrot.lane.b32.xlu1 %v12474_v53, %s9089_s30  ;;  %7963 = vmatpush3.bf16.msra.mxu1 %v12488_v63  ;;  %v1659_v3 = vpack.c.bf16 %v1636_v16, %v1635_v58 }
 0x364   : > { %3053 = vrot.lane.b32.xlu0 %v12489_v4, %s9089_s30  ;;  %8440 = vmatprep.subr.msk.bf16.mxu1 %vm941_vm0, %v12490_v35  ;;  %v8673_v37 = vpop.eup %8672 }
 0x365   : > { %7948 = vmatprep.mubr.msk.bf16.mxu0 %vm1298_vm1, %v1659_v3  ;;  %v8675_v41 = vpop.eup %8674  ;;  %v1642_v59 = vmul.f32 %v8673_v37, %v10019_v19  ;;  %v12494_v3 = vld [vmem:[#allocation46_spill] sm:$0xff]  ;;  %v12496_v37 = vld [vmem:[#allocation7_spill] sm:$0xff] }
 0x366   : > { %7949 = vmatmul.mubr.msk.bf16.vlgmr.msra.gmra.mxu0 %vm1298_vm1, %v1660_v23  ;;  %v8677_v2 = vpop.eup %8676  ;;  %v1639_v31 = vmul.f32 %v8675_v41, %v10017_v42  ;;  %v2179_v42 = vsel %vm941_vm0, %v12491_v6, 0  ;;  %v12495_v23 = vld [vmem:[#allocation48_spill] sm:$0xff] }
 0x367   : > { %3245 = vrot.lane.b32.xlu1 %v12483_v52, %s9089_s30  ;;  %7973 = vmatpush3.bf16.xpose.msra.mxu0 %v2182_v26  ;;  %v1641_v60 = vmul.f32 %v8677_v2, %v10009_v13 }
 0x368   : > { %3243 = vrot.lane.b32.xlu0 %v12484_v40, %s9089_s30  ;;  %v8679_v39 = vpop.eup %8678  ;;  %8437 = vmatprep.subr.msk.bf16.mxu0 %vm941_vm0, %v12491_v6  ;;  %v12497_v6 = vld [vmem:[#allocation3_spill] sm:$0xff] }
 0x369   : > { %v1640_v9 = vmul.f32 %v8679_v39, %v10025_v22  ;;  %v1662_v16 = vpack.c.bf16 %v1642_v59, %v1641_v60  ;;  %v2295_v59 = vsel %vm941_vm0, %v12490_v35, 0 }
 0x36b   : > { %3567 = vrot.lane.b32.xlu1 %v12492_v30, %s9090_s7  ;;  %v1661_v27 = vpack.c.bf16 %v1640_v9, %v1639_v31  ;;  %v12500_v31 = vld [vmem:[#allocation43_spill] sm:$0xff]  ;;  %v12501_v9 = vld [vmem:[#allocation5_spill] sm:$0xff] }
 0x36c   : > { %3565 = vrot.lane.b32.xlu0 %v12493_v36, %s9090_s7  ;;  %v8681_v58 = vpop.eup %8680  ;;  %v2173_v60 = vsel %vm941_vm0, %v12500_v31, 0 }
 0x36d   : > { %v8683_v57 = vpop.eup %8682  ;;  %7952 = vmatprep.mubr.msk.bf16.mxu0 %vm1298_vm1, %v1661_v27  ;;  %v1646_v13 = vmul.f32 %v8681_v58, %v10035_v46  ;;  %v12502_v27 = vld [vmem:[#allocation12_spill] sm:$0xff]  ;;  %v2385_v58 = vpop.permute.xlu0 %2384 }
 0x36e   : > { %v8685_v19 = vpop.eup %8684  ;;  %7953 = vmatmul.mubr.msk.bf16.gmra.mxu0 %vm1298_vm1, %v1662_v16  ;;  %v1643_v41 = vmul.f32 %v8683_v57, %v10033_v29  ;;  %v2176_v29 = vsel %vm941_vm0, %v12495_v23, 0  ;;  %v12503_v16 = vld [vmem:[#allocation45_spill] sm:$0xff]  ;;  %v12504_v57 = vld [vmem:[#allocation11_spill] sm:$0xff] }
 0x36f   : > { %3241 = vrot.lane.b32.xlu1 %v12486_v62, %s9089_s30  ;;  %7975 = vmatpush3.bf16.xpose.msra.mxu0 %v2179_v42  ;;  %v1645_v2 = vmul.f32 %v8685_v19, %v10027_v34  ;;  %v12498_v34 = vld [vmem:[#allocation14_spill] sm:$0xff]  ;;  %v2143_v19 = vpop.permute.xlu1 %2142  ;;  %v2289_v42 = vsel %vm941_vm0, %v12503_v16, 0 }
 0x370   : > { %v8687_v22 = vpop.eup %8686  ;;  %7980 = vmatprep.mubr.msk.bf16.mxu0 %vm941_vm0, %v12494_v3  ;;  %8438 = vmatprep.subr.msk.bf16.mxu0 %vm941_vm0, %v12495_v23 }
 0x371   : > { %3563 = vrot.lane.b32.xlu0 %v12496_v37, %s9090_s7  ;;  %v1644_v26 = vmul.f32 %v8687_v22, %v10041_v10  ;;  %v1664_v39 = vpack.c.bf16 %v1646_v13, %v1645_v2  ;;  %v12499_v10 = vld [vmem:[#allocation47_spill] sm:$0xff]  ;;  %v2408_v22 = vsel %vm941_vm0, %v2385_v58, 0 }
 0x372   : > { %v2292_v35 = vsel %vm941_vm0, %v12499_v10, 0 }
 0x373   : > { %3239 = vrot.lane.b32.xlu1 %v12488_v63, %s9089_s30  ;;  %v1663_v46 = vpack.c.bf16 %v1644_v26, %v1643_v41 }
 0x375   : > { %3553 = vrot.lane.b32.xlu0 %v12497_v6, %s9090_s7  ;;  %7964 = vmatprep.mubr.msk.bf16.mxu1 %vm1298_vm1, %v1663_v46 }
 0x376   : > { %7965 = vmatmul.mubr.msk.bf16.vlgmr.msra.gmra.mxu1 %vm1298_vm1, %v1664_v39 }
 0x377   : > { %7989 = vmatpush3.bf16.xpose.msra.mxu1 %v2295_v59  ;;  %3672 = vrot.lane.b32.xlu1 %v12498_v34, %s9090_s7 }
 0x378   : > { %7977 = vmatpush3.bf16.xpose.msra.mxu0 %v2176_v29  ;;  %8441 = vmatprep.subr.msk.bf16.mxu1 %vm941_vm0, %v12499_v10 }
 0x379   : > { %8439 = vmatprep.subr.msk.bf16.mxu0 %vm941_vm0, %v12500_v31 }
 0x37b   : > { %3561 = vrot.lane.b32.xlu1 %v12501_v9, %s9090_s7 }
 0x37f   : > { %7991 = vmatpush3.bf16.xpose.msra.mxu1 %v2292_v35  ;;  %3670 = vrot.lane.b32.xlu1 %v12502_v27, %s9090_s7 }
 0x380   : > { %7979 = vmatpush3.bf16.xpose.msra.mxu0 %v2173_v60  ;;  %8442 = vmatprep.subr.msk.bf16.mxu1 %vm941_vm0, %v12503_v16 }
 0x381   : > { %8444 = vmatprep.subr.msk.bf16.mxu0 %vm941_vm0, %v2385_v58 }
 0x383   : > { %3668 = vrot.lane.b32.xlu1 %v12504_v57, %s9090_s7 }
 0x387   : > { %7981 = vmatmul.mubr.msk.bf16.vlgmr.msra.gmra.mxu0 %vm941_vm0, %v2143_v19  ;;  %7993 = vmatpush3.bf16.xpose.msra.mxu1 %v2289_v42 }
 0x388   : > { %8005 = vmatpush3.bf16.xpose.msra.mxu0 %v2408_v22 }
 0x393   : > { %v1583_v13 = vpop.xlane.xlu0 %1582 }
 0x397   : > { %v1580_v3 = vpop.xlane.xlu0 %1579  ;;  %v1577_v23 = vpop.xlane.xlu1 %1576 }
 0x398   : > { %8688 = vrcp.f32 %v1580_v3 }
 0x399   : > { %8690 = vrcp.f32 %v1577_v23 }
 0x39a   : > { %8692 = vrcp.f32 %v1583_v13 }
 0x39b   : > { %v2266_v41 = vpop.permute.xlu0 %2265  ;;  %v1586_v26 = vpop.xlane.xlu1 %1585 }
 0x39c   : > { %8694 = vrcp.f32 %v1586_v26  ;;  %8443 = vmatprep.subr.msk.bf16.mxu1 %vm941_vm0, %v2266_v41  ;;  %v2286_v2 = vsel %vm941_vm0, %v2266_v41, 0 }
 0x39d   : > { %7995 = vmatpush3.bf16.xpose.msra.mxu1 %v2286_v2 }
 0x39f   : > { %v2254_v46 = vpop.permute.xlu0 %2253  ;;  %v2383_v39 = vpop.permute.xlu1 %2382 }
 0x3a0   : > { %8445 = vmatprep.subr.msk.bf16.mxu0 %vm941_vm0, %v2383_v39  ;;  %v2405_v59 = vsel %vm941_vm0, %v2383_v39, 0 }
 0x3a1   : > { %8007 = vmatpush3.bf16.xpose.msra.mxu0 %v2405_v59 }
 0x3a3   : > { %v2498_v29 = vpop.permute.xlu0 %2497  ;;  %v2381_v10 = vpop.permute.xlu1 %2380 }
 0x3a4   : > { %8446 = vmatprep.subr.msk.bf16.mxu0 %vm941_vm0, %v2381_v10  ;;  %8448 = vmatprep.subr.msk.bf16.mxu1 %vm941_vm0, %v2498_v29  ;;  %v2402_v22 = vsel %vm941_vm0, %v2381_v10, 0  ;;  %v2521_v10 = vsel %vm941_vm0, %v2498_v29, 0 }
 0x3a5   : > { %v8689_v31 = vpop.eup %8688 }
 0x3a6   : > { %v8691_v35 = vpop.eup %8690  ;;  %v1648_v60 = vmul.f32 %v8689_v31, %v10059_v45 }
 0x3a7   : > { %v8693_v58 = vpop.eup %8692  ;;  %v2145_v16 = vpop.permute.xlu0 %2144  ;;  %v1647_v42 = vmul.f32 %v8691_v35, %v10055_v47 }
 0x3a8   : > { %v2256_v19 = vpop.permute.xlu1 %2255  ;;  %7984 = vmatprep.mubr.msk.bf16.mxu0 %vm941_vm0, %v2145_v16  ;;  %v1649_v23 = vmul.f32 %v8693_v58, %v10053_v18 }
 0x3a9   : > { %v8695_v13 = vpop.eup %8694  ;;  %8009 = vmatpush3.bf16.xpose.msra.mxu0 %v2402_v22  ;;  %v1665_v3 = vpack.c.bf16 %v1648_v60, %v1647_v42 }
 0x3aa   : > { %v1650_v41 = vmul.f32 %v8695_v13, %v10065_v12 }
 0x3ab   : > { %7968 = vmatprep.mubr.msk.bf16.mxu1 %vm1298_vm1, %v1665_v3  ;;  %v2379_v26 = vpop.permute.xlu0 %2378 }
 0x3ac   : > { %v2147_v45 = vpop.permute.xlu1 %2146  ;;  %8447 = vmatprep.subr.msk.bf16.mxu0 %vm941_vm0, %v2379_v26  ;;  %v1666_v47 = vpack.c.bf16 %v1650_v41, %v1649_v23  ;;  %v2399_v18 = vsel %vm941_vm0, %v2379_v26, 0 }
 0x3ad   : > { %7985 = vmatmul.mubr.msk.bf16.gmra.mxu0 %vm941_vm0, %v2147_v45 }
 0x3ae   : > { %7969 = vmatmul.mubr.msk.bf16.gmra.mxu1 %vm1298_vm1, %v1666_v47 }
 0x3af   : > { %v2367_v2 = vpop.permute.xlu0 %2366  ;;  %7996 = vmatprep.mubr.msk.bf16.mxu1 %vm941_vm0, %v2254_v46 }
 0x3b0   : > { %v2496_v39 = vpop.permute.xlu1 %2495  ;;  %8012 = vmatprep.mubr.msk.bf16.mxu0 %vm941_vm0, %v2367_v2 }
 0x3b1   : > { %8011 = vmatpush3.bf16.xpose.msra.mxu0 %v2399_v18  ;;  %v2518_v58 = vsel %vm941_vm0, %v2496_v39, 0 }
 0x3b3   : > { %v2494_v12 = vpop.permute.xlu0 %2493 }
 0x3b4   : > { %v2369_v59 = vpop.permute.xlu1 %2368  ;;  %v2515_v22 = vsel %vm941_vm0, %v2494_v12, 0 }
 0x3b6   : > { %7997 = vmatmul.mubr.msk.bf16.vlgmr.msra.gmra.mxu1 %vm941_vm0, %v2256_v19 }
 0x3b7   : > { %8021 = vmatpush3.bf16.xpose.msra.mxu1 %v2521_v10  ;;  %v2260_v31 = vpop.permute.xlu0 %2259 }
 0x3b8   : > { %v2258_v35 = vpop.permute.xlu1 %2257  ;;  %8449 = vmatprep.subr.msk.bf16.mxu1 %vm941_vm0, %v2496_v39  ;;  %8013 = vmatmul.mubr.msk.bf16.vlgmr.msra.gmra.mxu0 %vm941_vm0, %v2369_v59 }
 0x3b9   : > { %8000 = vmatprep.mubr.msk.bf16.mxu1 %vm941_vm0, %v2258_v35 }
 0x3bb   : > { %v2480_v46 = vpop.permute.xlu0 %2479 }
 0x3bc   : > { %v2492_v60 = vpop.permute.xlu1 %2491 }
 0x3bd   : > { %v2512_v26 = vsel %vm941_vm0, %v2492_v60, 0 }
 0x3be   : > { %8001 = vmatmul.mubr.msk.bf16.gmra.mxu1 %vm941_vm0, %v2260_v31 }
 0x3bf   : > { %8023 = vmatpush3.bf16.xpose.msra.mxu1 %v2518_v58  ;;  %v2371_v16 = vpop.permute.xlu0 %2370  ;;  %8028 = vmatprep.mubr.msk.bf16.mxu1 %vm941_vm0, %v2480_v46 }
 0x3c0   : > { %v2482_v29 = vpop.permute.xlu1 %2481  ;;  %8450 = vmatprep.subr.msk.bf16.mxu1 %vm941_vm0, %v2494_v12  ;;  %8016 = vmatprep.mubr.msk.bf16.mxu0 %vm941_vm0, %v2371_v16 }
 0x3c3   : > { %v2484_v19 = vpop.permute.xlu0 %2483 }
 0x3c4   : > { %v2373_v42 = vpop.permute.xlu1 %2372 }
 0x3c5   : > { %8017 = vmatmul.mubr.msk.bf16.gmra.mxu0 %vm941_vm0, %v2373_v42 }
 0x3c7   : > { %8025 = vmatpush3.bf16.xpose.msra.mxu1 %v2515_v22  ;;  %v2967_v13 = vpop.permute.xlu0 %2966 }
 0x3c8   : > { %v2486_v3 = vpop.permute.xlu1 %2485  ;;  %8451 = vmatprep.subr.msk.bf16.mxu1 %vm941_vm0, %v2492_v60  ;;  %8036 = vmatprep.subr.bf16.mxu0 %v2967_v13 }
 0x3c9   : > { %8037 = vmatpush3.bf16.msra.mxu0 %v2967_v13 }
 0x3cb   : > { %v2961_v23 = vpop.permute.xlu0 %2960 }
 0x3cc   : > { %v2965_v41 = vpop.permute.xlu1 %2964 }
 0x3cd   : > { %8038 = vmatprep.subr.bf16.mxu0 %v2965_v41 }
 0x3ce   : > { %8039 = vmatpush3.bf16.msra.mxu0 %v2965_v41 }
 0x3cf   : > { %8027 = vmatpush3.bf16.xpose.msra.mxu1 %v2512_v26  ;;  %v10283_v45 = vpop.permute.xlu0 %3152 }
 0x3d0   : > { %v2963_v47 = vpop.permute.xlu1 %2962 }
 0x3d1   : > { %8040 = vmatprep.subr.bf16.mxu0 %v2963_v47 }
 0x3d2   : > { %8041 = vmatpush3.bf16.msra.mxu0 %v2963_v47 }
 0x3d3   : > { %8042 = vmatprep.subr.bf16.mxu0 %v2961_v23  ;;  %v3058_v2 = vpop.permute.xlu0 %3057 }
 0x3d4   : > { %v3060_v39 = vpop.permute.xlu1 %3059 }
 0x3d5   : > { %8052 = vmatprep.subr.bf16.mxu1 %v3060_v39 }
 0x3d6   : > { %8043 = vmatpush3.bf16.msra.mxu0 %v2961_v23  ;;  %8029 = vmatmul.mubr.msk.bf16.vlgmr.msra.gmra.mxu1 %vm941_vm0, %v2482_v29 }
 0x3d7   : > { %8068 = vmatprep.subr.bf16.mxu0 %v10283_v45  ;;  %8032 = vmatprep.mubr.msk.bf16.mxu1 %vm941_vm0, %v2484_v19  ;;  %v3056_v12 = vpop.permute.xlu0 %3055 }
 0x3d8   : > { %8053 = vmatpush3.bf16.msra.mxu1 %v3060_v39  ;;  %v10288_v18 = vpop.permute.xlu1 %3150 }
 0x3d9   : > { %8054 = vmatprep.subr.bf16.mxu1 %v3058_v2 }
 0x3db   : > { %v3054_v10 = vpop.permute.xlu0 %3053 }
 0x3dc   : > { %8055 = vmatpush3.bf16.msra.mxu1 %v3058_v2  ;;  %v10290_v59 = vpop.permute.xlu1 %3148 }
 0x3dd   : > { %8056 = vmatprep.subr.bf16.mxu1 %v3056_v12 }
 0x3de   : > { %8033 = vmatmul.mubr.msk.bf16.gmra.mxu1 %vm941_vm0, %v2486_v3 }
 0x3e0   : > { %8057 = vmatpush3.bf16.msra.mxu1 %v3056_v12  ;;  %v10293_v31 = vpop.permute.xlu1 %3146 }
 0x3e1   : > { %8058 = vmatprep.subr.bf16.mxu1 %v3054_v10 }
 0x3e4   : > { %8059 = vmatpush3.bf16.msra.mxu1 %v3054_v10  ;;  %v10295_v35 = vpop.permute.xlu1 %3245 }
 0x3e5   : > { %12505 = vst [vmem:[#allocation19_spill] sm:$0xff] %v10295_v35  ;;  %8084 = vmatprep.subr.bf16.mxu1 %v10295_v35 }
 0x3e8   : > { %v10458_v48 = vpop.permute.xlu1 %3567 }
 0x3f4   : > { %v7918_v46 = vpop.f32.mrf.mxu0 }
 0x3f5   : > { %v7239_v60 = vpack.c.bf16 %v7918_v46, %v7918_v46 }
 0x3f6   : > { %v1713_v58 = vpop.f32.mrf.mxu0 }
 0x3f7   : > { %2106 = vst.msk [vmem:[#allocation2 + $0x8] sm:$0xf] %vm2103_vm2, %v7239_v60  ;;  %v7237_v16 = vpack.c.bf16 %v1713_v58, %v1713_v58 }
 0x3f8   : > { %v7919_v29 = vpop.f32.mrf.mxu0 }
 0x3f9   : > { %2104 = vst.msk [vmem:[#allocation2] sm:$0xf] %vm2103_vm2, %v7237_v16  ;;  %v7240_v19 = vpack.c.bf16 %v7919_v29, %v7919_v29 }
 0x3fa   : > { %v1716_v42 = vpop.f32.mrf.mxu0 }
 0x3fb   : > { %2107 = vst.msk [vmem:[#allocation2 + $0xc] sm:$0xf] %vm2103_vm2, %v7240_v19  ;;  %v7238_v22 = vpack.c.bf16 %v1716_v42, %v1716_v42 }
 0x3fc   : > { %v7922_v13 = vpop.f32.mrf.mxu0 }
 0x3fd   : > { %2105 = vst.msk [vmem:[#allocation2 + $0x4] sm:$0xf] %vm2103_vm2, %v7238_v22  ;;  %v7243_v3 = vpack.c.bf16 %v7922_v13, %v7922_v13 }
 0x3fe   : > { %v1729_v23 = vpop.f32.mrf.mxu0 }
 0x3ff   : > { %2110 = vst.msk [vmem:[#allocation2 + $0x18] sm:$0xf] %vm2103_vm2, %v7243_v3  ;;  %v7241_v41 = vpack.c.bf16 %v1729_v23, %v1729_v23 }
 0x400   : > { %v7923_v26 = vpop.f32.mrf.mxu0 }
 0x401   : > { %2108 = vst.msk [vmem:[#allocation2 + $0x10] sm:$0xf] %vm2103_vm2, %v7241_v41  ;;  %v7244_v47 = vpack.c.bf16 %v7923_v26, %v7923_v26 }
 0x402   : > { %v1732_v2 = vpop.f32.mrf.mxu0 }
 0x403   : > { %2111 = vst.msk [vmem:[#allocation2 + $0x1c] sm:$0xf] %vm2103_vm2, %v7244_v47  ;;  %v7242_v39 = vpack.c.bf16 %v1732_v2, %v1732_v2 }
 0x405   : > { %2109 = vst.msk [vmem:[#allocation2 + $0x14] sm:$0xf] %vm2103_vm2, %v7242_v39 }
 0x416   : > { %v7934_v12 = vpop.f32.mrf.mxu1 }
 0x417   : > { %v7247_v10 = vpack.c.bf16 %v7934_v12, %v7934_v12 }
 0x418   : > { %v1790_v46 = vpop.f32.mrf.mxu1 }
 0x419   : > { %2114 = vst.msk [vmem:[#allocation2 + $0x28] sm:$0xf] %vm2103_vm2, %v7247_v10  ;;  %v7245_v60 = vpack.c.bf16 %v1790_v46, %v1790_v46 }
 0x41a   : > { %v7935_v58 = vpop.f32.mrf.mxu1 }
 0x41b   : > { %2112 = vst.msk [vmem:[#allocation2 + $0x20] sm:$0xf] %vm2103_vm2, %v7245_v60  ;;  %v7248_v16 = vpack.c.bf16 %v7935_v58, %v7935_v58 }
 0x41c   : > { %v1793_v29 = vpop.f32.mrf.mxu1 }
 0x41d   : > { %2115 = vst.msk [vmem:[#allocation2 + $0x2c] sm:$0xf] %vm2103_vm2, %v7248_v16  ;;  %v7246_v19 = vpack.c.bf16 %v1793_v29, %v1793_v29 }
 0x41e   : > { %v7938_v42 = vpop.f32.mrf.mxu1 }
 0x41f   : > { %2113 = vst.msk [vmem:[#allocation2 + $0x24] sm:$0xf] %vm2103_vm2, %v7246_v19  ;;  %v7251_v22 = vpack.c.bf16 %v7938_v42, %v7938_v42 }
 0x420   : > { %v1806_v13 = vpop.f32.mrf.mxu1 }
 0x421   : > { %2118 = vst.msk [vmem:[#allocation2 + $0x38] sm:$0xf] %vm2103_vm2, %v7251_v22  ;;  %v7249_v3 = vpack.c.bf16 %v1806_v13, %v1806_v13 }
 0x422   : > { %v7939_v23 = vpop.f32.mrf.mxu1 }
 0x423   : > { %2116 = vst.msk [vmem:[#allocation2 + $0x30] sm:$0xf] %vm2103_vm2, %v7249_v3  ;;  %v7252_v41 = vpack.c.bf16 %v7939_v23, %v7939_v23 }
 0x424   : > { %v1809_v26 = vpop.f32.mrf.mxu1 }
 0x425   : > { %2119 = vst.msk [vmem:[#allocation2 + $0x3c] sm:$0xf] %vm2103_vm2, %v7252_v41  ;;  %v7250_v47 = vpack.c.bf16 %v1809_v26, %v1809_v26 }
 0x426   : > { %v7950_v2 = vpop.f32.mrf.mxu0 }
 0x427   : > { %2117 = vst.msk [vmem:[#allocation2 + $0x34] sm:$0xf] %vm2103_vm2, %v7250_v47  ;;  %v7255_v39 = vpack.c.bf16 %v7950_v2, %v7950_v2 }
 0x428   : > { %v1867_v12 = vpop.f32.mrf.mxu0 }
 0x429   : > { %2122 = vst.msk [vmem:[#allocation2 + $0x48] sm:$0xf] %vm2103_vm2, %v7255_v39  ;;  %v7253_v10 = vpack.c.bf16 %v1867_v12, %v1867_v12 }
 0x42a   : > { %v7951_v46 = vpop.f32.mrf.mxu0 }
 0x42b   : > { %2120 = vst.msk [vmem:[#allocation2 + $0x40] sm:$0xf] %vm2103_vm2, %v7253_v10  ;;  %v7256_v60 = vpack.c.bf16 %v7951_v46, %v7951_v46 }
 0x42c   : > { %v1870_v58 = vpop.f32.mrf.mxu0 }
 0x42d   : > { %2123 = vst.msk [vmem:[#allocation2 + $0x4c] sm:$0xf] %vm2103_vm2, %v7256_v60  ;;  %v7254_v16 = vpack.c.bf16 %v1870_v58, %v1870_v58 }
 0x42e   : > { %v7954_v29 = vpop.f32.mrf.mxu0 }
 0x42f   : > { %2121 = vst.msk [vmem:[#allocation2 + $0x44] sm:$0xf] %vm2103_vm2, %v7254_v16  ;;  %v7259_v19 = vpack.c.bf16 %v7954_v29, %v7954_v29 }
 0x430   : > { %v1883_v42 = vpop.f32.mrf.mxu0 }
 0x431   : > { %2126 = vst.msk [vmem:[#allocation2 + $0x58] sm:$0xf] %vm2103_vm2, %v7259_v19  ;;  %v7257_v22 = vpack.c.bf16 %v1883_v42, %v1883_v42 }
 0x432   : > { %v7955_v13 = vpop.f32.mrf.mxu0 }
 0x433   : > { %2124 = vst.msk [vmem:[#allocation2 + $0x50] sm:$0xf] %vm2103_vm2, %v7257_v22  ;;  %v7260_v3 = vpack.c.bf16 %v7955_v13, %v7955_v13 }
 0x434   : > { %v1886_v23 = vpop.f32.mrf.mxu0 }
 0x435   : > { %2127 = vst.msk [vmem:[#allocation2 + $0x5c] sm:$0xf] %vm2103_vm2, %v7260_v3  ;;  %v7258_v41 = vpack.c.bf16 %v1886_v23, %v1886_v23 }
 0x436   : > { %v7966_v26 = vpop.f32.mrf.mxu1 }
 0x437   : > { %v7263_v47 = vpack.c.bf16 %v7966_v26, %v7966_v26  ;;  %2125 = vst.msk [vmem:[#allocation2 + $0x54] sm:$0xf] %vm2103_vm2, %v7258_v41 }
 0x438   : > { %v1944_v2 = vpop.f32.mrf.mxu1 }
 0x439   : > { %2130 = vst.msk [vmem:[#allocation2 + $0x68] sm:$0xf] %vm2103_vm2, %v7263_v47  ;;  %v7261_v39 = vpack.c.bf16 %v1944_v2, %v1944_v2 }
 0x43a   : > { %v7967_v12 = vpop.f32.mrf.mxu1 }
 0x43b   : > { %2128 = vst.msk [vmem:[#allocation2 + $0x60] sm:$0xf] %vm2103_vm2, %v7261_v39  ;;  %v7264_v10 = vpack.c.bf16 %v7967_v12, %v7967_v12 }
 0x43c   : > { %v1947_v46 = vpop.f32.mrf.mxu1 }
 0x43d   : > { %2131 = vst.msk [vmem:[#allocation2 + $0x6c] sm:$0xf] %vm2103_vm2, %v7264_v10  ;;  %v7262_v60 = vpack.c.bf16 %v1947_v46, %v1947_v46 }
 0x43f   : > { %2129 = vst.msk [vmem:[#allocation2 + $0x64] sm:$0xf] %vm2103_vm2, %v7262_v60 }
 0x447   : > { %v10326_v58 = vpop.f32.mrf.mxu0 }
 0x448   : > { %v2594_v16 = vsel %vm1298_vm1, %v10326_v58, -inf }
 0x449   : > { %2595 = vmax.xlane.f32.xlu0 %v2594_v16  ;;  %v10330_v29 = vpop.f32.mrf.mxu0 }
 0x44a   : > { %v2588_v42 = vsel %vm1298_vm1, %v10330_v29, -inf }
 0x44b   : > { %v10332_v19 = vpop.f32.mrf.mxu0 }
 0x44c   : > { %v2597_v3 = vsel %vm1298_vm1, %v10332_v19, -inf }
 0x44d   : > { %2589 = vmax.xlane.f32.xlu0 %v2588_v42  ;;  %v10336_v22 = vpop.f32.mrf.mxu0 }
 0x44e   : > { %v2591_v13 = vsel %vm1298_vm1, %v10336_v22, -inf }
 0x44f   : > { %2592 = vmax.xlane.f32.xlu1 %v2591_v13 }
 0x451   : > { %2598 = vmax.xlane.f32.xlu0 %v2597_v3 }
 0x46d   : > { %v10342_v23 = vpop.f32.mrf.mxu0 }
 0x46e   : > { %v2606_v41 = vsel %vm1298_vm1, %v10342_v23, -inf  ;;  %v7970_v26 = vpop.f32.mrf.mxu1 }
 0x46f   : > { %2607 = vmax.xlane.f32.xlu0 %v2606_v41  ;;  %v10346_v47 = vpop.f32.mrf.mxu0  ;;  %v7267_v2 = vpack.c.bf16 %v7970_v26, %v7970_v26 }
 0x470   : > { %v1960_v39 = vpop.f32.mrf.mxu1  ;;  %v2600_v46 = vsel %vm1298_vm1, %v10346_v47, -inf }
 0x471   : > { %v10348_v12 = vpop.f32.mrf.mxu0  ;;  %2134 = vst.msk [vmem:[#allocation2 + $0x78] sm:$0xf] %vm2103_vm2, %v7267_v2  ;;  %v7265_v10 = vpack.c.bf16 %v1960_v39, %v1960_v39 }
 0x472   : > { %v2609_v60 = vsel %vm1298_vm1, %v10348_v12, -inf  ;;  %v7971_v16 = vpop.f32.mrf.mxu1 }
 0x473   : > { %2601 = vmax.xlane.f32.xlu0 %v2600_v46  ;;  %2610 = vmax.xlane.f32.xlu1 %v2609_v60  ;;  %v10355_v42 = vpop.f32.mrf.mxu0  ;;  %2132 = vst.msk [vmem:[#allocation2 + $0x70] sm:$0xf] %vm2103_vm2, %v7265_v10  ;;  %v7268_v13 = vpack.c.bf16 %v7971_v16, %v7971_v16 }
 0x474   : > { %v1963_v3 = vpop.f32.mrf.mxu1  ;;  %v2603_v26 = vsel %vm1298_vm1, %v10355_v42, -inf }
 0x475   : > { %2135 = vst.msk [vmem:[#allocation2 + $0x7c] sm:$0xf] %vm2103_vm2, %v7268_v13  ;;  %v7266_v41 = vpack.c.bf16 %v1963_v3, %v1963_v3 }
 0x476   : > { %v10361_v2 = vpop.f32.mrf.mxu1 }
 0x477   : > { %2604 = vmax.xlane.f32.xlu1 %v2603_v26  ;;  %2133 = vst.msk [vmem:[#allocation2 + $0x74] sm:$0xf] %vm2103_vm2, %v7266_v41  ;;  %v2618_v39 = vsel %vm1298_vm1, %v10361_v2, -inf }
 0x478   : > { %v10366_v46 = vpop.f32.mrf.mxu1  ;;  %2619 = vmax.xlane.f32.xlu0 %v2618_v39  ;;  %v10368_v10 = vpop.f32.mrf.mxu0 }
 0x479   : > { %v2612_v16 = vsel %vm1298_vm1, %v10366_v46, -inf }
 0x47a   : > { %v10370_v60 = vpop.f32.mrf.mxu1  ;;  %v10378_v41 = vpop.f32.mrf.mxu0 }
 0x47b   : > { %v2621_v13 = vsel %vm1298_vm1, %v10370_v60, -inf  ;;  %v2636_v34 = vsel %vm1298_vm1, %v10378_v41, -inf }
 0x47c   : > { %v10376_v3 = vpop.f32.mrf.mxu1  ;;  %2613 = vmax.xlane.f32.xlu0 %v2612_v16  ;;  %2622 = vmax.xlane.f32.xlu1 %v2621_v13  ;;  %v10388_v37 = vpop.f32.mrf.mxu0 }
 0x47d   : > { %v2615_v39 = vsel %vm1298_vm1, %v10376_v3, -inf }
 0x47e   : > { %v10380_v26 = vpop.f32.mrf.mxu1  ;;  %v10398_v9 = vpop.f32.mrf.mxu0 }
 0x47f   : > { %v2630_v57 = vsel %vm1298_vm1, %v10380_v26, -inf  ;;  %v2639_v4 = vsel %vm1298_vm1, %v10398_v9, -inf }
 0x480   : > { %2616 = vmax.xlane.f32.xlu1 %v2615_v39  ;;  %2631 = vmax.xlane.f32.xlu0 %v2630_v57  ;;  %v10386_v6 = vpop.f32.mrf.mxu1  ;;  %v2642_v57 = vsel %vm1298_vm1, %v10368_v10, -inf }
 0x481   : > { %v2624_v16 = vsel %vm1298_vm1, %v10386_v6, -inf }
 0x482   : > { %v10390_v27 = vpop.f32.mrf.mxu1 }
 0x483   : > { %v2633_v13 = vsel %vm1298_vm1, %v10390_v27, -inf }
 0x484   : > { %2625 = vmax.xlane.f32.xlu0 %v2624_v16  ;;  %2634 = vmax.xlane.f32.xlu1 %v2633_v13  ;;  %v10396_v36 = vpop.f32.mrf.mxu1  ;;  %v2645_v16 = vsel %vm1298_vm1, %v10388_v37, -inf }
 0x485   : > { %v2627_v39 = vsel %vm1298_vm1, %v10396_v36, -inf  ;;  %v10404_v40 = vpop.f32.mrf.mxu0 }
 0x486   : > { %v2654_v63 = vsel %vm1298_vm1, %v10404_v40, -inf }
 0x487   : > { %v10410_v13 = vpop.f32.mrf.mxu0 }
 0x488   : > { %2643 = vmax.xlane.f32.xlu0 %v2642_v57  ;;  %2628 = vmax.xlane.f32.xlu1 %v2627_v39  ;;  %v2648_v57 = vsel %vm1298_vm1, %v10410_v13, -inf }
 0x489   : > { %v10416_v24 = vpop.f32.mrf.mxu0 }
 0x48a   : > { %v2657_v39 = vsel %vm1298_vm1, %v10416_v24, -inf }
 0x48b   : > { %v10422_v62 = vpop.f32.mrf.mxu0 }
 0x48c   : > { %2637 = vmax.xlane.f32.xlu0 %v2636_v34  ;;  %2646 = vmax.xlane.f32.xlu1 %v2645_v16  ;;  %v2651_v55 = vsel %vm1298_vm1, %v10422_v62, -inf }
 0x490   : > { %2640 = vmax.xlane.f32.xlu1 %v2639_v4  ;;  %2655 = vmax.xlane.f32.xlu0 %v2654_v63 }
 0x494   : > { %2649 = vmax.xlane.f32.xlu0 %v2648_v57  ;;  %2658 = vmax.xlane.f32.xlu1 %v2657_v39 }
 0x496   : > { %v10424_v34 = vpop.f32.mrf.mxu1 }
 0x497   : > { %v2666_v16 = vsel %vm1298_vm1, %v10424_v34, -inf }
 0x498   : > { %v10430_v4 = vpop.f32.mrf.mxu1  ;;  %2667 = vmax.xlane.f32.xlu0 %v2666_v16  ;;  %2652 = vmax.xlane.f32.xlu1 %v2651_v55 }
 0x499   : > { %v2660_v30 = vsel %vm1298_vm1, %v10430_v4, -inf }
 0x49a   : > { %v10432_v63 = vpop.f32.mrf.mxu1 }
 0x49b   : > { %v2669_v57 = vsel %vm1298_vm1, %v10432_v63, -inf }
 0x49c   : > { %v10438_v39 = vpop.f32.mrf.mxu1  ;;  %2661 = vmax.xlane.f32.xlu0 %v2660_v30  ;;  %2670 = vmax.xlane.f32.xlu1 %v2669_v57 }
 0x49d   : > { %v2663_v52 = vsel %vm1298_vm1, %v10438_v39, -inf }
 0x49e   : > { %v10440_v50 = vpop.f32.mrf.mxu1 }
 0x49f   : > { %v2678_v55 = vsel %vm1298_vm1, %v10440_v50, -inf }
 0x4a0   : > { %v10446_v16 = vpop.f32.mrf.mxu1  ;;  %2664 = vmax.xlane.f32.xlu1 %v2663_v52  ;;  %2679 = vmax.xlane.f32.xlu0 %v2678_v55  ;;  %v10460_v52 = vpop.permute.xlu1 %3241 }
 0x4a1   : > { %v2672_v53 = vsel %vm1298_vm1, %v10446_v16, -inf  ;;  %12506 = vst [vmem:[#allocation18_spill] sm:$0xff] %v10460_v52  ;;  %v10462_v55 = vpop.permute.xlu0 %3243 }
 0x4a2   : > { %v10448_v56 = vpop.f32.mrf.mxu1  ;;  %12507 = vst [vmem:[#allocation15_spill] sm:$0xff] %v10462_v55 }
 0x4a3   : > { %v2681_v30 = vsel %vm1298_vm1, %v10448_v56, -inf }
 0x4a4   : > { %v10454_v57 = vpop.f32.mrf.mxu1  ;;  %2673 = vmax.xlane.f32.xlu0 %v2672_v53  ;;  %2682 = vmax.xlane.f32.xlu1 %v2681_v30  ;;  %v10464_v8 = vpop.permute.xlu1 %3239 }
 0x4a5   : > { %v2675_v35 = vsel %vm1298_vm1, %v10454_v57, -inf  ;;  %12508 = vst [vmem:[#allocation49_spill] sm:$0xff] %v10464_v8  ;;  %v10466_v38 = vpop.permute.xlu0 %3565 }
 0x4a6   : > { %12509 = vst [vmem:[#allocation44_spill] sm:$0xff] %v10466_v38 }
 0x4a8   : > { %2676 = vmax.xlane.f32.xlu1 %v2675_v35  ;;  %v10468_v11 = vpop.permute.xlu1 %3672 }
 0x4a9   : > { %12510 = vst [vmem:[#allocation46_spill] sm:$0xff] %v10468_v11  ;;  %v10470_v44 = vpop.permute.xlu0 %3563 }
 0x4aa   : > { %12511 = vst [vmem:[#allocation48_spill] sm:$0xff] %v10470_v44 }
 0x4ac   : > { %v10472_v53 = vpop.permute.xlu1 %3561 }
 0x4ad   : > { %12512 = vst [vmem:[#allocation47_spill] sm:$0xff] %v10472_v53  ;;  %v10474_v30 = vpop.permute.xlu0 %3553 }
 0x4ae   : > { %12513 = vst [vmem:[#allocation43_spill] sm:$0xff] %v10474_v30 }
 0x4b0   : > { %v10476_v33 = vpop.permute.xlu1 %3670 }
 0x4b1   : > { %12514 = vst [vmem:[#allocation45_spill] sm:$0xff] %v10476_v33 }
 0x4b4   : > { %v10479_v52 = vpop.permute.xlu1 %3668 }
 0x4b5   : > { %12515 = vst [vmem:[#allocation50_spill] sm:$0xff] %v10479_v52 }
 0x4d2   : > { %v2596_v35 = vpop.xlane.xlu0 %2595 }
 0x4d3   : > { %v2686_v49 = vsub.f32 %v10326_v58, %v2596_v35 }
 0x4d5   : > { %v2720_v55 = vmul.f32 1.442695, %v2686_v49 }
 0x4d6   : > { %v2590_v14 = vpop.xlane.xlu0 %2589 }
 0x4d7   : > { %8696 = vpow2.f32 %v2720_v55  ;;  %v2684_v38 = vsub.f32 %v10330_v29, %v2590_v14 }
 0x4d8   : > { %v2593_v8 = vpop.xlane.xlu1 %2592 }
 0x4d9   : > { %v2716_v11 = vmul.f32 1.442695, %v2684_v38  ;;  %v2685_v44 = vsub.f32 %v10336_v22, %v2593_v8 }
 0x4da   : > { %v2599_v0 = vpop.xlane.xlu0 %2598 }
 0x4db   : > { %8698 = vpow2.f32 %v2716_v11  ;;  %v2687_v53 = vsub.f32 %v10332_v19, %v2599_v0  ;;  %v2718_v30 = vmul.f32 1.442695, %v2685_v44 }
 0x4dd   : > { %v2722_v33 = vmul.f32 1.442695, %v2687_v53 }
 0x4df   : > { %8700 = vpow2.f32 %v2722_v33 }
 0x4e0   : > { %8702 = vpow2.f32 %v2718_v30 }
 0x4e4   : > { %v10484_v58 = vpop.eup %8696 }
 0x4e5   : > { %v2786_v49 = vsel %vm1298_vm1, %v10484_v58, 0.0 }
 0x4e6   : > { %2787 = vadd.xlane.f32.xlu0 %v2786_v49 }
 0x4e8   : > { %v10488_v55 = vpop.eup %8698 }
 0x4e9   : > { %v2780_v14 = vsel %vm1298_vm1, %v10488_v55, 0.0 }
 0x4ea   : > { %2781 = vadd.xlane.f32.xlu0 %v2780_v14 }
 0x4ec   : > { %v10492_v8 = vpop.eup %8700 }
 0x4ed   : > { %v2789_v0 = vsel %vm1298_vm1, %v10492_v8, 0.0  ;;  %v10496_v11 = vpop.eup %8702 }
 0x4ee   : > { %2790 = vadd.xlane.f32.xlu1 %v2789_v0  ;;  %v2783_v33 = vsel %vm1298_vm1, %v10496_v11, 0.0 }
 0x4f2   : > { %2784 = vadd.xlane.f32.xlu1 %v2783_v33 }
 0x4f8   : > { %v2608_v44 = vpop.xlane.xlu0 %2607 }
 0x4f9   : > { %v2690_v38 = vsub.f32 %v10342_v23, %v2608_v44 }
 0x4fb   : > { %v2728_v29 = vmul.f32 1.442695, %v2690_v38 }
 0x4fc   : > { %v2602_v19 = vpop.xlane.xlu0 %2601  ;;  %v2611_v22 = vpop.xlane.xlu1 %2610 }
 0x4fd   : > { %8704 = vpow2.f32 %v2728_v29  ;;  %v2688_v53 = vsub.f32 %v10346_v47, %v2602_v19  ;;  %v2691_v30 = vsub.f32 %v10348_v12, %v2611_v22 }
 0x4ff   : > { %v2724_v35 = vmul.f32 1.442695, %v2688_v53  ;;  %v2730_v49 = vmul.f32 1.442695, %v2691_v30 }
 0x500   : > { %v2605_v14 = vpop.xlane.xlu1 %2604 }
 0x501   : > { %8706 = vpow2.f32 %v2724_v35  ;;  %v2689_v0 = vsub.f32 %v10355_v42, %v2605_v14  ;;  %v2620_v52 = vpop.xlane.xlu0 %2619 }
 0x502   : > { %8708 = vpow2.f32 %v2730_v49  ;;  %v2694_v61 = vsub.f32 %v10361_v2, %v2620_v52 }
 0x503   : > { %v2726_v33 = vmul.f32 1.442695, %v2689_v0 }
 0x504   : > { %v2736_v23 = vmul.f32 1.442695, %v2694_v61 }
 0x505   : > { %8710 = vpow2.f32 %v2726_v33  ;;  %v2614_v44 = vpop.xlane.xlu0 %2613  ;;  %v2623_v38 = vpop.xlane.xlu1 %2622 }
 0x506   : > { %v2692_v29 = vsub.f32 %v10366_v46, %v2614_v44  ;;  %8712 = vpow2.f32 %v2736_v23  ;;  %v2695_v47 = vsub.f32 %v10370_v60, %v2623_v38 }
 0x508   : > { %v2732_v12 = vmul.f32 1.442695, %v2692_v29  ;;  %v2738_v61 = vmul.f32 1.442695, %v2695_v47 }
 0x509   : > { %v2632_v22 = vpop.xlane.xlu0 %2631  ;;  %v2617_v53 = vpop.xlane.xlu1 %2616 }
 0x50a   : > { %v10507_v19 = vpop.eup %8704  ;;  %v2698_v42 = vsub.f32 %v10380_v26, %v2632_v22  ;;  %v2693_v30 = vsub.f32 %v10376_v3, %v2617_v53  ;;  %8714 = vpow2.f32 %v2732_v12 }
 0x50b   : > { %v2798_v2 = vsel %vm1298_vm1, %v10507_v19, 0.0 }
 0x50c   : > { %2799 = vadd.xlane.f32.xlu0 %v2798_v2  ;;  %v2744_v52 = vmul.f32 1.442695, %v2698_v42  ;;  %v2734_v35 = vmul.f32 1.442695, %v2693_v30 }
 0x50d   : > { %v2626_v60 = vpop.xlane.xlu0 %2625  ;;  %v2635_v49 = vpop.xlane.xlu1 %2634 }
 0x50e   : > { %v10513_v46 = vpop.eup %8706  ;;  %8716 = vpow2.f32 %v2744_v52  ;;  %v2696_v0 = vsub.f32 %v10386_v6, %v2626_v60  ;;  %v2699_v26 = vsub.f32 %v10390_v27, %v2635_v49 }
 0x50f   : > { %v10515_v14 = vpop.eup %8708  ;;  %v2792_v3 = vsel %vm1298_vm1, %v10513_v46, 0.0  ;;  %8718 = vpow2.f32 %v2738_v61 }
 0x510   : > { %2793 = vadd.xlane.f32.xlu0 %v2792_v3  ;;  %v2801_v33 = vsel %vm1298_vm1, %v10515_v14, 0.0  ;;  %v2746_v23 = vmul.f32 1.442695, %v2699_v26  ;;  %8720 = vpow2.f32 %v2734_v35  ;;  %v2740_v47 = vmul.f32 1.442695, %v2696_v0 }
 0x511   : > { %2802 = vadd.xlane.f32.xlu1 %v2801_v33  ;;  %v2644_v38 = vpop.xlane.xlu0 %2643  ;;  %v2629_v29 = vpop.xlane.xlu1 %2628 }
 0x512   : > { %v10523_v44 = vpop.eup %8710  ;;  %v2702_v6 = vsub.f32 %v10368_v10, %v2644_v38  ;;  %v2697_v27 = vsub.f32 %v10396_v36, %v2629_v29  ;;  %8722 = vpow2.f32 %v2746_v23 }
 0x513   : > { %v2795_v12 = vsel %vm1298_vm1, %v10523_v44, 0.0  ;;  %v10529_v22 = vpop.eup %8712  ;;  %8724 = vpow2.f32 %v2740_v47 }
 0x514   : > { %v2742_v53 = vmul.f32 1.442695, %v2697_v27  ;;  %v2752_v42 = vmul.f32 1.442695, %v2702_v6  ;;  %v2810_v36 = vsel %vm1298_vm1, %v10529_v22, 0.0 }
 0x515   : > { %2796 = vadd.xlane.f32.xlu1 %v2795_v12  ;;  %v2638_v30 = vpop.xlane.xlu0 %2637  ;;  %v2647_v2 = vpop.xlane.xlu1 %2646 }
 0x516   : > { %v2700_v61 = vsub.f32 %v10378_v41, %v2638_v30  ;;  %8726 = vpow2.f32 %v2742_v53  ;;  %v2703_v52 = vsub.f32 %v10388_v37, %v2647_v2 }
 0x517   : > { %v10535_v10 = vpop.eup %8714  ;;  %8728 = vpow2.f32 %v2752_v42 }
 0x518   : > { %v2748_v35 = vmul.f32 1.442695, %v2700_v61  ;;  %v2754_v3 = vmul.f32 1.442695, %v2703_v52  ;;  %v2804_v37 = vsel %vm1298_vm1, %v10535_v10, 0.0 }
 0x519   : > { %2811 = vadd.xlane.f32.xlu1 %v2810_v36  ;;  %v2656_v60 = vpop.xlane.xlu0 %2655  ;;  %v2641_v49 = vpop.xlane.xlu1 %2640 }
 0x51a   : > { %v2706_v0 = vsub.f32 %v10404_v40, %v2656_v60  ;;  %8730 = vpow2.f32 %v2748_v35  ;;  %v2701_v41 = vsub.f32 %v10398_v9, %v2641_v49 }
 0x51b   : > { %v10538_v26 = vpop.eup %8716 }
 0x51c   : > { %v10543_v33 = vpop.eup %8718  ;;  %v2760_v23 = vmul.f32 1.442695, %v2706_v0  ;;  %v2822_v38 = vsel %vm1298_vm1, %v10538_v26, 0.0  ;;  %v2750_v27 = vmul.f32 1.442695, %v2701_v41 }
 0x51d   : > { %2805 = vadd.xlane.f32.xlu1 %v2804_v37  ;;  %v2650_v29 = vpop.xlane.xlu0 %2649  ;;  %2823 = vadd.xlane.f32.xlu0 %v2822_v38  ;;  %v2659_v47 = vpop.xlane.xlu1 %2658  ;;  %v2813_v12 = vsel %vm1298_vm1, %v10543_v33, 0.0 }
 0x51e   : > { %v10547_v40 = vpop.eup %8720  ;;  %8732 = vpow2.f32 %v2760_v23  ;;  %v2704_v6 = vsub.f32 %v10410_v13, %v2650_v29  ;;  %v2707_v9 = vsub.f32 %v10416_v24, %v2659_v47 }
 0x51f   : > { %8734 = vpow2.f32 %v2754_v3  ;;  %v10553_v53 = vpop.eup %8722  ;;  %v2807_v35 = vsel %vm1298_vm1, %v10547_v40, 0.0 }
 0x520   : > { %v2756_v42 = vmul.f32 1.442695, %v2704_v6  ;;  %v2762_v30 = vmul.f32 1.442695, %v2707_v9  ;;  %v2825_v61 = vsel %vm1298_vm1, %v10553_v53, 0.0  ;;  %v10559_v36 = vpop.eup %8724 }
 0x521   : > { %2814 = vadd.xlane.f32.xlu1 %v2813_v12  ;;  %v2668_v2 = vpop.xlane.xlu0 %2667  ;;  %v2653_v52 = vpop.xlane.xlu1 %2652  ;;  %2826 = vadd.xlane.f32.xlu0 %v2825_v61  ;;  %v2816_v23 = vsel %vm1298_vm1, %v10559_v36, 0.0 }
 0x522   : > { %8736 = vpow2.f32 %v2756_v42  ;;  %v2710_v13 = vsub.f32 %v10424_v34, %v2668_v2  ;;  %v2705_v24 = vsub.f32 %v10422_v62, %v2653_v52 }
 0x523   : > { %8738 = vpow2.f32 %v2750_v27  ;;  %v10563_v60 = vpop.eup %8726 }
 0x524   : > { %v2758_v49 = vmul.f32 1.442695, %v2705_v24  ;;  %8740 = vpow2.f32 %v2762_v30  ;;  %v2768_v0 = vmul.f32 1.442695, %v2710_v13  ;;  %v2819_v41 = vsel %vm1298_vm1, %v10563_v60, 0.0  ;;  %v10567_v37 = vpop.eup %8728 }
 0x525   : > { %2808 = vadd.xlane.f32.xlu1 %v2807_v35  ;;  %v2662_v3 = vpop.xlane.xlu0 %2661  ;;  %v2671_v34 = vpop.xlane.xlu1 %2670  ;;  %2820 = vadd.xlane.f32.xlu0 %v2819_v41  ;;  %v2834_v6 = vsel %vm1298_vm1, %v10567_v37, 0.0 }
 0x526   : > { %v2708_v62 = vsub.f32 %v10430_v4, %v2662_v3  ;;  %8742 = vpow2.f32 %v2758_v49  ;;  %v2711_v47 = vsub.f32 %v10432_v63, %v2671_v34 }
 0x527   : > { %v10572_v38 = vpop.eup %8730  ;;  %8744 = vpow2.f32 %v2768_v0 }
 0x528   : > { %v2764_v29 = vmul.f32 1.442695, %v2708_v62  ;;  %v2828_v12 = vsel %vm1298_vm1, %v10572_v38, 0.0  ;;  %v2770_v63 = vmul.f32 1.442695, %v2711_v47 }
 0x529   : > { %2817 = vadd.xlane.f32.xlu1 %v2816_v23  ;;  %v2665_v9 = vpop.xlane.xlu1 %2664  ;;  %2835 = vadd.xlane.f32.xlu0 %v2834_v6 }
 0x52a   : > { %v2709_v27 = vsub.f32 %v10438_v39, %v2665_v9  ;;  %8746 = vpow2.f32 %v2764_v29 }
 0x52b   : > { %v10578_v4 = vpop.eup %8732 }
 0x52c   : > { %v10582_v42 = vpop.eup %8734  ;;  %v2766_v30 = vmul.f32 1.442695, %v2709_v27  ;;  %v2846_v2 = vsel %vm1298_vm1, %v10578_v4, 0.0  ;;  %v12516_v27 = vld [vmem:[#allocation13_spill] sm:$0xff] }
 0x52d   : > { %2829 = vadd.xlane.f32.xlu1 %v2828_v12  ;;  %2847 = vadd.xlane.f32.xlu0 %v2846_v2  ;;  %v2837_v39 = vsel %vm1298_vm1, %v10582_v42, 0.0  ;;  %v2680_v12 = vpop.xlane.xlu0 %2679  ;;  %v12517_v2 = vld [vmem:[#allocation6_spill] sm:$0xff] }
 0x52e   : > { %8748 = vpow2.f32 %v2766_v30 }
 0x52f   : > { %v10586_v61 = vpop.eup %8736  ;;  %8750 = vpow2.f32 %v2770_v63 }
 0x530   : > { %v10590_v52 = vpop.eup %8738  ;;  %v2840_v13 = vsel %vm1298_vm1, %v10586_v61, 0.0 }
 0x531   : > { %2838 = vadd.xlane.f32.xlu1 %v2837_v39  ;;  %v10594_v24 = vpop.eup %8740  ;;  %2841 = vadd.xlane.f32.xlu0 %v2840_v13  ;;  %v2831_v35 = vsel %vm1298_vm1, %v10590_v52, 0.0  ;;  %v2674_v30 = vpop.xlane.xlu0 %2673  ;;  %v2714_v13 = vsub.f32 %v10440_v50, %v2680_v12 }
 0x532   : > { %v2849_v0 = vsel %vm1298_vm1, %v10594_v24, 0.0  ;;  %v2712_v63 = vsub.f32 %v10446_v16, %v2674_v30  ;;  %v2683_v39 = vpop.xlane.xlu1 %2682 }
 0x533   : > { %v10598_v49 = vpop.eup %8742 }
 0x534   : > { %v10602_v3 = vpop.eup %8744  ;;  %v2843_v41 = vsel %vm1298_vm1, %v10598_v49, 0.0 }
 0x535   : > { %2832 = vadd.xlane.f32.xlu1 %v2831_v35  ;;  %2850 = vadd.xlane.f32.xlu0 %v2849_v0  ;;  %v2858_v34 = vsel %vm1298_vm1, %v10602_v3, 0.0  ;;  %v2772_v35 = vmul.f32 1.442695, %v2712_v63  ;;  %v2776_v0 = vmul.f32 1.442695, %v2714_v13 }
 0x537   : > { %v10608_v62 = vpop.eup %8746  ;;  %8752 = vpow2.f32 %v2772_v35 }
 0x538   : > { %v2852_v29 = vsel %vm1298_vm1, %v10608_v62, 0.0  ;;  %8754 = vpow2.f32 %v2776_v0 }
 0x539   : > { %2844 = vadd.xlane.f32.xlu1 %v2843_v41  ;;  %2859 = vadd.xlane.f32.xlu0 %v2858_v34  ;;  %v2715_v41 = vsub.f32 %v10448_v56, %v2683_v39  ;;  %v2677_v34 = vpop.xlane.xlu1 %2676 }
 0x53b   : > { %v10610_v23 = vpop.eup %8748 }
 0x53c   : > { %v2855_v47 = vsel %vm1298_vm1, %v10610_v23, 0.0  ;;  %v10616_v6 = vpop.eup %8750 }
 0x53d   : > { %2853 = vadd.xlane.f32.xlu0 %v2852_v29  ;;  %2856 = vadd.xlane.f32.xlu1 %v2855_v47  ;;  %v2861_v9 = vsel %vm1298_vm1, %v10616_v6, 0.0  ;;  %v2778_v29 = vmul.f32 1.442695, %v2715_v41  ;;  %v2713_v47 = vsub.f32 %v10454_v57, %v2677_v34 }
 0x53f   : > { %8756 = vpow2.f32 %v2778_v29 }
 0x541   : > { %2862 = vadd.xlane.f32.xlu0 %v2861_v9  ;;  %v2774_v9 = vmul.f32 1.442695, %v2713_v47 }
 0x543   : > { %8758 = vpow2.f32 %v2774_v9 }
 0x54e   : > { %3555 = vrot.lane.b32.xlu1 %v12516_v27, %s9090_s7  ;;  %v10628_v27 = vpop.eup %8752 }
 0x54f   : > { %v2864_v16 = vsel %vm1298_vm1, %v10628_v27, 0.0  ;;  %v10632_v50 = vpop.eup %8754 }
 0x550   : > { %v2870_v56 = vsel %vm1298_vm1, %v10632_v50, 0.0  ;;  %v10636_v12 = vpop.eup %8756 }
 0x551   : > { %v2873_v57 = vsel %vm1298_vm1, %v10636_v12, 0.0  ;;  %v10640_v39 = vpop.eup %8758 }
 0x552   : > { %v2867_v35 = vsel %vm1298_vm1, %v10640_v39, 0.0 }
 0x557   : > { %3777 = vrot.lane.b32.xlu0 %v12517_v2, %s9090_s7 }
 0x56f   : > { %v2788_v2 = vpop.xlane.xlu0 %2787 }
 0x572   : > { %2865 = vadd.xlane.f32.xlu1 %v2864_v16 }
 0x573   : > { %v2782_v30 = vpop.xlane.xlu0 %2781 }
 0x576   : > { %2871 = vadd.xlane.f32.xlu0 %v2870_v56 }
 0x577   : > { %v2791_v63 = vpop.xlane.xlu1 %2790 }
 0x578   : > { %8760 = vrcp.f32 %v2791_v63 }
 0x579   : > { %8762 = vrcp.f32 %v2782_v30 }
 0x57a   : > { %8764 = vrcp.f32 %v2788_v2  ;;  %2874 = vadd.xlane.f32.xlu0 %v2873_v57  ;;  %v12519_v57 = vld [vmem:[#allocation4_spill] sm:$0xff] }
 0x57b   : > { %v2785_v13 = vpop.xlane.xlu1 %2784 }
 0x57c   : > { %8766 = vrcp.f32 %v2785_v13 }
 0x57e   : > { %2868 = vadd.xlane.f32.xlu0 %v2867_v35  ;;  %v12520_v35 = vld [vmem:[#allocation17_spill] sm:$0xff] }
 0x583   : > { %3775 = vrot.lane.b32.xlu1 %v9536_v32, %s9090_s7 }
 0x585   : > { %v8761_v0 = vpop.eup %8760 }
 0x586   : > { %v8763_v41 = vpop.eup %8762  ;;  %v2911_v47 = vmul.f32 %v8761_v0, %v10492_v8 }
 0x587   : > { %v8765_v34 = vpop.eup %8764  ;;  %3773 = vrot.lane.b32.xlu1 %v9540_v17, %s9090_s7  ;;  %v2908_v2 = vmul.f32 %v8763_v41, %v10488_v55 }
 0x588   : > { %v2910_v16 = vmul.f32 %v8765_v34, %v10484_v58 }
 0x589   : > { %v8767_v29 = vpop.eup %8766 }
 0x58a   : > { %v2909_v9 = vmul.f32 %v8767_v29, %v10496_v11  ;;  %v2941_v30 = vpack.c.bf16 %v2911_v47, %v2910_v16 }
 0x58b   : > { %3660 = vrot.lane.b32.xlu1 %v9572_v21, %s9090_s7 }
 0x58c   : > { %v2940_v56 = vpack.c.bf16 %v2909_v9, %v2908_v2  ;;  %v12521_v2 = vld [vmem:[#allocation16_spill] sm:$0xff] }
 0x58e   : > { %8044 = vmatprep.mubr.msk.bf16.mxu0 %vm1298_vm1, %v2940_v56  ;;  %v12522_v56 = vld [vmem:[#allocation30_spill] sm:$0xff] }
 0x58f   : > { %8045 = vmatmul.mubr.msk.bf16.vlgmr.msra.gmra.mxu0 %vm1298_vm1, %v2941_v30  ;;  %3559 = vrot.lane.b32.xlu1 %v12470_v54, %s9090_s7 }
 0x590   : > { %8069 = vmatpush3.bf16.msra.mxu0 %v10283_v45 }
 0x591   : > { %8070 = vmatprep.subr.bf16.mxu0 %v10288_v18 }
 0x593   : > { %3880 = vrot.lane.b32.xlu1 %v9585_v1, %s9090_s7 }
 0x594   : > { %8071 = vmatpush3.bf16.msra.mxu0 %v10288_v18  ;;  %3666 = vrot.lane.b32.xlu0 %v9513_v5, %s9090_s7 }
 0x595   : > { %v2800_v58 = vpop.xlane.xlu0 %2799  ;;  %8072 = vmatprep.subr.bf16.mxu0 %v10290_v59 }
 0x597   : > { %3765 = vrot.lane.b32.xlu1 %v9658_v51, %s9090_s7 }
 0x598   : > { %8073 = vmatpush3.bf16.msra.mxu0 %v10290_v59  ;;  %3658 = vrot.lane.b32.xlu0 %v12469_v25, %s9090_s7 }
 0x599   : > { %8074 = vmatprep.subr.bf16.mxu0 %v10293_v31  ;;  %v2794_v45 = vpop.xlane.xlu0 %2793 }
 0x59a   : > { %v2803_v18 = vpop.xlane.xlu1 %2802 }
 0x59b   : > { %8768 = vrcp.f32 %v2803_v18  ;;  %3662 = vrot.lane.b32.xlu1 %v9576_v43, %s9090_s7 }
 0x59c   : > { %8770 = vrcp.f32 %v2794_v45  ;;  %8075 = vmatpush3.bf16.msra.mxu0 %v10293_v31  ;;  %3882 = vrot.lane.b32.xlu0 %v9538_v15, %s9090_s7  ;;  %v12518_v31 = vld [vmem:[#allocation25_spill] sm:$0xff] }
 0x59d   : > { %8772 = vrcp.f32 %v2800_v58  ;;  %8452 = vmatprep.subr.msk.bf16.mxu0 %vm941_vm0, %v10458_v48 }
 0x59e   : > { %v2797_v59 = vpop.xlane.xlu1 %2796 }
 0x59f   : > { %8774 = vrcp.f32 %v2797_v59  ;;  %3876 = vrot.lane.b32.xlu1 %v9670_v7, %s9090_s7 }
 0x5a0   : > { %3557 = vrot.lane.b32.xlu0 %v12471_v20, %s9090_s7 }
 0x5a2   : > { %v2812_v55 = vpop.xlane.xlu1 %2811 }
 0x5a3   : > { %3870 = vrot.lane.b32.xlu1 %v9323_v28, %s9090_s7 }
 0x5a4   : > { %3771 = vrot.lane.b32.xlu0 %v12518_v31, %s9090_s7 }
 0x5a6   : > { %v2806_v8 = vpop.xlane.xlu1 %2805  ;;  %v2824_v11 = vpop.xlane.xlu0 %2823 }
 0x5a7   : > { %3769 = vrot.lane.b32.xlu1 %v12519_v57, %s9090_s7 }
 0x5a8   : > { %v8769_v63 = vpop.eup %8768  ;;  %3763 = vrot.lane.b32.xlu0 %v12520_v35, %s9090_s7 }
 0x5a9   : > { %v8771_v13 = vpop.eup %8770  ;;  %v2915_v47 = vmul.f32 %v8769_v63, %v10515_v14  ;;  %v12523_v14 = vld [vmem:[#allocation32_spill] sm:$0xff] }
 0x5aa   : > { %v2815_v0 = vpop.xlane.xlu1 %2814  ;;  %v8773_v41 = vpop.eup %8772  ;;  %v2912_v9 = vmul.f32 %v8771_v13, %v10513_v46  ;;  %v12524_v46 = vld [vmem:[#allocation27_spill] sm:$0xff] }
 0x5ab   : > { %8776 = vrcp.f32 %v2815_v0  ;;  %v2827_v29 = vpop.xlane.xlu0 %2826  ;;  %3874 = vrot.lane.b32.xlu1 %v12521_v2, %s9090_s7  ;;  %v2914_v58 = vmul.f32 %v8773_v41, %v10507_v19  ;;  %v12525_v19 = vld [vmem:[#allocation34_spill] sm:$0xff]  ;;  %v12527_v41 = vld [vmem:[#allocation36_spill] sm:$0xff] }
 0x5ac   : > { %v8775_v34 = vpop.eup %8774  ;;  %8778 = vrcp.f32 %v2806_v8  ;;  %3878 = vrot.lane.b32.xlu0 %v12522_v56, %s9090_s7  ;;  %v12526_v8 = vld [vmem:[#allocation29_spill] sm:$0xff] }
 0x5ad   : > { %v2913_v16 = vmul.f32 %v8775_v34, %v10523_v44  ;;  %8780 = vrcp.f32 %v2812_v55  ;;  %v2943_v59 = vpack.c.bf16 %v2915_v47, %v2914_v58  ;;  %v12528_v47 = vld [vmem:[#allocation33_spill] sm:$0xff]  ;;  %v12529_v58 = vld [vmem:[#allocation22_spill] sm:$0xff] }
 0x5ae   : > { %v2809_v30 = vpop.xlane.xlu1 %2808 }
 0x5af   : > { %8782 = vrcp.f32 %v2809_v30  ;;  %v2942_v45 = vpack.c.bf16 %v2913_v16, %v2912_v9  ;;  %v2821_v18 = vpop.xlane.xlu0 %2820  ;;  %4345 = vrot.lane.b32.xlu1 %v12523_v14, %s9090_s7 }
 0x5b0   : > { %8784 = vrcp.f32 %v2821_v18  ;;  %3664 = vrot.lane.b32.xlu0 %v12524_v46, %s9090_s7 }
 0x5b1   : > { %8048 = vmatprep.mubr.msk.bf16.mxu0 %vm1298_vm1, %v2942_v45 }
 0x5b2   : > { %8049 = vmatmul.mubr.msk.bf16.gmra.mxu0 %vm1298_vm1, %v2943_v59  ;;  %v2818_v44 = vpop.xlane.xlu1 %2817 }
 0x5b3   : > { %8786 = vrcp.f32 %v2818_v44  ;;  %v2836_v55 = vpop.xlane.xlu0 %2835  ;;  %4343 = vrot.lane.b32.xlu1 %v12525_v19, %s9090_s7  ;;  %v12530_v19 = vld [vmem:[#allocation39_spill] sm:$0xff] }
 0x5b4   : > { %8788 = vrcp.f32 %v2827_v29  ;;  %3868 = vrot.lane.b32.xlu0 %v12526_v8, %s9090_s7 }
 0x5b5   : > { %8790 = vrcp.f32 %v2824_v11 }
 0x5b6   : > { %v2830_v63 = vpop.xlane.xlu1 %2829 }
 0x5b7   : > { %v2848_v13 = vpop.xlane.xlu0 %2847  ;;  %4436 = vrot.lane.b32.xlu1 %v12527_v41, %s9090_s7 }
 0x5b8   : > { %v8777_v0 = vpop.eup %8776  ;;  %3767 = vrot.lane.b32.xlu0 %v12528_v47, %s9090_s7 }
 0x5b9   : > { %v8779_v34 = vpop.eup %8778  ;;  %v2919_v30 = vmul.f32 %v8777_v0, %v10543_v33 }
 0x5ba   : > { %v2839_v9 = vpop.xlane.xlu1 %2838  ;;  %v8781_v29 = vpop.eup %8780  ;;  %v2916_v45 = vmul.f32 %v8779_v34, %v10535_v10  ;;  %v12533_v34 = vld [vmem:[#allocation19_spill] sm:$0xff] }
 0x5bb   : > { %8792 = vrcp.f32 %v2839_v9  ;;  %v2842_v11 = vpop.xlane.xlu0 %2841  ;;  %4523 = vrot.lane.b32.xlu1 %v12529_v58, %s9090_s7  ;;  %v2918_v44 = vmul.f32 %v8781_v29, %v10529_v22  ;;  %v12531_v58 = vld [vmem:[#allocation20_spill] sm:$0xff] }
 0x5bc   : > { %v8783_v16 = vpop.eup %8782  ;;  %8794 = vrcp.f32 %v2830_v63  ;;  %3872 = vrot.lane.b32.xlu0 %v12530_v19, %s9090_s7 }
 0x5bd   : > { %v2917_v18 = vmul.f32 %v8783_v16, %v10547_v40  ;;  %v8785_v59 = vpop.eup %8784  ;;  %8796 = vrcp.f32 %v2836_v55  ;;  %v2945_v63 = vpack.c.bf16 %v2919_v30, %v2918_v44  ;;  %v12532_v40 = vld [vmem:[#allocation28_spill] sm:$0xff]  ;;  %v12534_v16 = vld [vmem:[#allocation15_spill] sm:$0xff] }
 0x5be   : > { %v2833_v8 = vpop.xlane.xlu1 %2832  ;;  %v2921_v22 = vmul.f32 %v8785_v59, %v10563_v60  ;;  %v12536_v60 = vld [vmem:[#allocation35_spill] sm:$0xff] }
 0x5bf   : > { %8798 = vrcp.f32 %v2833_v8  ;;  %v2944_v33 = vpack.c.bf16 %v2917_v18, %v2916_v45  ;;  %v2851_v9 = vpop.xlane.xlu0 %2850  ;;  %4521 = vrot.lane.b32.xlu1 %v12531_v58, %s9090_s7  ;;  %v12537_v18 = vld [vmem:[#allocation18_spill] sm:$0xff] }
 0x5c0   : > { %v8787_v0 = vpop.eup %8786  ;;  %8800 = vrcp.f32 %v2842_v11  ;;  %4347 = vrot.lane.b32.xlu0 %v12532_v40, %s9090_s7 }
 0x5c1   : > { %v8789_v57 = vpop.eup %8788  ;;  %8060 = vmatprep.mubr.msk.bf16.mxu1 %vm1298_vm1, %v2944_v33  ;;  %v2920_v10 = vmul.f32 %v8787_v0, %v10559_v36  ;;  %v12535_v36 = vld [vmem:[#allocation21_spill] sm:$0xff] }
 0x5c2   : > { %8061 = vmatmul.mubr.msk.bf16.vlgmr.msra.gmra.mxu1 %vm1298_vm1, %v2945_v63  ;;  %v2845_v55 = vpop.xlane.xlu1 %2844  ;;  %v8791_v8 = vpop.eup %8790  ;;  %v2923_v11 = vmul.f32 %v8789_v57, %v10553_v53  ;;  %v12538_v53 = vld [vmem:[#allocation42_spill] sm:$0xff] }
 0x5c3   : > { %8085 = vmatpush3.bf16.msra.mxu1 %v12533_v34  ;;  %8802 = vrcp.f32 %v2845_v55  ;;  %v2946_v29 = vpack.c.bf16 %v2921_v22, %v2920_v10  ;;  %v2860_v30 = vpop.xlane.xlu0 %2859  ;;  %4519 = vrot.lane.b32.xlu1 %v12535_v36, %s9090_s7  ;;  %v2922_v45 = vmul.f32 %v8791_v8, %v10538_v26  ;;  %v12540_v10 = vld [vmem:[#allocation49_spill] sm:$0xff]  ;;  %v12541_v55 = vld [vmem:[#allocation10_spill] sm:$0xff] }
 0x5c4   : > { %8804 = vrcp.f32 %v2851_v9  ;;  %8086 = vmatprep.subr.bf16.mxu1 %v12534_v16  ;;  %4341 = vrot.lane.b32.xlu0 %v12536_v60, %s9090_s7 }
 0x5c5   : > { %8064 = vmatprep.mubr.msk.bf16.mxu1 %vm1298_vm1, %v2946_v29  ;;  %8806 = vrcp.f32 %v2848_v13  ;;  %v2947_v33 = vpack.c.bf16 %v2923_v11, %v2922_v45  ;;  %v12539_v13 = vld [vmem:[#allocation37_spill] sm:$0xff]  ;;  %v12543_v45 = vld [vmem:[#allocation46_spill] sm:$0xff] }
 0x5c6   : > { %v2857_v44 = vpop.xlane.xlu1 %2856 }
 0x5c7   : > { %8087 = vmatpush3.bf16.msra.mxu1 %v12534_v16  ;;  %v2854_v59 = vpop.xlane.xlu0 %2853  ;;  %4614 = vrot.lane.b32.xlu1 %v12538_v53, %s9090_s7 }
 0x5c8   : > { %8088 = vmatprep.subr.bf16.mxu1 %v12537_v18  ;;  %v8793_v0 = vpop.eup %8792  ;;  %8808 = vrcp.f32 %v2854_v59  ;;  %4525 = vrot.lane.b32.xlu0 %v12539_v13, %s9090_s7 }
 0x5c9   : > { %v8795_v57 = vpop.eup %8794  ;;  %8810 = vrcp.f32 %v2857_v44  ;;  %v2927_v63 = vmul.f32 %v8793_v0, %v10582_v42  ;;  %v12544_v44 = vld [vmem:[#allocation24_spill] sm:$0xff] }
 0x5ca   : > { %8065 = vmatmul.mubr.msk.bf16.gmra.mxu1 %vm1298_vm1, %v2947_v33  ;;  %v8797_v26 = vpop.eup %8796  ;;  %8812 = vrcp.f32 %v2860_v30  ;;  %v2924_v8 = vmul.f32 %v8795_v57, %v10572_v38  ;;  %v12542_v30 = vld [vmem:[#allocation38_spill] sm:$0xff]  ;;  %v3591_v33 = vsel %vm941_vm0, %v10458_v48, 0 }
 0x5cb   : > { %8089 = vmatpush3.bf16.msra.mxu1 %v12537_v18  ;;  %v2863_v22 = vpop.xlane.xlu0 %2862  ;;  %4936 = vrot.lane.b32.xlu1 %v12541_v55, %s9091_s8  ;;  %v2926_v16 = vmul.f32 %v8797_v26, %v10567_v37  ;;  %v12546_v26 = vld [vmem:[#allocation44_spill] sm:$0xff] }
 0x5cc   : > { %v8799_v9 = vpop.eup %8798  ;;  %8090 = vmatprep.subr.bf16.mxu1 %v12540_v10  ;;  %8814 = vrcp.f32 %v2863_v22  ;;  %4434 = vrot.lane.b32.xlu0 %v12542_v30, %s9090_s7 }
 0x5cd   : > { %v2925_v34 = vmul.f32 %v8799_v9, %v10590_v52  ;;  %v8801_v29 = vpop.eup %8800  ;;  %v2949_v18 = vpack.c.bf16 %v2927_v63, %v2926_v16  ;;  %v12545_v52 = vld [vmem:[#allocation40_spill] sm:$0xff]  ;;  %v12548_v63 = vld [vmem:[#allocation41_spill] sm:$0xff]  ;;  %v12550_v16 = vld [vmem:[#allocation31_spill] sm:$0xff] }
 0x5ce   : > { %v2928_v38 = vmul.f32 %v8801_v29, %v10586_v61  ;;  %v12547_v61 = vld [vmem:[#allocation26_spill] sm:$0xff] }
 0x5cf   : > { %8091 = vmatpush3.bf16.msra.mxu1 %v12540_v10  ;;  %v2948_v42 = vpack.c.bf16 %v2925_v34, %v2924_v8  ;;  %4610 = vrot.lane.b32.xlu1 %v12544_v44, %s9090_s7 }
 0x5d0   : > { %v8803_v11 = vpop.eup %8802  ;;  %8456 = vmatprep.subr.msk.bf16.mxu1 %vm941_vm0, %v12543_v45  ;;  %4432 = vrot.lane.b32.xlu0 %v12545_v52, %s9090_s7 }
 0x5d1   : > { %v8805_v59 = vpop.eup %8804  ;;  %8076 = vmatprep.mubr.msk.bf16.mxu0 %vm1298_vm1, %v2948_v42  ;;  %v2929_v37 = vmul.f32 %v8803_v11, %v10598_v49  ;;  %v3588_v42 = vsel %vm941_vm0, %v12546_v26, 0 }
 0x5d2   : > { %8077 = vmatmul.mubr.msk.bf16.vlgmr.msra.gmra.mxu0 %vm1298_vm1, %v2949_v18  ;;  %v8807_v0 = vpop.eup %8806  ;;  %v2931_v9 = vmul.f32 %v8805_v59, %v10594_v24  ;;  %v12549_v24 = vld [vmem:[#allocation14_spill] sm:$0xff]  ;;  %v12551_v18 = vld [vmem:[#allocation43_spill] sm:$0xff] }
 0x5d3   : > { %8101 = vmatpush3.bf16.xpose.msra.mxu0 %v3591_v33  ;;  %v2950_v57 = vpack.c.bf16 %v2929_v37, %v2928_v38  ;;  %4608 = vrot.lane.b32.xlu1 %v12547_v61, %s9090_s7  ;;  %v2930_v10 = vmul.f32 %v8807_v0, %v10578_v4  ;;  %v12553_v38 = vld [vmem:[#allocation5_spill] sm:$0xff]  ;;  %v12556_v33 = vld [vmem:[#allocation12_spill] sm:$0xff]  ;;  %v12557_v0 = vld [vmem:[#allocation7_spill] sm:$0xff] }
 0x5d4   : > { %8453 = vmatprep.subr.msk.bf16.mxu0 %vm941_vm0, %v12546_v26  ;;  %4430 = vrot.lane.b32.xlu0 %v12548_v63, %s9090_s7  ;;  %v12554_v37 = vld [vmem:[#allocation9_spill] sm:$0xff]  ;;  %v12558_v26 = vld [vmem:[#allocation47_spill] sm:$0xff] }
 0x5d5   : > { %8080 = vmatprep.mubr.msk.bf16.mxu0 %vm1298_vm1, %v2950_v57  ;;  %v8809_v49 = vpop.eup %8808  ;;  %v2951_v8 = vpack.c.bf16 %v2931_v9, %v2930_v10  ;;  %v12559_v9 = vld [vmem:[#allocation13_spill] sm:$0xff]  ;;  %v12561_v10 = vld [vmem:[#allocation50_spill] sm:$0xff] }
 0x5d6   : > { %v8811_v48 = vpop.eup %8810  ;;  %v2932_v22 = vmul.f32 %v8809_v49, %v10608_v62 }
 0x5d7   : > { %v8813_v55 = vpop.eup %8812  ;;  %v2933_v34 = vmul.f32 %v8811_v48, %v10610_v23  ;;  %5041 = vrot.lane.b32.xlu1 %v12549_v24, %s9091_s8  ;;  %v12552_v23 = vld [vmem:[#allocation48_spill] sm:$0xff]  ;;  %v12562_v48 = vld [vmem:[#allocation6_spill] sm:$0xff]  ;;  %v3556_v24 = vpop.permute.xlu1 %3555 }
 0x5d8   : > { %4612 = vrot.lane.b32.xlu0 %v12550_v16, %s9090_s7  ;;  %v2934_v11 = vmul.f32 %v8813_v55, %v10602_v3  ;;  %v3696_v3 = vsel %vm941_vm0, %v12543_v45, 0  ;;  %v3585_v57 = vsel %vm941_vm0, %v12552_v23, 0  ;;  %v12560_v45 = vld [vmem:[#allocation3_spill] sm:$0xff]  ;;  %v3582_v55 = vsel %vm941_vm0, %v12558_v26, 0 }
 0x5d9   : > { %v8815_v29 = vpop.eup %8814  ;;  %v2952_v4 = vpack.c.bf16 %v2933_v34, %v2932_v22  ;;  %v12563_v22 = vld [vmem:[#allocation11_spill] sm:$0xff]  ;;  %v3690_v34 = vsel %vm941_vm0, %v12561_v10, 0 }
 0x5da   : > { %8081 = vmatmul.mubr.msk.bf16.gmra.mxu0 %vm1298_vm1, %v2951_v8  ;;  %v2935_v62 = vmul.f32 %v8815_v29, %v10616_v6  ;;  %v12555_v6 = vld [vmem:[#allocation45_spill] sm:$0xff]  ;;  %v3778_v8 = vpop.permute.xlu0 %3777 }
 0x5db   : > { %8103 = vmatpush3.bf16.xpose.msra.mxu0 %v3588_v42  ;;  %8108 = vmatprep.mubr.msk.bf16.mxu0 %vm941_vm0, %v12551_v18  ;;  %v3693_v49 = vsel %vm941_vm0, %v12555_v6, 0  ;;  %v3801_v29 = vsel %vm941_vm0, %v3778_v8, 0 }
 0x5dc   : > { %8092 = vmatprep.mubr.msk.bf16.mxu1 %vm1298_vm1, %v2952_v4  ;;  %8454 = vmatprep.subr.msk.bf16.mxu0 %vm941_vm0, %v12552_v23  ;;  %v2953_v59 = vpack.c.bf16 %v2935_v62, %v2934_v11 }
 0x5dd   : > { %4930 = vrot.lane.b32.xlu1 %v12553_v38, %s9091_s8  ;;  %4934 = vrot.lane.b32.xlu0 %v12554_v37, %s9091_s8 }
 0x5de   : > { %8093 = vmatmul.mubr.msk.bf16.vlgmr.msra.gmra.mxu1 %vm1298_vm1, %v2953_v59 }
 0x5df   : > { %8117 = vmatpush3.bf16.xpose.msra.mxu1 %v3696_v3 }
 0x5e0   : > { %8457 = vmatprep.subr.msk.bf16.mxu1 %vm941_vm0, %v12555_v6 }
 0x5e1   : > { %5039 = vrot.lane.b32.xlu1 %v12556_v33, %s9091_s8  ;;  %4932 = vrot.lane.b32.xlu0 %v12557_v0, %s9091_s8 }
 0x5e3   : > { %8105 = vmatpush3.bf16.xpose.msra.mxu0 %v3585_v57 }
 0x5e4   : > { %8455 = vmatprep.subr.msk.bf16.mxu0 %vm941_vm0, %v12558_v26 }
 0x5e5   : > { %4924 = vrot.lane.b32.xlu1 %v12559_v9, %s9091_s8  ;;  %4922 = vrot.lane.b32.xlu0 %v12560_v45, %s9091_s8 }
 0x5e7   : > { %8119 = vmatpush3.bf16.xpose.msra.mxu1 %v3693_v49 }
 0x5e8   : > { %8458 = vmatprep.subr.msk.bf16.mxu1 %vm941_vm0, %v12561_v10 }
 0x5e9   : > { %5146 = vrot.lane.b32.xlu1 %v12562_v48, %s9091_s8  ;;  %5037 = vrot.lane.b32.xlu0 %v12563_v22, %s9091_s8 }
 0x5eb   : > { %8107 = vmatpush3.bf16.xpose.msra.mxu0 %v3582_v55 }
 0x5ec   : > { %8460 = vmatprep.subr.msk.bf16.mxu0 %vm941_vm0, %v3778_v8 }
 0x5ef   : > { %8121 = vmatpush3.bf16.xpose.msra.mxu1 %v3690_v34 }
 0x5f2   : > { %8109 = vmatmul.mubr.msk.bf16.vlgmr.msra.gmra.mxu0 %vm941_vm0, %v3556_v24 }
 0x5f3   : > { %8133 = vmatpush3.bf16.xpose.msra.mxu0 %v3801_v29 }
 0x5fb   : > { %v2866_v42 = vpop.xlane.xlu1 %2865 }
 0x5ff   : > { %v2872_v4 = vpop.xlane.xlu0 %2871  ;;  %v3776_v11 = vpop.permute.xlu1 %3775 }
 0x600   : > { %8461 = vmatprep.subr.msk.bf16.mxu0 %vm941_vm0, %v3776_v11  ;;  %v3798_v62 = vsel %vm941_vm0, %v3776_v11, 0 }
 0x601   : > { %8135 = vmatpush3.bf16.xpose.msra.mxu0 %v3798_v62 }
 0x603   : > { %v2875_v18 = vpop.xlane.xlu0 %2874  ;;  %v3774_v23 = vpop.permute.xlu1 %3773 }
 0x604   : > { %8462 = vmatprep.subr.msk.bf16.mxu0 %vm941_vm0, %v3774_v23  ;;  %8816 = vrcp.f32 %v2875_v18  ;;  %v3795_v37 = vsel %vm941_vm0, %v3774_v23, 0 }
 0x605   : > { %8818 = vrcp.f32 %v2866_v42 }
 0x606   : > { %8820 = vrcp.f32 %v2872_v4 }
 0x607   : > { %v2869_v59 = vpop.xlane.xlu0 %2868  ;;  %v3661_v38 = vpop.permute.xlu1 %3660 }
 0x608   : > { %8822 = vrcp.f32 %v2869_v59 }
 0x609   : > { %8137 = vmatpush3.bf16.xpose.msra.mxu0 %v3795_v37 }
 0x60b   : > { %v3667_v3 = vpop.permute.xlu0 %3666  ;;  %v3560_v6 = vpop.permute.xlu1 %3559 }
 0x60c   : > { %8459 = vmatprep.subr.msk.bf16.mxu1 %vm941_vm0, %v3667_v3  ;;  %v3687_v33 = vsel %vm941_vm0, %v3667_v3, 0 }
 0x60d   : > { %8123 = vmatpush3.bf16.xpose.msra.mxu1 %v3687_v33 }
 0x60f   : > { %v3659_v0 = vpop.permute.xlu0 %3658  ;;  %v3881_v57 = vpop.permute.xlu1 %3880 }
 0x611   : > { %v8817_v26 = vpop.eup %8816 }
 0x612   : > { %v8819_v9 = vpop.eup %8818  ;;  %v2939_v22 = vmul.f32 %v8817_v26, %v10636_v12 }
 0x613   : > { %v3883_v45 = vpop.permute.xlu0 %3882  ;;  %v3766_v49 = vpop.permute.xlu1 %3765  ;;  %v2936_v55 = vmul.f32 %v8819_v9, %v10628_v27 }
 0x614   : > { %v8821_v10 = vpop.eup %8820  ;;  %8464 = vmatprep.subr.msk.bf16.mxu1 %vm941_vm0, %v3883_v45  ;;  %v3906_v18 = vsel %vm941_vm0, %v3883_v45, 0 }
 0x615   : > { %v8823_v48 = vpop.eup %8822  ;;  %v2938_v29 = vmul.f32 %v8821_v10, %v10632_v50 }
 0x616   : > { %v2937_v8 = vmul.f32 %v8823_v48, %v10640_v39 }
 0x617   : > { %v3558_v34 = vpop.permute.xlu0 %3557  ;;  %v3663_v24 = vpop.permute.xlu1 %3662  ;;  %v2955_v4 = vpack.c.bf16 %v2939_v22, %v2938_v29 }
 0x618   : > { %8112 = vmatprep.mubr.msk.bf16.mxu0 %vm941_vm0, %v3558_v34  ;;  %v2954_v42 = vpack.c.bf16 %v2937_v8, %v2936_v55 }
 0x619   : > { %8113 = vmatmul.mubr.msk.bf16.gmra.mxu0 %vm941_vm0, %v3560_v6  ;;  %v3903_v6 = vsel %vm941_vm0, %v3881_v57, 0 }
 0x61a   : > { %8096 = vmatprep.mubr.msk.bf16.mxu1 %vm1298_vm1, %v2954_v42 }
 0x61b   : > { %v3772_v11 = vpop.permute.xlu0 %3771  ;;  %8097 = vmatmul.mubr.msk.bf16.gmra.mxu1 %vm1298_vm1, %v2955_v4  ;;  %v3877_v12 = vpop.permute.xlu1 %3876 }
 0x61c   : > { %8124 = vmatprep.mubr.msk.bf16.mxu1 %vm941_vm0, %v3659_v0  ;;  %8463 = vmatprep.subr.msk.bf16.mxu0 %vm941_vm0, %v3772_v11  ;;  %v3792_v27 = vsel %vm941_vm0, %v3772_v11, 0  ;;  %v3897_v10 = vsel %vm941_vm0, %v3877_v12, 0 }
 0x61d   : > { %8139 = vmatpush3.bf16.xpose.msra.mxu0 %v3792_v27 }
 0x61f   : > { %v3764_v50 = vpop.permute.xlu0 %3763  ;;  %v3871_v39 = vpop.permute.xlu1 %3870 }
 0x620   : > { %8140 = vmatprep.mubr.msk.bf16.mxu0 %vm941_vm0, %v3764_v50 }
 0x623   : > { %v3879_v62 = vpop.permute.xlu0 %3878  ;;  %8125 = vmatmul.mubr.msk.bf16.vlgmr.msra.gmra.mxu1 %vm941_vm0, %v3661_v38  ;;  %v3770_v23 = vpop.permute.xlu1 %3769 }
 0x624   : > { %8149 = vmatpush3.bf16.xpose.msra.mxu1 %v3906_v18  ;;  %8128 = vmatprep.mubr.msk.bf16.mxu1 %vm941_vm0, %v3663_v24  ;;  %v3900_v9 = vsel %vm941_vm0, %v3879_v62, 0 }
 0x625   : > { %8141 = vmatmul.mubr.msk.bf16.vlgmr.msra.gmra.mxu0 %vm941_vm0, %v3766_v49  ;;  %8465 = vmatprep.subr.msk.bf16.mxu1 %vm941_vm0, %v3881_v57 }
 0x627   : > { %v3665_v59 = vpop.permute.xlu0 %3664  ;;  %v3875_v37 = vpop.permute.xlu1 %3874 }
 0x62b   : > { %v3869_v3 = vpop.permute.xlu0 %3868  ;;  %8129 = vmatmul.mubr.msk.bf16.gmra.mxu1 %vm941_vm0, %v3665_v59  ;;  %v4346_v33 = vpop.permute.xlu1 %4345 }
 0x62c   : > { %8151 = vmatpush3.bf16.xpose.msra.mxu1 %v3903_v6  ;;  %8156 = vmatprep.mubr.msk.bf16.mxu1 %vm941_vm0, %v3869_v3 }
 0x62d   : > { %8466 = vmatprep.subr.msk.bf16.mxu1 %vm941_vm0, %v3879_v62 }
 0x62f   : > { %v3768_v38 = vpop.permute.xlu0 %3767  ;;  %v4344_v0 = vpop.permute.xlu1 %4343 }
 0x630   : > { %8144 = vmatprep.mubr.msk.bf16.mxu0 %vm941_vm0, %v3768_v38 }
 0x631   : > { %8145 = vmatmul.mubr.msk.bf16.gmra.mxu0 %vm941_vm0, %v3770_v23 }
 0x633   : > { %v3873_v26 = vpop.permute.xlu0 %3872  ;;  %v4437_v57 = vpop.permute.xlu1 %4436 }
 0x634   : > { %8153 = vmatpush3.bf16.xpose.msra.mxu1 %v3900_v9 }
 0x635   : > { %8467 = vmatprep.subr.msk.bf16.mxu1 %vm941_vm0, %v3877_v12 }
 0x637   : > { %v4348_v45 = vpop.permute.xlu0 %4347  ;;  %v10862_v48 = vpop.permute.xlu1 %4523 }
 0x638   : > { %8164 = vmatprep.subr.bf16.mxu0 %v4348_v45 }
 0x639   : > { %8165 = vmatpush3.bf16.msra.mxu0 %v4348_v45 }
 0x63a   : > { %8166 = vmatprep.subr.bf16.mxu0 %v4346_v33 }
 0x63b   : > { %v4342_v49 = vpop.permute.xlu0 %4341  ;;  %v10867_v8 = vpop.permute.xlu1 %4521 }
 0x63c   : > { %8155 = vmatpush3.bf16.xpose.msra.mxu1 %v3897_v10 }
 0x63d   : > { %8180 = vmatprep.subr.bf16.mxu1 %v4437_v57  ;;  %8167 = vmatpush3.bf16.msra.mxu0 %v4346_v33 }
 0x63e   : > { %8168 = vmatprep.subr.bf16.mxu0 %v4344_v0 }
 0x63f   : > { %v10864_v22 = vpop.permute.xlu0 %4525  ;;  %v10871_v24 = vpop.permute.xlu1 %4519 }
 0x641   : > { %8169 = vmatpush3.bf16.msra.mxu0 %v4344_v0 }
 0x642   : > { %8170 = vmatprep.subr.bf16.mxu0 %v4342_v49 }
 0x643   : > { %8157 = vmatmul.mubr.msk.bf16.vlgmr.msra.gmra.mxu1 %vm941_vm0, %v3871_v39  ;;  %v4435_v55 = vpop.permute.xlu0 %4434  ;;  %v10874_v42 = vpop.permute.xlu1 %4614 }
 0x644   : > { %8160 = vmatprep.mubr.msk.bf16.mxu1 %vm941_vm0, %v3873_v26  ;;  %8181 = vmatpush3.bf16.msra.mxu1 %v4437_v57  ;;  %12564 = vst [vmem:[#allocation27_spill] sm:$0xff] %v10874_v42 }
 0x645   : > { %8182 = vmatprep.subr.bf16.mxu1 %v4435_v55  ;;  %8171 = vmatpush3.bf16.msra.mxu0 %v4342_v49 }
 0x646   : > { %8196 = vmatprep.subr.bf16.mxu0 %v10864_v22 }
 0x647   : > { %v4433_v34 = vpop.permute.xlu0 %4432  ;;  %v11067_v19 = vpop.permute.xlu1 %4936 }
 0x648   : > { %8183 = vmatpush3.bf16.msra.mxu1 %v4435_v55 }
 0x649   : > { %8184 = vmatprep.subr.bf16.mxu1 %v4433_v34 }
 0x64b   : > { %8161 = vmatmul.mubr.msk.bf16.gmra.mxu1 %vm941_vm0, %v3875_v37  ;;  %v4431_v29 = vpop.permute.xlu0 %4430 }
 0x64c   : > { %8185 = vmatpush3.bf16.msra.mxu1 %v4433_v34 }
 0x64d   : > { %8186 = vmatprep.subr.bf16.mxu1 %v4431_v29 }
 0x64f   : > { %v10877_v4 = vpop.f32.mrf.mxu0 }
 0x650   : > { %8187 = vmatpush3.bf16.msra.mxu1 %v4431_v29  ;;  %12565 = vst [vmem:[#allocation33_spill] sm:$0xff] %v10877_v4 }
 0x651   : > { %8212 = vmatprep.subr.bf16.mxu1 %v10874_v42  ;;  %v10879_v11 = vpop.f32.mrf.mxu0 }
 0x652   : > { %12566 = vst [vmem:[#allocation19_spill] sm:$0xff] %v10879_v11 }
 0x653   : > { %v10881_v12 = vpop.f32.mrf.mxu0 }
 0x654   : > { %12567 = vst [vmem:[#allocation15_spill] sm:$0xff] %v10881_v12 }
 0x655   : > { %v10883_v27 = vpop.f32.mrf.mxu0 }
 0x656   : > { %12568 = vst [vmem:[#allocation18_spill] sm:$0xff] %v10883_v27 }
 0x672   : > { %v10885_v50 = vpop.f32.mrf.mxu0 }
 0x673   : > { %12569 = vst [vmem:[#allocation49_spill] sm:$0xff] %v10885_v50 }
 0x674   : > { %v10887_v39 = vpop.f32.mrf.mxu0 }
 0x675   : > { %12570 = vst [vmem:[#allocation10_spill] sm:$0xff] %v10887_v39 }
 0x676   : > { %v10889_v62 = vpop.f32.mrf.mxu0 }
 0x677   : > { %12571 = vst [vmem:[#allocation46_spill] sm:$0xff] %v10889_v62 }
 0x678   : > { %v10891_v18 = vpop.f32.mrf.mxu0 }
 0x679   : > { %12572 = vst [vmem:[#allocation44_spill] sm:$0xff] %v10891_v18 }
 0x682   : > { %v10909_v26 = vpop.f32.mrf.mxu1 }
 0x683   : > { %12581 = vst [vmem:[#allocation47_spill] sm:$0xff] %v10909_v26 }
 0x684   : > { %v10917_v49 = vpop.f32.mrf.mxu1 }
 0x685   : > { %12582 = vst [vmem:[#allocation13_spill] sm:$0xff] %v10917_v49 }
 0x686   : > { %v10925_v29 = vpop.f32.mrf.mxu1 }
 0x687   : > { %12583 = vst [vmem:[#allocation3_spill] sm:$0xff] %v10925_v29 }
 0x692   : > { %v10893_v23 = vpop.f32.mrf.mxu0 }
 0x693   : > { %12573 = vst [vmem:[#allocation14_spill] sm:$0xff] %v10893_v23 }
 0x694   : > { %v10895_v59 = vpop.f32.mrf.mxu0 }
 0x695   : > { %12574 = vst [vmem:[#allocation43_spill] sm:$0xff] %v10895_v59 }
 0x696   : > { %v10897_v37 = vpop.f32.mrf.mxu0 }
 0x697   : > { %12575 = vst [vmem:[#allocation48_spill] sm:$0xff] %v10897_v37 }
 0x698   : > { %v10899_v3 = vpop.f32.mrf.mxu0 }
 0x699   : > { %12576 = vst [vmem:[#allocation5_spill] sm:$0xff] %v10899_v3 }
 0x69a   : > { %v10901_v6 = vpop.f32.mrf.mxu0 }
 0x69b   : > { %12577 = vst [vmem:[#allocation9_spill] sm:$0xff] %v10901_v6 }
 0x69c   : > { %v10903_v33 = vpop.f32.mrf.mxu0 }
 0x69d   : > { %12578 = vst [vmem:[#allocation45_spill] sm:$0xff] %v10903_v33  ;;  %v10931_v33 = vpop.f32.mrf.mxu1 }
 0x69e   : > { %v10905_v38 = vpop.f32.mrf.mxu0  ;;  %12584 = vst [vmem:[#allocation50_spill] sm:$0xff] %v10931_v33 }
 0x69f   : > { %12579 = vst [vmem:[#allocation12_spill] sm:$0xff] %v10905_v38  ;;  %v10933_v23 = vpop.f32.mrf.mxu1 }
 0x6a0   : > { %v10907_v0 = vpop.f32.mrf.mxu0  ;;  %12585 = vst [vmem:[#allocation6_spill] sm:$0xff] %v10933_v23 }
 0x6a1   : > { %12580 = vst [vmem:[#allocation7_spill] sm:$0xff] %v10907_v0  ;;  %v10935_v59 = vpop.f32.mrf.mxu1 }
 0x6a2   : > { %12586 = vst [vmem:[#allocation11_spill] sm:$0xff] %v10935_v59 }
 0x6a3   : > { %v10937_v26 = vpop.f32.mrf.mxu1 }
 0x6a4   : > { %12587 = vst [vmem:[#allocation51_spill] sm:$0xff] %v10937_v26 }
 0x6b2   : > { %v10911_v9 = vpop.f32.mrf.mxu0 }
 0x6b3   : > { %v3979_v45 = vsel %vm1298_vm1, %v10911_v9, -inf }
 0x6b4   : > { %3980 = vmax.xlane.f32.xlu0 %v3979_v45  ;;  %v10915_v57 = vpop.f32.mrf.mxu0 }
 0x6b5   : > { %v3973_v55 = vsel %vm1298_vm1, %v10915_v57, -inf }
 0x6b6   : > { %v10919_v10 = vpop.f32.mrf.mxu0 }
 0x6b7   : > { %v3982_v45 = vsel %vm1298_vm1, %v10919_v10, -inf }
 0x6b8   : > { %3974 = vmax.xlane.f32.xlu0 %v3973_v55  ;;  %v10923_v34 = vpop.f32.mrf.mxu0  ;;  %v10939_v55 = vpop.f32.mrf.mxu1 }
 0x6b9   : > { %v3976_v6 = vsel %vm1298_vm1, %v10923_v34, -inf  ;;  %12588 = vst [vmem:[#allocation52_spill] sm:$0xff] %v10939_v55 }
 0x6ba   : > { %3977 = vmax.xlane.f32.xlu1 %v3976_v6  ;;  %v10941_v38 = vpop.f32.mrf.mxu1 }
 0x6bb   : > { %12589 = vst [vmem:[#allocation53_spill] sm:$0xff] %v10941_v38 }
 0x6bc   : > { %3983 = vmax.xlane.f32.xlu0 %v3982_v45  ;;  %v10943_v49 = vpop.f32.mrf.mxu1 }
 0x6bd   : > { %12590 = vst [vmem:[#allocation54_spill] sm:$0xff] %v10943_v49 }
 0x6be   : > { %v10945_v0 = vpop.f32.mrf.mxu1 }
 0x6bf   : > { %12591 = vst [vmem:[#allocation55_spill] sm:$0xff] %v10945_v0 }
 0x6c0   : > { %v10947_v6 = vpop.f32.mrf.mxu1 }
 0x6c1   : > { %12592 = vst [vmem:[#allocation56_spill] sm:$0xff] %v10947_v6 }
 0x6d9   : > { %v10949_v50 = vpop.f32.mrf.mxu0 }
 0x6da   : > { %v3991_v45 = vsel %vm1298_vm1, %v10949_v50, -inf }
 0x6db   : > { %v10953_v23 = vpop.f32.mrf.mxu1  ;;  %3992 = vmax.xlane.f32.xlu0 %v3991_v45  ;;  %v10955_v59 = vpop.f32.mrf.mxu0 }
 0x6dc   : > { %12593 = vst [vmem:[#allocation57_spill] sm:$0xff] %v10953_v23  ;;  %v3985_v38 = vsel %vm1298_vm1, %v10955_v59, -inf }
 0x6dd   : > { %v10957_v37 = vpop.f32.mrf.mxu1  ;;  %v10959_v39 = vpop.f32.mrf.mxu0 }
 0x6de   : > { %12594 = vst [vmem:[#allocation58_spill] sm:$0xff] %v10957_v37  ;;  %v3994_v49 = vsel %vm1298_vm1, %v10959_v39, -inf }
 0x6df   : > { %v10965_v0 = vpop.f32.mrf.mxu1  ;;  %3986 = vmax.xlane.f32.xlu0 %v3985_v38  ;;  %3995 = vmax.xlane.f32.xlu1 %v3994_v49  ;;  %v10967_v6 = vpop.f32.mrf.mxu0 }
 0x6e0   : > { %12595 = vst [vmem:[#allocation59_spill] sm:$0xff] %v10965_v0  ;;  %v3988_v45 = vsel %vm1298_vm1, %v10967_v6, -inf }
 0x6e1   : > { %v10969_v23 = vpop.f32.mrf.mxu1 }
 0x6e2   : > { %12596 = vst [vmem:[#allocation60_spill] sm:$0xff] %v10969_v23 }
 0x6e3   : > { %v10973_v37 = vpop.f32.mrf.mxu1  ;;  %3989 = vmax.xlane.f32.xlu1 %v3988_v45 }
 0x6e4   : > { %v4003_v3 = vsel %vm1298_vm1, %v10973_v37, -inf }
 0x6e5   : > { %v10977_v4 = vpop.f32.mrf.mxu1  ;;  %4004 = vmax.xlane.f32.xlu0 %v4003_v3  ;;  %v10979_v26 = vpop.f32.mrf.mxu0 }
 0x6e6   : > { %v3997_v49 = vsel %vm1298_vm1, %v10977_v4, -inf }
 0x6e7   : > { %v10981_v38 = vpop.f32.mrf.mxu1  ;;  %v10989_v45 = vpop.f32.mrf.mxu0 }
 0x6e8   : > { %v4006_v0 = vsel %vm1298_vm1, %v10981_v38, -inf  ;;  %v4021_v27 = vsel %vm1298_vm1, %v10989_v45, -inf }
 0x6e9   : > { %v10987_v23 = vpop.f32.mrf.mxu1  ;;  %3998 = vmax.xlane.f32.xlu0 %v3997_v49  ;;  %4007 = vmax.xlane.f32.xlu1 %v4006_v0  ;;  %v10999_v29 = vpop.f32.mrf.mxu0 }
 0x6ea   : > { %v4000_v3 = vsel %vm1298_vm1, %v10987_v23, -inf }
 0x6eb   : > { %v10991_v11 = vpop.f32.mrf.mxu1  ;;  %v11009_v18 = vpop.f32.mrf.mxu0 }
 0x6ec   : > { %v4015_v55 = vsel %vm1298_vm1, %v10991_v11, -inf  ;;  %v4024_v61 = vsel %vm1298_vm1, %v11009_v18, -inf }
 0x6ed   : > { %4001 = vmax.xlane.f32.xlu1 %v4000_v3  ;;  %4016 = vmax.xlane.f32.xlu0 %v4015_v55  ;;  %v10997_v53 = vpop.f32.mrf.mxu1  ;;  %v4027_v55 = vsel %vm1298_vm1, %v10979_v26, -inf }
 0x6ee   : > { %v4009_v0 = vsel %vm1298_vm1, %v10997_v53, -inf }
 0x6ef   : > { %v11001_v33 = vpop.f32.mrf.mxu1 }
 0x6f0   : > { %v4018_v49 = vsel %vm1298_vm1, %v11001_v33, -inf }
 0x6f1   : > { %4010 = vmax.xlane.f32.xlu0 %v4009_v0  ;;  %4019 = vmax.xlane.f32.xlu1 %v4018_v49  ;;  %v11007_v62 = vpop.f32.mrf.mxu1  ;;  %v11015_v12 = vpop.f32.mrf.mxu0  ;;  %v4030_v0 = vsel %vm1298_vm1, %v10999_v29, -inf }
 0x6f2   : > { %v4012_v3 = vsel %vm1298_vm1, %v11007_v62, -inf  ;;  %v4039_v44 = vsel %vm1298_vm1, %v11015_v12, -inf }
 0x6f3   : > { %v11021_v49 = vpop.f32.mrf.mxu0 }
 0x6f5   : > { %4028 = vmax.xlane.f32.xlu0 %v4027_v55  ;;  %4013 = vmax.xlane.f32.xlu1 %v4012_v3  ;;  %v11027_v16 = vpop.f32.mrf.mxu0  ;;  %v4033_v55 = vsel %vm1298_vm1, %v11021_v49, -inf }
 0x6f6   : > { %v4042_v3 = vsel %vm1298_vm1, %v11027_v16, -inf }
 0x6f7   : > { %v11033_v58 = vpop.f32.mrf.mxu0 }
 0x6f8   : > { %v4036_v36 = vsel %vm1298_vm1, %v11033_v58, -inf }
 0x6f9   : > { %4022 = vmax.xlane.f32.xlu0 %v4021_v27  ;;  %4031 = vmax.xlane.f32.xlu1 %v4030_v0 }
 0x6fd   : > { %4025 = vmax.xlane.f32.xlu1 %v4024_v61  ;;  %4040 = vmax.xlane.f32.xlu0 %v4039_v44 }
 0x701   : > { %4034 = vmax.xlane.f32.xlu0 %v4033_v55  ;;  %4043 = vmax.xlane.f32.xlu1 %v4042_v3 }
 0x703   : > { %v11035_v27 = vpop.f32.mrf.mxu1 }
 0x704   : > { %v4051_v0 = vsel %vm1298_vm1, %v11035_v27, -inf }
 0x705   : > { %v11041_v61 = vpop.f32.mrf.mxu1  ;;  %4052 = vmax.xlane.f32.xlu0 %v4051_v0  ;;  %4037 = vmax.xlane.f32.xlu1 %v4036_v36 }
 0x706   : > { %v4045_v13 = vsel %vm1298_vm1, %v11041_v61, -inf }
 0x707   : > { %v11043_v44 = vpop.f32.mrf.mxu1 }
 0x708   : > { %v4054_v55 = vsel %vm1298_vm1, %v11043_v44, -inf }
 0x709   : > { %v11049_v3 = vpop.f32.mrf.mxu1  ;;  %4046 = vmax.xlane.f32.xlu0 %v4045_v13  ;;  %4055 = vmax.xlane.f32.xlu1 %v4054_v55 }
 0x70a   : > { %v4048_v60 = vsel %vm1298_vm1, %v11049_v3, -inf }
 0x70b   : > { %v11051_v52 = vpop.f32.mrf.mxu1 }
 0x70c   : > { %v4063_v36 = vsel %vm1298_vm1, %v11051_v52, -inf }
 0x70d   : > { %v11057_v0 = vpop.f32.mrf.mxu1  ;;  %4049 = vmax.xlane.f32.xlu1 %v4048_v60  ;;  %4064 = vmax.xlane.f32.xlu0 %v4063_v36  ;;  %v11071_v60 = vpop.permute.xlu1 %4610 }
 0x70e   : > { %v4057_v40 = vsel %vm1298_vm1, %v11057_v0, -inf  ;;  %12597 = vst [vmem:[#allocation61_spill] sm:$0xff] %v11071_v60  ;;  %v11073_v36 = vpop.permute.xlu0 %4612 }
 0x70f   : > { %v11059_v42 = vpop.f32.mrf.mxu1  ;;  %12598 = vst [vmem:[#allocation62_spill] sm:$0xff] %v11073_v36 }
 0x710   : > { %v4066_v13 = vsel %vm1298_vm1, %v11059_v42, -inf }
 0x711   : > { %v11065_v55 = vpop.f32.mrf.mxu1  ;;  %4058 = vmax.xlane.f32.xlu0 %v4057_v40  ;;  %4067 = vmax.xlane.f32.xlu1 %v4066_v13  ;;  %v11075_v30 = vpop.permute.xlu1 %4608 }
 0x712   : > { %v4060_v63 = vsel %vm1298_vm1, %v11065_v55, -inf  ;;  %12599 = vst [vmem:[#allocation63_spill] sm:$0xff] %v11075_v30  ;;  %v11077_v41 = vpop.permute.xlu0 %4934 }
 0x713   : > { %12600 = vst [vmem:[#allocation64_spill] sm:$0xff] %v11077_v41 }
 0x715   : > { %4061 = vmax.xlane.f32.xlu1 %v4060_v63  ;;  %v11079_v56 = vpop.permute.xlu1 %5041 }
 0x716   : > { %12601 = vst [vmem:[#allocation65_spill] sm:$0xff] %v11079_v56  ;;  %v11081_v14 = vpop.permute.xlu0 %4932 }
 0x717   : > { %12602 = vst [vmem:[#allocation66_spill] sm:$0xff] %v11081_v14 }
 0x719   : > { %v11083_v40 = vpop.permute.xlu1 %4930 }
 0x71a   : > { %12603 = vst [vmem:[#allocation67_spill] sm:$0xff] %v11083_v40  ;;  %v11085_v13 = vpop.permute.xlu0 %4922 }
 0x71b   : > { %12604 = vst [vmem:[#allocation68_spill] sm:$0xff] %v11085_v13 }
 0x71d   : > { %v11087_v35 = vpop.permute.xlu1 %5039 }
 0x71e   : > { %12605 = vst [vmem:[#allocation69_spill] sm:$0xff] %v11087_v35  ;;  %v11089_v2 = vpop.permute.xlu0 %5037 }
 0x71f   : > { %12606 = vst [vmem:[#allocation70_spill] sm:$0xff] %v11089_v2 }
 0x721   : > { %v11091_v63 = vpop.permute.xlu1 %4924 }
 0x722   : > { %12607 = vst [vmem:[#allocation71_spill] sm:$0xff] %v11091_v63 }
 0x725   : > { %v11094_v30 = vpop.permute.xlu1 %5146 }
 0x726   : > { %12608 = vst [vmem:[#allocation72_spill] sm:$0xff] %v11094_v30 }
 0x73d   : > { %v3981_v60 = vpop.xlane.xlu0 %3980 }
 0x73e   : > { %v4071_v36 = vsub.f32 %v10911_v9, %v3981_v60 }
 0x740   : > { %v4105_v41 = vmul.f32 1.442695, %v4071_v36 }
 0x741   : > { %v3975_v31 = vpop.xlane.xlu0 %3974 }
 0x742   : > { %8824 = vpow2.f32 %v4105_v41  ;;  %v4069_v14 = vsub.f32 %v10915_v57, %v3975_v31 }
 0x743   : > { %v3978_v56 = vpop.xlane.xlu1 %3977 }
 0x744   : > { %v4101_v40 = vmul.f32 1.442695, %v4069_v14  ;;  %v4070_v13 = vsub.f32 %v10923_v34, %v3978_v56 }
 0x745   : > { %v3984_v28 = vpop.xlane.xlu0 %3983 }
 0x746   : > { %8826 = vpow2.f32 %v4101_v40  ;;  %v4072_v2 = vsub.f32 %v10919_v10, %v3984_v28  ;;  %v4103_v35 = vmul.f32 1.442695, %v4070_v13 }
 0x748   : > { %v4107_v63 = vmul.f32 1.442695, %v4072_v2 }
 0x74a   : > { %8828 = vpow2.f32 %v4107_v63 }
 0x74b   : > { %8830 = vpow2.f32 %v4103_v35 }
 0x74f   : > { %v11099_v9 = vpop.eup %8824 }
 0x750   : > { %v4171_v60 = vsel %vm1298_vm1, %v11099_v9, 0.0 }
 0x751   : > { %4172 = vadd.xlane.f32.xlu0 %v4171_v60 }
 0x753   : > { %v11103_v41 = vpop.eup %8826 }
 0x754   : > { %v4165_v31 = vsel %vm1298_vm1, %v11103_v41, 0.0 }
 0x755   : > { %4166 = vadd.xlane.f32.xlu0 %v4165_v31 }
 0x757   : > { %v11107_v56 = vpop.eup %8828 }
 0x758   : > { %v4174_v28 = vsel %vm1298_vm1, %v11107_v56, 0.0  ;;  %v11111_v2 = vpop.eup %8830 }
 0x759   : > { %4175 = vadd.xlane.f32.xlu1 %v4174_v28  ;;  %v4168_v35 = vsel %vm1298_vm1, %v11111_v2, 0.0 }
 0x75d   : > { %4169 = vadd.xlane.f32.xlu1 %v4168_v35 }
 0x764   : > { %v3993_v14 = vpop.xlane.xlu0 %3992 }
 0x765   : > { %v4075_v57 = vsub.f32 %v10949_v50, %v3993_v14 }
 0x767   : > { %v4113_v10 = vmul.f32 1.442695, %v4075_v57 }
 0x768   : > { %v3987_v34 = vpop.xlane.xlu0 %3986  ;;  %v3996_v36 = vpop.xlane.xlu1 %3995 }
 0x769   : > { %8832 = vpow2.f32 %v4113_v10  ;;  %v4073_v40 = vsub.f32 %v10955_v59, %v3987_v34  ;;  %v4076_v13 = vsub.f32 %v10959_v39, %v3996_v36 }
 0x76b   : > { %v4109_v63 = vmul.f32 1.442695, %v4073_v40  ;;  %v4115_v60 = vmul.f32 1.442695, %v4076_v13 }
 0x76c   : > { %v3990_v31 = vpop.xlane.xlu1 %3989 }
 0x76d   : > { %8834 = vpow2.f32 %v4109_v63  ;;  %v4074_v28 = vsub.f32 %v10967_v6, %v3990_v31 }
 0x76e   : > { %8836 = vpow2.f32 %v4115_v60  ;;  %v4005_v30 = vpop.xlane.xlu0 %4004 }
 0x76f   : > { %v4111_v35 = vmul.f32 1.442695, %v4074_v28  ;;  %v4079_v43 = vsub.f32 %v10973_v37, %v4005_v30 }
 0x771   : > { %8838 = vpow2.f32 %v4111_v35  ;;  %v4121_v50 = vmul.f32 1.442695, %v4079_v43 }
 0x772   : > { %v3999_v14 = vpop.xlane.xlu0 %3998  ;;  %v4008_v57 = vpop.xlane.xlu1 %4007 }
 0x773   : > { %v4077_v10 = vsub.f32 %v10977_v4, %v3999_v14  ;;  %8840 = vpow2.f32 %v4121_v50  ;;  %v4080_v39 = vsub.f32 %v10981_v38, %v4008_v57 }
 0x775   : > { %v4117_v59 = vmul.f32 1.442695, %v4077_v10  ;;  %v4123_v43 = vmul.f32 1.442695, %v4080_v39 }
 0x776   : > { %v11122_v34 = vpop.eup %8832  ;;  %v4017_v36 = vpop.xlane.xlu0 %4016 }
 0x777   : > { %v4002_v40 = vpop.xlane.xlu1 %4001  ;;  %v4083_v6 = vsub.f32 %v10991_v11, %v4017_v36  ;;  %v4183_v30 = vsel %vm1298_vm1, %v11122_v34, 0.0  ;;  %8842 = vpow2.f32 %v4117_v59 }
 0x778   : > { %v4078_v13 = vsub.f32 %v10987_v23, %v4002_v40  ;;  %4184 = vadd.xlane.f32.xlu0 %v4183_v30 }
 0x779   : > { %v4129_v37 = vmul.f32 1.442695, %v4083_v6 }
 0x77a   : > { %v11128_v4 = vpop.eup %8834  ;;  %v4119_v63 = vmul.f32 1.442695, %v4078_v13  ;;  %v4011_v38 = vpop.xlane.xlu0 %4010 }
 0x77b   : > { %v4020_v60 = vpop.xlane.xlu1 %4019  ;;  %v11130_v31 = vpop.eup %8836  ;;  %8844 = vpow2.f32 %v4129_v37  ;;  %v4081_v28 = vsub.f32 %v10997_v53, %v4011_v38  ;;  %v4177_v23 = vsel %vm1298_vm1, %v11128_v4, 0.0 }
 0x77c   : > { %v4084_v11 = vsub.f32 %v11001_v33, %v4020_v60  ;;  %8846 = vpow2.f32 %v4123_v43  ;;  %4178 = vadd.xlane.f32.xlu0 %v4177_v23  ;;  %v4186_v35 = vsel %vm1298_vm1, %v11130_v31, 0.0 }
 0x77d   : > { %4187 = vadd.xlane.f32.xlu1 %v4186_v35  ;;  %8848 = vpow2.f32 %v4119_v63  ;;  %v4125_v39 = vmul.f32 1.442695, %v4081_v28 }
 0x77e   : > { %v4131_v50 = vmul.f32 1.442695, %v4084_v11  ;;  %v11138_v14 = vpop.eup %8838  ;;  %v4029_v57 = vpop.xlane.xlu0 %4028 }
 0x77f   : > { %v4014_v10 = vpop.xlane.xlu1 %4013  ;;  %v4087_v53 = vsub.f32 %v10979_v26, %v4029_v57  ;;  %v4180_v59 = vsel %vm1298_vm1, %v11138_v14, 0.0 }
 0x780   : > { %v4082_v33 = vsub.f32 %v11007_v62, %v4014_v10  ;;  %8850 = vpow2.f32 %v4131_v50  ;;  %v11144_v36 = vpop.eup %8840 }
 0x781   : > { %4181 = vadd.xlane.f32.xlu1 %v4180_v59  ;;  %v4137_v6 = vmul.f32 1.442695, %v4087_v53  ;;  %8852 = vpow2.f32 %v4125_v39  ;;  %v4195_v62 = vsel %vm1298_vm1, %v11144_v36, 0.0 }
 0x782   : > { %v4127_v40 = vmul.f32 1.442695, %v4082_v33  ;;  %v4023_v13 = vpop.xlane.xlu0 %4022 }
 0x783   : > { %v4032_v30 = vpop.xlane.xlu1 %4031  ;;  %v4085_v43 = vsub.f32 %v10989_v45, %v4023_v13 }
 0x784   : > { %8854 = vpow2.f32 %v4127_v40  ;;  %v4088_v37 = vsub.f32 %v10999_v29, %v4032_v30  ;;  %v11150_v26 = vpop.eup %8842 }
 0x785   : > { %v4133_v63 = vmul.f32 1.442695, %v4085_v43  ;;  %4196 = vadd.xlane.f32.xlu1 %v4195_v62  ;;  %8856 = vpow2.f32 %v4137_v6  ;;  %v4189_v29 = vsel %vm1298_vm1, %v11150_v26, 0.0 }
 0x786   : > { %v4041_v38 = vpop.xlane.xlu0 %4040  ;;  %v4139_v23 = vmul.f32 1.442695, %v4088_v37 }
 0x787   : > { %v4026_v60 = vpop.xlane.xlu1 %4025  ;;  %v4091_v28 = vsub.f32 %v11015_v12, %v4041_v38  ;;  %8858 = vpow2.f32 %v4133_v63 }
 0x788   : > { %v11153_v11 = vpop.eup %8844  ;;  %v4086_v45 = vsub.f32 %v11009_v18, %v4026_v60 }
 0x789   : > { %v11158_v35 = vpop.eup %8846  ;;  %v4145_v50 = vmul.f32 1.442695, %v4091_v28  ;;  %4190 = vadd.xlane.f32.xlu1 %v4189_v29  ;;  %v4207_v57 = vsel %vm1298_vm1, %v11153_v11, 0.0 }
 0x78a   : > { %v4035_v10 = vpop.xlane.xlu0 %4034  ;;  %4208 = vadd.xlane.f32.xlu0 %v4207_v57  ;;  %v11162_v12 = vpop.eup %8848  ;;  %v4135_v33 = vmul.f32 1.442695, %v4086_v45  ;;  %v4198_v59 = vsel %vm1298_vm1, %v11158_v35, 0.0 }
 0x78b   : > { %v4044_v39 = vpop.xlane.xlu1 %4043  ;;  %8860 = vpow2.f32 %v4145_v50  ;;  %v4089_v53 = vsub.f32 %v11021_v49, %v4035_v10  ;;  %v4192_v63 = vsel %vm1298_vm1, %v11162_v12, 0.0 }
 0x78c   : > { %v4092_v18 = vsub.f32 %v11027_v16, %v4044_v39  ;;  %8862 = vpow2.f32 %v4139_v23 }
 0x78d   : > { %v11168_v40 = vpop.eup %8850  ;;  %v4141_v6 = vmul.f32 1.442695, %v4089_v53  ;;  %4199 = vadd.xlane.f32.xlu1 %v4198_v59 }
 0x78e   : > { %v4147_v13 = vmul.f32 1.442695, %v4092_v18  ;;  %v4053_v30 = vpop.xlane.xlu0 %4052  ;;  %v4210_v43 = vsel %vm1298_vm1, %v11168_v40, 0.0  ;;  %v11174_v62 = vpop.eup %8852 }
 0x78f   : > { %v4038_v37 = vpop.xlane.xlu1 %4037  ;;  %8864 = vpow2.f32 %v4141_v6  ;;  %v4095_v49 = vsub.f32 %v11035_v27, %v4053_v30  ;;  %4211 = vadd.xlane.f32.xlu0 %v4210_v43  ;;  %v4201_v50 = vsel %vm1298_vm1, %v11174_v62, 0.0 }
 0x790   : > { %v4090_v16 = vsub.f32 %v11033_v58, %v4038_v37  ;;  %8866 = vpow2.f32 %v4135_v33 }
 0x791   : > { %v11178_v38 = vpop.eup %8854  ;;  %4193 = vadd.xlane.f32.xlu1 %v4192_v63  ;;  %8868 = vpow2.f32 %v4147_v13  ;;  %v4153_v28 = vmul.f32 1.442695, %v4095_v49 }
 0x792   : > { %v4143_v60 = vmul.f32 1.442695, %v4090_v16  ;;  %v4047_v23 = vpop.xlane.xlu0 %4046  ;;  %v4204_v45 = vsel %vm1298_vm1, %v11178_v38, 0.0  ;;  %v11182_v29 = vpop.eup %8856 }
 0x793   : > { %v4056_v27 = vpop.xlane.xlu1 %4055  ;;  %v4093_v58 = vsub.f32 %v11041_v61, %v4047_v23  ;;  %4205 = vadd.xlane.f32.xlu0 %v4204_v45  ;;  %v4219_v53 = vsel %vm1298_vm1, %v11182_v29, 0.0 }
 0x794   : > { %8870 = vpow2.f32 %v4143_v60  ;;  %v11187_v57 = vpop.eup %8858  ;;  %v4096_v39 = vsub.f32 %v11043_v44, %v4056_v27 }
 0x795   : > { %4202 = vadd.xlane.f32.xlu1 %v4201_v50  ;;  %8872 = vpow2.f32 %v4153_v28  ;;  %v4149_v10 = vmul.f32 1.442695, %v4093_v58  ;;  %v4213_v59 = vsel %vm1298_vm1, %v11187_v57, 0.0 }
 0x796   : > { %v4155_v44 = vmul.f32 1.442695, %v4096_v39 }
 0x797   : > { %v4050_v18 = vpop.xlane.xlu1 %4049  ;;  %4220 = vadd.xlane.f32.xlu0 %v4219_v53  ;;  %8874 = vpow2.f32 %v4149_v10 }
 0x798   : > { %v4094_v33 = vsub.f32 %v11049_v3, %v4050_v18  ;;  %v11193_v61 = vpop.eup %8860 }
 0x799   : > { %v11197_v6 = vpop.eup %8862  ;;  %4214 = vadd.xlane.f32.xlu1 %v4213_v59  ;;  %v4231_v30 = vsel %vm1298_vm1, %v11193_v61, 0.0 }
 0x79a   : > { %v4151_v13 = vmul.f32 1.442695, %v4094_v33  ;;  %v4222_v3 = vsel %vm1298_vm1, %v11197_v6, 0.0  ;;  %v4065_v33 = vpop.xlane.xlu0 %4064 }
 0x79b   : > { %4232 = vadd.xlane.f32.xlu0 %v4231_v30  ;;  %v4068_v30 = vpop.xlane.xlu1 %4067 }
 0x79c   : > { %v11201_v43 = vpop.eup %8864  ;;  %8876 = vpow2.f32 %v4151_v13 }
 0x79d   : > { %v11205_v37 = vpop.eup %8866  ;;  %4223 = vadd.xlane.f32.xlu1 %v4222_v3  ;;  %v4225_v49 = vsel %vm1298_vm1, %v11201_v43, 0.0  ;;  %8878 = vpow2.f32 %v4155_v44  ;;  %v4099_v44 = vsub.f32 %v11051_v52, %v4065_v33 }
 0x79e   : > { %v11209_v16 = vpop.eup %8868  ;;  %v4216_v63 = vsel %vm1298_vm1, %v11205_v37, 0.0  ;;  %v4059_v59 = vpop.xlane.xlu0 %4058 }
 0x79f   : > { %4226 = vadd.xlane.f32.xlu0 %v4225_v49  ;;  %v4234_v28 = vsel %vm1298_vm1, %v11209_v16, 0.0  ;;  %v4097_v13 = vsub.f32 %v11057_v0, %v4059_v59  ;;  %v4161_v49 = vmul.f32 1.442695, %v4099_v44 }
 0x7a1   : > { %v11213_v60 = vpop.eup %8870  ;;  %4217 = vadd.xlane.f32.xlu1 %v4216_v63  ;;  %v4157_v3 = vmul.f32 1.442695, %v4097_v13  ;;  %v4100_v63 = vsub.f32 %v11059_v42, %v4068_v30 }
 0x7a2   : > { %v11217_v23 = vpop.eup %8872  ;;  %v4228_v45 = vsel %vm1298_vm1, %v11213_v60, 0.0 }
 0x7a3   : > { %4235 = vadd.xlane.f32.xlu0 %v4234_v28  ;;  %v4243_v27 = vsel %vm1298_vm1, %v11217_v23, 0.0  ;;  %8880 = vpow2.f32 %v4157_v3  ;;  %v4062_v28 = vpop.xlane.xlu1 %4061 }
 0x7a4   : > { %v11223_v58 = vpop.eup %8874  ;;  %8882 = vpow2.f32 %v4161_v49 }
 0x7a5   : > { %4229 = vadd.xlane.f32.xlu1 %v4228_v45  ;;  %v4237_v10 = vsel %vm1298_vm1, %v11223_v58, 0.0  ;;  %v4163_v45 = vmul.f32 1.442695, %v4100_v63 }
 0x7a7   : > { %4244 = vadd.xlane.f32.xlu0 %v4243_v27  ;;  %8884 = vpow2.f32 %v4163_v45 }
 0x7a9   : > { %v11225_v50 = vpop.eup %8876 }
 0x7aa   : > { %v4240_v39 = vsel %vm1298_vm1, %v11225_v50, 0.0  ;;  %v11231_v53 = vpop.eup %8878 }
 0x7ab   : > { %4238 = vadd.xlane.f32.xlu0 %v4237_v10  ;;  %4241 = vadd.xlane.f32.xlu1 %v4240_v39  ;;  %v4246_v18 = vsel %vm1298_vm1, %v11231_v53, 0.0 }
 0x7af   : > { %4247 = vadd.xlane.f32.xlu0 %v4246_v18 }
 0x7bc   : > { %4928 = vrot.lane.b32.xlu1 %v12470_v54, %s9091_s8  ;;  %v4098_v54 = vsub.f32 %v11065_v55, %v4062_v28 }
 0x7be   : > { %v4159_v27 = vmul.f32 1.442695, %v4098_v54 }
 0x7c0   : > { %8886 = vpow2.f32 %v4159_v27 }
 0x7c5   : > { %4926 = vrot.lane.b32.xlu0 %v12471_v20, %s9091_s8  ;;  %v11243_v20 = vpop.eup %8880 }
 0x7c6   : > { %v4249_v0 = vsel %vm1298_vm1, %v11243_v20, 0.0  ;;  %v11247_v52 = vpop.eup %8882 }
 0x7c7   : > { %v4255_v42 = vsel %vm1298_vm1, %v11247_v52, 0.0  ;;  %v11251_v55 = vpop.eup %8884 }
 0x7c8   : > { %v4258_v59 = vsel %vm1298_vm1, %v11251_v55, 0.0 }
 0x7cd   : > { %v11255_v13 = vpop.eup %8886 }
 0x7ce   : > { %v4252_v30 = vsel %vm1298_vm1, %v11255_v13, 0.0 }
 0x7da   : > { %v4173_v10 = vpop.xlane.xlu0 %4172 }
 0x7de   : > { %v4167_v39 = vpop.xlane.xlu0 %4166 }
 0x7e0   : > { %4250 = vadd.xlane.f32.xlu1 %v4249_v0 }
 0x7e2   : > { %v4176_v18 = vpop.xlane.xlu1 %4175 }
 0x7e3   : > { %8888 = vrcp.f32 %v4176_v18 }
 0x7e4   : > { %8890 = vrcp.f32 %v4167_v39  ;;  %4256 = vadd.xlane.f32.xlu0 %v4255_v42  ;;  %v12614_v39 = vld [vmem:[#allocation32_spill] sm:$0xff] }
 0x7e5   : > { %8892 = vrcp.f32 %v4173_v10 }
 0x7e6   : > { %v4170_v33 = vpop.xlane.xlu1 %4169 }
 0x7e7   : > { %8894 = vrcp.f32 %v4170_v33  ;;  %v12615_v33 = vld [vmem:[#allocation30_spill] sm:$0xff] }
 0x7e8   : > { %4259 = vadd.xlane.f32.xlu0 %v4258_v59 }
 0x7ec   : > { %4253 = vadd.xlane.f32.xlu0 %v4252_v30 }
 0x7f0   : > { %v8889_v44 = vpop.eup %8888 }
 0x7f1   : > { %v8891_v3 = vpop.eup %8890  ;;  %5144 = vrot.lane.b32.xlu1 %v9536_v32, %s9091_s8  ;;  %v4296_v28 = vmul.f32 %v8889_v44, %v11107_v56 }
 0x7f2   : > { %v8893_v49 = vpop.eup %8892  ;;  %v4293_v45 = vmul.f32 %v8891_v3, %v11103_v41 }
 0x7f3   : > { %v4295_v27 = vmul.f32 %v8893_v49, %v11099_v9 }
 0x7f4   : > { %v8895_v63 = vpop.eup %8894 }
 0x7f5   : > { %v4294_v54 = vmul.f32 %v8895_v63, %v11111_v2  ;;  %5029 = vrot.lane.b32.xlu1 %v9572_v21, %s9091_s8  ;;  %v4326_v0 = vpack.c.bf16 %v4296_v28, %v4295_v27  ;;  %v12619_v28 = vld [vmem:[#allocation29_spill] sm:$0xff] }
 0x7f7   : > { %v4325_v10 = vpack.c.bf16 %v4294_v54, %v4293_v45 }
 0x7f9   : > { %8172 = vmatprep.mubr.msk.bf16.mxu0 %vm1298_vm1, %v4325_v10  ;;  %5251 = vrot.lane.b32.xlu1 %v9538_v15, %s9091_s8  ;;  %v12620_v10 = vld [vmem:[#allocation41_spill] sm:$0xff] }
 0x7fa   : > { %8173 = vmatmul.mubr.msk.bf16.vlgmr.msra.gmra.mxu0 %vm1298_vm1, %v4326_v0 }
 0x7fb   : > { %8197 = vmatpush3.bf16.msra.mxu0 %v10864_v22 }
 0x7fc   : > { %8198 = vmatprep.subr.bf16.mxu0 %v10862_v48 }
 0x7fd   : > { %5033 = vrot.lane.b32.xlu1 %v12524_v46, %s9091_s8  ;;  %v12611_v46 = vld [vmem:[#allocation25_spill] sm:$0xff] }
 0x7ff   : > { %8199 = vmatpush3.bf16.msra.mxu0 %v10862_v48 }
 0x800   : > { %8200 = vmatprep.subr.bf16.mxu0 %v10867_v8 }
 0x801   : > { %5249 = vrot.lane.b32.xlu1 %v9585_v1, %s9091_s8  ;;  %v4185_v32 = vpop.xlane.xlu0 %4184  ;;  %v12609_v1 = vld [vmem:[#allocation23_spill] sm:$0xff] }
 0x802   : > { %5035 = vrot.lane.b32.xlu0 %v9513_v5, %s9091_s8 }
 0x803   : > { %8201 = vmatpush3.bf16.msra.mxu0 %v10867_v8 }
 0x804   : > { %8202 = vmatprep.subr.bf16.mxu0 %v10871_v24 }
 0x805   : > { %5134 = vrot.lane.b32.xlu1 %v9658_v51, %s9091_s8  ;;  %v4179_v15 = vpop.xlane.xlu0 %4178 }
 0x806   : > { %5027 = vrot.lane.b32.xlu0 %v12469_v25, %s9091_s8  ;;  %v4188_v21 = vpop.xlane.xlu1 %4187  ;;  %v12610_v25 = vld [vmem:[#allocation8_spill] sm:$0xff] }
 0x807   : > { %8203 = vmatpush3.bf16.msra.mxu0 %v10871_v24  ;;  %8896 = vrcp.f32 %v4188_v21  ;;  %v12613_v24 = vld [vmem:[#allocation17_spill] sm:$0xff] }
 0x808   : > { %8468 = vmatprep.subr.msk.bf16.mxu0 %vm941_vm0, %v11067_v19  ;;  %8898 = vrcp.f32 %v4179_v15 }
 0x809   : > { %5136 = vrot.lane.b32.xlu1 %v12528_v47, %s9091_s8  ;;  %8900 = vrcp.f32 %v4185_v32  ;;  %v12621_v32 = vld [vmem:[#allocation39_spill] sm:$0xff] }
 0x80a   : > { %5142 = vrot.lane.b32.xlu0 %v9540_v17, %s9091_s8  ;;  %v4182_v5 = vpop.xlane.xlu1 %4181  ;;  %v12612_v17 = vld [vmem:[#allocation16_spill] sm:$0xff] }
 0x80b   : > { %8902 = vrcp.f32 %v4182_v5 }
 0x80d   : > { %5245 = vrot.lane.b32.xlu1 %v9670_v7, %s9091_s8 }
 0x80e   : > { %5031 = vrot.lane.b32.xlu0 %v12609_v1, %s9091_s8  ;;  %v4197_v51 = vpop.xlane.xlu1 %4196 }
 0x811   : > { %5239 = vrot.lane.b32.xlu1 %v12610_v25, %s9091_s8  ;;  %v12622_v25 = vld [vmem:[#allocation22_spill] sm:$0xff] }
 0x812   : > { %5140 = vrot.lane.b32.xlu0 %v12611_v46, %s9091_s8  ;;  %v4191_v47 = vpop.xlane.xlu1 %4190 }
 0x813   : > { %v4209_v48 = vpop.xlane.xlu0 %4208 }
 0x814   : > { %v8897_v22 = vpop.eup %8896 }
 0x815   : > { %5243 = vrot.lane.b32.xlu1 %v12612_v17, %s9091_s8  ;;  %v8899_v8 = vpop.eup %8898  ;;  %v4300_v2 = vmul.f32 %v8897_v22, %v11130_v31  ;;  %v12616_v31 = vld [vmem:[#allocation36_spill] sm:$0xff] }
 0x816   : > { %5132 = vrot.lane.b32.xlu0 %v12613_v24, %s9091_s8  ;;  %v4200_v7 = vpop.xlane.xlu1 %4199  ;;  %v8901_v9 = vpop.eup %8900  ;;  %v4297_v18 = vmul.f32 %v8899_v8, %v11128_v4  ;;  %v12617_v4 = vld [vmem:[#allocation4_spill] sm:$0xff] }
 0x817   : > { %8904 = vrcp.f32 %v4200_v7  ;;  %v4299_v30 = vmul.f32 %v8901_v9, %v11122_v34  ;;  %v12618_v34 = vld [vmem:[#allocation38_spill] sm:$0xff]  ;;  %v12623_v17 = vld [vmem:[#allocation28_spill] sm:$0xff] }
 0x818   : > { %v8903_v41 = vpop.eup %8902  ;;  %v4212_v56 = vpop.xlane.xlu0 %4211  ;;  %8906 = vrcp.f32 %v4191_v47 }
 0x819   : > { %5714 = vrot.lane.b32.xlu1 %v12614_v39, %s9091_s8  ;;  %v4298_v42 = vmul.f32 %v8903_v41, %v11138_v14  ;;  %8908 = vrcp.f32 %v4197_v51  ;;  %v4328_v49 = vpack.c.bf16 %v4300_v2, %v4299_v30  ;;  %v12625_v39 = vld [vmem:[#allocation27_spill] sm:$0xff]  ;;  %v12628_v30 = vld [vmem:[#allocation61_spill] sm:$0xff] }
 0x81a   : > { %5247 = vrot.lane.b32.xlu0 %v12615_v33, %s9091_s8  ;;  %v4194_v59 = vpop.xlane.xlu1 %4193 }
 0x81b   : > { %8910 = vrcp.f32 %v4194_v59  ;;  %v4327_v44 = vpack.c.bf16 %v4298_v42, %v4297_v18  ;;  %v12626_v42 = vld [vmem:[#allocation62_spill] sm:$0xff] }
 0x81c   : > { %v4206_v3 = vpop.xlane.xlu0 %4205 }
 0x81d   : > { %8912 = vrcp.f32 %v4206_v3  ;;  %5805 = vrot.lane.b32.xlu1 %v12616_v31, %s9091_s8  ;;  %8176 = vmatprep.mubr.msk.bf16.mxu0 %vm1298_vm1, %v4327_v44 }
 0x81e   : > { %5138 = vrot.lane.b32.xlu0 %v12617_v4, %s9091_s8  ;;  %8177 = vmatmul.mubr.msk.bf16.gmra.mxu0 %vm1298_vm1, %v4328_v49  ;;  %v4203_v14 = vpop.xlane.xlu1 %4202 }
 0x81f   : > { %8914 = vrcp.f32 %v4203_v14 }
 0x820   : > { %8916 = vrcp.f32 %v4212_v56  ;;  %v4221_v63 = vpop.xlane.xlu0 %4220 }
 0x821   : > { %5803 = vrot.lane.b32.xlu1 %v12618_v34, %s9091_s8  ;;  %8918 = vrcp.f32 %v4209_v48  ;;  %v12630_v34 = vld [vmem:[#allocation63_spill] sm:$0xff] }
 0x822   : > { %5237 = vrot.lane.b32.xlu0 %v12619_v28, %s9091_s8  ;;  %v4215_v45 = vpop.xlane.xlu1 %4214 }
 0x824   : > { %v4233_v54 = vpop.xlane.xlu0 %4232  ;;  %v8905_v27 = vpop.eup %8904 }
 0x825   : > { %5799 = vrot.lane.b32.xlu1 %v12620_v10, %s9091_s8  ;;  %v8907_v0 = vpop.eup %8906  ;;  %v4304_v1 = vmul.f32 %v8905_v27, %v11158_v35 }
 0x826   : > { %5241 = vrot.lane.b32.xlu0 %v12621_v32, %s9091_s8  ;;  %v4224_v15 = vpop.xlane.xlu1 %4223  ;;  %v8909_v21 = vpop.eup %8908  ;;  %v4301_v46 = vmul.f32 %v8907_v0, %v11150_v26  ;;  %v12631_v0 = vld [vmem:[#allocation37_spill] sm:$0xff] }
 0x827   : > { %8920 = vrcp.f32 %v4224_v15  ;;  %v4303_v22 = vmul.f32 %v8909_v21, %v11144_v36  ;;  %v12624_v36 = vld [vmem:[#allocation34_spill] sm:$0xff] }
 0x828   : > { %v8911_v5 = vpop.eup %8910  ;;  %v4227_v51 = vpop.xlane.xlu0 %4226  ;;  %8922 = vrcp.f32 %v4215_v45 }
 0x829   : > { %5892 = vrot.lane.b32.xlu1 %v12622_v25, %s9091_s8  ;;  %v4302_v47 = vmul.f32 %v8911_v5, %v11162_v12  ;;  %8924 = vrcp.f32 %v4221_v63  ;;  %v4330_v7 = vpack.c.bf16 %v4304_v1, %v4303_v22  ;;  %v12633_v25 = vld [vmem:[#allocation64_spill] sm:$0xff] }
 0x82a   : > { %v8913_v48 = vpop.eup %8912  ;;  %5716 = vrot.lane.b32.xlu0 %v12623_v17, %s9091_s8  ;;  %v4218_v8 = vpop.xlane.xlu1 %4217 }
 0x82b   : > { %8926 = vrcp.f32 %v4218_v8  ;;  %v4329_v35 = vpack.c.bf16 %v4302_v47, %v4301_v46  ;;  %v4306_v12 = vmul.f32 %v8913_v48, %v11178_v38 }
 0x82c   : > { %v8915_v24 = vpop.eup %8914  ;;  %v4236_v9 = vpop.xlane.xlu0 %4235  ;;  %8928 = vrcp.f32 %v4227_v51 }
 0x82d   : > { %v8917_v41 = vpop.eup %8916  ;;  %8188 = vmatprep.mubr.msk.bf16.mxu1 %vm1298_vm1, %v4329_v35  ;;  %v4305_v26 = vmul.f32 %v8915_v24, %v11174_v62  ;;  %v12627_v62 = vld [vmem:[#allocation35_spill] sm:$0xff]  ;;  %v4957_v35 = vsel %vm941_vm0, %v12633_v25, 0 }
 0x82e   : > { %5712 = vrot.lane.b32.xlu0 %v12624_v36, %s9091_s8  ;;  %8189 = vmatmul.mubr.msk.bf16.vlgmr.msra.gmra.mxu1 %vm1298_vm1, %v4330_v7  ;;  %v4230_v56 = vpop.xlane.xlu1 %4229  ;;  %v8919_v2 = vpop.eup %8918  ;;  %v4308_v59 = vmul.f32 %v8917_v41, %v11168_v40  ;;  %v12629_v40 = vld [vmem:[#allocation40_spill] sm:$0xff]  ;;  %v12636_v41 = vld [vmem:[#allocation69_spill] sm:$0xff] }
 0x82f   : > { %8213 = vmatpush3.bf16.msra.mxu1 %v12625_v39  ;;  %8930 = vrcp.f32 %v4230_v56  ;;  %v4331_v18 = vpack.c.bf16 %v4306_v12, %v4305_v26  ;;  %v4307_v38 = vmul.f32 %v8919_v2, %v11153_v11  ;;  %v5062_v26 = vsel %vm941_vm0, %v12636_v41, 0  ;;  %v12638_v12 = vld [vmem:[#allocation70_spill] sm:$0xff]  ;;  %v12639_v56 = vld [vmem:[#allocation72_spill] sm:$0xff] }
 0x830   : > { %8932 = vrcp.f32 %v4236_v9  ;;  %8214 = vmatprep.subr.bf16.mxu1 %v12626_v42  ;;  %v4245_v33 = vpop.xlane.xlu0 %4244  ;;  %v5059_v2 = vsel %vm941_vm0, %v12638_v12, 0 }
 0x831   : > { %8192 = vmatprep.mubr.msk.bf16.mxu1 %vm1298_vm1, %v4331_v18  ;;  %8934 = vrcp.f32 %v4233_v54  ;;  %v4332_v49 = vpack.c.bf16 %v4308_v59, %v4307_v38  ;;  %v12640_v18 = vld [vmem:[#allocation71_spill] sm:$0xff] }
 0x832   : > { %5710 = vrot.lane.b32.xlu0 %v12627_v62, %s9091_s8 }
 0x833   : > { %8215 = vmatpush3.bf16.msra.mxu1 %v12626_v42  ;;  %v5170_v42 = vsel %vm941_vm0, %v12639_v56, 0 }
 0x834   : > { %8216 = vmatprep.subr.bf16.mxu1 %v12628_v30  ;;  %v4239_v44 = vpop.xlane.xlu0 %4238  ;;  %v4242_v3 = vpop.xlane.xlu1 %4241 }
 0x835   : > { %v8921_v31 = vpop.eup %8920  ;;  %8936 = vrcp.f32 %v4239_v44 }
 0x836   : > { %v8923_v4 = vpop.eup %8922  ;;  %8938 = vrcp.f32 %v4242_v3  ;;  %5801 = vrot.lane.b32.xlu0 %v12629_v40, %s9091_s8  ;;  %8193 = vmatmul.mubr.msk.bf16.gmra.mxu1 %vm1298_vm1, %v4332_v49  ;;  %v4312_v63 = vmul.f32 %v8921_v31, %v11197_v6  ;;  %v12632_v6 = vld [vmem:[#allocation65_spill] sm:$0xff] }
 0x837   : > { %v8925_v14 = vpop.eup %8924  ;;  %8940 = vrcp.f32 %v4245_v33  ;;  %8217 = vmatpush3.bf16.msra.mxu1 %v12628_v30  ;;  %v4309_v45 = vmul.f32 %v8923_v4, %v11187_v57  ;;  %v5065_v9 = vsel %vm941_vm0, %v12632_v6, 0 }
 0x838   : > { %v8927_v11 = vpop.eup %8926  ;;  %8218 = vmatprep.subr.bf16.mxu1 %v12630_v34  ;;  %v4248_v28 = vpop.xlane.xlu0 %4247  ;;  %v4311_v10 = vmul.f32 %v8925_v14, %v11182_v29  ;;  %v4960_v29 = vsel %vm941_vm0, %v11067_v19, 0 }
 0x839   : > { %8942 = vrcp.f32 %v4248_v28  ;;  %v4310_v54 = vmul.f32 %v8927_v11, %v11205_v37  ;;  %v8929_v27 = vpop.eup %8928  ;;  %v4929_v33 = vpop.permute.xlu1 %4928 }
 0x83a   : > { %5894 = vrot.lane.b32.xlu0 %v12631_v0, %s9091_s8  ;;  %v4334_v21 = vpack.c.bf16 %v4312_v63, %v4311_v10  ;;  %v4313_v57 = vmul.f32 %v8929_v27, %v11201_v43 }
 0x83b   : > { %8219 = vmatpush3.bf16.msra.mxu1 %v12630_v34  ;;  %v4333_v32 = vpack.c.bf16 %v4310_v54, %v4309_v45 }
 0x83c   : > { %v8931_v15 = vpop.eup %8930  ;;  %8472 = vmatprep.subr.msk.bf16.mxu1 %vm941_vm0, %v12632_v6  ;;  %v4927_v39 = vpop.permute.xlu0 %4926 }
 0x83d   : > { %v8933_v5 = vpop.eup %8932  ;;  %8204 = vmatprep.mubr.msk.bf16.mxu0 %vm1298_vm1, %v4333_v32  ;;  %v4314_v37 = vmul.f32 %v8931_v15, %v11213_v60 }
 0x83e   : > { %8205 = vmatmul.mubr.msk.bf16.vlgmr.msra.gmra.mxu0 %vm1298_vm1, %v4334_v21  ;;  %v8935_v1 = vpop.eup %8934  ;;  %v4316_v46 = vmul.f32 %v8933_v5, %v11209_v16 }
 0x83f   : > { %8229 = vmatpush3.bf16.xpose.msra.mxu0 %v4960_v29  ;;  %v4335_v51 = vpack.c.bf16 %v4314_v37, %v4313_v57  ;;  %v4315_v43 = vmul.f32 %v8935_v1, %v11193_v61  ;;  %v12634_v61 = vld [vmem:[#allocation68_spill] sm:$0xff] }
 0x840   : > { %8469 = vmatprep.subr.msk.bf16.mxu0 %vm941_vm0, %v12633_v25 }
 0x841   : > { %8208 = vmatprep.mubr.msk.bf16.mxu0 %vm1298_vm1, %v4335_v51  ;;  %v4336_v17 = vpack.c.bf16 %v4316_v46, %v4315_v43 }
 0x842   : > { %v8937_v47 = vpop.eup %8936 }
 0x843   : > { %v8939_v48 = vpop.eup %8938  ;;  %v4317_v60 = vmul.f32 %v8937_v47, %v11223_v58  ;;  %v12635_v58 = vld [vmem:[#allocation66_spill] sm:$0xff] }
 0x844   : > { %v8941_v22 = vpop.eup %8940  ;;  %v4318_v19 = vmul.f32 %v8939_v48, %v11225_v50 }
 0x845   : > { %v4319_v16 = vmul.f32 %v8941_v22, %v11217_v23  ;;  %v4954_v23 = vsel %vm941_vm0, %v12635_v58, 0 }
 0x846   : > { %v8943_v8 = vpop.eup %8942  ;;  %8209 = vmatmul.mubr.msk.bf16.gmra.mxu0 %vm1298_vm1, %v4336_v17  ;;  %v4337_v24 = vpack.c.bf16 %v4318_v19, %v4317_v60 }
 0x847   : > { %v4320_v7 = vmul.f32 %v8943_v8, %v11231_v53  ;;  %8231 = vmatpush3.bf16.xpose.msra.mxu0 %v4957_v35  ;;  %8236 = vmatprep.mubr.msk.bf16.mxu0 %vm941_vm0, %v12634_v61  ;;  %v12637_v53 = vld [vmem:[#allocation67_spill] sm:$0xff] }
 0x848   : > { %8220 = vmatprep.mubr.msk.bf16.mxu1 %vm1298_vm1, %v4337_v24  ;;  %8470 = vmatprep.subr.msk.bf16.mxu0 %vm941_vm0, %v12635_v58  ;;  %v4951_v36 = vsel %vm941_vm0, %v12637_v53, 0 }
 0x849   : > { %v4338_v50 = vpack.c.bf16 %v4320_v7, %v4319_v16 }
 0x84b   : > { %8221 = vmatmul.mubr.msk.bf16.vlgmr.msra.gmra.mxu1 %vm1298_vm1, %v4338_v50 }
 0x84c   : > { %8245 = vmatpush3.bf16.xpose.msra.mxu1 %v5065_v9 }
 0x84d   : > { %8473 = vmatprep.subr.msk.bf16.mxu1 %vm941_vm0, %v12636_v41 }
 0x84f   : > { %8233 = vmatpush3.bf16.xpose.msra.mxu0 %v4954_v23 }
 0x850   : > { %8471 = vmatprep.subr.msk.bf16.mxu0 %vm941_vm0, %v12637_v53 }
 0x854   : > { %8247 = vmatpush3.bf16.xpose.msra.mxu1 %v5062_v26 }
 0x855   : > { %8474 = vmatprep.subr.msk.bf16.mxu1 %vm941_vm0, %v12638_v12 }
 0x857   : > { %8235 = vmatpush3.bf16.xpose.msra.mxu0 %v4951_v36 }
 0x858   : > { %8476 = vmatprep.subr.msk.bf16.mxu0 %vm941_vm0, %v12639_v56 }
 0x85c   : > { %8249 = vmatpush3.bf16.xpose.msra.mxu1 %v5059_v2 }
 0x85e   : > { %8237 = vmatmul.mubr.msk.bf16.vlgmr.msra.gmra.mxu0 %vm941_vm0, %v12640_v18 }
 0x85f   : > { %8240 = vmatprep.mubr.msk.bf16.mxu0 %vm941_vm0, %v4927_v39  ;;  %8261 = vmatpush3.bf16.xpose.msra.mxu0 %v5170_v42 }
 0x866   : > { %8241 = vmatmul.mubr.msk.bf16.gmra.mxu0 %vm941_vm0, %v4929_v33 }
 0x869   : > { %v4251_v59 = vpop.xlane.xlu1 %4250 }
 0x86d   : > { %v4257_v62 = vpop.xlane.xlu0 %4256  ;;  %v5145_v38 = vpop.permute.xlu1 %5144 }
 0x86e   : > { %8477 = vmatprep.subr.msk.bf16.mxu0 %vm941_vm0, %v5145_v38  ;;  %v5167_v30 = vsel %vm941_vm0, %v5145_v38, 0 }
 0x86f   : > { %8263 = vmatpush3.bf16.xpose.msra.mxu0 %v5167_v30 }
 0x871   : > { %v4260_v44 = vpop.xlane.xlu0 %4259  ;;  %v5030_v3 = vpop.permute.xlu1 %5029 }
 0x872   : > { %8944 = vrcp.f32 %v4260_v44 }
 0x873   : > { %8946 = vrcp.f32 %v4251_v59 }
 0x874   : > { %8948 = vrcp.f32 %v4257_v62 }
 0x875   : > { %v4254_v49 = vpop.xlane.xlu0 %4253  ;;  %v5252_v31 = vpop.permute.xlu1 %5251 }
 0x876   : > { %8950 = vrcp.f32 %v4254_v49  ;;  %v5275_v51 = vsel %vm941_vm0, %v5252_v31, 0 }
 0x879   : > { %v5036_v4 = vpop.permute.xlu0 %5035  ;;  %v5034_v40 = vpop.permute.xlu1 %5033 }
 0x87a   : > { %8475 = vmatprep.subr.msk.bf16.mxu1 %vm941_vm0, %v5036_v4  ;;  %v5056_v14 = vsel %vm941_vm0, %v5036_v4, 0 }
 0x87b   : > { %8251 = vmatpush3.bf16.xpose.msra.mxu1 %v5056_v14 }
 0x87c   : > { %8480 = vmatprep.subr.msk.bf16.mxu1 %vm941_vm0, %v5252_v31 }
 0x87d   : > { %v5028_v11 = vpop.permute.xlu0 %5027  ;;  %v5250_v63 = vpop.permute.xlu1 %5249 }
 0x87e   : > { %v5272_v43 = vsel %vm941_vm0, %v5250_v63, 0 }
 0x87f   : > { %v8945_v34 = vpop.eup %8944 }
 0x880   : > { %v8947_v28 = vpop.eup %8946  ;;  %v4324_v0 = vmul.f32 %v8945_v34, %v11251_v55 }
 0x881   : > { %v5143_v45 = vpop.permute.xlu0 %5142  ;;  %v8949_v54 = vpop.eup %8948  ;;  %v4321_v32 = vmul.f32 %v8947_v28, %v11243_v20 }
 0x882   : > { %8478 = vmatprep.subr.msk.bf16.mxu0 %vm941_vm0, %v5143_v45  ;;  %v5164_v27 = vsel %vm941_vm0, %v5143_v45, 0  ;;  %v5135_v21 = vpop.permute.xlu1 %5134  ;;  %v4323_v5 = vmul.f32 %v8949_v54, %v11247_v52 }
 0x883   : > { %v8951_v10 = vpop.eup %8950  ;;  %8265 = vmatpush3.bf16.xpose.msra.mxu0 %v5164_v27 }
 0x884   : > { %v4322_v15 = vmul.f32 %v8951_v10, %v11255_v13  ;;  %v4340_v37 = vpack.c.bf16 %v4324_v0, %v4323_v5 }
 0x885   : > { %v5032_v6 = vpop.permute.xlu0 %5031 }
 0x886   : > { %v4339_v57 = vpack.c.bf16 %v4322_v15, %v4321_v32  ;;  %v5137_v20 = vpop.permute.xlu1 %5136 }
 0x888   : > { %8224 = vmatprep.mubr.msk.bf16.mxu1 %vm1298_vm1, %v4339_v57 }
 0x889   : > { %v5141_v29 = vpop.permute.xlu0 %5140  ;;  %8225 = vmatmul.mubr.msk.bf16.gmra.mxu1 %vm1298_vm1, %v4340_v37 }
 0x88a   : > { %8252 = vmatprep.mubr.msk.bf16.mxu1 %vm941_vm0, %v5028_v11  ;;  %8479 = vmatprep.subr.msk.bf16.mxu0 %vm941_vm0, %v5141_v29  ;;  %v5161_v55 = vsel %vm941_vm0, %v5141_v29, 0  ;;  %v5246_v1 = vpop.permute.xlu1 %5245 }
 0x88b   : > { %8267 = vmatpush3.bf16.xpose.msra.mxu0 %v5161_v55  ;;  %v5266_v24 = vsel %vm941_vm0, %v5246_v1, 0 }
 0x88d   : > { %v5133_v13 = vpop.permute.xlu0 %5132 }
 0x88e   : > { %8268 = vmatprep.mubr.msk.bf16.mxu0 %vm941_vm0, %v5133_v13  ;;  %v5240_v46 = vpop.permute.xlu1 %5239 }
 0x891   : > { %v5248_v52 = vpop.permute.xlu0 %5247  ;;  %8253 = vmatmul.mubr.msk.bf16.vlgmr.msra.gmra.mxu1 %vm941_vm0, %v5030_v3 }
 0x892   : > { %8277 = vmatpush3.bf16.xpose.msra.mxu1 %v5275_v51  ;;  %8256 = vmatprep.mubr.msk.bf16.mxu1 %vm941_vm0, %v5032_v6  ;;  %v5244_v48 = vpop.permute.xlu1 %5243  ;;  %v5269_v17 = vsel %vm941_vm0, %v5248_v52, 0 }
 0x893   : > { %8269 = vmatmul.mubr.msk.bf16.vlgmr.msra.gmra.mxu0 %vm941_vm0, %v5135_v21  ;;  %8481 = vmatprep.subr.msk.bf16.mxu1 %vm941_vm0, %v5250_v63 }
 0x894   : > { %8272 = vmatprep.mubr.msk.bf16.mxu0 %vm941_vm0, %v5137_v20 }
 0x895   : > { %v5139_v25 = vpop.permute.xlu0 %5138 }
 0x896   : > { %v5715_v19 = vpop.permute.xlu1 %5714 }
 0x899   : > { %v5238_v47 = vpop.permute.xlu0 %5237  ;;  %8257 = vmatmul.mubr.msk.bf16.gmra.mxu1 %vm941_vm0, %v5034_v40 }
 0x89a   : > { %8279 = vmatpush3.bf16.xpose.msra.mxu1 %v5272_v43  ;;  %8284 = vmatprep.mubr.msk.bf16.mxu1 %vm941_vm0, %v5238_v47  ;;  %v5806_v16 = vpop.permute.xlu1 %5805 }
 0x89b   : > { %8273 = vmatmul.mubr.msk.bf16.gmra.mxu0 %vm941_vm0, %v5139_v25  ;;  %8482 = vmatprep.subr.msk.bf16.mxu1 %vm941_vm0, %v5248_v52 }
 0x89d   : > { %v5242_v60 = vpop.permute.xlu0 %5241 }
 0x89e   : > { %v5804_v58 = vpop.permute.xlu1 %5803 }
 0x8a1   : > { %v5717_v22 = vpop.permute.xlu0 %5716 }
 0x8a2   : > { %8281 = vmatpush3.bf16.xpose.msra.mxu1 %v5269_v17  ;;  %8292 = vmatprep.subr.bf16.mxu0 %v5717_v22  ;;  %v5800_v50 = vpop.permute.xlu1 %5799 }
 0x8a3   : > { %8483 = vmatprep.subr.msk.bf16.mxu1 %vm941_vm0, %v5246_v1  ;;  %8293 = vmatpush3.bf16.msra.mxu0 %v5717_v22 }
 0x8a4   : > { %8294 = vmatprep.subr.bf16.mxu0 %v5715_v19 }
 0x8a5   : > { %v5713_v8 = vpop.permute.xlu0 %5712 }
 0x8a7   : > { %8295 = vmatpush3.bf16.msra.mxu0 %v5715_v19 }
 0x8a8   : > { %8296 = vmatprep.subr.bf16.mxu0 %v5713_v8 }
 0x8a9   : > { %v5711_v35 = vpop.permute.xlu0 %5710 }
 0x8aa   : > { %8283 = vmatpush3.bf16.xpose.msra.mxu1 %v5266_v24 }
 0x8ab   : > { %8308 = vmatprep.subr.bf16.mxu1 %v5806_v16  ;;  %8297 = vmatpush3.bf16.msra.mxu0 %v5713_v8 }
 0x8ac   : > { %8298 = vmatprep.subr.bf16.mxu0 %v5711_v35 }
 0x8ad   : > { %v5802_v7 = vpop.permute.xlu0 %5801 }
 0x8af   : > { %8299 = vmatpush3.bf16.msra.mxu0 %v5711_v35 }
 0x8b1   : > { %8285 = vmatmul.mubr.msk.bf16.vlgmr.msra.gmra.mxu1 %vm941_vm0, %v5240_v46  ;;  %v11445_v61 = vpop.permute.xlu0 %5894 }
 0x8b2   : > { %8288 = vmatprep.mubr.msk.bf16.mxu1 %vm941_vm0, %v5242_v60  ;;  %8309 = vmatpush3.bf16.msra.mxu1 %v5806_v16 }
 0x8b3   : > { %8310 = vmatprep.subr.bf16.mxu1 %v5804_v58  ;;  %8324 = vmatprep.subr.bf16.mxu0 %v11445_v61 }
 0x8b6   : > { %8311 = vmatpush3.bf16.msra.mxu1 %v5804_v58 }
 0x8b7   : > { %8312 = vmatprep.subr.bf16.mxu1 %v5802_v7 }
 0x8b9   : > { %8289 = vmatmul.mubr.msk.bf16.gmra.mxu1 %vm941_vm0, %v5244_v48 }
 0x8ba   : > { %8313 = vmatpush3.bf16.msra.mxu1 %v5802_v7  ;;  %v11450_v9 = vpop.f32.mrf.mxu0 }
 0x8bb   : > { %8314 = vmatprep.subr.bf16.mxu1 %v5800_v50 }
 0x8bc   : > { %v11452_v41 = vpop.f32.mrf.mxu0 }
 0x8be   : > { %8315 = vmatpush3.bf16.msra.mxu1 %v5800_v50  ;;  %v11454_v23 = vpop.f32.mrf.mxu0 }
 0x8c0   : > { %v11456_v53 = vpop.f32.mrf.mxu0 }
 0x8de   : > { %v11458_v26 = vpop.f32.mrf.mxu0 }
 0x8e0   : > { %v11460_v12 = vpop.f32.mrf.mxu0 }
 0x8e2   : > { %v11462_v36 = vpop.f32.mrf.mxu0 }
 0x8e4   : > { %v11464_v56 = vpop.f32.mrf.mxu0 }
 0x8ee   : > { %v11482_v30 = vpop.f32.mrf.mxu1 }
 0x8ef   : > { %12646 = vst [vmem:[#allocation32_spill] sm:$0xff] %v11482_v30 }
 0x8f0   : > { %v11490_v31 = vpop.f32.mrf.mxu1 }
 0x8f2   : > { %v11498_v11 = vpop.f32.mrf.mxu1 }
 0x8f4   : > { %v11508_v54 = vpop.f32.mrf.mxu1 }
 0x8f6   : > { %v11518_v15 = vpop.f32.mrf.mxu1 }
 0x8f7   : > { %12647 = vst [vmem:[#allocation30_spill] sm:$0xff] %v11518_v15 }
 0x8f8   : > { %v11524_v5 = vpop.f32.mrf.mxu1 }
 0x8f9   : > { %12648 = vst [vmem:[#allocation36_spill] sm:$0xff] %v11524_v5 }
 0x8fa   : > { %v11526_v57 = vpop.f32.mrf.mxu1 }
 0x8fc   : > { %v11528_v37 = vpop.f32.mrf.mxu1 }
 0x8fe   : > { %v11466_v2 = vpop.f32.mrf.mxu0 }
 0x8ff   : > { %12641 = vst [vmem:[#allocation23_spill] sm:$0xff] %v11466_v2 }
 0x900   : > { %v11468_v39 = vpop.f32.mrf.mxu0 }
 0x901   : > { %12642 = vst [vmem:[#allocation8_spill] sm:$0xff] %v11468_v39 }
 0x902   : > { %v11470_v18 = vpop.f32.mrf.mxu0 }
 0x904   : > { %v11472_v42 = vpop.f32.mrf.mxu0 }
 0x906   : > { %v11474_v33 = vpop.f32.mrf.mxu0 }
 0x907   : > { %12643 = vst [vmem:[#allocation25_spill] sm:$0xff] %v11474_v33 }
 0x908   : > { %v11476_v59 = vpop.f32.mrf.mxu0 }
 0x909   : > { %12644 = vst [vmem:[#allocation16_spill] sm:$0xff] %v11476_v59  ;;  %v11639_v59 = vpop.permute.xlu1 %5892 }
 0x90a   : > { %v11478_v62 = vpop.f32.mrf.mxu0 }
 0x90b   : > { %12645 = vst [vmem:[#allocation17_spill] sm:$0xff] %v11478_v62  ;;  %v11530_v29 = vpop.f32.mrf.mxu1 }
 0x90c   : > { %v11480_v38 = vpop.f32.mrf.mxu0  ;;  %12649 = vst [vmem:[#allocation4_spill] sm:$0xff] %v11530_v29 }
 0x90d   : > { %v11532_v55 = vpop.f32.mrf.mxu1 }
 0x90e   : > { %12650 = vst [vmem:[#allocation38_spill] sm:$0xff] %v11532_v55  ;;  %v12657_v55 = vld [vmem:[#allocation21_spill] sm:$0xff] }
 0x90f   : > { %v11534_v20 = vpop.f32.mrf.mxu1 }
 0x910   : > { %12651 = vst [vmem:[#allocation29_spill] sm:$0xff] %v11534_v20 }
 0x911   : > { %v11536_v13 = vpop.f32.mrf.mxu1 }
 0x912   : > { %12652 = vst [vmem:[#allocation41_spill] sm:$0xff] %v11536_v13 }
 0x91e   : > { %v11484_v44 = vpop.f32.mrf.mxu0 }
 0x91f   : > { %v5348_v3 = vsel %vm1298_vm1, %v11484_v44, -inf }
 0x920   : > { %5349 = vmax.xlane.f32.xlu0 %v5348_v3  ;;  %v11488_v49 = vpop.f32.mrf.mxu0 }
 0x921   : > { %v5342_v40 = vsel %vm1298_vm1, %v11488_v49, -inf }
 0x922   : > { %v11492_v4 = vpop.f32.mrf.mxu0 }
 0x923   : > { %v5351_v28 = vsel %vm1298_vm1, %v11492_v4, -inf }
 0x924   : > { %5343 = vmax.xlane.f32.xlu0 %v5342_v40  ;;  %v11496_v14 = vpop.f32.mrf.mxu0 }
 0x925   : > { %v5345_v63 = vsel %vm1298_vm1, %v11496_v14, -inf }
 0x926   : > { %5346 = vmax.xlane.f32.xlu1 %v5345_v63  ;;  %v11502_v34 = vpop.f32.mrf.mxu0 }
 0x927   : > { %v5360_v10 = vsel %vm1298_vm1, %v11502_v34, -inf }
 0x928   : > { %5352 = vmax.xlane.f32.xlu0 %v5351_v28  ;;  %v11506_v45 = vpop.f32.mrf.mxu0 }
 0x929   : > { %v5354_v21 = vsel %vm1298_vm1, %v11506_v45, -inf }
 0x92a   : > { %v11510_v27 = vpop.f32.mrf.mxu0 }
 0x92b   : > { %v5363_v0 = vsel %vm1298_vm1, %v11510_v27, -inf }
 0x92c   : > { %5361 = vmax.xlane.f32.xlu0 %v5360_v10  ;;  %5364 = vmax.xlane.f32.xlu1 %v5363_v0  ;;  %v11516_v32 = vpop.f32.mrf.mxu0 }
 0x92d   : > { %v5357_v6 = vsel %vm1298_vm1, %v11516_v32, -inf }
 0x930   : > { %5355 = vmax.xlane.f32.xlu0 %v5354_v21  ;;  %5358 = vmax.xlane.f32.xlu1 %v5357_v6 }
 0x949   : > { %v11538_v1 = vpop.f32.mrf.mxu1 }
 0x94a   : > { %12653 = vst [vmem:[#allocation39_spill] sm:$0xff] %v11538_v1 }
 0x94b   : > { %v11540_v52 = vpop.f32.mrf.mxu1 }
 0x94c   : > { %12654 = vst [vmem:[#allocation22_spill] sm:$0xff] %v11540_v52 }
 0x94d   : > { %v11542_v51 = vpop.f32.mrf.mxu1 }
 0x94e   : > { %12655 = vst [vmem:[#allocation28_spill] sm:$0xff] %v11542_v51 }
 0x94f   : > { %v11544_v25 = vpop.f32.mrf.mxu1 }
 0x950   : > { %12656 = vst [vmem:[#allocation34_spill] sm:$0xff] %v11544_v25 }
 0x951   : > { %v11546_v46 = vpop.f32.mrf.mxu1 }
 0x952   : > { %v5372_v47 = vsel %vm1298_vm1, %v11546_v46, -inf }
 0x953   : > { %v11550_v43 = vpop.f32.mrf.mxu0  ;;  %5373 = vmax.xlane.f32.xlu0 %v5372_v47  ;;  %v11552_v48 = vpop.f32.mrf.mxu1 }
 0x954   : > { %v5366_v22 = vsel %vm1298_vm1, %v11552_v48, -inf  ;;  %v5396_v0 = vsel %vm1298_vm1, %v11550_v43, -inf }
 0x955   : > { %v11554_v60 = vpop.f32.mrf.mxu1  ;;  %v11560_v19 = vpop.f32.mrf.mxu0 }
 0x956   : > { %v5375_v17 = vsel %vm1298_vm1, %v11554_v60, -inf  ;;  %v5390_v6 = vsel %vm1298_vm1, %v11560_v19, -inf }
 0x957   : > { %5367 = vmax.xlane.f32.xlu0 %v5366_v22  ;;  %5376 = vmax.xlane.f32.xlu1 %v5375_v17  ;;  %v11562_v8 = vpop.f32.mrf.mxu1  ;;  %v11570_v7 = vpop.f32.mrf.mxu0 }
 0x958   : > { %v5369_v24 = vsel %vm1298_vm1, %v11562_v8, -inf  ;;  %v5399_v47 = vsel %vm1298_vm1, %v11570_v7, -inf }
 0x959   : > { %v11564_v35 = vpop.f32.mrf.mxu1  ;;  %v11580_v63 = vpop.f32.mrf.mxu0 }
 0x95a   : > { %v5384_v16 = vsel %vm1298_vm1, %v11564_v35, -inf  ;;  %v5393_v17 = vsel %vm1298_vm1, %v11580_v63, -inf }
 0x95b   : > { %5370 = vmax.xlane.f32.xlu1 %v5369_v24  ;;  %5385 = vmax.xlane.f32.xlu0 %v5384_v16  ;;  %v11572_v58 = vpop.f32.mrf.mxu1  ;;  %v11588_v21 = vpop.f32.mrf.mxu0 }
 0x95c   : > { %v5378_v3 = vsel %vm1298_vm1, %v11572_v58, -inf  ;;  %v5408_v24 = vsel %vm1298_vm1, %v11588_v21, -inf }
 0x95d   : > { %v11574_v50 = vpop.f32.mrf.mxu1  ;;  %v11594_v22 = vpop.f32.mrf.mxu0 }
 0x95e   : > { %v5387_v40 = vsel %vm1298_vm1, %v11574_v50, -inf }
 0x95f   : > { %5379 = vmax.xlane.f32.xlu0 %v5378_v3  ;;  %5388 = vmax.xlane.f32.xlu1 %v5387_v40  ;;  %v11582_v28 = vpop.f32.mrf.mxu1  ;;  %v11600_v16 = vpop.f32.mrf.mxu0  ;;  %v5402_v3 = vsel %vm1298_vm1, %v11594_v22, -inf }
 0x960   : > { %v5381_v10 = vsel %vm1298_vm1, %v11582_v28, -inf  ;;  %v5411_v40 = vsel %vm1298_vm1, %v11600_v16, -inf }
 0x963   : > { %5382 = vmax.xlane.f32.xlu1 %v5381_v10  ;;  %5397 = vmax.xlane.f32.xlu0 %v5396_v0  ;;  %v11606_v10 = vpop.f32.mrf.mxu0 }
 0x967   : > { %5391 = vmax.xlane.f32.xlu0 %v5390_v6  ;;  %5400 = vmax.xlane.f32.xlu1 %v5399_v47  ;;  %v5405_v6 = vsel %vm1298_vm1, %v11606_v10, -inf }
 0x96b   : > { %5394 = vmax.xlane.f32.xlu1 %v5393_v17  ;;  %5409 = vmax.xlane.f32.xlu0 %v5408_v24 }
 0x96f   : > { %5403 = vmax.xlane.f32.xlu0 %v5402_v3  ;;  %5412 = vmax.xlane.f32.xlu1 %v5411_v40 }
 0x971   : > { %v11608_v0 = vpop.f32.mrf.mxu1 }
 0x972   : > { %v5420_v47 = vsel %vm1298_vm1, %v11608_v0, -inf }
 0x973   : > { %v11614_v17 = vpop.f32.mrf.mxu1  ;;  %5406 = vmax.xlane.f32.xlu1 %v5405_v6  ;;  %5421 = vmax.xlane.f32.xlu0 %v5420_v47 }
 0x974   : > { %v5414_v51 = vsel %vm1298_vm1, %v11614_v17, -inf }
 0x975   : > { %v11616_v24 = vpop.f32.mrf.mxu1 }
 0x976   : > { %v5423_v3 = vsel %vm1298_vm1, %v11616_v24, -inf }
 0x977   : > { %v11622_v40 = vpop.f32.mrf.mxu1  ;;  %5415 = vmax.xlane.f32.xlu0 %v5414_v51  ;;  %5424 = vmax.xlane.f32.xlu1 %v5423_v3  ;;  %v12658_v51 = vld [vmem:[#allocation20_spill] sm:$0xff] }
 0x978   : > { %v5417_v52 = vsel %vm1298_vm1, %v11622_v40, -inf }
 0x979   : > { %v11624_v1 = vpop.f32.mrf.mxu1 }
 0x97a   : > { %v5432_v6 = vsel %vm1298_vm1, %v11624_v1, -inf }
 0x97b   : > { %v11630_v47 = vpop.f32.mrf.mxu1  ;;  %5418 = vmax.xlane.f32.xlu1 %v5417_v52  ;;  %5433 = vmax.xlane.f32.xlu0 %v5432_v6 }
 0x97c   : > { %v5426_v29 = vsel %vm1298_vm1, %v11630_v47, -inf }
 0x97d   : > { %v11641_v2 = vpop.f32.mrf.mxu1 }
 0x97f   : > { %5427 = vmax.xlane.f32.xlu0 %v5426_v29  ;;  %v5435_v29 = vsel %vm1298_vm1, %v11641_v2, -inf }
 0x98c   : > { %5888 = vrot.lane.b32.xlu1 %v12657_v55, %s9091_s8  ;;  %v11646_v55 = vpop.f32.mrf.mxu1 }
 0x995   : > { %5890 = vrot.lane.b32.xlu0 %v12658_v51, %s9091_s8 }
 0x9a9   : > { %v5350_v3 = vpop.xlane.xlu0 %5349 }
 0x9aa   : > { %v5440_v33 = vsub.f32 %v11484_v44, %v5350_v3 }
 0x9ac   : > { %v5474_v39 = vmul.f32 1.442695, %v5440_v33  ;;  %v5429_v33 = vsel %vm1298_vm1, %v11646_v55, -inf }
 0x9ad   : > { %v5344_v52 = vpop.xlane.xlu0 %5343 }
 0x9ae   : > { %8952 = vpow2.f32 %v5474_v39  ;;  %v5438_v6 = vsub.f32 %v11488_v49, %v5344_v52 }
 0x9af   : > { %v5347_v25 = vpop.xlane.xlu1 %5346 }
 0x9b0   : > { %v5470_v15 = vmul.f32 1.442695, %v5438_v6  ;;  %v5439_v51 = vsub.f32 %v11496_v14, %v5347_v25  ;;  %5436 = vmax.xlane.f32.xlu1 %v5435_v29 }
 0x9b1   : > { %v5353_v44 = vpop.xlane.xlu0 %5352 }
 0x9b2   : > { %8954 = vpow2.f32 %v5470_v15  ;;  %v5441_v3 = vsub.f32 %v11492_v4, %v5353_v44  ;;  %v5472_v39 = vmul.f32 1.442695, %v5439_v51 }
 0x9b4   : > { %v5476_v20 = vmul.f32 1.442695, %v5441_v3  ;;  %5430 = vmax.xlane.f32.xlu1 %v5429_v33 }
 0x9b5   : > { %v5362_v49 = vpop.xlane.xlu0 %5361  ;;  %v5365_v52 = vpop.xlane.xlu1 %5364 }
 0x9b6   : > { %8956 = vpow2.f32 %v5476_v20  ;;  %v5444_v5 = vsub.f32 %v11502_v34, %v5362_v49  ;;  %v5445_v6 = vsub.f32 %v11510_v27, %v5365_v52 }
 0x9b7   : > { %8958 = vpow2.f32 %v5472_v39 }
 0x9b8   : > { %v5482_v14 = vmul.f32 1.442695, %v5444_v5  ;;  %v5484_v25 = vmul.f32 1.442695, %v5445_v6 }
 0x9b9   : > { %v5356_v29 = vpop.xlane.xlu0 %5355  ;;  %v5359_v15 = vpop.xlane.xlu1 %5358 }
 0x9ba   : > { %8960 = vpow2.f32 %v5482_v14  ;;  %v5442_v4 = vsub.f32 %v11506_v45, %v5356_v29  ;;  %v5443_v44 = vsub.f32 %v11516_v32, %v5359_v15 }
 0x9bb   : > { %v11656_v51 = vpop.eup %8952  ;;  %8962 = vpow2.f32 %v5484_v25 }
 0x9bc   : > { %v5478_v3 = vmul.f32 1.442695, %v5442_v4  ;;  %v5480_v33 = vmul.f32 1.442695, %v5443_v44  ;;  %v5540_v34 = vsel %vm1298_vm1, %v11656_v51, 0.0 }
 0x9bd   : > { %5541 = vadd.xlane.f32.xlu0 %v5540_v34 }
 0x9be   : > { %8964 = vpow2.f32 %v5478_v3 }
 0x9bf   : > { %v11660_v27 = vpop.eup %8954  ;;  %8966 = vpow2.f32 %v5480_v33 }
 0x9c0   : > { %v5534_v5 = vsel %vm1298_vm1, %v11660_v27, 0.0 }
 0x9c1   : > { %5535 = vadd.xlane.f32.xlu0 %v5534_v5 }
 0x9c3   : > { %v11664_v45 = vpop.eup %8956 }
 0x9c4   : > { %v5543_v32 = vsel %vm1298_vm1, %v11664_v45, 0.0  ;;  %v11668_v20 = vpop.eup %8958 }
 0x9c5   : > { %5544 = vadd.xlane.f32.xlu1 %v5543_v32  ;;  %v5537_v52 = vsel %vm1298_vm1, %v11668_v20, 0.0 }
 0x9c7   : > { %v11670_v39 = vpop.eup %8960 }
 0x9c8   : > { %v5552_v49 = vsel %vm1298_vm1, %v11670_v39, 0.0  ;;  %v11676_v6 = vpop.eup %8962 }
 0x9c9   : > { %5553 = vadd.xlane.f32.xlu0 %v5552_v49  ;;  %5538 = vadd.xlane.f32.xlu1 %v5537_v52  ;;  %v5555_v29 = vsel %vm1298_vm1, %v11676_v6, 0.0 }
 0x9cb   : > { %v11678_v14 = vpop.eup %8964 }
 0x9cc   : > { %v5546_v25 = vsel %vm1298_vm1, %v11678_v14, 0.0  ;;  %v11684_v15 = vpop.eup %8966 }
 0x9cd   : > { %5547 = vadd.xlane.f32.xlu0 %v5546_v25  ;;  %5556 = vadd.xlane.f32.xlu1 %v5555_v29  ;;  %v5549_v4 = vsel %vm1298_vm1, %v11684_v15, 0.0 }
 0x9d1   : > { %5550 = vadd.xlane.f32.xlu1 %v5549_v4 }
 0x9dc   : > { %v5374_v44 = vpop.xlane.xlu0 %5373 }
 0x9dd   : > { %v5448_v3 = vsub.f32 %v11546_v46, %v5374_v44 }
 0x9df   : > { %v5490_v33 = vmul.f32 1.442695, %v5448_v3 }
 0x9e0   : > { %v5368_v34 = vpop.xlane.xlu0 %5367  ;;  %v5377_v5 = vpop.xlane.xlu1 %5376 }
 0x9e1   : > { %8968 = vpow2.f32 %v5490_v33  ;;  %v5446_v32 = vsub.f32 %v11552_v48, %v5368_v34  ;;  %v5449_v49 = vsub.f32 %v11554_v60, %v5377_v5 }
 0x9e3   : > { %v5486_v52 = vmul.f32 1.442695, %v5446_v32  ;;  %v5492_v13 = vmul.f32 1.442695, %v5449_v49 }
 0x9e4   : > { %v5386_v30 = vpop.xlane.xlu0 %5385  ;;  %v5371_v25 = vpop.xlane.xlu1 %5370 }
 0x9e5   : > { %8970 = vpow2.f32 %v5486_v52  ;;  %v5452_v29 = vsub.f32 %v11564_v35, %v5386_v30  ;;  %v5447_v4 = vsub.f32 %v11562_v8, %v5371_v25 }
 0x9e6   : > { %8972 = vpow2.f32 %v5492_v13 }
 0x9e7   : > { %v5498_v62 = vmul.f32 1.442695, %v5452_v29  ;;  %v5488_v46 = vmul.f32 1.442695, %v5447_v4 }
 0x9e8   : > { %v5380_v44 = vpop.xlane.xlu0 %5379  ;;  %v5389_v3 = vpop.xlane.xlu1 %5388 }
 0x9e9   : > { %8974 = vpow2.f32 %v5498_v62  ;;  %v5450_v33 = vsub.f32 %v11572_v58, %v5380_v44  ;;  %v5453_v48 = vsub.f32 %v11574_v50, %v5389_v3 }
 0x9ea   : > { %8976 = vpow2.f32 %v5488_v46 }
 0x9eb   : > { %v5494_v60 = vmul.f32 1.442695, %v5450_v33  ;;  %v5500_v34 = vmul.f32 1.442695, %v5453_v48 }
 0x9ec   : > { %v5398_v5 = vpop.xlane.xlu0 %5397  ;;  %v5383_v32 = vpop.xlane.xlu1 %5382 }
 0x9ed   : > { %8978 = vpow2.f32 %v5494_v60  ;;  %v5456_v30 = vsub.f32 %v11550_v43, %v5398_v5  ;;  %v5451_v8 = vsub.f32 %v11582_v28, %v5383_v32 }
 0x9ee   : > { %v11697_v13 = vpop.eup %8968  ;;  %8980 = vpow2.f32 %v5500_v34 }
 0x9ef   : > { %v5506_v35 = vmul.f32 1.442695, %v5456_v30  ;;  %v5496_v49 = vmul.f32 1.442695, %v5451_v8  ;;  %v5564_v62 = vsel %vm1298_vm1, %v11697_v13, 0.0 }
 0x9f0   : > { %v5392_v58 = vpop.xlane.xlu0 %5391  ;;  %5565 = vadd.xlane.f32.xlu1 %v5564_v62  ;;  %v5401_v50 = vpop.xlane.xlu1 %5400 }
 0x9f1   : > { %8982 = vpow2.f32 %v5506_v35  ;;  %v5454_v52 = vsub.f32 %v11560_v19, %v5392_v58  ;;  %v5457_v25 = vsub.f32 %v11570_v7, %v5401_v50 }
 0x9f2   : > { %v11703_v29 = vpop.eup %8970  ;;  %8984 = vpow2.f32 %v5496_v49 }
 0x9f3   : > { %v5502_v43 = vmul.f32 1.442695, %v5454_v52  ;;  %v5508_v28 = vmul.f32 1.442695, %v5457_v25  ;;  %v5558_v4 = vsel %vm1298_vm1, %v11703_v29, 0.0  ;;  %v11707_v46 = vpop.eup %8972 }
 0x9f4   : > { %v5410_v44 = vpop.xlane.xlu0 %5409  ;;  %5559 = vadd.xlane.f32.xlu1 %v5558_v4  ;;  %v5395_v3 = vpop.xlane.xlu1 %5394  ;;  %v5567_v32 = vsel %vm1298_vm1, %v11707_v46, 0.0 }
 0x9f5   : > { %8986 = vpow2.f32 %v5502_v43  ;;  %v5460_v33 = vsub.f32 %v11588_v21, %v5410_v44  ;;  %v5455_v19 = vsub.f32 %v11580_v63, %v5395_v3 }
 0x9f6   : > { %v11711_v48 = vpop.eup %8974  ;;  %8988 = vpow2.f32 %v5508_v28 }
 0x9f7   : > { %v11713_v7 = vpop.eup %8976  ;;  %v5514_v60 = vmul.f32 1.442695, %v5460_v33  ;;  %v5504_v34 = vmul.f32 1.442695, %v5455_v19  ;;  %v5576_v5 = vsel %vm1298_vm1, %v11711_v48, 0.0 }
 0x9f8   : > { %v5404_v30 = vpop.xlane.xlu0 %5403  ;;  %5577 = vadd.xlane.f32.xlu0 %v5576_v5  ;;  %5568 = vadd.xlane.f32.xlu1 %v5567_v32  ;;  %v5413_v8 = vpop.xlane.xlu1 %5412  ;;  %v5561_v49 = vsel %vm1298_vm1, %v11713_v7, 0.0 }
 0x9f9   : > { %8990 = vpow2.f32 %v5514_v60  ;;  %v5458_v63 = vsub.f32 %v11594_v22, %v5404_v30  ;;  %v5461_v21 = vsub.f32 %v11600_v16, %v5413_v8 }
 0x9fa   : > { %v11721_v35 = vpop.eup %8978  ;;  %8992 = vpow2.f32 %v5504_v34 }
 0x9fb   : > { %v5510_v62 = vmul.f32 1.442695, %v5458_v63  ;;  %v5516_v58 = vmul.f32 1.442695, %v5461_v21  ;;  %v5570_v50 = vsel %vm1298_vm1, %v11721_v35, 0.0  ;;  %v11727_v52 = vpop.eup %8980 }
 0x9fc   : > { %v5422_v25 = vpop.xlane.xlu0 %5421  ;;  %5571 = vadd.xlane.f32.xlu0 %v5570_v50  ;;  %5562 = vadd.xlane.f32.xlu1 %v5561_v49  ;;  %v5407_v43 = vpop.xlane.xlu1 %5406  ;;  %v5579_v33 = vsel %vm1298_vm1, %v11727_v52, 0.0 }
 0x9fd   : > { %8994 = vpow2.f32 %v5510_v62  ;;  %v5464_v22 = vsub.f32 %v11608_v0, %v5422_v25  ;;  %v5459_v16 = vsub.f32 %v11606_v10, %v5407_v43 }
 0x9fe   : > { %v11731_v28 = vpop.eup %8982  ;;  %8996 = vpow2.f32 %v5516_v58 }
 0x9ff   : > { %v11733_v4 = vpop.eup %8984  ;;  %v5522_v44 = vmul.f32 1.442695, %v5464_v22  ;;  %v5512_v3 = vmul.f32 1.442695, %v5459_v16  ;;  %v5588_v32 = vsel %vm1298_vm1, %v11731_v28, 0.0 }
 0xa00   : > { %v5416_v19 = vpop.xlane.xlu0 %5415  ;;  %5580 = vadd.xlane.f32.xlu0 %v5579_v33  ;;  %v5573_v60 = vsel %vm1298_vm1, %v11733_v4, 0.0  ;;  %v5425_v34 = vpop.xlane.xlu1 %5424 }
 0xa01   : > { %8998 = vpow2.f32 %v5522_v44  ;;  %v5462_v0 = vsub.f32 %v11614_v17, %v5416_v19  ;;  %5574 = vadd.xlane.f32.xlu1 %v5573_v60  ;;  %v5465_v10 = vsub.f32 %v11616_v24, %v5425_v34 }
 0xa02   : > { %v11741_v5 = vpop.eup %8986  ;;  %9000 = vpow2.f32 %v5512_v3 }
 0xa03   : > { %v11745_v30 = vpop.eup %8988  ;;  %v5518_v8 = vmul.f32 1.442695, %v5462_v0  ;;  %v5524_v63 = vmul.f32 1.442695, %v5465_v10  ;;  %v5582_v21 = vsel %vm1298_vm1, %v11741_v5, 0.0 }
 0xa04   : > { %v5434_v49 = vpop.xlane.xlu0 %5433  ;;  %5589 = vadd.xlane.f32.xlu0 %v5588_v32  ;;  %v5419_v62 = vpop.xlane.xlu1 %5418  ;;  %v5591_v50 = vsel %vm1298_vm1, %v11745_v30, 0.0 }
 0xa05   : > { %9002 = vpow2.f32 %v5518_v8  ;;  %v5468_v17 = vsub.f32 %v11624_v1, %v5434_v49  ;;  %5583 = vadd.xlane.f32.xlu1 %v5582_v21  ;;  %v5463_v24 = vsub.f32 %v11622_v40, %v5419_v62 }
 0xa06   : > { %v11751_v58 = vpop.eup %8990  ;;  %9004 = vpow2.f32 %v5524_v63 }
 0xa07   : > { %v5530_v25 = vmul.f32 1.442695, %v5468_v17  ;;  %v5520_v43 = vmul.f32 1.442695, %v5463_v24  ;;  %v5600_v22 = vsel %vm1298_vm1, %v11751_v58, 0.0  ;;  %v11757_v16 = vpop.eup %8992 }
 0xa08   : > { %v5428_v44 = vpop.xlane.xlu0 %5427  ;;  %5592 = vadd.xlane.f32.xlu0 %v5591_v50  ;;  %v5585_v19 = vsel %vm1298_vm1, %v11757_v16, 0.0 }
 0xa09   : > { %9006 = vpow2.f32 %v5530_v25  ;;  %v5466_v1 = vsub.f32 %v11630_v47, %v5428_v44  ;;  %5601 = vadd.xlane.f32.xlu1 %v5600_v22  ;;  %v12659_v22 = vld [vmem:[#allocation31_spill] sm:$0xff]  ;;  %v12660_v44 = vld [vmem:[#allocation24_spill] sm:$0xff] }
 0xa0a   : > { %v11760_v40 = vpop.eup %8994  ;;  %9008 = vpow2.f32 %v5520_v43 }
 0xa0b   : > { %v5526_v3 = vmul.f32 1.442695, %v5466_v1  ;;  %v5594_v33 = vsel %vm1298_vm1, %v11760_v40, 0.0  ;;  %v11766_v60 = vpop.eup %8996  ;;  %v11802_v1 = vpop.permute.xlu1 %5888 }
 0xa0c   : > { %5586 = vadd.xlane.f32.xlu0 %v5585_v19  ;;  %v5603_v0 = vsel %vm1298_vm1, %v11766_v60, 0.0 }
 0xa0d   : > { %9010 = vpow2.f32 %v5526_v3  ;;  %5595 = vadd.xlane.f32.xlu1 %v5594_v33  ;;  %v12661_v3 = vld [vmem:[#allocation26_spill] sm:$0xff] }
 0xa0e   : > { %v11768_v34 = vpop.eup %8998  ;;  %v12662_v33 = vld [vmem:[#allocation18_spill] sm:$0xff] }
 0xa0f   : > { %v5612_v47 = vsel %vm1298_vm1, %v11768_v34, 0.0  ;;  %v11774_v10 = vpop.eup %9000  ;;  %v7270_v19 = vpack.c.bf16 %v12662_v33, %v12662_v33 }
 0xa10   : > { %5604 = vadd.xlane.f32.xlu0 %v5603_v0  ;;  %v5597_v63 = vsel %vm1298_vm1, %v11774_v10, 0.0 }
 0xa11   : > { %5613 = vadd.xlane.f32.xlu1 %v5612_v47 }
 0xa12   : > { %v11776_v32 = vpop.eup %9002 }
 0xa13   : > { %v5606_v8 = vsel %vm1298_vm1, %v11776_v32, 0.0  ;;  %v11782_v21 = vpop.eup %9004 }
 0xa14   : > { %5598 = vadd.xlane.f32.xlu0 %v5597_v63  ;;  %v5615_v17 = vsel %vm1298_vm1, %v11782_v21, 0.0 }
 0xa15   : > { %5607 = vadd.xlane.f32.xlu1 %v5606_v8  ;;  %v12663_v8 = vld [vmem:[#allocation15_spill] sm:$0xff] }
 0xa16   : > { %v11784_v49 = vpop.eup %9006  ;;  %v7272_v63 = vpack.c.bf16 %v12663_v8, %v12663_v8 }
 0xa17   : > { %v5624_v62 = vsel %vm1298_vm1, %v11784_v49, 0.0  ;;  %v11790_v24 = vpop.eup %9008 }
 0xa18   : > { %5616 = vadd.xlane.f32.xlu0 %v5615_v17  ;;  %v5609_v43 = vsel %vm1298_vm1, %v11790_v24, 0.0 }
 0xa19   : > { %5625 = vadd.xlane.f32.xlu1 %v5624_v62 }
 0xa1a   : > { %v11792_v50 = vpop.eup %9010 }
 0xa1b   : > { %v5618_v25 = vsel %vm1298_vm1, %v11792_v50, 0.0 }
 0xa1c   : > { %5610 = vadd.xlane.f32.xlu0 %v5609_v43  ;;  %v7302_v43 = vpack.c.bf16 %v11456_v53, %v11456_v53  ;;  %v12665_v53 = vld [vmem:[#allocation46_spill] sm:$0xff] }
 0xa1d   : > { %5619 = vadd.xlane.f32.xlu1 %v5618_v25 }
 0xa2e   : > { %5981 = vrot.lane.b32.xlu1 %v12659_v22, %s9091_s8 }
 0xa32   : > { %5979 = vrot.lane.b32.xlu1 %v12660_v44, %s9091_s8  ;;  %v11819_v44 = vpop.permute.xlu0 %5890 }
 0xa36   : > { %5977 = vrot.lane.b32.xlu1 %v12661_v3, %s9091_s8  ;;  %v12664_v3 = vld [vmem:[#allocation44_spill] sm:$0xff] }
 0xa37   : > { %v7274_v33 = vpack.c.bf16 %v12664_v3, %v12664_v3 }
 0xa39   : > { %v5437_v47 = vpop.xlane.xlu1 %5436 }
 0xa3a   : > { %3426 = vrot.lane.b32.xlu1 %v7270_v19, %s9091_s8  ;;  %v5469_v0 = vsub.f32 %v11641_v2, %v5437_v47  ;;  %v7304_v2 = vpack.c.bf16 %v11454_v23, %v11454_v23  ;;  %v7276_v47 = vpack.c.bf16 %v12665_v53, %v12665_v53 }
 0xa3c   : > { %v5532_v62 = vmul.f32 1.442695, %v5469_v0 }
 0xa3d   : > { %v5431_v17 = vpop.xlane.xlu1 %5430 }
 0xa3e   : > { %9012 = vpow2.f32 %v5532_v62  ;;  %3430 = vrot.lane.b32.xlu1 %v7272_v63, %s9091_s8  ;;  %v5467_v25 = vsub.f32 %v11646_v55, %v5431_v17  ;;  %v7306_v62 = vpack.c.bf16 %v11464_v56, %v11464_v56  ;;  %v12666_v56 = vld [vmem:[#allocation50_spill] sm:$0xff] }
 0xa40   : > { %v5528_v22 = vmul.f32 1.442695, %v5467_v25 }
 0xa42   : > { %9014 = vpow2.f32 %v5528_v22  ;;  %4795 = vrot.lane.b32.xlu1 %v7302_v43, %s9090_s7  ;;  %v7308_v22 = vpack.c.bf16 %v11462_v36, %v11462_v36 }
 0xa46   : > { %4799 = vrot.lane.b32.xlu1 %v7304_v2, %s9090_s7  ;;  %v5542_v19 = vpop.xlane.xlu0 %5541 }
 0xa4a   : > { %3434 = vrot.lane.b32.xlu1 %v7274_v33, %s9091_s8  ;;  %v5536_v23 = vpop.xlane.xlu0 %5535  ;;  %v7278_v33 = vpack.c.bf16 %v12666_v56, %v12666_v56 }
 0xa4b   : > { %v11825_v55 = vpop.eup %9012 }
 0xa4c   : > { %v5627_v0 = vsel %vm1298_vm1, %v11825_v55, 0.0 }
 0xa4d   : > { %5628 = vadd.xlane.f32.xlu0 %v5627_v0 }
 0xa4e   : > { %3438 = vrot.lane.b32.xlu1 %v7276_v47, %s9091_s8  ;;  %v5545_v8 = vpop.xlane.xlu1 %5544  ;;  %v12667_v47 = vld [vmem:[#allocation3_spill] sm:$0xff] }
 0xa4f   : > { %v11832_v63 = vpop.eup %9014  ;;  %9016 = vrcp.f32 %v5545_v8  ;;  %v7310_v8 = vpack.c.bf16 %v11508_v54, %v11508_v54 }
 0xa50   : > { %v5621_v17 = vsel %vm1298_vm1, %v11832_v63, 0.0  ;;  %9018 = vrcp.f32 %v5536_v23 }
 0xa51   : > { %5622 = vadd.xlane.f32.xlu0 %v5621_v17  ;;  %9020 = vrcp.f32 %v5542_v19  ;;  %v7280_v19 = vpack.c.bf16 %v12667_v47, %v12667_v47 }
 0xa52   : > { %v5554_v25 = vpop.xlane.xlu0 %5553  ;;  %4803 = vrot.lane.b32.xlu1 %v7306_v62, %s9090_s7  ;;  %v5539_v43 = vpop.xlane.xlu1 %5538 }
 0xa53   : > { %9022 = vrcp.f32 %v5539_v43 }
 0xa56   : > { %v5548_v2 = vpop.xlane.xlu0 %5547  ;;  %4807 = vrot.lane.b32.xlu1 %v7308_v22, %s9090_s7  ;;  %v5557_v3 = vpop.xlane.xlu1 %5556 }
 0xa57   : > { %9024 = vrcp.f32 %v5548_v2  ;;  %v7312_v2 = vpack.c.bf16 %v11498_v11, %v11498_v11  ;;  %v12670_v11 = vld [vmem:[#allocation19_spill] sm:$0xff] }
 0xa58   : > { %9026 = vrcp.f32 %v5557_v3  ;;  %v7269_v47 = vpack.c.bf16 %v12670_v11, %v12670_v11  ;;  %v12678_v11 = vld [vmem:[#allocation13_spill] sm:$0xff] }
 0xa59   : > { %9028 = vrcp.f32 %v5554_v25 }
 0xa5a   : > { %3442 = vrot.lane.b32.xlu1 %v7278_v33, %s9091_s8  ;;  %v5551_v53 = vpop.xlane.xlu1 %5550 }
 0xa5b   : > { %9030 = vrcp.f32 %v5551_v53 }
 0xa5c   : > { %v9017_v0 = vpop.eup %9016 }
 0xa5d   : > { %v9019_v36 = vpop.eup %9018  ;;  %v5665_v17 = vmul.f32 %v9017_v0, %v11664_v45 }
 0xa5e   : > { %3446 = vrot.lane.b32.xlu1 %v7280_v19, %s9091_s8  ;;  %v9021_v23 = vpop.eup %9020  ;;  %v5662_v25 = vmul.f32 %v9019_v36, %v11660_v27  ;;  %v12668_v27 = vld [vmem:[#allocation42_spill] sm:$0xff] }
 0xa5f   : > { %v5664_v22 = vmul.f32 %v9021_v23, %v11656_v51 }
 0xa60   : > { %v9023_v62 = vpop.eup %9022 }
 0xa61   : > { %v5663_v43 = vmul.f32 %v9023_v62, %v11668_v20  ;;  %v5695_v33 = vpack.c.bf16 %v5665_v17, %v5664_v22  ;;  %v12669_v20 = vld [vmem:[#allocation52_spill] sm:$0xff]  ;;  %v12671_v62 = vld [vmem:[#allocation51_spill] sm:$0xff]  ;;  %v12672_v17 = vld [vmem:[#allocation33_spill] sm:$0xff] }
 0xa62   : > { %4811 = vrot.lane.b32.xlu1 %v7310_v8, %s9090_s7  ;;  %v7282_v51 = vpack.c.bf16 %v12669_v20, %v12669_v20 }
 0xa63   : > { %v5694_v3 = vpack.c.bf16 %v5663_v43, %v5662_v25  ;;  %v7271_v25 = vpack.c.bf16 %v12672_v17, %v12672_v17 }
 0xa64   : > { %v9025_v56 = vpop.eup %9024 }
 0xa65   : > { %v9027_v53 = vpop.eup %9026  ;;  %8300 = vmatprep.mubr.msk.bf16.mxu0 %vm1298_vm1, %v5694_v3  ;;  %v5666_v19 = vmul.f32 %v9025_v56, %v11678_v14  ;;  %v7316_v14 = vpack.c.bf16 %v11526_v57, %v11526_v57  ;;  %v12675_v57 = vld [vmem:[#allocation48_spill] sm:$0xff]  ;;  %v7318_v56 = vpack.c.bf16 %v11472_v42, %v11472_v42 }
 0xa66   : > { %4815 = vrot.lane.b32.xlu1 %v7312_v2, %s9090_s7  ;;  %v9029_v54 = vpop.eup %9028  ;;  %8301 = vmatmul.mubr.msk.bf16.vlgmr.msra.gmra.mxu0 %vm1298_vm1, %v5695_v33  ;;  %v5669_v36 = vmul.f32 %v9027_v53, %v11676_v6  ;;  %v12676_v2 = vld [vmem:[#allocation49_spill] sm:$0xff]  ;;  %v7305_v33 = vpack.c.bf16 %v11460_v12, %v11460_v12  ;;  %v12677_v12 = vld [vmem:[#allocation7_spill] sm:$0xff] }
 0xa67   : > { %5983 = vrot.lane.b32.xlu0 %v12668_v27, %s9091_s8  ;;  %8325 = vmatpush3.bf16.msra.mxu0 %v11445_v61  ;;  %v5668_v8 = vmul.f32 %v9029_v54, %v11670_v39  ;;  %v7284_v61 = vpack.c.bf16 %v12671_v62, %v12671_v62  ;;  %v7314_v39 = vpack.c.bf16 %v11528_v37, %v11528_v37  ;;  %v12673_v37 = vld [vmem:[#allocation5_spill] sm:$0xff] }
 0xa68   : > { %v9031_v45 = vpop.eup %9030  ;;  %8326 = vmatprep.subr.bf16.mxu0 %v11639_v59  ;;  %v7320_v27 = vpack.c.bf16 %v11470_v18, %v11470_v18  ;;  %v7290_v42 = vpack.c.bf16 %v12677_v12, %v12677_v12 }
 0xa69   : > { %v5667_v0 = vmul.f32 %v9031_v45, %v11684_v15  ;;  %v5697_v6 = vpack.c.bf16 %v5669_v36, %v5668_v8  ;;  %v7303_v15 = vpack.c.bf16 %v11450_v9, %v11450_v9  ;;  %v7275_v9 = vpack.c.bf16 %v12676_v2, %v12676_v2  ;;  %v12680_v36 = vld [vmem:[#allocation47_spill] sm:$0xff] }
 0xa6a   : > { %3450 = vrot.lane.b32.xlu1 %v7282_v51, %s9091_s8  ;;  %v7307_v45 = vpack.c.bf16 %v11458_v26, %v11458_v26 }
 0xa6b   : > { %3424 = vrot.lane.b32.xlu0 %v7269_v47, %s9091_s8  ;;  %v5696_v23 = vpack.c.bf16 %v5667_v0, %v5666_v19  ;;  %8327 = vmatpush3.bf16.msra.mxu0 %v11639_v59  ;;  %v7301_v59 = vpack.c.bf16 %v11452_v41, %v11452_v41  ;;  %v7286_v41 = vpack.c.bf16 %v12673_v37, %v12673_v37  ;;  %v12679_v19 = vld [vmem:[#allocation12_spill] sm:$0xff]  ;;  %v12681_v37 = vld [vmem:[#allocation17_spill] sm:$0xff] }
 0xa6c   : > { %8328 = vmatprep.subr.bf16.mxu0 %v11819_v44  ;;  %v7277_v47 = vpack.c.bf16 %v12678_v11, %v12678_v11  ;;  %v7292_v0 = vpack.c.bf16 %v12679_v19, %v12679_v19 }
 0xa6d   : > { %8304 = vmatprep.mubr.msk.bf16.mxu0 %vm1298_vm1, %v5696_v23  ;;  %v7279_v23 = vpack.c.bf16 %v12680_v36, %v12680_v36  ;;  %v12687_v36 = vld [vmem:[#allocation41_spill] sm:$0xff] }
 0xa6e   : > { %3454 = vrot.lane.b32.xlu1 %v7284_v61, %s9091_s8  ;;  %8305 = vmatmul.mubr.msk.bf16.gmra.mxu0 %vm1298_vm1, %v5697_v6  ;;  %v7322_v61 = vpack.c.bf16 %v11480_v38, %v11480_v38  ;;  %v12682_v38 = vld [vmem:[#allocation32_spill] sm:$0xff] }
 0xa6f   : > { %3428 = vrot.lane.b32.xlu0 %v7271_v25, %s9091_s8  ;;  %8329 = vmatpush3.bf16.msra.mxu0 %v11819_v44  ;;  %v12674_v44 = vld [vmem:[#allocation10_spill] sm:$0xff]  ;;  %v7309_v25 = vpack.c.bf16 %v11490_v31, %v11490_v31 }
 0xa70   : > { %8330 = vmatprep.subr.bf16.mxu0 %v11802_v1  ;;  %v7273_v43 = vpack.c.bf16 %v12674_v44, %v12674_v44 }
 0xa72   : > { %4819 = vrot.lane.b32.xlu1 %v7314_v39, %s9090_s7 }
 0xa73   : > { %4793 = vrot.lane.b32.xlu0 %v7301_v59, %s9090_s7  ;;  %8331 = vmatpush3.bf16.msra.mxu0 %v11802_v1  ;;  %v7288_v1 = vpack.c.bf16 %v12675_v57, %v12675_v57 }
 0xa76   : > { %4823 = vrot.lane.b32.xlu1 %v7316_v14, %s9090_s7 }
 0xa77   : > { %4797 = vrot.lane.b32.xlu0 %v7303_v15, %s9090_s7 }
 0xa79   : > { %v5566_v22 = vpop.xlane.xlu1 %5565 }
 0xa7a   : > { %3458 = vrot.lane.b32.xlu1 %v7286_v41, %s9091_s8  ;;  %v7324_v41 = vpack.c.bf16 %v12681_v37, %v12681_v37 }
 0xa7b   : > { %3432 = vrot.lane.b32.xlu0 %v7273_v43, %s9091_s8  ;;  %v7311_v43 = vpack.c.bf16 %v12682_v38, %v12682_v38 }
 0xa7d   : > { %v5560_v3 = vpop.xlane.xlu1 %5559 }
 0xa7e   : > { %3462 = vrot.lane.b32.xlu1 %v7288_v1, %s9091_s8 }
 0xa7f   : > { %3436 = vrot.lane.b32.xlu0 %v7275_v9, %s9091_s8 }
 0xa81   : > { %v5578_v53 = vpop.xlane.xlu0 %5577  ;;  %v5569_v54 = vpop.xlane.xlu1 %5568 }
 0xa82   : > { %4827 = vrot.lane.b32.xlu1 %v7318_v56, %s9090_s7  ;;  %9032 = vrcp.f32 %v5569_v54  ;;  %v12683_v56 = vld [vmem:[#allocation56_spill] sm:$0xff] }
 0xa83   : > { %4801 = vrot.lane.b32.xlu0 %v7305_v33, %s9090_s7  ;;  %9034 = vrcp.f32 %v5560_v3  ;;  %v7294_v33 = vpack.c.bf16 %v12683_v56, %v12683_v56 }
 0xa84   : > { %9036 = vrcp.f32 %v5566_v22 }
 0xa85   : > { %v5572_v20 = vpop.xlane.xlu0 %5571  ;;  %v5563_v51 = vpop.xlane.xlu1 %5562 }
 0xa86   : > { %4831 = vrot.lane.b32.xlu1 %v7320_v27, %s9090_s7  ;;  %9038 = vrcp.f32 %v5563_v51  ;;  %v12684_v27 = vld [vmem:[#allocation11_spill] sm:$0xff] }
 0xa87   : > { %4805 = vrot.lane.b32.xlu0 %v7307_v45, %s9090_s7  ;;  %9040 = vrcp.f32 %v5572_v20 }
 0xa89   : > { %v5581_v18 = vpop.xlane.xlu0 %5580 }
 0xa8a   : > { %3466 = vrot.lane.b32.xlu1 %v7290_v42, %s9091_s8  ;;  %v5575_v26 = vpop.xlane.xlu1 %5574  ;;  %v12685_v42 = vld [vmem:[#allocation55_spill] sm:$0xff] }
 0xa8b   : > { %9042 = vrcp.f32 %v5575_v26  ;;  %3440 = vrot.lane.b32.xlu0 %v7277_v47, %s9091_s8  ;;  %v7296_v11 = vpack.c.bf16 %v12685_v42, %v12685_v42 }
 0xa8c   : > { %9044 = vrcp.f32 %v5581_v18 }
 0xa8d   : > { %v5590_v8 = vpop.xlane.xlu0 %5589  ;;  %9046 = vrcp.f32 %v5578_v53 }
 0xa8e   : > { %3470 = vrot.lane.b32.xlu1 %v7292_v0, %s9091_s8  ;;  %v5584_v62 = vpop.xlane.xlu1 %5583 }
 0xa8f   : > { %3444 = vrot.lane.b32.xlu0 %v7279_v23, %s9091_s8  ;;  %v9033_v17 = vpop.eup %9032  ;;  %v7326_v23 = vpack.c.bf16 %v12687_v36, %v12687_v36  ;;  %v12698_v36 = vld [vmem:[#allocation45_spill] sm:$0xff] }
 0xa90   : > { %v9035_v39 = vpop.eup %9034  ;;  %v5673_v44 = vmul.f32 %v9033_v17, %v11707_v46 }
 0xa91   : > { %v5593_v6 = vpop.xlane.xlu0 %5592  ;;  %v9037_v14 = vpop.eup %9036  ;;  %v5670_v22 = vmul.f32 %v9035_v39, %v11703_v29  ;;  %v7281_v29 = vpack.c.bf16 %v12684_v27, %v12684_v27 }
 0xa92   : > { %4835 = vrot.lane.b32.xlu1 %v7322_v61, %s9090_s7  ;;  %v5602_v59 = vpop.xlane.xlu1 %5601  ;;  %9048 = vrcp.f32 %v5593_v6  ;;  %v5672_v2 = vmul.f32 %v9037_v14, %v11697_v13 }
 0xa93   : > { %4809 = vrot.lane.b32.xlu0 %v7309_v25, %s9090_s7  ;;  %v9039_v15 = vpop.eup %9038  ;;  %9050 = vrcp.f32 %v5584_v62  ;;  %v12688_v62 = vld [vmem:[#allocation36_spill] sm:$0xff] }
 0xa94   : > { %9052 = vrcp.f32 %v5590_v8  ;;  %v5671_v57 = vmul.f32 %v9039_v15, %v11713_v7  ;;  %v9041_v1 = vpop.eup %9040  ;;  %v5699_v53 = vpack.c.bf16 %v5673_v44, %v5672_v2  ;;  %v7313_v61 = vpack.c.bf16 %v12688_v62, %v12688_v62  ;;  %v12692_v2 = vld [vmem:[#allocation43_spill] sm:$0xff]  ;;  %v12700_v62 = vld [vmem:[#allocation16_spill] sm:$0xff] }
 0xa95   : > { %v5587_v31 = vpop.xlane.xlu0 %5586  ;;  %v5674_v13 = vmul.f32 %v9041_v1, %v11721_v35  ;;  %v12686_v35 = vld [vmem:[#allocation6_spill] sm:$0xff]  ;;  %v12691_v1 = vld [vmem:[#allocation60_spill] sm:$0xff] }
 0xa96   : > { %9054 = vrcp.f32 %v5587_v31  ;;  %4839 = vrot.lane.b32.xlu1 %v7324_v41, %s9090_s7  ;;  %v5596_v9 = vpop.xlane.xlu1 %5595  ;;  %v5698_v46 = vpack.c.bf16 %v5671_v57, %v5670_v22  ;;  %v12690_v41 = vld [vmem:[#allocation30_spill] sm:$0xff] }
 0xa97   : > { %4813 = vrot.lane.b32.xlu0 %v7311_v43, %s9090_s7  ;;  %v7315_v44 = vpack.c.bf16 %v12690_v41, %v12690_v41  ;;  %v12703_v41 = vld [vmem:[#allocation53_spill] sm:$0xff] }
 0xa98   : > { %v9043_v3 = vpop.eup %9042  ;;  %8316 = vmatprep.mubr.msk.bf16.mxu1 %vm1298_vm1, %v5698_v46 }
 0xa99   : > { %v9045_v54 = vpop.eup %9044  ;;  %v5605_v7 = vpop.xlane.xlu0 %5604  ;;  %v5675_v45 = vmul.f32 %v9043_v3, %v11733_v4  ;;  %8317 = vmatmul.mubr.msk.bf16.vlgmr.msra.gmra.mxu1 %vm1298_vm1, %v5699_v53  ;;  %v7283_v4 = vpack.c.bf16 %v12686_v35, %v12686_v35 }
 0xa9a   : > { %3474 = vrot.lane.b32.xlu1 %v7294_v33, %s9091_s8  ;;  %v11960_v20 = vpop.xlane.xlu1 %5613  ;;  %v9047_v51 = vpop.eup %9046  ;;  %9056 = vrcp.f32 %v5605_v7  ;;  %v5677_v47 = vmul.f32 %v9045_v54, %v11727_v52  ;;  %v12693_v33 = vld [vmem:[#allocation59_spill] sm:$0xff] }
 0xa9b   : > { %3448 = vrot.lane.b32.xlu0 %v7281_v29, %s9091_s8  ;;  %v5700_v12 = vpack.c.bf16 %v5675_v45, %v5674_v13  ;;  %9058 = vrcp.f32 %v5596_v9  ;;  %v5676_v19 = vmul.f32 %v9047_v51, %v11711_v48  ;;  %v7300_v53 = vpack.c.bf16 %v12693_v33, %v12693_v33  ;;  %v12694_v29 = vld [vmem:[#allocation14_spill] sm:$0xff] }
 0xa9c   : > { %9060 = vrcp.f32 %v5602_v59  ;;  %v12689_v59 = vld [vmem:[#allocation29_spill] sm:$0xff]  ;;  %v7287_v7 = vpack.c.bf16 %v12694_v29, %v12694_v29 }
 0xa9d   : > { %8320 = vmatprep.mubr.msk.bf16.mxu1 %vm1298_vm1, %v5700_v12  ;;  %v5599_v18 = vpop.xlane.xlu0 %5598  ;;  %v5701_v52 = vpack.c.bf16 %v5677_v47, %v5676_v19  ;;  %v7328_v14 = vpack.c.bf16 %v12689_v59, %v12689_v59  ;;  %v12695_v12 = vld [vmem:[#allocation34_spill] sm:$0xff] }
 0xa9e   : > { %9062 = vrcp.f32 %v5599_v18  ;;  %3478 = vrot.lane.b32.xlu1 %v7296_v11, %s9091_s8  ;;  %v5608_v26 = vpop.xlane.xlu1 %5607  ;;  %v7330_v42 = vpack.c.bf16 %v12695_v12, %v12695_v12  ;;  %v12697_v18 = vld [vmem:[#allocation23_spill] sm:$0xff] }
 0xa9f   : > { %3452 = vrot.lane.b32.xlu0 %v7283_v4, %s9091_s8  ;;  %v9049_v0 = vpop.eup %9048  ;;  %9064 = vrcp.f32 %v5608_v26  ;;  %v7319_v26 = vpack.c.bf16 %v12697_v18, %v12697_v18 }
 0xaa0   : > { %v9051_v8 = vpop.eup %9050  ;;  %v5681_v39 = vmul.f32 %v9049_v0, %v11745_v30 }
 0xaa1   : > { %v11976_v17 = vpop.xlane.xlu0 %5616  ;;  %v9053_v25 = vpop.eup %9052  ;;  %8321 = vmatmul.mubr.msk.bf16.gmra.mxu1 %vm1298_vm1, %v5701_v52  ;;  %v5678_v15 = vmul.f32 %v9051_v8, %v11741_v5  ;;  %v7298_v5 = vpack.c.bf16 %v12691_v1, %v12691_v1 }
 0xaa2   : > { %4843 = vrot.lane.b32.xlu1 %v7326_v23, %s9090_s7  ;;  %v11980_v6 = vpop.xlane.xlu1 %5625  ;;  %v5680_v38 = vmul.f32 %v9053_v25, %v11731_v28  ;;  %v7285_v28 = vpack.c.bf16 %v12692_v2, %v12692_v2  ;;  %v7289_v23 = vpack.c.bf16 %v12698_v36, %v12698_v36  ;;  %v12706_v2 = vld [vmem:[#allocation58_spill] sm:$0xff] }
 0xaa3   : > { %v9055_v48 = vpop.eup %9054  ;;  %4817 = vrot.lane.b32.xlu0 %v7313_v61, %s9090_s7  ;;  %v7321_v61 = vpack.c.bf16 %v12700_v62, %v12700_v62 }
 0xaa4   : > { %v5679_v37 = vmul.f32 %v9055_v48, %v11757_v16  ;;  %v5703_v22 = vpack.c.bf16 %v5681_v39, %v5680_v38  ;;  %v12701_v48 = vld [vmem:[#allocation25_spill] sm:$0xff] }
 0xaa5   : > { %v5611_v43 = vpop.xlane.xlu0 %5610  ;;  %v7323_v39 = vpack.c.bf16 %v12701_v48, %v12701_v48 }
 0xaa6   : > { %9066 = vrcp.f32 %v5611_v43  ;;  %4847 = vrot.lane.b32.xlu1 %v7328_v14, %s9090_s7  ;;  %v11992_v30 = vpop.xlane.xlu1 %5619  ;;  %v5702_v31 = vpack.c.bf16 %v5679_v37, %v5678_v15  ;;  %v12702_v14 = vld [vmem:[#allocation54_spill] sm:$0xff] }
 0xaa7   : > { %4821 = vrot.lane.b32.xlu0 %v7315_v44, %s9090_s7  ;;  %v9057_v57 = vpop.eup %9056  ;;  %v7293_v15 = vpack.c.bf16 %v12702_v14, %v12702_v14  ;;  %v7295_v44 = vpack.c.bf16 %v12703_v41, %v12703_v41  ;;  %v12704_v43 = vld [vmem:[#allocation38_spill] sm:$0xff]  ;;  %9068 = vrcp.f32 %v11976_v17 }
 0xaa8   : > { %8332 = vmatprep.mubr.msk.bf16.mxu0 %vm1298_vm1, %v5702_v31  ;;  %v9059_v16 = vpop.eup %9058  ;;  %v5685_v56 = vmul.f32 %v9057_v57, %v11766_v60  ;;  %v7325_v31 = vpack.c.bf16 %v12704_v43, %v12704_v43  ;;  %v12705_v57 = vld [vmem:[#allocation4_spill] sm:$0xff]  ;;  %9070 = vrcp.f32 %v11960_v20  ;;  %v12708_v20 = vld [vmem:[#allocation22_spill] sm:$0xff] }
 0xaa9   : > { %8333 = vmatmul.mubr.msk.bf16.vlgmr.msra.gmra.mxu0 %vm1298_vm1, %v5703_v22  ;;  %v9061_v9 = vpop.eup %9060  ;;  %v5682_v54 = vmul.f32 %v9059_v16, %v11760_v40  ;;  %v7327_v1 = vpack.c.bf16 %v12705_v57, %v12705_v57  ;;  %v7329_v17 = vpack.c.bf16 %v12708_v20, %v12708_v20 }
 0xaaa   : > { %3482 = vrot.lane.b32.xlu1 %v7298_v5, %s9091_s8  ;;  %v12002_v46 = vpop.permute.xlu1 %5981  ;;  %v5684_v13 = vmul.f32 %v9061_v9, %v11751_v58 }
 0xaab   : > { %v9063_v3 = vpop.eup %9062  ;;  %3456 = vrot.lane.b32.xlu0 %v7285_v28, %s9091_s8  ;;  %v7297_v28 = vpack.c.bf16 %v12706_v2, %v12706_v2  ;;  %v8549_v2 = vld [vmem:[%s12309_s3 + $0x10] sm:$0xff]  }
 0xaac   : > { %v5683_v27 = vmul.f32 %v9063_v3, %v11774_v10  ;;  %v5705_v60 = vpack.c.bf16 %v5685_v56, %v5684_v13  ;;  %v9065_v40 = vpop.eup %9064  ;;  %v12696_v10 = vld [vmem:[#allocation8_spill] sm:$0xff]  ;;  %v12707_v56 = vld [vmem:[#allocation57_spill] sm:$0xff] }
 0xaad   : > { %v7317_v11 = vpack.c.bf16 %v12696_v10, %v12696_v10  ;;  %v5686_v35 = vmul.f32 %v9065_v40, %v11776_v32  ;;  %v12699_v32 = vld [vmem:[#allocation9_spill] sm:$0xff]  ;;  %v7299_v33 = vpack.c.bf16 %v12707_v56, %v12707_v56 }
 0xaae   : > { %3486 = vrot.lane.b32.xlu1 %v7300_v53, %s9091_s8  ;;  %v12014_v45 = vpop.permute.xlu1 %5979  ;;  %v5704_v51 = vpack.c.bf16 %v5683_v27, %v5682_v54 }
 0xaaf   : > { %3460 = vrot.lane.b32.xlu0 %v7287_v7, %s9091_s8 }
 0xab0   : > { %8336 = vmatprep.mubr.msk.bf16.mxu0 %vm1298_vm1, %v5704_v51 }
 0xab1   : > { %8337 = vmatmul.mubr.msk.bf16.gmra.mxu0 %vm1298_vm1, %v5705_v60 }
 0xab2   : > { %4851 = vrot.lane.b32.xlu1 %v7330_v42, %s9090_s7  ;;  %v12024_v58 = vpop.permute.xlu1 %5977 }
 0xab3   : > { %v9067_v47 = vpop.eup %9066  ;;  %4825 = vrot.lane.b32.xlu0 %v7317_v11, %s9090_s7 }
 0xab4   : > { %v5687_v4 = vmul.f32 %v9067_v47, %v11790_v24  ;;  %v7291_v24 = vpack.c.bf16 %v12699_v32, %v12699_v32 }
 0xab6   : > { %v3427_v19 = vpop.permute.xlu1 %3426  ;;  %v5706_v0 = vpack.c.bf16 %v5687_v4, %v5686_v35 }
 0xab7   : > { %3522 = vst.msk [vmem:[#allocation2 + $0x4] sm:$0xf] %vm3520_vm3, %v3427_v19  ;;  %4829 = vrot.lane.b32.xlu0 %v7319_v26, %s9090_s7 }
 0xab8   : > { %8348 = vmatprep.mubr.msk.bf16.mxu1 %vm1298_vm1, %v5706_v0 }
 0xaba   : > { %v3431_v52 = vpop.permute.xlu1 %3430 }
 0xabb   : > { %3524 = vst.msk [vmem:[#allocation2 + $0xc] sm:$0xf] %vm3520_vm3, %v3431_v52  ;;  %3464 = vrot.lane.b32.xlu0 %v7289_v23, %s9091_s8 }
 0xabe   : > { %v4796_v8 = vpop.permute.xlu1 %4795 }
 0xabf   : > { %4891 = vst.msk [vmem:[#allocation2 + $0x4] sm:$0xf] %vm4889_vm4, %v4796_v8  ;;  %3468 = vrot.lane.b32.xlu0 %v7291_v24, %s9091_s8  ;;  %v8546_v24 = vld [vmem:[%s12309_s3 + $0x28] sm:$0xff]  }
 0xac2   : > { %v4800_v25 = vpop.permute.xlu1 %4799 }
 0xac3   : > { %4893 = vst.msk [vmem:[#allocation2 + $0xc] sm:$0xf] %vm4889_vm4, %v4800_v25  ;;  %4833 = vrot.lane.b32.xlu0 %v7321_v61, %s9090_s7 }
 0xac6   : > { %v3435_v59 = vpop.permute.xlu1 %3434 }
 0xac7   : > { %3526 = vst.msk [vmem:[#allocation2 + $0x14] sm:$0xf] %vm3520_vm3, %v3435_v59  ;;  %4837 = vrot.lane.b32.xlu0 %v7323_v39, %s9090_s7 }
 0xaca   : > { %v3439_v37 = vpop.permute.xlu1 %3438 }
 0xacb   : > { %3528 = vst.msk [vmem:[#allocation2 + $0x1c] sm:$0xf] %vm3520_vm3, %v3439_v37  ;;  %3472 = vrot.lane.b32.xlu0 %v7293_v15, %s9091_s8 }
 0xace   : > { %v4804_v38 = vpop.permute.xlu1 %4803 }
 0xacf   : > { %4895 = vst.msk [vmem:[#allocation2 + $0x14] sm:$0xf] %vm4889_vm4, %v4804_v38  ;;  %3476 = vrot.lane.b32.xlu0 %v7295_v44, %s9091_s8 }
 0xad2   : > { %v4808_v22 = vpop.permute.xlu1 %4807 }
 0xad3   : > { %4897 = vst.msk [vmem:[#allocation2 + $0x1c] sm:$0xf] %vm4889_vm4, %v4808_v22  ;;  %4841 = vrot.lane.b32.xlu0 %v7325_v31, %s9090_s7  ;;  %v8547_v31 = vld [vmem:[%s12309_s3 + $0x20] sm:$0xff]  }
 0xad6   : > { %v3443_v5 = vpop.permute.xlu1 %3442  ;;  %v5629_v16 = vpop.xlane.xlu0 %5628 }
 0xad7   : > { %3530 = vst.msk [vmem:[#allocation2 + $0x24] sm:$0xf] %vm3520_vm3, %v3443_v5  ;;  %4845 = vrot.lane.b32.xlu0 %v7327_v1, %s9090_s7  ;;  %v8548_v1 = vld [vmem:[%s12309_s3 + $0x18] sm:$0xff]  }
 0xada   : > { %v3447_v9 = vpop.permute.xlu1 %3446  ;;  %v5623_v3 = vpop.xlane.xlu0 %5622 }
 0xadb   : > { %3532 = vst.msk [vmem:[#allocation2 + $0x2c] sm:$0xf] %vm3520_vm3, %v3447_v9  ;;  %9072 = vrcp.f32 %v5623_v3  ;;  %3480 = vrot.lane.b32.xlu0 %v7297_v28, %s9091_s8  ;;  %v8550_v3 = vld [vmem:[%s12309_s3 + $0x8] sm:$0xff]  }
 0xadc   : > { %9074 = vrcp.f32 %v11992_v30  ;;  %v9069_v30 = vpop.eup %9068 }
 0xadd   : > { %9076 = vrcp.f32 %v5629_v16  ;;  %v9071_v51 = vpop.eup %9070  ;;  %v5689_v12 = vmul.f32 %v9069_v30, %v11782_v21 }
 0xade   : > { %v4812_v53 = vpop.permute.xlu1 %4811  ;;  %v5984_v54 = vpop.permute.xlu0 %5983  ;;  %9078 = vrcp.f32 %v11980_v6  ;;  %v5688_v10 = vmul.f32 %v9071_v51, %v11768_v34 }
 0xadf   : > { %4899 = vst.msk [vmem:[#allocation2 + $0x24] sm:$0xf] %vm4889_vm4, %v4812_v53  ;;  %3484 = vrot.lane.b32.xlu0 %v7299_v33, %s9091_s8  ;;  %8340 = vmatprep.subr.bf16.mxu1 %v5984_v54 }
 0xae0   : > { %8341 = vmatpush3.bf16.msra.mxu1 %v5984_v54  ;;  %v8551_v54 = vld [vmem:[%s12309_s3] sm:$0xff]  }
 0xae1   : > { %8342 = vmatprep.subr.bf16.mxu1 %v12002_v46 }
 0xae2   : > { %v4816_v27 = vpop.permute.xlu1 %4815  ;;  %v3425_v29 = vpop.permute.xlu0 %3424 }
 0xae3   : > { %4901 = vst.msk [vmem:[#allocation2 + $0x2c] sm:$0xf] %vm4889_vm4, %v4816_v27  ;;  %4849 = vrot.lane.b32.xlu0 %v7329_v17, %s9090_s7 }
 0xae4   : > { %3521 = vst.msk [vmem:[#allocation2] sm:$0xf] %vm3520_vm3, %v3425_v29  ;;  %8343 = vmatpush3.bf16.msra.mxu1 %v12002_v46 }
 0xae5   : > { %8344 = vmatprep.subr.bf16.mxu1 %v12014_v45 }
 0xae6   : > { %v3451_v7 = vpop.permute.xlu1 %3450  ;;  %v3429_v13 = vpop.permute.xlu0 %3428 }
 0xae7   : > { %3534 = vst.msk [vmem:[#allocation2 + $0x34] sm:$0xf] %vm3520_vm3, %v3451_v7  ;;  %3523 = vst.msk [vmem:[#allocation2 + $0x8] sm:$0xf] %vm3520_vm3, %v3429_v13 }
 0xae8   : > { %v9073_v60 = vpop.eup %9072  ;;  %8345 = vmatpush3.bf16.msra.mxu1 %v12014_v45  ;;  %v5707_v45 = vpack.c.bf16 %v5689_v12, %v5688_v10 }
 0xae9   : > { %v9075_v6 = vpop.eup %9074  ;;  %8346 = vmatprep.subr.bf16.mxu1 %v12024_v58  ;;  %v5691_v40 = vmul.f32 %v9073_v60, %v11832_v63 }
 0xaea   : > { %v3455_v42 = vpop.permute.xlu1 %3454  ;;  %v4794_v46 = vpop.permute.xlu0 %4793  ;;  %v5690_v11 = vmul.f32 %v9075_v6, %v11792_v50 }
 0xaeb   : > { %3536 = vst.msk [vmem:[#allocation2 + $0x3c] sm:$0xf] %vm3520_vm3, %v3455_v42  ;;  %v9077_v47 = vpop.eup %9076 }
 0xaec   : > { %4890 = vst.msk [vmem:[#allocation2] sm:$0xf] %vm4889_vm4, %v4794_v46  ;;  %8347 = vmatpush3.bf16.msra.mxu1 %v12024_v58  ;;  %v5708_v4 = vpack.c.bf16 %v5691_v40, %v5690_v11  ;;  %v9079_v34 = vpop.eup %9078  ;;  %v5693_v63 = vmul.f32 %v9077_v47, %v11825_v55  ;;  %v8544_v55 = vld [vmem:[%s12309_s3 + $0x38] sm:$0xff]  }
 0xaed   : > { %v5692_v50 = vmul.f32 %v9079_v34, %v11784_v49  ;;  %v8545_v49 = vld [vmem:[%s12309_s3 + $0x30] sm:$0xff]   ;;  %8356 = vmatprep.subr.bf16.mxu0 %v8544_v55 }
 0xaee   : > { %v4820_v35 = vpop.permute.xlu1 %4819  ;;  %v4798_v21 = vpop.permute.xlu0 %4797  ;;  %8357 = vmatpush3.bf16.msra.mxu0 %v8544_v55 }
 0xaef   : > { %4903 = vst.msk [vmem:[#allocation2 + $0x34] sm:$0xf] %vm4889_vm4, %v4820_v35  ;;  %4892 = vst.msk [vmem:[#allocation2 + $0x8] sm:$0xf] %vm4889_vm4, %v4798_v21  ;;  %8349 = vmatmul.mubr.msk.bf16.vlgmr.msra.gmra.mxu1 %vm1298_vm1, %v5707_v45  ;;  %v5709_v26 = vpack.c.bf16 %v5693_v63, %v5692_v50  ;;  %8358 = vmatprep.subr.bf16.mxu0 %v8545_v49 }
 0xaf0   : > { %8352 = vmatprep.mubr.msk.bf16.mxu1 %vm1298_vm1, %v5708_v4 }
 0xaf2   : > { %v4824_v18 = vpop.permute.xlu1 %4823  ;;  %v3433_v58 = vpop.permute.xlu0 %3432  ;;  %8359 = vmatpush3.bf16.msra.mxu0 %v8545_v49 }
 0xaf3   : > { %4905 = vst.msk [vmem:[#allocation2 + $0x3c] sm:$0xf] %vm4889_vm4, %v4824_v18  ;;  %8360 = vmatprep.subr.bf16.mxu0 %v8546_v24 }
 0xaf4   : > { %3525 = vst.msk [vmem:[#allocation2 + $0x10] sm:$0xf] %vm3520_vm3, %v3433_v58 }
 0xaf6   : > { %v3459_v19 = vpop.permute.xlu1 %3458  ;;  %v3437_v0 = vpop.permute.xlu0 %3436  ;;  %8361 = vmatpush3.bf16.msra.mxu0 %v8546_v24 }
 0xaf7   : > { %3538 = vst.msk [vmem:[#allocation2 + $0x44] sm:$0xf] %vm3520_vm3, %v3459_v19  ;;  %3527 = vst.msk [vmem:[#allocation2 + $0x18] sm:$0xf] %vm3520_vm3, %v3437_v0  ;;  %8353 = vmatmul.mubr.msk.bf16.gmra.mxu1 %vm1298_vm1, %v5709_v26  ;;  %8362 = vmatprep.subr.bf16.mxu0 %v8547_v31 }
 0xafa   : > { %v3463_v36 = vpop.permute.xlu1 %3462  ;;  %v4802_v23 = vpop.permute.xlu0 %4801  ;;  %8363 = vmatpush3.bf16.msra.mxu0 %v8547_v31 }
 0xafb   : > { %3540 = vst.msk [vmem:[#allocation2 + $0x4c] sm:$0xf] %vm3520_vm3, %v3463_v36  ;;  %8364 = vmatprep.subr.bf16.mxu0 %v8548_v1 }
 0xafc   : > { %4894 = vst.msk [vmem:[#allocation2 + $0x10] sm:$0xf] %vm4889_vm4, %v4802_v23 }
 0xafe   : > { %v4828_v52 = vpop.permute.xlu1 %4827  ;;  %v4806_v32 = vpop.permute.xlu0 %4805  ;;  %8365 = vmatpush3.bf16.msra.mxu0 %v8548_v1 }
 0xaff   : > { %4907 = vst.msk [vmem:[#allocation2 + $0x44] sm:$0xf] %vm4889_vm4, %v4828_v52  ;;  %4896 = vst.msk [vmem:[#allocation2 + $0x18] sm:$0xf] %vm4889_vm4, %v4806_v32  ;;  %8366 = vmatprep.subr.bf16.mxu0 %v8549_v2 }
 0xb02   : > { %v4832_v8 = vpop.permute.xlu1 %4831  ;;  %v3441_v62 = vpop.permute.xlu0 %3440  ;;  %8367 = vmatpush3.bf16.msra.mxu0 %v8549_v2 }
 0xb03   : > { %4909 = vst.msk [vmem:[#allocation2 + $0x4c] sm:$0xf] %vm4889_vm4, %v4832_v8  ;;  %8368 = vmatprep.subr.bf16.mxu0 %v8550_v3 }
 0xb04   : > { %3529 = vst.msk [vmem:[#allocation2 + $0x20] sm:$0xf] %vm3520_vm3, %v3441_v62 }
 0xb06   : > { %v3467_v61 = vpop.permute.xlu1 %3466  ;;  %v3445_v25 = vpop.permute.xlu0 %3444  ;;  %8369 = vmatpush3.bf16.msra.mxu0 %v8550_v3 }
 0xb07   : > { %3542 = vst.msk [vmem:[#allocation2 + $0x54] sm:$0xf] %vm3520_vm3, %v3467_v61  ;;  %3531 = vst.msk [vmem:[#allocation2 + $0x28] sm:$0xf] %vm3520_vm3, %v3445_v25  ;;  %8370 = vmatprep.subr.bf16.mxu0 %v8551_v54 }
 0xb0a   : > { %v3471_v48 = vpop.permute.xlu1 %3470  ;;  %v4810_v39 = vpop.permute.xlu0 %4809  ;;  %8371 = vmatpush3.bf16.msra.mxu0 %v8551_v54 }
 0xb0b   : > { %3544 = vst.msk [vmem:[#allocation2 + $0x5c] sm:$0xf] %vm3520_vm3, %v3471_v48 }
 0xb0c   : > { %4898 = vst.msk [vmem:[#allocation2 + $0x20] sm:$0xf] %vm4889_vm4, %v4810_v39 }
 0xb0e   : > { %v4836_v59 = vpop.permute.xlu1 %4835  ;;  %v4814_v14 = vpop.permute.xlu0 %4813 }
 0xb0f   : > { %4911 = vst.msk [vmem:[#allocation2 + $0x54] sm:$0xf] %vm4889_vm4, %v4836_v59  ;;  %4900 = vst.msk [vmem:[#allocation2 + $0x28] sm:$0xf] %vm4889_vm4, %v4814_v14 }
 0xb12   : > { %v4840_v15 = vpop.permute.xlu1 %4839  ;;  %v3449_v37 = vpop.permute.xlu0 %3448 }
 0xb13   : > { %4913 = vst.msk [vmem:[#allocation2 + $0x5c] sm:$0xf] %vm4889_vm4, %v4840_v15 }
 0xb14   : > { %3533 = vst.msk [vmem:[#allocation2 + $0x30] sm:$0xf] %vm3520_vm3, %v3449_v37 }
 0xb16   : > { %v3475_v41 = vpop.permute.xlu1 %3474  ;;  %v3453_v44 = vpop.permute.xlu0 %3452 }
 0xb17   : > { %3546 = vst.msk [vmem:[#allocation2 + $0x64] sm:$0xf] %vm3520_vm3, %v3475_v41  ;;  %3535 = vst.msk [vmem:[#allocation2 + $0x38] sm:$0xf] %vm3520_vm3, %v3453_v44 }
 0xb1a   : > { %v3479_v38 = vpop.permute.xlu1 %3478  ;;  %v4818_v43 = vpop.permute.xlu0 %4817 }
 0xb1b   : > { %3548 = vst.msk [vmem:[#allocation2 + $0x6c] sm:$0xf] %vm3520_vm3, %v3479_v38 }
 0xb1c   : > { %4902 = vst.msk [vmem:[#allocation2 + $0x30] sm:$0xf] %vm4889_vm4, %v4818_v43 }
 0xb1e   : > { %v4844_v22 = vpop.permute.xlu1 %4843  ;;  %v4822_v57 = vpop.permute.xlu0 %4821 }
 0xb1f   : > { %4915 = vst.msk [vmem:[#allocation2 + $0x64] sm:$0xf] %vm4889_vm4, %v4844_v22  ;;  %4904 = vst.msk [vmem:[#allocation2 + $0x38] sm:$0xf] %vm4889_vm4, %v4822_v57 }
 0xb22   : > { %v4848_v5 = vpop.permute.xlu1 %4847  ;;  %v3457_v16 = vpop.permute.xlu0 %3456 }
 0xb23   : > { %4917 = vst.msk [vmem:[#allocation2 + $0x6c] sm:$0xf] %vm4889_vm4, %v4848_v5 }
 0xb24   : > { %3537 = vst.msk [vmem:[#allocation2 + $0x40] sm:$0xf] %vm3520_vm3, %v3457_v16 }
 0xb26   : > { %v3483_v28 = vpop.permute.xlu1 %3482  ;;  %v3461_v9 = vpop.permute.xlu0 %3460 }
 0xb27   : > { %v8302_v56 = vpop.f32.mrf.mxu0  ;;  %3550 = vst.msk [vmem:[#allocation2 + $0x74] sm:$0xf] %vm3520_vm3, %v3483_v28  ;;  %3539 = vst.msk [vmem:[#allocation2 + $0x48] sm:$0xf] %vm3520_vm3, %v3461_v9 }
 0xb28   : > { %v7335_v33 = vpack.c.bf16 %v8302_v56, %v8302_v56 }
 0xb29   : > { %v5768_v53 = vpop.f32.mrf.mxu0 }
 0xb2a   : > { %6166 = vrot.lane.b32.xlu0 %v7335_v33, %s9089_s30  ;;  %v3487_v20 = vpop.permute.xlu1 %3486  ;;  %v4826_v17 = vpop.permute.xlu0 %4825  ;;  %v7333_v29 = vpack.c.bf16 %v5768_v53, %v5768_v53 }
 0xb2b   : > { %v8303_v27 = vpop.f32.mrf.mxu0  ;;  %3552 = vst.msk [vmem:[#allocation2 + $0x7c] sm:$0xf] %vm3520_vm3, %v3487_v20 }
 0xb2c   : > { %4906 = vst.msk [vmem:[#allocation2 + $0x40] sm:$0xf] %vm4889_vm4, %v4826_v17  ;;  %v7336_v30 = vpack.c.bf16 %v8303_v27, %v8303_v27 }
 0xb2d   : > { %v5771_v7 = vpop.f32.mrf.mxu0 }
 0xb2e   : > { %6162 = vrot.lane.b32.xlu0 %v7333_v29, %s9089_s30  ;;  %6168 = vrot.lane.b32.xlu1 %v7336_v30, %s9089_s30  ;;  %v4852_v13 = vpop.permute.xlu1 %4851  ;;  %v4830_v51 = vpop.permute.xlu0 %4829  ;;  %v7334_v6 = vpack.c.bf16 %v5771_v7, %v5771_v7 }
 0xb2f   : > { %v8306_v60 = vpop.f32.mrf.mxu0  ;;  %4919 = vst.msk [vmem:[#allocation2 + $0x74] sm:$0xf] %vm4889_vm4, %v4852_v13  ;;  %4908 = vst.msk [vmem:[#allocation2 + $0x48] sm:$0xf] %vm4889_vm4, %v4830_v51 }
 0xb30   : > { %v7339_v12 = vpack.c.bf16 %v8306_v60, %v8306_v60 }
 0xb31   : > { %v5784_v42 = vpop.f32.mrf.mxu0 }
 0xb32   : > { %6164 = vrot.lane.b32.xlu1 %v7334_v6, %s9089_s30  ;;  %6174 = vrot.lane.b32.xlu0 %v7339_v12, %s9089_s30  ;;  %v3465_v46 = vpop.permute.xlu0 %3464  ;;  %v7337_v10 = vpack.c.bf16 %v5784_v42, %v5784_v42 }
 0xb33   : > { %v8307_v40 = vpop.f32.mrf.mxu0  ;;  %3541 = vst.msk [vmem:[#allocation2 + $0x50] sm:$0xf] %vm3520_vm3, %v3465_v46 }
 0xb34   : > { %v7340_v11 = vpack.c.bf16 %v8307_v40, %v8307_v40 }
 0xb35   : > { %v5787_v45 = vpop.f32.mrf.mxu0 }
 0xb36   : > { %6170 = vrot.lane.b32.xlu0 %v7337_v10, %s9089_s30  ;;  %6176 = vrot.lane.b32.xlu1 %v7340_v11, %s9089_s30  ;;  %v3469_v47 = vpop.permute.xlu0 %3468  ;;  %v7338_v35 = vpack.c.bf16 %v5787_v45, %v5787_v45  ;;  %v12709_v45 = vld [vmem:[#allocation39_spill] sm:$0xff] }
 0xb37   : > { %3543 = vst.msk [vmem:[#allocation2 + $0x58] sm:$0xf] %vm3520_vm3, %v3469_v47  ;;  %v7331_v47 = vpack.c.bf16 %v12709_v45, %v12709_v45 }
 0xb3a   : > { %6172 = vrot.lane.b32.xlu1 %v7338_v35, %s9089_s30  ;;  %v4834_v21 = vpop.permute.xlu0 %4833 }
 0xb3b   : > { %4910 = vst.msk [vmem:[#allocation2 + $0x50] sm:$0xf] %vm4889_vm4, %v4834_v21 }
 0xb3e   : > { %v4838_v4 = vpop.permute.xlu0 %4837 }
 0xb3f   : > { %4912 = vst.msk [vmem:[#allocation2 + $0x58] sm:$0xf] %vm4889_vm4, %v4838_v4 }
 0xb42   : > { %v3473_v34 = vpop.permute.xlu0 %3472 }
 0xb43   : > { %3545 = vst.msk [vmem:[#allocation2 + $0x60] sm:$0xf] %vm3520_vm3, %v3473_v34 }
 0xb46   : > { %v3477_v63 = vpop.permute.xlu0 %3476 }
 0xb47   : > { %3547 = vst.msk [vmem:[#allocation2 + $0x68] sm:$0xf] %vm3520_vm3, %v3477_v63  ;;  %v12710_v63 = vld [vmem:[#allocation28_spill] sm:$0xff] }
 0xb4a   : > { %v4842_v18 = vpop.permute.xlu0 %4841 }
 0xb4b   : > { %4914 = vst.msk [vmem:[#allocation2 + $0x60] sm:$0xf] %vm4889_vm4, %v4842_v18  ;;  %v7332_v18 = vpack.c.bf16 %v12710_v63, %v12710_v63 }
 0xb4e   : > { %v4846_v58 = vpop.permute.xlu0 %4845 }
 0xb4f   : > { %4916 = vst.msk [vmem:[#allocation2 + $0x68] sm:$0xf] %vm4889_vm4, %v4846_v58 }
 0xb52   : > { %v3481_v50 = vpop.permute.xlu0 %3480 }
 0xb53   : > { %3549 = vst.msk [vmem:[#allocation2 + $0x70] sm:$0xf] %vm3520_vm3, %v3481_v50 }
 0xb56   : > { %v3485_v26 = vpop.permute.xlu0 %3484 }
 0xb57   : > { %3551 = vst.msk [vmem:[#allocation2 + $0x78] sm:$0xf] %vm3520_vm3, %v3485_v26 }
 0xb59   : > { %v8318_v19 = vpop.f32.mrf.mxu1 }
 0xb5a   : > { %v4850_v0 = vpop.permute.xlu0 %4849  ;;  %v7343_v36 = vpack.c.bf16 %v8318_v19, %v8318_v19 }
 0xb5b   : > { %4918 = vst.msk [vmem:[#allocation2 + $0x70] sm:$0xf] %vm4889_vm4, %v4850_v0  ;;  %v5857_v23 = vpop.f32.mrf.mxu1 }
 0xb5c   : > { %6182 = vrot.lane.b32.xlu0 %v7343_v36, %s9089_s30  ;;  %v7341_v49 = vpack.c.bf16 %v5857_v23, %v5857_v23 }
 0xb5d   : > { %v8319_v55 = vpop.f32.mrf.mxu1 }
 0xb5e   : > { %v7344_v52 = vpack.c.bf16 %v8319_v55, %v8319_v55 }
 0xb5f   : > { %v5860_v32 = vpop.f32.mrf.mxu1 }
 0xb60   : > { %6178 = vrot.lane.b32.xlu0 %v7341_v49, %s9089_s30  ;;  %6184 = vrot.lane.b32.xlu1 %v7344_v52, %s9089_s30  ;;  %v7342_v8 = vpack.c.bf16 %v5860_v32, %v5860_v32 }
 0xb61   : > { %v8322_v24 = vpop.f32.mrf.mxu1 }
 0xb62   : > { %v7347_v62 = vpack.c.bf16 %v8322_v24, %v8322_v24 }
 0xb63   : > { %v5873_v61 = vpop.f32.mrf.mxu1 }
 0xb64   : > { %6180 = vrot.lane.b32.xlu1 %v7342_v8, %s9089_s30  ;;  %6190 = vrot.lane.b32.xlu0 %v7347_v62, %s9089_s30  ;;  %v7345_v48 = vpack.c.bf16 %v5873_v61, %v5873_v61 }
 0xb65   : > { %v8323_v25 = vpop.f32.mrf.mxu1 }
 0xb66   : > { %v7348_v39 = vpack.c.bf16 %v8323_v25, %v8323_v25 }
 0xb67   : > { %v5876_v59 = vpop.f32.mrf.mxu1 }
 0xb68   : > { %6186 = vrot.lane.b32.xlu0 %v7345_v48, %s9089_s30  ;;  %6192 = vrot.lane.b32.xlu1 %v7348_v39, %s9089_s30  ;;  %v7346_v37 = vpack.c.bf16 %v5876_v59, %v5876_v59 }
 0xb69   : > { %v8334_v14 = vpop.f32.mrf.mxu0 }
 0xb6a   : > { %v7351_v15 = vpack.c.bf16 %v8334_v14, %v8334_v14 }
 0xb6b   : > { %v5946_v41 = vpop.f32.mrf.mxu0 }
 0xb6c   : > { %6188 = vrot.lane.b32.xlu1 %v7346_v37, %s9089_s30  ;;  %6198 = vrot.lane.b32.xlu0 %v7351_v15, %s9089_s30  ;;  %v7349_v43 = vpack.c.bf16 %v5946_v41, %v5946_v41 }
 0xb6d   : > { %v8335_v44 = vpop.f32.mrf.mxu0 }
 0xb6e   : > { %v7352_v38 = vpack.c.bf16 %v8335_v44, %v8335_v44 }
 0xb6f   : > { %v5949_v31 = vpop.f32.mrf.mxu0 }
 0xb70   : > { %6194 = vrot.lane.b32.xlu0 %v7349_v43, %s9089_s30  ;;  %6200 = vrot.lane.b32.xlu1 %v7352_v38, %s9089_s30  ;;  %v7350_v1 = vpack.c.bf16 %v5949_v31, %v5949_v31 }
 0xb71   : > { %v8338_v22 = vpop.f32.mrf.mxu0 }
 0xb72   : > { %v7355_v57 = vpack.c.bf16 %v8338_v22, %v8338_v22 }
 0xb73   : > { %v5962_v5 = vpop.f32.mrf.mxu0 }
 0xb74   : > { %6196 = vrot.lane.b32.xlu1 %v7350_v1, %s9089_s30  ;;  %6206 = vrot.lane.b32.xlu0 %v7355_v57, %s9089_s30  ;;  %v7353_v28 = vpack.c.bf16 %v5962_v5, %v5962_v5 }
 0xb75   : > { %v8339_v16 = vpop.f32.mrf.mxu0 }
 0xb76   : > { %v7356_v2 = vpack.c.bf16 %v8339_v16, %v8339_v16 }
 0xb77   : > { %v5965_v9 = vpop.f32.mrf.mxu0 }
 0xb78   : > { %6202 = vrot.lane.b32.xlu0 %v7353_v28, %s9089_s30  ;;  %6208 = vrot.lane.b32.xlu1 %v7356_v2, %s9089_s30  ;;  %v7354_v3 = vpack.c.bf16 %v5965_v9, %v5965_v9 }
 0xb7c   : > { %6204 = vrot.lane.b32.xlu1 %v7354_v3, %s9089_s30 }
 0xb9c   : > { %v6167_v56 = vpop.permute.xlu0 %6166 }
 0xb9d   : > { %6261 = vst.msk [vmem:[#allocation2 + $0x8] sm:$0xf] %vm6258_vm5, %v6167_v56 }
 0xba0   : > { %v6163_v33 = vpop.permute.xlu0 %6162  ;;  %v6169_v53 = vpop.permute.xlu1 %6168 }
 0xba1   : > { %6259 = vst.msk [vmem:[#allocation2] sm:$0xf] %vm6258_vm5, %v6163_v33  ;;  %6262 = vst.msk [vmem:[#allocation2 + $0xc] sm:$0xf] %vm6258_vm5, %v6169_v53 }
 0xba4   : > { %v6175_v54 = vpop.permute.xlu0 %6174  ;;  %v6165_v20 = vpop.permute.xlu1 %6164 }
 0xba5   : > { %6265 = vst.msk [vmem:[#allocation2 + $0x18] sm:$0xf] %vm6258_vm5, %v6175_v54  ;;  %6260 = vst.msk [vmem:[#allocation2 + $0x4] sm:$0xf] %vm6258_vm5, %v6165_v20 }
 0xba8   : > { %v6171_v17 = vpop.permute.xlu0 %6170  ;;  %v6177_v27 = vpop.permute.xlu1 %6176  ;;  %v8553_v7 = vld [vmem:[#allocation2 + $0x8] sm:$0xff]  }
 0xba9   : > { %6263 = vst.msk [vmem:[#allocation2 + $0x10] sm:$0xf] %vm6258_vm5, %v6171_v17  ;;  %6266 = vst.msk [vmem:[#allocation2 + $0x1c] sm:$0xf] %vm6258_vm5, %v6177_v27 }
 0xbac   : > { %v6173_v29 = vpop.permute.xlu1 %6172  ;;  %v8552_v30 = vld [vmem:[#allocation2] sm:$0xff]  }
 0xbad   : > { %6264 = vst.msk [vmem:[#allocation2 + $0x14] sm:$0xf] %vm6258_vm5, %v6173_v29  ;;  %8372 = vmatprep.mubr.bf16.mxu0 %v8552_v30  ;;  %v12246_v29 = vld [vmem:[%s12310_s4] ss:$0 sm:$0xff] }
 0xbae   : > { %8373 = vmatmul.mubr.bf16.vlgmr.msra.gmra.mxu0 %v8553_v7 }
 0xbaf   : > { %v8350_v13 = vpop.f32.mrf.mxu1 }
 0xbb0   : > { %v7359_v51 = vpack.c.bf16 %v8350_v13, %v8350_v13  ;;  %v8555_v10 = vld [vmem:[#allocation2 + $0x18] sm:$0xff]  }
 0xbb1   : > { %v6035_v60 = vpop.f32.mrf.mxu1 }
 0xbb2   : > { %6214 = vrot.lane.b32.xlu0 %v7359_v51, %s9089_s30  ;;  %v7357_v12 = vpack.c.bf16 %v6035_v60, %v6035_v60 }
 0xbb3   : > { %v8351_v6 = vpop.f32.mrf.mxu1 }
 0xbb4   : > { %v7360_v42 = vpack.c.bf16 %v8351_v6, %v8351_v6  ;;  %v8554_v46 = vld [vmem:[#allocation2 + $0x10] sm:$0xff]  }
 0xbb5   : > { %v6038_v40 = vpop.f32.mrf.mxu1  ;;  %8376 = vmatprep.mubr.bf16.mxu0 %v8554_v46 }
 0xbb6   : > { %6210 = vrot.lane.b32.xlu0 %v7357_v12, %s9089_s30  ;;  %6216 = vrot.lane.b32.xlu1 %v7360_v42, %s9089_s30  ;;  %v7358_v35 = vpack.c.bf16 %v6038_v40, %v6038_v40 }
 0xbb7   : > { %8377 = vmatmul.mubr.bf16.gmra.mxu0 %v8555_v10  ;;  %v8354_v11 = vpop.f32.mrf.mxu1 }
 0xbb8   : > { %v7363_v50 = vpack.c.bf16 %v8354_v11, %v8354_v11 }
 0xbb9   : > { %v6051_v21 = vpop.f32.mrf.mxu1 }
 0xbba   : > { %4853 = vrot.lane.b32.xlu0 %v7331_v47, %s9090_s7  ;;  %6212 = vrot.lane.b32.xlu1 %v7358_v35, %s9089_s30  ;;  %v7361_v34 = vpack.c.bf16 %v6051_v21, %v6051_v21 }
 0xbbb   : > { %v8355_v4 = vpop.f32.mrf.mxu1 }
 0xbbc   : > { %v7364_v19 = vpack.c.bf16 %v8355_v4, %v8355_v4 }
 0xbbd   : > { %v6054_v58 = vpop.f32.mrf.mxu1 }
 0xbbe   : > { %6218 = vrot.lane.b32.xlu0 %v7361_v34, %s9089_s30  ;;  %4855 = vrot.lane.b32.xlu1 %v7332_v18, %s9090_s7  ;;  %v7362_v26 = vpack.c.bf16 %v6054_v58, %v6054_v58  ;;  %s12255_s7 = scalar_lea.vmem %s12311_s5, %s7235_s6 }
 0xbc2   : > { %6222 = vrot.lane.b32.xlu0 %v7363_v50, %s9089_s30  ;;  %6220 = vrot.lane.b32.xlu1 %v7362_v26, %s9089_s30 }
 0xbc6   : > { %6224 = vrot.lane.b32.xlu1 %v7364_v19, %s9089_s30 }
 0xbce   : > { %v6183_v0 = vpop.permute.xlu0 %6182 }
 0xbcf   : > { %6269 = vst.msk [vmem:[#allocation2 + $0x28] sm:$0xf] %vm6258_vm5, %v6183_v0 }
 0xbd2   : > { %v6179_v36 = vpop.permute.xlu0 %6178  ;;  %v6185_v23 = vpop.permute.xlu1 %6184 }
 0xbd3   : > { %6267 = vst.msk [vmem:[#allocation2 + $0x20] sm:$0xf] %vm6258_vm5, %v6179_v36  ;;  %6270 = vst.msk [vmem:[#allocation2 + $0x2c] sm:$0xf] %vm6258_vm5, %v6185_v23 }
 0xbd6   : > { %v6191_v55 = vpop.permute.xlu0 %6190  ;;  %v6181_v49 = vpop.permute.xlu1 %6180 }
 0xbd7   : > { %6273 = vst.msk [vmem:[#allocation2 + $0x38] sm:$0xf] %vm6258_vm5, %v6191_v55  ;;  %6268 = vst.msk [vmem:[#allocation2 + $0x24] sm:$0xf] %vm6258_vm5, %v6181_v49 }
 0xbda   : > { %v6187_v52 = vpop.permute.xlu0 %6186  ;;  %v6193_v32 = vpop.permute.xlu1 %6192  ;;  %v8557_v61 = vld [vmem:[#allocation2 + $0x28] sm:$0xff]  }
 0xbdb   : > { %6271 = vst.msk [vmem:[#allocation2 + $0x30] sm:$0xf] %vm6258_vm5, %v6187_v52  ;;  %6274 = vst.msk [vmem:[#allocation2 + $0x3c] sm:$0xf] %vm6258_vm5, %v6193_v32 }
 0xbde   : > { %v6199_v24 = vpop.permute.xlu0 %6198  ;;  %v6189_v8 = vpop.permute.xlu1 %6188  ;;  %v8556_v62 = vld [vmem:[#allocation2 + $0x20] sm:$0xff]  }
 0xbdf   : > { %6277 = vst.msk [vmem:[#allocation2 + $0x48] sm:$0xf] %vm6258_vm5, %v6199_v24  ;;  %6272 = vst.msk [vmem:[#allocation2 + $0x34] sm:$0xf] %vm6258_vm5, %v6189_v8  ;;  %8380 = vmatprep.mubr.bf16.mxu0 %v8556_v62 }
 0xbe0   : > { %8381 = vmatmul.mubr.bf16.gmra.mxu0 %v8557_v61 }
 0xbe2   : > { %v6195_v25 = vpop.permute.xlu0 %6194  ;;  %v6201_v48 = vpop.permute.xlu1 %6200  ;;  %v8559_v15 = vld [vmem:[#allocation2 + $0x38] sm:$0xff]  }
 0xbe3   : > { %6275 = vst.msk [vmem:[#allocation2 + $0x40] sm:$0xf] %vm6258_vm5, %v6195_v25  ;;  %6278 = vst.msk [vmem:[#allocation2 + $0x4c] sm:$0xf] %vm6258_vm5, %v6201_v48 }
 0xbe6   : > { %v6207_v39 = vpop.permute.xlu0 %6206  ;;  %v6197_v59 = vpop.permute.xlu1 %6196  ;;  %v8558_v14 = vld [vmem:[#allocation2 + $0x30] sm:$0xff]  }
 0xbe7   : > { %6281 = vst.msk [vmem:[#allocation2 + $0x58] sm:$0xf] %vm6258_vm5, %v6207_v39  ;;  %6276 = vst.msk [vmem:[#allocation2 + $0x44] sm:$0xf] %vm6258_vm5, %v6197_v59  ;;  %8384 = vmatprep.mubr.bf16.mxu0 %v8558_v14 }
 0xbe8   : > { %8385 = vmatmul.mubr.bf16.gmra.mxu0 %v8559_v15 }
 0xbea   : > { %v6203_v37 = vpop.permute.xlu0 %6202  ;;  %v6209_v41 = vpop.permute.xlu1 %6208  ;;  %v8561_v43 = vld [vmem:[#allocation2 + $0x48] sm:$0xff]  }
 0xbeb   : > { %6279 = vst.msk [vmem:[#allocation2 + $0x50] sm:$0xf] %vm6258_vm5, %v6203_v37  ;;  %6282 = vst.msk [vmem:[#allocation2 + $0x5c] sm:$0xf] %vm6258_vm5, %v6209_v41 }
 0xbee   : > { %v6205_v44 = vpop.permute.xlu1 %6204  ;;  %v8560_v38 = vld [vmem:[#allocation2 + $0x40] sm:$0xff]  }
 0xbef   : > { %6280 = vst.msk [vmem:[#allocation2 + $0x54] sm:$0xf] %vm6258_vm5, %v6205_v44  ;;  %8388 = vmatprep.mubr.bf16.mxu0 %v8560_v38 }
 0xbf0   : > { %8389 = vmatmul.mubr.bf16.gmra.mxu0 %v8561_v43 }
 0xbf2   : > { %v8563_v22 = vld [vmem:[#allocation2 + $0x58] sm:$0xff]  }
 0xbf6   : > { %v8562_v31 = vld [vmem:[#allocation2 + $0x50] sm:$0xff]  }
 0xbf7   : > { %8392 = vmatprep.mubr.bf16.mxu0 %v8562_v31 }
 0xbf8   : > { %8393 = vmatmul.mubr.bf16.gmra.mxu0 %v8563_v22 }
 0xc24   : > { %v6215_v57 = vpop.permute.xlu0 %6214 }
 0xc25   : > { %6285 = vst.msk [vmem:[#allocation2 + $0x68] sm:$0xf] %vm6258_vm5, %v6215_v57 }
 0xc28   : > { %v6211_v1 = vpop.permute.xlu0 %6210  ;;  %v6217_v5 = vpop.permute.xlu1 %6216 }
 0xc29   : > { %6283 = vst.msk [vmem:[#allocation2 + $0x60] sm:$0xf] %vm6258_vm5, %v6211_v1  ;;  %6286 = vst.msk [vmem:[#allocation2 + $0x6c] sm:$0xf] %vm6258_vm5, %v6217_v5 }
 0xc2c   : > { %v4854_v16 = vpop.permute.xlu0 %4853  ;;  %v6213_v2 = vpop.permute.xlu1 %6212 }
 0xc2d   : > { %4920 = vst.msk [vmem:[#allocation2 + $0x78] sm:$0xf] %vm4889_vm4, %v4854_v16 }
 0xc2e   : > { %6284 = vst.msk [vmem:[#allocation2 + $0x64] sm:$0xf] %vm6258_vm5, %v6213_v2 }
 0xc30   : > { %v6219_v28 = vpop.permute.xlu0 %6218  ;;  %v4856_v9 = vpop.permute.xlu1 %4855  ;;  %v8565_v53 = vld [vmem:[#allocation2 + $0x68] sm:$0xff]  }
 0xc31   : > { %6287 = vst.msk [vmem:[#allocation2 + $0x70] sm:$0xf] %vm6258_vm5, %v6219_v28 }
 0xc32   : > { %4921 = vst.msk [vmem:[#allocation2 + $0x7c] sm:$0xf] %vm4889_vm4, %v4856_v9 }
 0xc34   : > { %v6223_v3 = vpop.permute.xlu0 %6222  ;;  %v6221_v56 = vpop.permute.xlu1 %6220 }
 0xc35   : > { %6289 = vst.msk [vmem:[#allocation2 + $0x78] sm:$0xf] %vm6258_vm5, %v6223_v3  ;;  %v8564_v33 = vld [vmem:[#allocation2 + $0x60] sm:$0xff]   ;;  %6288 = vst.msk [vmem:[#allocation2 + $0x74] sm:$0xf] %vm6258_vm5, %v6221_v56 }
 0xc36   : > { %8396 = vmatprep.mubr.bf16.mxu0 %v8564_v33 }
 0xc37   : > { %8397 = vmatmul.mubr.bf16.gmra.mxu0 %v8565_v53 }
 0xc38   : > { %v6225_v54 = vpop.permute.xlu1 %6224 }
 0xc39   : > { %6290 = vst.msk [vmem:[#allocation2 + $0x7c] sm:$0xf] %vm6258_vm5, %v6225_v54 }
 0xc3c   : > { %v8566_v20 = vld [vmem:[#allocation2 + $0x70] sm:$0xff]  }
 0xc3d   : > { %8400 = vmatprep.mubr.bf16.mxu0 %v8566_v20 }
 0xc40   : > { %v8567_v17 = vld [vmem:[#allocation2 + $0x78] sm:$0xff]  }
 0xc41   : > { %8401 = vmatmul.mubr.bf16.gmra.mxu0 %v8567_v17 }
 0xc6e   : > { %v8374_v27 = vpop.f32.mrf.mxu0 }
 0xc6f   : > { %v6533_v13 = vadd.f32 %v8374_v27, %v12246_v29 }
 0xc70   : > { %v6524_v30 = vpop.f32.mrf.mxu0 }
 0xc71   : > { %v6525_v6 = vadd.f32 %v12246_v29, %v6524_v30 }
 0xc72   : > { %v8375_v7 = vpop.f32.mrf.mxu0 }
 0xc73   : > { %v6536_v51 = vadd.f32 %v8375_v7, %v12246_v29 }
 0xc74   : > { %v6527_v60 = vpop.f32.mrf.mxu0 }
 0xc75   : > { %v7405_v12 = vpack.c.bf16 %v6536_v51, %v6533_v13  ;;  %v6528_v42 = vadd.f32 %v12246_v29, %v6527_v60 }
 0xc77   : > { %v8378_v46 = vpop.f32.mrf.mxu0  ;;  %7477 = vst [vmem:[%s12255_s7 + $0x8] sm:$0xff] %v7405_v12   ;;  %v7400_v40 = vpack.c.bf16 %v6528_v42, %v6525_v6 }
 0xc78   : > { %v6549_v45 = vadd.f32 %v8378_v46, %v12246_v29 }
 0xc79   : > { %v6540_v10 = vpop.f32.mrf.mxu0  ;;  %7401 = vst [vmem:[%s12255_s7] sm:$0xff] %v7400_v40  }
 0xc7a   : > { %v6541_v21 = vadd.f32 %v12246_v29, %v6540_v10 }
 0xc7b   : > { %v8379_v11 = vpop.f32.mrf.mxu0 }
 0xc7c   : > { %v6552_v47 = vadd.f32 %v8379_v11, %v12246_v29 }
 0xc7d   : > { %v6543_v35 = vpop.f32.mrf.mxu0 }
 0xc7e   : > { %v7415_v4 = vpack.c.bf16 %v6552_v47, %v6549_v45  ;;  %v6544_v34 = vadd.f32 %v12246_v29, %v6543_v35 }
 0xc80   : > { %7479 = vst [vmem:[%s12255_s7 + $0x18] sm:$0xff] %v7415_v4   ;;  %v7410_v63 = vpack.c.bf16 %v6544_v34, %v6541_v21 }
 0xc82   : > { %7478 = vst [vmem:[%s12255_s7 + $0x10] sm:$0xff] %v7410_v63  }
 0xca0   : > { %v8382_v18 = vpop.f32.mrf.mxu0 }
 0xca1   : > { %v6565_v26 = vadd.f32 %v8382_v18, %v12246_v29 }
 0xca2   : > { %v6556_v58 = vpop.f32.mrf.mxu0 }
 0xca3   : > { %v6557_v36 = vadd.f32 %v12246_v29, %v6556_v58 }
 0xca4   : > { %v8383_v50 = vpop.f32.mrf.mxu0 }
 0xca5   : > { %v6568_v19 = vadd.f32 %v8383_v50, %v12246_v29 }
 0xca6   : > { %v6559_v0 = vpop.f32.mrf.mxu0 }
 0xca7   : > { %v7425_v23 = vpack.c.bf16 %v6568_v19, %v6565_v26  ;;  %v6560_v55 = vadd.f32 %v12246_v29, %v6559_v0 }
 0xca8   : > { %v8386_v49 = vpop.f32.mrf.mxu0 }
 0xca9   : > { %7481 = vst [vmem:[%s12255_s7 + $0x28] sm:$0xff] %v7425_v23   ;;  %v7420_v52 = vpack.c.bf16 %v6560_v55, %v6557_v36  ;;  %v6581_v8 = vadd.f32 %v8386_v49, %v12246_v29 }
 0xcaa   : > { %v6572_v32 = vpop.f32.mrf.mxu0 }
 0xcab   : > { %7480 = vst [vmem:[%s12255_s7 + $0x20] sm:$0xff] %v7420_v52   ;;  %v6573_v25 = vadd.f32 %v12246_v29, %v6572_v32 }
 0xcac   : > { %v8387_v24 = vpop.f32.mrf.mxu0 }
 0xcad   : > { %v6584_v62 = vadd.f32 %v8387_v24, %v12246_v29 }
 0xcae   : > { %v6575_v61 = vpop.f32.mrf.mxu0 }
 0xcaf   : > { %v7435_v48 = vpack.c.bf16 %v6584_v62, %v6581_v8  ;;  %v6576_v39 = vadd.f32 %v12246_v29, %v6575_v61 }
 0xcb0   : > { %v8390_v59 = vpop.f32.mrf.mxu0 }
 0xcb1   : > { %7483 = vst [vmem:[%s12255_s7 + $0x38] sm:$0xff] %v7435_v48   ;;  %v7430_v14 = vpack.c.bf16 %v6576_v39, %v6573_v25  ;;  %v6597_v41 = vadd.f32 %v8390_v59, %v12246_v29 }
 0xcb2   : > { %v6588_v15 = vpop.f32.mrf.mxu0 }
 0xcb3   : > { %7482 = vst [vmem:[%s12255_s7 + $0x30] sm:$0xff] %v7430_v14   ;;  %v6589_v43 = vadd.f32 %v12246_v29, %v6588_v15 }
 0xcb4   : > { %v8391_v37 = vpop.f32.mrf.mxu0 }
 0xcb5   : > { %v6600_v44 = vadd.f32 %v8391_v37, %v12246_v29 }
 0xcb6   : > { %v6591_v38 = vpop.f32.mrf.mxu0 }
 0xcb7   : > { %v7445_v31 = vpack.c.bf16 %v6600_v44, %v6597_v41  ;;  %v6592_v22 = vadd.f32 %v12246_v29, %v6591_v38 }
 0xcb8   : > { %v8394_v57 = vpop.f32.mrf.mxu0 }
 0xcb9   : > { %7485 = vst [vmem:[%s12255_s7 + $0x48] sm:$0xff] %v7445_v31   ;;  %v7440_v1 = vpack.c.bf16 %v6592_v22, %v6589_v43  ;;  %v6613_v2 = vadd.f32 %v8394_v57, %v12246_v29 }
 0xcba   : > { %v6604_v5 = vpop.f32.mrf.mxu0 }
 0xcbb   : > { %7484 = vst [vmem:[%s12255_s7 + $0x40] sm:$0xff] %v7440_v1   ;;  %v6605_v3 = vadd.f32 %v12246_v29, %v6604_v5 }
 0xcbc   : > { %v8395_v16 = vpop.f32.mrf.mxu0 }
 0xcbd   : > { %v6616_v28 = vadd.f32 %v8395_v16, %v12246_v29 }
 0xcbe   : > { %v6607_v9 = vpop.f32.mrf.mxu0 }
 0xcbf   : > { %v7455_v56 = vpack.c.bf16 %v6616_v28, %v6613_v2  ;;  %v6608_v33 = vadd.f32 %v12246_v29, %v6607_v9 }
 0xcc1   : > { %7487 = vst [vmem:[%s12255_s7 + $0x58] sm:$0xff] %v7455_v56   ;;  %v7450_v53 = vpack.c.bf16 %v6608_v33, %v6605_v3 }
 0xcc3   : > { %7486 = vst [vmem:[%s12255_s7 + $0x50] sm:$0xff] %v7450_v53  }
 0xcf7   : > { %v8398_v54 = vpop.f32.mrf.mxu0 }
 0xcf8   : > { %v6629_v27 = vadd.f32 %v8398_v54, %v12246_v29 }
 0xcf9   : > { %v6620_v20 = vpop.f32.mrf.mxu0 }
 0xcfa   : > { %v6621_v13 = vadd.f32 %v12246_v29, %v6620_v20 }
 0xcfb   : > { %v8399_v17 = vpop.f32.mrf.mxu0 }
 0xcfc   : > { %v6632_v30 = vadd.f32 %v8399_v17, %v12246_v29 }
 0xcfd   : > { %v6623_v7 = vpop.f32.mrf.mxu0 }
 0xcfe   : > { %v7465_v51 = vpack.c.bf16 %v6632_v30, %v6629_v27  ;;  %v6624_v60 = vadd.f32 %v12246_v29, %v6623_v7 }
 0xd00   : > { %7489 = vst [vmem:[%s12255_s7 + $0x68] sm:$0xff] %v7465_v51   ;;  %v7460_v6 = vpack.c.bf16 %v6624_v60, %v6621_v13 }
 0xd01   : > { %v8402_v12 = vpop.f32.mrf.mxu0 }
 0xd02   : > { %7488 = vst [vmem:[%s12255_s7 + $0x60] sm:$0xff] %v7460_v6   ;;  %v6645_v40 = vadd.f32 %v8402_v12, %v12246_v29 }
 0xd03   : > { %v6636_v42 = vpop.f32.mrf.mxu0 }
 0xd04   : > { %v6637_v45 = vadd.f32 %v12246_v29, %v6636_v42 }
 0xd05   : > { %v8403_v46 = vpop.f32.mrf.mxu0 }
 0xd06   : > { %v6648_v10 = vadd.f32 %v8403_v46, %v12246_v29 }
 0xd07   : > { %v6639_v11 = vpop.f32.mrf.mxu0 }
 0xd08   : > { %v7475_v47 = vpack.c.bf16 %v6648_v10, %v6645_v40  ;;  %v6640_v35 = vadd.f32 %v12246_v29, %v6639_v11 }
 0xd0a   : > { %7491 = vst [vmem:[%s12255_s7 + $0x78] sm:$0xff] %v7475_v47   ;;  %v7470_v21 = vpack.c.bf16 %v6640_v35, %v6637_v45 }
 0xd0c   : > { %7490 = vst [vmem:[%s12255_s7 + $0x70] sm:$0xff] %v7470_v21  }
 0xd0d PF: > { %s15_s18 = sadd.s32 1, %s9086_s18  }
 0xd0e   : > { %p12_p4 = scmp.ge.s32.totalorder %s15_s18, 4  }
 0xd10   :  { %14 = sbr.rel (!%p12_p4) target bundleno = 1 (0x1), region = 70 }

</bundles_post_ra>
